<compile_context>
chip_gen: v7x
topology: tpu7x:2x2x1
jax: 0.10.0
libtpu: 0.0.40
codegen_flags: <defaults>
</compile_context>

<pallas_src>
import functools

import jax
import jax.numpy as jnp
from jax import lax
from jax.experimental import pallas as pl
from jax.experimental.pallas import tpu as pltpu


# ---------------------------------------------------------------------------
# Pallas kernel: fused bf16 GEMM + BatchNorm/bias epilogue (+ optional ReLU)
# ---------------------------------------------------------------------------
def _fused_linear_kernel(x_ref, w_ref, ss_ref, o_ref, *, relu):
    y = jnp.dot(x_ref[...], w_ref[...], preferred_element_type=jnp.float32)
    ss = ss_ref[...]                      # (2, tn) f32: row0 = scale, row1 = shift
    y = y * ss[0:1, :] + ss[1:2, :]
    if relu:
        y = jnp.maximum(y, 0.0)
    o_ref[...] = y


def _round_up(x, m):
    return (x + m - 1) // m * m


def _choose_tm(M):
    Mr = _round_up(M, 8)
    return Mr if Mr <= 256 else 256


def pallas_fused_linear(x, layer, *, relu):
    """x: (M, K) f32.  layer: {'w': (Kp, Np) bf16, 'ss': (2, Np) f32, 'n': N}."""
    w, ss, N = layer["w"], layer["ss"], layer["n"]
    Kp, Np = w.shape
    M, K = x.shape
    tm = _choose_tm(M)
    Mp = _round_up(M, tm)
    tn = Np                                    # N <= 384 here -> single column tile
    xp = jnp.pad(x, ((0, Mp - M), (0, Kp - K))).astype(jnp.bfloat16)

    cost = pl.CostEstimate(
        flops=2 * Mp * Kp * Np,
        transcendentals=0,
        bytes_accessed=Mp * Kp * 2 + Kp * Np * 2 + 2 * Np * 4 + Mp * Np * 4)

    out = pl.pallas_call(
        functools.partial(_fused_linear_kernel, relu=relu),
        out_shape=jax.ShapeDtypeStruct((Mp, Np), jnp.float32),
        grid_spec=pltpu.PrefetchScalarGridSpec(
            num_scalar_prefetch=0,
            grid=(Mp // tm,),
            in_specs=[
                pl.BlockSpec((tm, Kp), lambda i: (i, 0)),
                pl.BlockSpec((Kp, tn), lambda i: (0, 0)),
                pl.BlockSpec((2, tn), lambda i: (0, 0)),
            ],
            out_specs=pl.BlockSpec((tm, tn), lambda i: (i, 0)),
        ),
        compiler_params=pltpu.CompilerParams(
            dimension_semantics=("parallel",)),
        cost_estimate=cost,
    )(xp, w, ss)
    return out[:M, :N]


def ref_fused_linear(x, layer, *, relu):
    """Same math path (bf16 GEMM, f32 accum/epilogue) in plain XLA."""
    w, ss, N = layer["w"], layer["ss"], layer["n"]
    Kp = w.shape[0]
    M, K = x.shape
    xp = jnp.pad(x, ((0, 0), (0, Kp - K))).astype(jnp.bfloat16)
    y = jnp.dot(xp, w, preferred_element_type=jnp.float32)
    y = y * ss[0:1, :] + ss[1:2, :]
    if relu:
        y = jnp.maximum(y, 0.0)
    return y[:, :N]


# ---------------------------------------------------------------------------
# Glue: NHWC im2col, NHWC maxpool, BN folding, one-time parameter preprocessing
# ---------------------------------------------------------------------------
def im2col_nhwc(x, k):
    """x: (N, H, W, C) -> ((N*OH*OW, k*k*C), OH, OW); columns ordered (kh, kw, c)."""
    N, H, W, C = x.shape
    OH, OW = H - k + 1, W - k + 1
    cols = jnp.concatenate(
        [x[:, i:i + OH, j:j + OW, :] for i in range(k) for j in range(k)],
        axis=-1)
    return cols.reshape(N * OH * OW, k * k * C), OH, OW


def maxpool2_nhwc(x):
    N, H, W, C = x.shape
    return x.reshape(N, H // 2, 2, W // 2, 2, C).max(axis=(2, 4))


def bn_fold(bias, gamma, beta, mean, var, eps=1e-5):
    scale = gamma / jnp.sqrt(var + eps)
    shift = scale * (bias - mean) + beta
    return scale, shift


def _pack_layer(w, scale, shift, extra=None):
    K, N = w.shape
    Kp, Np = _round_up(K, 128), _round_up(N, 128)
    wp = jnp.pad(w, ((0, Kp - K), (0, Np - N))).astype(jnp.bfloat16)
    ss = jnp.pad(jnp.stack([scale, shift]).astype(jnp.float32),
                 ((0, 0), (0, Np - N)))
    d = dict(w=wp, ss=ss, n=N)
    if extra:
        d.update(extra)
    return d


def preprocess_params(params):
    """One-time: fold BN, transpose/reorder weights, pad, cast to bf16."""
    layers = {}
    for name in ("conv1", "conv2", "conv3"):
        p = params[name]
        OC, C, k, _ = p["w"].shape
        # (OC, C, kh, kw) -> (kh, kw, C, OC) -> (kh*kw*C, OC)  [matches im2col_nhwc]
        w = p["w"].transpose(2, 3, 1, 0).reshape(k * k * C, OC)
        scale, shift = bn_fold(p["b"], p["gamma"], p["beta"], p["mean"], p["var"])
        layers[name] = _pack_layer(w, scale, shift, extra=dict(ksize=k))

    p = params["fc1"]
    OC, K = p["w"].shape                        # (350, 2700), cols in (c, h, w) order
    # Fold torch's NCHW .view(-1, 300*3*3) into the weight so the NHWC (h, w, c)
    # flatten feeds fc1 directly.
    w = p["w"].reshape(OC, 300, 3, 3).transpose(2, 3, 1, 0).reshape(K, OC)
    scale, shift = bn_fold(p["b"], p["gamma"], p["beta"], p["mean"], p["var"])
    layers["fc1"] = _pack_layer(w, scale, shift)

    p = params["fc2"]
    layers["fc2"] = _pack_layer(p["w"].T, jnp.ones_like(p["b"]), p["b"])
    return layers


# ---------------------------------------------------------------------------
# Model: BS_Net_German.forward_baseline_german (eval mode)
# ---------------------------------------------------------------------------
def forward(layers, x, linear_fn):
    """x: (N, 3, H, W) NCHW f32 (torch convention)."""
    x = x.transpose(0, 2, 3, 1)                             # NHWC end-to-end
    for name in ("conv1", "conv2", "conv3"):
        lp = layers[name]
        n = x.shape[0]
        cols, OH, OW = im2col_nhwc(x, lp["ksize"])
        y = linear_fn(cols, lp, relu=True)                  # conv + BN + ReLU
        x = maxpool2_nhwc(y.reshape(n, OH, OW, lp["n"]))
        # conv_drop: identity in eval mode
    x = x.reshape(x.shape[0], -1)                           # (N, 3*3*300), (h,w,c)
    x = linear_fn(x, layers["fc1"], relu=True)              # fc1 + BN1d + ReLU
    # fc_drop: identity in eval mode
    x = linear_fn(x, layers["fc2"], relu=False)             # fc2
    return x


def torch_reference_forward(params, x):
    """Direct NCHW f32 re-implementation of forward_baseline_german (eval)."""
    def bn(y, p, c_axis):
        shape = [1] * y.ndim
        shape[c_axis] = -1
        return (p["gamma"].reshape(shape) * (y - p["mean"].reshape(shape))
                / jnp.sqrt(p["var"].reshape(shape) + 1e-5)
                + p["beta"].reshape(shape))

    def pool(y):
        N, C, H, W = y.shape
        return y.reshape(N, C, H // 2, 2, W // 2, 2).max(axis=(3, 5))

    for name in ("conv1", "conv2", "conv3"):
        p = params[name]
        y = lax.conv_general_dilated(
            x, p["w"], window_strides=(1, 1), padding="VALID",
            dimension_numbers=("NCHW", "OIHW", "NCHW"))
        y = y + p["b"][None, :, None, None]
        x = pool(jnp.maximum(bn(y, p, 1), 0.0))
    x = x.reshape(x.shape[0], -1)
    p = params["fc1"]
    x = jnp.maximum(bn(x @ p["w"].T + p["b"], p, 1), 0.0)
    p = params["fc2"]
    return x @ p["w"].T + p["b"]


def init_params(num_classes=48):
    keys = iter(jax.random.split(jax.random.PRNGKey(42), 64))

    def conv_p(cin, cout, k):
        return dict(
            w=0.05 * jax.random.normal(next(keys), (cout, cin, k, k), jnp.float32),
            b=0.05 * jax.random.normal(next(keys), (cout,), jnp.float32),
            gamma=1.0 + 0.1 * jax.random.normal(next(keys), (cout,), jnp.float32),
            beta=0.1 * jax.random.normal(next(keys), (cout,), jnp.float32),
            mean=0.1 * jax.random.normal(next(keys), (cout,), jnp.float32),
            var=jnp.abs(1.0 + 0.1 * jax.random.normal(next(keys), (cout,), jnp.float32)),
        )

    def fc_p(fin, fout, with_bn):
        p = dict(
            w=0.05 * jax.random.normal(next(keys), (fout, fin), jnp.float32),
            b=0.05 * jax.random.normal(next(keys), (fout,), jnp.float32),
        )
        if with_bn:
            p.update(
                gamma=1.0 + 0.1 * jax.random.normal(next(keys), (fout,), jnp.float32),
                beta=0.1 * jax.random.normal(next(keys), (fout,), jnp.float32),
                mean=0.1 * jax.random.normal(next(keys), (fout,), jnp.float32),
                var=jnp.abs(1.0 + 0.1 * jax.random.normal(next(keys), (fout,), jnp.float32)),
            )
        return p

    return dict(
        conv1=conv_p(3, 150, 7),
        conv2=conv_p(150, 200, 4),
        conv3=conv_p(200, 300, 4),
        fc1=fc_p(300 * 3 * 3, 350, True),
        fc2=fc_p(350, num_classes, False),
    )


if __name__ == "__main__":
    params = init_params(num_classes=48)
    layers = preprocess_params(params)

    # Minimum spatial size consistent with the architecture is 48x48
    # (fc1 expects 300*3*3 features after the three conv/pool stages).
    x = jax.random.normal(jax.random.PRNGKey(0), (2, 3, 48, 48), jnp.float32)

    pallas_fwd = jax.jit(lambda inp: forward(layers, inp, pallas_fused_linear))
    out = jax.block_until_ready(pallas_fwd(x))
    assert out.shape == (2, 48), out.shape

    # 1) Same math path (bf16 GEMMs, f32 accum) in plain XLA -> tight tolerance.
    ref = jax.block_until_ready(forward(layers, x, ref_fused_linear))
    assert jnp.allclose(out, ref, rtol=3e-2, atol=3e-2), (
        float(jnp.max(jnp.abs(out - ref))))

    # 2) f32 NCHW torch-semantics reference (validates layout/BN folding);
    #    loose tolerance because the Pallas path runs the GEMMs in bf16.
    ref32 = jax.block_until_ready(torch_reference_forward(params, x))
    assert jnp.allclose(out, ref32, rtol=1e-1, atol=2e-1), (
        float(jnp.max(jnp.abs(out - ref32))))

    print("KERNEL_OK")
</pallas_src>

<mosaic_0001>
module attributes {stable_mosaic.version = 11 : i64} {
  func.func @_fused_linear_kernel(%arg0: i32, %arg1: memref<256x256xbf16, #tpu.memory_space<vmem>>, %arg2: memref<256x256xbf16, #tpu.memory_space<vmem>>, %arg3: memref<2x256xf32, #tpu.memory_space<vmem>>, %arg4: memref<256x256xf32, #tpu.memory_space<vmem>>) attributes {dimension_semantics = [#tpu.dimension_semantics<parallel>], iteration_bounds = array<i64: 14>, scalar_prefetch = 0 : i64, scratch_operands = 0 : i64, tpu.core_type = #tpu.core_type<tc>, window_params = [{transform_indices = @transform_0, window_bounds = array<i64: 256, 256>}, {pipeline_mode = #tpu.pipeline_mode<synchronous>, transform_indices = @transform_1, window_bounds = array<i64: 256, 256>}, {pipeline_mode = #tpu.pipeline_mode<synchronous>, transform_indices = @transform_2, window_bounds = array<i64: 2, 256>}, {transform_indices = @transform_3, window_bounds = array<i64: 256, 256>}]} {
    %c0 = arith.constant 0 : index
    %c0_0 = arith.constant 0 : index
    %0 = vector.load %arg1[%c0, %c0_0] : memref<256x256xbf16, #tpu.memory_space<vmem>>, vector<256x256xbf16>
    %c0_1 = arith.constant 0 : index
    %c0_2 = arith.constant 0 : index
    %1 = vector.load %arg2[%c0_1, %c0_2] : memref<256x256xbf16, #tpu.memory_space<vmem>>, vector<256x256xbf16>
    %cst = arith.constant dense<0.000000e+00> : vector<256x256xf32>
    %2 = tpu.matmul %0, %1, %cst {dimension_numbers = #tpu.dot_dimension_numbers<[1], [0], [0], [1], [0, 0, 1, 1], [], []>} : vector<256x256xbf16>, vector<256x256xbf16>, vector<256x256xf32> -> vector<256x256xf32>
    %c0_3 = arith.constant 0 : index
    %c0_4 = arith.constant 0 : index
    %3 = vector.load %arg3[%c0_3, %c0_4] : memref<2x256xf32, #tpu.memory_space<vmem>>, vector<2x256xf32>
    %4 = vector.extract_strided_slice %3 {offsets = [0, 0], sizes = [1, 256], strides = [1, 1]} : vector<2x256xf32> to vector<1x256xf32>
    %5 = vector.broadcast %4 : vector<1x256xf32> to vector<256x256xf32>
    %6 = arith.mulf %2, %5 : vector<256x256xf32>
    %7 = vector.extract_strided_slice %3 {offsets = [1, 0], sizes = [1, 256], strides = [1, 1]} : vector<2x256xf32> to vector<1x256xf32>
    %8 = vector.broadcast %7 : vector<1x256xf32> to vector<256x256xf32>
    %9 = arith.addf %6, %8 : vector<256x256xf32>
    %cst_5 = arith.constant 0.000000e+00 : f32
    %10 = vector.broadcast %cst_5 : f32 to vector<256x256xf32>
    %11 = arith.maximumf %9, %10 : vector<256x256xf32>
    %c0_6 = arith.constant 0 : index
    %c0_7 = arith.constant 0 : index
    %12 = vector.load %arg4[%c0_6, %c0_7] : memref<256x256xf32, #tpu.memory_space<vmem>>, vector<256x256xf32>
    tpu.vector_store %arg4[%c0_6, %c0_7], %11 {strides = array<i32>} : memref<256x256xf32, #tpu.memory_space<vmem>>, vector<256x256xf32>,
    return
  }
  func.func @transform_0(%arg0: i32) -> (i32, i32) {
    %c0_i32 = arith.constant 0 : i32
    %c0_i32_0 = arith.constant 0 : i32
    return %arg0, %c0_i32 : i32, i32
  }
  func.func @transform_1(%arg0: i32) -> (i32, i32) {
    %c0_i32 = arith.constant 0 : i32
    %c0_i32_0 = arith.constant 0 : i32
    %c0_i32_1 = arith.constant 0 : i32
    return %c0_i32, %c0_i32_0 : i32, i32
  }
  func.func @transform_2(%arg0: i32) -> (i32, i32) {
    %c0_i32 = arith.constant 0 : i32
    %c0_i32_0 = arith.constant 0 : i32
    %c0_i32_1 = arith.constant 0 : i32
    return %c0_i32, %c0_i32_0 : i32, i32
  }
  func.func @transform_3(%arg0: i32) -> (i32, i32) {
    %c0_i32 = arith.constant 0 : i32
    %c0_i32_0 = arith.constant 0 : i32
    return %arg0, %c0_i32 : i32, i32
  }
}

module attributes {stable_mosaic.version = 11 : i64} {
  func.func @_fused_linear_kernel(%arg0: i32, %arg1: memref<256x2432xbf16, #tpu.memory_space<vmem>>, %arg2: memref<2432x256xbf16, #tpu.memory_space<vmem>>, %arg3: memref<2x256xf32, #tpu.memory_space<vmem>>, %arg4: memref<256x256xf32, #tpu.memory_space<vmem>>) attributes {dimension_semantics = [#tpu.dimension_semantics<parallel>], iteration_bounds = array<i64: 3>, scalar_prefetch = 0 : i64, scratch_operands = 0 : i64, tpu.core_type = #tpu.core_type<tc>, window_params = [{transform_indices = @transform_0, window_bounds = array<i64: 256, 2432>}, {pipeline_mode = #tpu.pipeline_mode<synchronous>, transform_indices = @transform_1, window_bounds = array<i64: 2432, 256>}, {pipeline_mode = #tpu.pipeline_mode<synchronous>, transform_indices = @transform_2, window_bounds = array<i64: 2, 256>}, {transform_indices = @transform_3, window_bounds = array<i64: 256, 256>}]} {
    %c0 = arith.constant 0 : index
    %c0_0 = arith.constant 0 : index
    %0 = vector.load %arg1[%c0, %c0_0] : memref<256x2432xbf16, #tpu.memory_space<vmem>>, vector<256x2432xbf16>
    %c0_1 = arith.constant 0 : index
    %c0_2 = arith.constant 0 : index
    %1 = vector.load %arg2[%c0_1, %c0_2] : memref<2432x256xbf16, #tpu.memory_space<vmem>>, vector<2432x256xbf16>
    %cst = arith.constant dense<0.000000e+00> : vector<256x256xf32>
    %2 = tpu.matmul %0, %1, %cst {dimension_numbers = #tpu.dot_dimension_numbers<[1], [0], [0], [1], [0, 0, 1, 1], [], []>} : vector<256x2432xbf16>, vector<2432x256xbf16>, vector<256x256xf32> -> vector<256x256xf32>
    %c0_3 = arith.constant 0 : index
    %c0_4 = arith.constant 0 : index
    %3 = vector.load %arg3[%c0_3, %c0_4] : memref<2x256xf32, #tpu.memory_space<vmem>>, vector<2x256xf32>
    %4 = vector.extract_strided_slice %3 {offsets = [0, 0], sizes = [1, 256], strides = [1, 1]} : vector<2x256xf32> to vector<1x256xf32>
    %5 = vector.broadcast %4 : vector<1x256xf32> to vector<256x256xf32>
    %6 = arith.mulf %2, %5 : vector<256x256xf32>
    %7 = vector.extract_strided_slice %3 {offsets = [1, 0], sizes = [1, 256], strides = [1, 1]} : vector<2x256xf32> to vector<1x256xf32>
    %8 = vector.broadcast %7 : vector<1x256xf32> to vector<256x256xf32>
    %9 = arith.addf %6, %8 : vector<256x256xf32>
    %cst_5 = arith.constant 0.000000e+00 : f32
    %10 = vector.broadcast %cst_5 : f32 to vector<256x256xf32>
    %11 = arith.maximumf %9, %10 : vector<256x256xf32>
    %c0_6 = arith.constant 0 : index
    %c0_7 = arith.constant 0 : index
    %12 = vector.load %arg4[%c0_6, %c0_7] : memref<256x256xf32, #tpu.memory_space<vmem>>, vector<256x256xf32>
    tpu.vector_store %arg4[%c0_6, %c0_7], %11 {strides = array<i32>} : memref<256x256xf32, #tpu.memory_space<vmem>>, vector<256x256xf32>,
    return
  }
  func.func @transform_0(%arg0: i32) -> (i32, i32) {
    %c0_i32 = arith.constant 0 : i32
    %c0_i32_0 = arith.constant 0 : i32
    return %arg0, %c0_i32 : i32, i32
  }
  func.func @transform_1(%arg0: i32) -> (i32, i32) {
    %c0_i32 = arith.constant 0 : i32
    %c0_i32_0 = arith.constant 0 : i32
    %c0_i32_1 = arith.constant 0 : i32
    return %c0_i32, %c0_i32_0 : i32, i32
  }
  func.func @transform_2(%arg0: i32) -> (i32, i32) {
    %c0_i32 = arith.constant 0 : i32
    %c0_i32_0 = arith.constant 0 : i32
    %c0_i32_1 = arith.constant 0 : i32
    return %c0_i32, %c0_i32_0 : i32, i32
  }
  func.func @transform_3(%arg0: i32) -> (i32, i32) {
    %c0_i32 = arith.constant 0 : i32
    %c0_i32_0 = arith.constant 0 : i32
    return %arg0, %c0_i32 : i32, i32
  }
}

module attributes {stable_mosaic.version = 11 : i64} {
  func.func @_fused_linear_kernel(%arg0: i32, %arg1: memref<72x3200xbf16, #tpu.memory_space<vmem>>, %arg2: memref<3200x384xbf16, #tpu.memory_space<vmem>>, %arg3: memref<2x384xf32, #tpu.memory_space<vmem>>, %arg4: memref<72x384xf32, #tpu.memory_space<vmem>>) attributes {dimension_semantics = [#tpu.dimension_semantics<parallel>], iteration_bounds = array<i64: 1>, scalar_prefetch = 0 : i64, scratch_operands = 0 : i64, tpu.core_type = #tpu.core_type<tc>, window_params = [{transform_indices = @transform_0, window_bounds = array<i64: 72, 3200>}, {pipeline_mode = #tpu.pipeline_mode<synchronous>, transform_indices = @transform_1, window_bounds = array<i64: 3200, 384>}, {pipeline_mode = #tpu.pipeline_mode<synchronous>, transform_indices = @transform_2, window_bounds = array<i64: 2, 384>}, {transform_indices = @transform_3, window_bounds = array<i64: 72, 384>}]} {
    %c0 = arith.constant 0 : index
    %c0_0 = arith.constant 0 : index
    %0 = vector.load %arg1[%c0, %c0_0] : memref<72x3200xbf16, #tpu.memory_space<vmem>>, vector<72x3200xbf16>
    %c0_1 = arith.constant 0 : index
    %c0_2 = arith.constant 0 : index
    %1 = vector.load %arg2[%c0_1, %c0_2] : memref<3200x384xbf16, #tpu.memory_space<vmem>>, vector<3200x384xbf16>
    %cst = arith.constant dense<0.000000e+00> : vector<72x384xf32>
    %2 = tpu.matmul %0, %1, %cst {dimension_numbers = #tpu.dot_dimension_numbers<[1], [0], [0], [1], [0, 0, 1, 1], [], []>} : vector<72x3200xbf16>, vector<3200x384xbf16>, vector<72x384xf32> -> vector<72x384xf32>
    %c0_3 = arith.constant 0 : index
    %c0_4 = arith.constant 0 : index
    %3 = vector.load %arg3[%c0_3, %c0_4] : memref<2x384xf32, #tpu.memory_space<vmem>>, vector<2x384xf32>
    %4 = vector.extract_strided_slice %3 {offsets = [0, 0], sizes = [1, 384], strides = [1, 1]} : vector<2x384xf32> to vector<1x384xf32>
    %5 = vector.broadcast %4 : vector<1x384xf32> to vector<72x384xf32>
    %6 = arith.mulf %2, %5 : vector<72x384xf32>
    %7 = vector.extract_strided_slice %3 {offsets = [1, 0], sizes = [1, 384], strides = [1, 1]} : vector<2x384xf32> to vector<1x384xf32>
    %8 = vector.broadcast %7 : vector<1x384xf32> to vector<72x384xf32>
    %9 = arith.addf %6, %8 : vector<72x384xf32>
    %cst_5 = arith.constant 0.000000e+00 : f32
    %10 = vector.broadcast %cst_5 : f32 to vector<72x384xf32>
    %11 = arith.maximumf %9, %10 : vector<72x384xf32>
    %c0_6 = arith.constant 0 : index
    %c0_7 = arith.constant 0 : index
    %12 = vector.load %arg4[%c0_6, %c0_7] : memref<72x384xf32, #tpu.memory_space<vmem>>, vector<72x384xf32>
    tpu.vector_store %arg4[%c0_6, %c0_7], %11 {strides = array<i32>} : memref<72x384xf32, #tpu.memory_space<vmem>>, vector<72x384xf32>,
    return
  }
  func.func @transform_0(%arg0: i32) -> (i32, i32) {
    %c0_i32 = arith.constant 0 : i32
    %c0_i32_0 = arith.constant 0 : i32
    return %arg0, %c0_i32 : i32, i32
  }
  func.func @transform_1(%arg0: i32) -> (i32, i32) {
    %c0_i32 = arith.constant 0 : i32
    %c0_i32_0 = arith.constant 0 : i32
    %c0_i32_1 = arith.constant 0 : i32
    return %c0_i32, %c0_i32_0 : i32, i32
  }
  func.func @transform_2(%arg0: i32) -> (i32, i32) {
    %c0_i32 = arith.constant 0 : i32
    %c0_i32_0 = arith.constant 0 : i32
    %c0_i32_1 = arith.constant 0 : i32
    return %c0_i32, %c0_i32_0 : i32, i32
  }
  func.func @transform_3(%arg0: i32) -> (i32, i32) {
    %c0_i32 = arith.constant 0 : i32
    %c0_i32_0 = arith.constant 0 : i32
    return %arg0, %c0_i32 : i32, i32
  }
}

module attributes {stable_mosaic.version = 11 : i64} {
  func.func @_fused_linear_kernel(%arg0: i32, %arg1: memref<8x2816xbf16, #tpu.memory_space<vmem>>, %arg2: memref<2816x384xbf16, #tpu.memory_space<vmem>>, %arg3: memref<2x384xf32, #tpu.memory_space<vmem>>, %arg4: memref<8x384xf32, #tpu.memory_space<vmem>>) attributes {dimension_semantics = [#tpu.dimension_semantics<parallel>], iteration_bounds = array<i64: 1>, scalar_prefetch = 0 : i64, scratch_operands = 0 : i64, tpu.core_type = #tpu.core_type<tc>, window_params = [{transform_indices = @transform_0, window_bounds = array<i64: 8, 2816>}, {pipeline_mode = #tpu.pipeline_mode<synchronous>, transform_indices = @transform_1, window_bounds = array<i64: 2816, 384>}, {pipeline_mode = #tpu.pipeline_mode<synchronous>, transform_indices = @transform_2, window_bounds = array<i64: 2, 384>}, {transform_indices = @transform_3, window_bounds = array<i64: 8, 384>}]} {
    %c0 = arith.constant 0 : index
    %c0_0 = arith.constant 0 : index
    %0 = vector.load %arg1[%c0, %c0_0] : memref<8x2816xbf16, #tpu.memory_space<vmem>>, vector<8x2816xbf16>
    %c0_1 = arith.constant 0 : index
    %c0_2 = arith.constant 0 : index
    %1 = vector.load %arg2[%c0_1, %c0_2] : memref<2816x384xbf16, #tpu.memory_space<vmem>>, vector<2816x384xbf16>
    %cst = arith.constant dense<0.000000e+00> : vector<8x384xf32>
    %2 = tpu.matmul %0, %1, %cst {dimension_numbers = #tpu.dot_dimension_numbers<[1], [0], [0], [1], [0, 0, 1, 1], [], []>} : vector<8x2816xbf16>, vector<2816x384xbf16>, vector<8x384xf32> -> vector<8x384xf32>
    %c0_3 = arith.constant 0 : index
    %c0_4 = arith.constant 0 : index
    %3 = vector.load %arg3[%c0_3, %c0_4] : memref<2x384xf32, #tpu.memory_space<vmem>>, vector<2x384xf32>
    %4 = vector.extract_strided_slice %3 {offsets = [0, 0], sizes = [1, 384], strides = [1, 1]} : vector<2x384xf32> to vector<1x384xf32>
    %5 = vector.broadcast %4 : vector<1x384xf32> to vector<8x384xf32>
    %6 = arith.mulf %2, %5 : vector<8x384xf32>
    %7 = vector.extract_strided_slice %3 {offsets = [1, 0], sizes = [1, 384], strides = [1, 1]} : vector<2x384xf32> to vector<1x384xf32>
    %8 = vector.broadcast %7 : vector<1x384xf32> to vector<8x384xf32>
    %9 = arith.addf %6, %8 : vector<8x384xf32>
    %cst_5 = arith.constant 0.000000e+00 : f32
    %10 = vector.broadcast %cst_5 : f32 to vector<8x384xf32>
    %11 = arith.maximumf %9, %10 : vector<8x384xf32>
    %c0_6 = arith.constant 0 : index
    %c0_7 = arith.constant 0 : index
    %12 = vector.load %arg4[%c0_6, %c0_7] : memref<8x384xf32, #tpu.memory_space<vmem>>, vector<8x384xf32>
    tpu.vector_store %arg4[%c0_6, %c0_7], %11 {strides = array<i32>} : memref<8x384xf32, #tpu.memory_space<vmem>>, vector<8x384xf32>,
    return
  }
  func.func @transform_0(%arg0: i32) -> (i32, i32) {
    %c0_i32 = arith.constant 0 : i32
    %c0_i32_0 = arith.constant 0 : i32
    return %arg0, %c0_i32 : i32, i32
  }
  func.func @transform_1(%arg0: i32) -> (i32, i32) {
    %c0_i32 = arith.constant 0 : i32
    %c0_i32_0 = arith.constant 0 : i32
    %c0_i32_1 = arith.constant 0 : i32
    return %c0_i32, %c0_i32_0 : i32, i32
  }
  func.func @transform_2(%arg0: i32) -> (i32, i32) {
    %c0_i32 = arith.constant 0 : i32
    %c0_i32_0 = arith.constant 0 : i32
    %c0_i32_1 = arith.constant 0 : i32
    return %c0_i32, %c0_i32_0 : i32, i32
  }
  func.func @transform_3(%arg0: i32) -> (i32, i32) {
    %c0_i32 = arith.constant 0 : i32
    %c0_i32_0 = arith.constant 0 : i32
    return %arg0, %c0_i32 : i32, i32
  }
}

module attributes {stable_mosaic.version = 11 : i64} {
  func.func @_fused_linear_kernel(%arg0: i32, %arg1: memref<8x384xbf16, #tpu.memory_space<vmem>>, %arg2: memref<384x128xbf16, #tpu.memory_space<vmem>>, %arg3: memref<2x128xf32, #tpu.memory_space<vmem>>, %arg4: memref<8x128xf32, #tpu.memory_space<vmem>>) attributes {dimension_semantics = [#tpu.dimension_semantics<parallel>], iteration_bounds = array<i64: 1>, scalar_prefetch = 0 : i64, scratch_operands = 0 : i64, tpu.core_type = #tpu.core_type<tc>, window_params = [{transform_indices = @transform_0, window_bounds = array<i64: 8, 384>}, {pipeline_mode = #tpu.pipeline_mode<synchronous>, transform_indices = @transform_1, window_bounds = array<i64: 384, 128>}, {pipeline_mode = #tpu.pipeline_mode<synchronous>, transform_indices = @transform_2, window_bounds = array<i64: 2, 128>}, {transform_indices = @transform_3, window_bounds = array<i64: 8, 128>}]} {
    %c0 = arith.constant 0 : index
    %c0_0 = arith.constant 0 : index
    %0 = vector.load %arg1[%c0, %c0_0] : memref<8x384xbf16, #tpu.memory_space<vmem>>, vector<8x384xbf16>
    %c0_1 = arith.constant 0 : index
    %c0_2 = arith.constant 0 : index
    %1 = vector.load %arg2[%c0_1, %c0_2] : memref<384x128xbf16, #tpu.memory_space<vmem>>, vector<384x128xbf16>
    %cst = arith.constant dense<0.000000e+00> : vector<8x128xf32>
    %2 = tpu.matmul %0, %1, %cst {dimension_numbers = #tpu.dot_dimension_numbers<[1], [0], [0], [1], [0, 0, 1, 1], [], []>} : vector<8x384xbf16>, vector<384x128xbf16>, vector<8x128xf32> -> vector<8x128xf32>
    %c0_3 = arith.constant 0 : index
    %c0_4 = arith.constant 0 : index
    %3 = vector.load %arg3[%c0_3, %c0_4] : memref<2x128xf32, #tpu.memory_space<vmem>>, vector<2x128xf32>
    %4 = vector.extract_strided_slice %3 {offsets = [0, 0], sizes = [1, 128], strides = [1, 1]} : vector<2x128xf32> to vector<1x128xf32>
    %5 = vector.broadcast %4 : vector<1x128xf32> to vector<8x128xf32>
    %6 = arith.mulf %2, %5 : vector<8x128xf32>
    %7 = vector.extract_strided_slice %3 {offsets = [1, 0], sizes = [1, 128], strides = [1, 1]} : vector<2x128xf32> to vector<1x128xf32>
    %8 = vector.broadcast %7 : vector<1x128xf32> to vector<8x128xf32>
    %9 = arith.addf %6, %8 : vector<8x128xf32>
    %c0_5 = arith.constant 0 : index
    %c0_6 = arith.constant 0 : index
    %10 = vector.load %arg4[%c0_5, %c0_6] : memref<8x128xf32, #tpu.memory_space<vmem>>, vector<8x128xf32>
    tpu.vector_store %arg4[%c0_5, %c0_6], %9 {strides = array<i32>} : memref<8x128xf32, #tpu.memory_space<vmem>>, vector<8x128xf32>,
    return
  }
  func.func @transform_0(%arg0: i32) -> (i32, i32) {
    %c0_i32 = arith.constant 0 : i32
    %c0_i32_0 = arith.constant 0 : i32
    return %arg0, %c0_i32 : i32, i32
  }
  func.func @transform_1(%arg0: i32) -> (i32, i32) {
    %c0_i32 = arith.constant 0 : i32
    %c0_i32_0 = arith.constant 0 : i32
    %c0_i32_1 = arith.constant 0 : i32
    return %c0_i32, %c0_i32_0 : i32, i32
  }
  func.func @transform_2(%arg0: i32) -> (i32, i32) {
    %c0_i32 = arith.constant 0 : i32
    %c0_i32_0 = arith.constant 0 : i32
    %c0_i32_1 = arith.constant 0 : i32
    return %c0_i32, %c0_i32_0 : i32, i32
  }
  func.func @transform_3(%arg0: i32) -> (i32, i32) {
    %c0_i32 = arith.constant 0 : i32
    %c0_i32_0 = arith.constant 0 : i32
    return %arg0, %c0_i32 : i32, i32
  }
}

</mosaic_0001>

<bundles_post_ra>
// kernel: _lambda_.5
= control target key start
LH: loop header
LB: loop body
LE: loop exit
PB: predicated region body
PF: predicated region fallthrough
CT: control target
= control target key end

     0   :  { %s1351_s12 = smov 0   ;;  %s1707_s0 = inlined_call_operand.vmem [shape: bf16[3584,256], index: 0, kind: input, shape index: {}]   ;;  %s1708_s1 = inlined_call_operand.vmem [shape: bf16[256,256], index: 1, kind: input, shape index: {}]   ;;  %s1709_s2 = inlined_call_operand.vmem [shape: f32[2,256], index: 2, kind: input, shape index: {}]   ;;  %s1710_s3 = inlined_call_operand.vmem [shape: f32[3584,256], index: 3, kind: output, shape index: {}]  }
   0x1 LB: > { %s1108_s13 = sadd.s32 4294967295, %s1329_s12   ;;  %p1112_p0 = scmp.ge.s32.totalorder %s1329_s12, 1  ;;  %s1329_s12 = sphi %s1351_s12, %s13_s12  }
   0x2   : > { %p139_p1 = scmp.lt.s32.totalorder %s1329_s12, 15 }
   0x4   : > { %p140_p2 = pnand %p1112_p0, %p139_p1 }
   0x5   : > { %v1227_v0 = vld [vmem:[%s1708_s1 + $0x4] ss:$8 sps:$4 sm:$0xff] (!%p140_p2)   ;;  %v1229_v1 = vld [vmem:[%s1708_s1] ss:$8 sps:$4 sm:$0xff] (!%p140_p2)   ;;  %v1230_v2 = vld [vmem:[%s1708_s1 + $0x14] ss:$8 sps:$4 sm:$0xff] (!%p140_p2)  }
   0x6   : > { %143 = sbr.rel (%p140_p2) target bundleno = 348 (0x15c), region = 32  ;;  %563 = vmatprep.subr.bf16.mxu0 (!%p140_p2), %v1227_v0  ;;  %1187 = vmatprep.subr.bf16.mxu1 (!%p140_p2), %v1227_v0  ;;  %v1232_v3 = vld [vmem:[%s1708_s1 + $0x10] ss:$8 sps:$4 sm:$0xff] (!%p140_p2)   ;;  %v1233_v4 = vld [vmem:[%s1708_s1 + $0x24] ss:$8 sps:$4 sm:$0xff] (!%p140_p2)   ;;  %s1113_s24 = sshll.u32 (!%p140_p2), %s1108_s13, 5  ;;  %v758_v0 = vlaneseq (!%p140_p2) }
   0x7   : > { %564 = vmatpush1.bf16.msra.mxu0 (!%p140_p2), %v1229_v1  ;;  %1203 = vmatpush1.bf16.msra.mxu1 (!%p140_p2), %v1229_v1  ;;  %v1235_v5 = vld [vmem:[%s1708_s1 + $0x20] ss:$8 sps:$4 sm:$0xff] (!%p140_p2)   ;;  %v1236_v6 = vld [vmem:[%s1708_s1 + $0x34] ss:$8 sps:$4 sm:$0xff] (!%p140_p2)   ;;  %p166_p3 = scmp.lt.s32.totalorder (!%p140_p2), %s1113_s24, 447 }
   0x8   : > { %565 = vmatprep.subr.bf16.mxu0 (!%p140_p2), %v1230_v2  ;;  %1188 = vmatprep.subr.bf16.mxu1 (!%p140_p2), %v1230_v2  ;;  %v1238_v7 = vld [vmem:[%s1708_s1 + $0x30] ss:$8 sps:$4 sm:$0xff] (!%p140_p2)   ;;  %v1239_v8 = vld [vmem:[%s1708_s1 + $0x44] ss:$8 sps:$4 sm:$0xff] (!%p140_p2)   ;;  %v1241_v9 = vld [vmem:[%s1708_s1 + $0x40] ss:$8 sps:$4 sm:$0xff] (!%p140_p2)  }
   0x9   : > { %v1242_v10 = vld [vmem:[%s1708_s1 + $0x54] ss:$8 sps:$4 sm:$0xff] (!%p140_p2)   ;;  %v1244_v11 = vld [vmem:[%s1708_s1 + $0x50] ss:$8 sps:$4 sm:$0xff] (!%p140_p2)   ;;  %v1245_v12 = vld [vmem:[%s1708_s1 + $0x64] ss:$8 sps:$4 sm:$0xff] (!%p140_p2)  }
   0xa   : > { %v1247_v14 = vld [vmem:[%s1708_s1 + $0x60] ss:$8 sps:$4 sm:$0xff] (!%p140_p2)   ;;  %v1248_v16 = vld [vmem:[%s1708_s1 + $0x74] ss:$8 sps:$4 sm:$0xff] (!%p140_p2)   ;;  %v1250_v17 = vld [vmem:[%s1708_s1 + $0x70] ss:$8 sps:$4 sm:$0xff] (!%p140_p2)  }
   0xb   : > { %566 = vmatpush1.bf16.msra.mxu0 (!%p140_p2), %v1232_v3  ;;  %1204 = vmatpush1.bf16.msra.mxu1 (!%p140_p2), %v1232_v3  ;;  %v1251_v18 = vld [vmem:[%s1708_s1 + $0x84] ss:$8 sps:$4 sm:$0xff] (!%p140_p2)   ;;  %v1253_v19 = vld [vmem:[%s1708_s1 + $0x80] ss:$8 sps:$4 sm:$0xff] (!%p140_p2)   ;;  %v1254_v20 = vld [vmem:[%s1708_s1 + $0x94] ss:$8 sps:$4 sm:$0xff] (!%p140_p2)  }
   0xc   : > { %567 = vmatprep.subr.bf16.mxu0 (!%p140_p2), %v1233_v4  ;;  %1189 = vmatprep.subr.bf16.mxu1 (!%p140_p2), %v1233_v4  ;;  %v1256_v21 = vld [vmem:[%s1708_s1 + $0x90] ss:$8 sps:$4 sm:$0xff] (!%p140_p2)   ;;  %v1257_v22 = vld [vmem:[%s1708_s1 + $0xa4] ss:$8 sps:$4 sm:$0xff] (!%p140_p2)   ;;  %v1259_v23 = vld [vmem:[%s1708_s1 + $0xa0] ss:$8 sps:$4 sm:$0xff] (!%p140_p2)  }
   0xd   : > { %s1712_s24 = smov (!%p166_p3, %s1113_s24), 447  ;;  %v1260_v24 = vld [vmem:[%s1708_s1 + $0xb4] ss:$8 sps:$4 sm:$0xff]   ;;  %v1262_v25 = vld [vmem:[%s1708_s1 + $0xb0] ss:$8 sps:$4 sm:$0xff]   ;;  %v759_v1 = vshrl.u32 %v758_v0, 7 }
   0xe   : > { %s1185_s10 = sshll.u32 %s1712_s24, 3  ;;  %v1263_v26 = vld [vmem:[%s1708_s1 + $0xc4] ss:$8 sps:$4 sm:$0xff]   ;;  %v1265_v27 = vld [vmem:[%s1708_s1 + $0xc0] ss:$8 sps:$4 sm:$0xff]  }
   0xf   : > { %568 = vmatpush1.bf16.msra.mxu0 %v1235_v5  ;;  %1205 = vmatpush1.bf16.msra.mxu1 %v1235_v5  ;;  %s1401_s16 = scalar_lea.vmem %s1707_s0, %s1185_s10  ;;  %v1266_v28 = vld [vmem:[%s1708_s1 + $0xd4] ss:$8 sps:$4 sm:$0xff]   ;;  %v1268_v29 = vld [vmem:[%s1708_s1 + $0xd0] ss:$8 sps:$4 sm:$0xff]   ;;  %v1269_v30 = vld [vmem:[%s1708_s1 + $0xe4] ss:$8 sps:$4 sm:$0xff]  }
  0x10   : > { %569 = vmatprep.subr.bf16.mxu0 %v1236_v6  ;;  %1190 = vmatprep.subr.bf16.mxu1 %v1236_v6  ;;  %v1277_v13 = vld [vmem:[%s1401_s16 + $0x4] ss:$8 sps:$4 sm:$0xff]   ;;  %v1271_v31 = vld [vmem:[%s1708_s1 + $0xe0] ss:$8 sps:$4 sm:$0xff]   ;;  %v1272_v32 = vld [vmem:[%s1708_s1 + $0xf4] ss:$8 sps:$4 sm:$0xff]  }
  0x11   : > { %v1280_v15 = vld [vmem:[%s1401_s16 + $0x84] ss:$8 sps:$4 sm:$0xff]   ;;  %595 = vmatprep.mubr.bf16.mxu0 %v1277_v13  ;;  %v1274_v33 = vld [vmem:[%s1708_s1 + $0xf0] ss:$8 sps:$4 sm:$0xff]   ;;  %v1275_v34 = vld [vmem:[%s1401_s16] ss:$8 sps:$4 sm:$0xff]  }
  0x12   : > { %675 = vmatprep.mubr.bf16.mxu1 %v1280_v15  ;;  %v1278_v35 = vld [vmem:[%s1401_s16 + $0x80] ss:$8 sps:$4 sm:$0xff]   ;;  %v1281_v36 = vld [vmem:[%s1401_s16 + $0x14] ss:$8 sps:$4 sm:$0xff]   ;;  %v1285_v38 = vld [vmem:[%s1401_s16 + $0x10] ss:$8 sps:$4 sm:$0xff]  }
  0x13   : > { %570 = vmatpush1.bf16.msra.mxu0 %v1238_v7  ;;  %1206 = vmatpush1.bf16.msra.mxu1 %v1238_v7  ;;  %v1283_v37 = vld [vmem:[%s1401_s16 + $0x94] ss:$8 sps:$4 sm:$0xff]   ;;  %v1286_v39 = vld [vmem:[%s1401_s16 + $0x90] ss:$8 sps:$4 sm:$0xff]   ;;  %v1287_v40 = vld [vmem:[%s1401_s16 + $0x24] ss:$8 sps:$4 sm:$0xff]  }
  0x14   : > { %571 = vmatprep.subr.bf16.mxu0 %v1239_v8  ;;  %1191 = vmatprep.subr.bf16.mxu1 %v1239_v8  ;;  %v1289_v41 = vld [vmem:[%s1401_s16 + $0xa4] ss:$8 sps:$4 sm:$0xff]   ;;  %v1291_v42 = vld [vmem:[%s1401_s16 + $0x20] ss:$8 sps:$4 sm:$0xff]   ;;  %v1293_v44 = vld [vmem:[%s1401_s16 + $0x34] ss:$8 sps:$4 sm:$0xff]  }
  0x15   : > { %v1292_v43 = vld [vmem:[%s1401_s16 + $0xa0] ss:$8 sps:$4 sm:$0xff]   ;;  %v1295_v45 = vld [vmem:[%s1401_s16 + $0xb4] ss:$8 sps:$4 sm:$0xff]   ;;  %v1297_v46 = vld [vmem:[%s1401_s16 + $0x30] ss:$8 sps:$4 sm:$0xff]  }
  0x16   : > { %v1298_v47 = vld [vmem:[%s1401_s16 + $0xb0] ss:$8 sps:$4 sm:$0xff]   ;;  %v1299_v48 = vld [vmem:[%s1401_s16 + $0x44] ss:$8 sps:$4 sm:$0xff]   ;;  %v1303_v50 = vld [vmem:[%s1401_s16 + $0x40] ss:$8 sps:$4 sm:$0xff]  }
  0x17   : > { %572 = vmatpush1.bf16.msra.mxu0 %v1241_v9  ;;  %1207 = vmatpush1.bf16.msra.mxu1 %v1241_v9  ;;  %v1301_v49 = vld [vmem:[%s1401_s16 + $0xc4] ss:$8 sps:$4 sm:$0xff]   ;;  %v1304_v51 = vld [vmem:[%s1401_s16 + $0xc0] ss:$8 sps:$4 sm:$0xff]   ;;  %v1305_v52 = vld [vmem:[%s1401_s16 + $0x54] ss:$8 sps:$4 sm:$0xff]  }
  0x18   : > { %573 = vmatprep.subr.bf16.mxu0 %v1242_v10  ;;  %1192 = vmatprep.subr.bf16.mxu1 %v1242_v10  ;;  %v1307_v53 = vld [vmem:[%s1401_s16 + $0xd4] ss:$8 sps:$4 sm:$0xff]   ;;  %v1309_v54 = vld [vmem:[%s1401_s16 + $0x50] ss:$8 sps:$4 sm:$0xff]   ;;  %v1311_v56 = vld [vmem:[%s1401_s16 + $0x64] ss:$8 sps:$4 sm:$0xff]  }
  0x19   : > { %v1310_v55 = vld [vmem:[%s1401_s16 + $0xd0] ss:$8 sps:$4 sm:$0xff]   ;;  %v1313_v57 = vld [vmem:[%s1401_s16 + $0xe4] ss:$8 sps:$4 sm:$0xff]   ;;  %v1315_v58 = vld [vmem:[%s1401_s16 + $0x60] ss:$8 sps:$4 sm:$0xff]  }
  0x1a   : > { %v1316_v59 = vld [vmem:[%s1401_s16 + $0xe0] ss:$8 sps:$4 sm:$0xff]   ;;  %v1317_v60 = vld [vmem:[%s1401_s16 + $0x74] ss:$8 sps:$4 sm:$0xff]   ;;  %v1321_v62 = vld [vmem:[%s1401_s16 + $0x70] ss:$8 sps:$4 sm:$0xff]  }
  0x1b   : > { %574 = vmatpush1.bf16.msra.mxu0 %v1244_v11  ;;  %1208 = vmatpush1.bf16.msra.mxu1 %v1244_v11  ;;  %v1319_v61 = vld [vmem:[%s1401_s16 + $0xf4] ss:$8 sps:$4 sm:$0xff]   ;;  %v1322_v63 = vld [vmem:[%s1401_s16 + $0xf0] ss:$8 sps:$4 sm:$0xff]   ;;  %v760_v2 = vsub.s32 0, %v759_v1  ;;  %v764_v4 = vsub.s32 2, %v759_v1 }
  0x1c   : > { %575 = vmatprep.subr.bf16.mxu0 %v1245_v12  ;;  %1193 = vmatprep.subr.bf16.mxu1 %v1245_v12  ;;  %v756_v3 = vld [vmem:[%s1709_s2] sm:$0xf]  ;;  %v842_v5 = vsub.s32 1, %v759_v1  ;;  %v846_v6 = vsub.s32 3, %v759_v1  ;;  %s1186_s16 = sshll.u32 %s1712_s24, 4 }
  0x1d   : > { %v761_v7 = vrot.slane %v756_v3, %v760_v2  ;;  %v765_v8 = vrot.slane %v756_v3, %v764_v4  ;;  %s1518_s10 = scalar_lea.vmem %s1710_s3, %s1186_s16 }
  0x1e   : > { %v843_v9 = vrot.slane %v756_v3, %v842_v5  ;;  %v847_v10 = vrot.slane %v756_v3, %v846_v6 }
  0x1f   : > { %576 = vmatpush1.bf16.msra.mxu0 %v1247_v14  ;;  %1209 = vmatpush1.bf16.msra.mxu1 %v1247_v14  ;;  %v1498_v11 = vrot.slane %v761_v7, %v760_v2  ;;  %v1500_v12 = vrot.slane %v765_v8, %v760_v2 }
  0x20   : > { %577 = vmatprep.subr.bf16.mxu0 %v1248_v16  ;;  %1194 = vmatprep.subr.bf16.mxu1 %v1248_v16  ;;  %v1502_v13 = vrot.slane %v843_v9, %v842_v5  ;;  %v1504_v16 = vrot.slane %v847_v10, %v842_v5 }
  0x23   : > { %578 = vmatpush1.bf16.msra.mxu0 %v1250_v17  ;;  %1210 = vmatpush1.bf16.msra.mxu1 %v1250_v17 }
  0x24   : > { %579 = vmatprep.subr.bf16.mxu0 %v1251_v18  ;;  %1195 = vmatprep.subr.bf16.mxu1 %v1251_v18 }
  0x27   : > { %580 = vmatpush1.bf16.msra.mxu0 %v1253_v19  ;;  %1211 = vmatpush1.bf16.msra.mxu1 %v1253_v19 }
  0x28   : > { %581 = vmatprep.subr.bf16.mxu0 %v1254_v20  ;;  %1196 = vmatprep.subr.bf16.mxu1 %v1254_v20 }
  0x2b   : > { %582 = vmatpush1.bf16.msra.mxu0 %v1256_v21  ;;  %1212 = vmatpush1.bf16.msra.mxu1 %v1256_v21 }
  0x2c   : > { %583 = vmatprep.subr.bf16.mxu0 %v1257_v22  ;;  %1197 = vmatprep.subr.bf16.mxu1 %v1257_v22 }
  0x2f   : > { %584 = vmatpush1.bf16.msra.mxu0 %v1259_v23  ;;  %1213 = vmatpush1.bf16.msra.mxu1 %v1259_v23 }
  0x30   : > { %585 = vmatprep.subr.bf16.mxu0 %v1260_v24  ;;  %1198 = vmatprep.subr.bf16.mxu1 %v1260_v24 }
  0x33   : > { %586 = vmatpush1.bf16.msra.mxu0 %v1262_v25  ;;  %1214 = vmatpush1.bf16.msra.mxu1 %v1262_v25 }
  0x34   : > { %587 = vmatprep.subr.bf16.mxu0 %v1263_v26  ;;  %1199 = vmatprep.subr.bf16.mxu1 %v1263_v26 }
  0x37   : > { %588 = vmatpush1.bf16.msra.mxu0 %v1265_v27  ;;  %1215 = vmatpush1.bf16.msra.mxu1 %v1265_v27 }
  0x38   : > { %589 = vmatprep.subr.bf16.mxu0 %v1266_v28  ;;  %1200 = vmatprep.subr.bf16.mxu1 %v1266_v28 }
  0x3b   : > { %590 = vmatpush1.bf16.msra.mxu0 %v1268_v29  ;;  %1216 = vmatpush1.bf16.msra.mxu1 %v1268_v29 }
  0x3c   : > { %591 = vmatprep.subr.bf16.mxu0 %v1269_v30  ;;  %1201 = vmatprep.subr.bf16.mxu1 %v1269_v30 }
  0x3f   : > { %592 = vmatpush1.bf16.msra.mxu0 %v1271_v31  ;;  %1217 = vmatpush1.bf16.msra.mxu1 %v1271_v31 }
  0x40   : > { %593 = vmatprep.subr.bf16.mxu0 %v1272_v32  ;;  %1202 = vmatprep.subr.bf16.mxu1 %v1272_v32 }
  0x43   : > { %594 = vmatpush1.bf16.msra.mxu0 %v1274_v33  ;;  %1218 = vmatpush1.bf16.msra.mxu1 %v1274_v33 }
  0x46   : > { %596 = vmatmul.mubr.bf16.vlgmr.msra.gmra.mrb[0].mxu0 %v1275_v34  ;;  %676 = vmatmul.mubr.bf16.vlgmr.msra.gmra.mrb[0].mxu1 %v1278_v35 }
  0x47   : > { %605 = vmatprep.mubr.bf16.mxu0 %v1281_v36  ;;  %685 = vmatprep.mubr.bf16.mxu1 %v1283_v37 }
  0x4e   : > { %606 = vmatmul.mubr.bf16.gmra.mrb[4].mxu0 %v1285_v38  ;;  %686 = vmatmul.mubr.bf16.gmra.mrb[4].mxu1 %v1286_v39 }
  0x4f   : > { %615 = vmatprep.mubr.bf16.mxu0 %v1287_v40  ;;  %695 = vmatprep.mubr.bf16.mxu1 %v1289_v41 }
  0x56   : > { %616 = vmatmul.mubr.bf16.gmra.mrb[8].mxu0 %v1291_v42  ;;  %696 = vmatmul.mubr.bf16.gmra.mrb[8].mxu1 %v1292_v43 }
  0x57   : > { %625 = vmatprep.mubr.bf16.mxu0 %v1293_v44  ;;  %705 = vmatprep.mubr.bf16.mxu1 %v1295_v45 }
  0x5e   : > { %626 = vmatmul.mubr.bf16.gmra.mrb[12].mxu0 %v1297_v46  ;;  %706 = vmatmul.mubr.bf16.gmra.mrb[12].mxu1 %v1298_v47 }
  0x5f   : > { %635 = vmatprep.mubr.bf16.mxu0 %v1299_v48  ;;  %715 = vmatprep.mubr.bf16.mxu1 %v1301_v49 }
  0x66   : > { %636 = vmatmul.mubr.bf16.gmra.mrb[16].mxu0 %v1303_v50  ;;  %716 = vmatmul.mubr.bf16.gmra.mrb[16].mxu1 %v1304_v51 }
  0x67   : > { %645 = vmatprep.mubr.bf16.mxu0 %v1305_v52  ;;  %725 = vmatprep.mubr.bf16.mxu1 %v1307_v53 }
  0x6e   : > { %646 = vmatmul.mubr.bf16.gmra.mrb[20].mxu0 %v1309_v54  ;;  %726 = vmatmul.mubr.bf16.gmra.mrb[20].mxu1 %v1310_v55 }
  0x6f   : > { %655 = vmatprep.mubr.bf16.mxu0 %v1311_v56  ;;  %735 = vmatprep.mubr.bf16.mxu1 %v1313_v57 }
  0x76   : > { %656 = vmatmul.mubr.bf16.gmra.mrb[24].mxu0 %v1315_v58  ;;  %736 = vmatmul.mubr.bf16.gmra.mrb[24].mxu1 %v1316_v59 }
  0x77   : > { %665 = vmatprep.mubr.bf16.mxu0 %v1317_v60  ;;  %745 = vmatprep.mubr.bf16.mxu1 %v1319_v61 }
  0x7e   : > { %666 = vmatmul.mubr.bf16.gmra.mrb[28].mxu0 %v1321_v62  ;;  %746 = vmatmul.mubr.bf16.gmra.mrb[28].mxu1 %v1322_v63 }
 0x119   : > { %v597_v14 = vpop.f32.mrb[0].mxu0  ;;  %v677_v15 = vpop.f32.mrb[0].mxu1 }
 0x11a   : > { %v776_v17 = vmul.f32 %v1498_v11, %v597_v14  ;;  %v808_v18 = vmul.f32 %v1498_v11, %v677_v15  ;;  %v599_v19 = vpop.f32.mrb[1].mxu0  ;;  %v679_v20 = vpop.f32.mrb[1].mxu1 }
 0x11b   : > { %v777_v21 = vmul.f32 %v1500_v12, %v599_v19  ;;  %v809_v22 = vmul.f32 %v1500_v12, %v679_v20  ;;  %v601_v23 = vpop.f32.mrb[2].mxu0  ;;  %v681_v24 = vpop.f32.mrb[2].mxu1 }
 0x11c   : > { %v858_v25 = vadd.f32 %v1502_v13, %v776_v17  ;;  %v890_v26 = vadd.f32 %v1502_v13, %v808_v18  ;;  %v778_v27 = vmul.f32 %v1498_v11, %v601_v23  ;;  %v810_v28 = vmul.f32 %v1498_v11, %v681_v24  ;;  %v603_v29 = vpop.f32.mrb[3].mxu0  ;;  %v683_v30 = vpop.f32.mrb[3].mxu1 }
 0x11d   : > { %v859_v31 = vadd.f32 %v1504_v16, %v777_v21  ;;  %v891_v32 = vadd.f32 %v1504_v16, %v809_v22  ;;  %v779_v33 = vmul.f32 %v1500_v12, %v603_v29  ;;  %v811_v34 = vmul.f32 %v1500_v12, %v683_v30 }
 0x11e   : > { %v922_v35 = vmax.f32 %v858_v25, 0.0  ;;  %v954_v36 = vmax.f32 %v890_v26, 0.0  ;;  %v860_v37 = vadd.f32 %v1502_v13, %v778_v27  ;;  %v892_v38 = vadd.f32 %v1502_v13, %v810_v28 }
 0x11f   : > { %v923_v39 = vmax.f32 %v859_v31, 0.0  ;;  %v955_v40 = vmax.f32 %v891_v32, 0.0  ;;  %v861_v41 = vadd.f32 %v1504_v16, %v779_v33  ;;  %v893_v42 = vadd.f32 %v1504_v16, %v811_v34 }
 0x120   : > { %986 = vst [vmem:[%s1518_s10] sm:$0xff] %v922_v35  ;;  %1018 = vst [vmem:[%s1518_s10 + $0x100] sm:$0xff] %v954_v36  ;;  %v924_v43 = vmax.f32 %v860_v37, 0.0  ;;  %v956_v44 = vmax.f32 %v892_v38, 0.0 }
 0x121   : > { %987 = vst [vmem:[%s1518_s10 + $0x8] sm:$0xff] %v923_v39  ;;  %1019 = vst [vmem:[%s1518_s10 + $0x108] sm:$0xff] %v955_v40  ;;  %v925_v45 = vmax.f32 %v861_v41, 0.0  ;;  %v957_v46 = vmax.f32 %v893_v42, 0.0  ;;  %v607_v47 = vpop.f32.mrb[4].mxu0  ;;  %v687_v48 = vpop.f32.mrb[4].mxu1 }
 0x122   : > { %988 = vst [vmem:[%s1518_s10 + $0x10] sm:$0xff] %v924_v43  ;;  %1020 = vst [vmem:[%s1518_s10 + $0x110] sm:$0xff] %v956_v44  ;;  %v780_v49 = vmul.f32 %v1498_v11, %v607_v47  ;;  %v812_v50 = vmul.f32 %v1498_v11, %v687_v48  ;;  %v609_v51 = vpop.f32.mrb[5].mxu0  ;;  %v689_v52 = vpop.f32.mrb[5].mxu1 }
 0x123   : > { %989 = vst [vmem:[%s1518_s10 + $0x18] sm:$0xff] %v925_v45  ;;  %1021 = vst [vmem:[%s1518_s10 + $0x118] sm:$0xff] %v957_v46  ;;  %v781_v53 = vmul.f32 %v1500_v12, %v609_v51  ;;  %v813_v54 = vmul.f32 %v1500_v12, %v689_v52  ;;  %v611_v55 = vpop.f32.mrb[6].mxu0  ;;  %v691_v56 = vpop.f32.mrb[6].mxu1 }
 0x124   : > { %v862_v57 = vadd.f32 %v1502_v13, %v780_v49  ;;  %v894_v58 = vadd.f32 %v1502_v13, %v812_v50  ;;  %v782_v59 = vmul.f32 %v1498_v11, %v611_v55  ;;  %v814_v60 = vmul.f32 %v1498_v11, %v691_v56  ;;  %v613_v61 = vpop.f32.mrb[7].mxu0  ;;  %v693_v62 = vpop.f32.mrb[7].mxu1 }
 0x125   : > { %v863_v63 = vadd.f32 %v1504_v16, %v781_v53  ;;  %v895_v0 = vadd.f32 %v1504_v16, %v813_v54  ;;  %v783_v1 = vmul.f32 %v1500_v12, %v613_v61  ;;  %v815_v2 = vmul.f32 %v1500_v12, %v693_v62 }
 0x126   : > { %v926_v3 = vmax.f32 %v862_v57, 0.0  ;;  %v958_v4 = vmax.f32 %v894_v58, 0.0  ;;  %v864_v5 = vadd.f32 %v1502_v13, %v782_v59  ;;  %v896_v6 = vadd.f32 %v1502_v13, %v814_v60 }
 0x127   : > { %v927_v7 = vmax.f32 %v863_v63, 0.0  ;;  %v959_v8 = vmax.f32 %v895_v0, 0.0  ;;  %v865_v9 = vadd.f32 %v1504_v16, %v783_v1  ;;  %v897_v10 = vadd.f32 %v1504_v16, %v815_v2 }
 0x128   : > { %990 = vst [vmem:[%s1518_s10 + $0x20] sm:$0xff] %v926_v3  ;;  %1022 = vst [vmem:[%s1518_s10 + $0x120] sm:$0xff] %v958_v4  ;;  %v928_v14 = vmax.f32 %v864_v5, 0.0  ;;  %v960_v15 = vmax.f32 %v896_v6, 0.0 }
 0x129   : > { %991 = vst [vmem:[%s1518_s10 + $0x28] sm:$0xff] %v927_v7  ;;  %1023 = vst [vmem:[%s1518_s10 + $0x128] sm:$0xff] %v959_v8  ;;  %v929_v17 = vmax.f32 %v865_v9, 0.0  ;;  %v961_v18 = vmax.f32 %v897_v10, 0.0  ;;  %v617_v19 = vpop.f32.mrb[8].mxu0  ;;  %v697_v20 = vpop.f32.mrb[8].mxu1 }
 0x12a   : > { %992 = vst [vmem:[%s1518_s10 + $0x30] sm:$0xff] %v928_v14  ;;  %1024 = vst [vmem:[%s1518_s10 + $0x130] sm:$0xff] %v960_v15  ;;  %v784_v21 = vmul.f32 %v1498_v11, %v617_v19  ;;  %v816_v22 = vmul.f32 %v1498_v11, %v697_v20  ;;  %v619_v23 = vpop.f32.mrb[9].mxu0  ;;  %v699_v24 = vpop.f32.mrb[9].mxu1 }
 0x12b   : > { %993 = vst [vmem:[%s1518_s10 + $0x38] sm:$0xff] %v929_v17  ;;  %1025 = vst [vmem:[%s1518_s10 + $0x138] sm:$0xff] %v961_v18  ;;  %v785_v25 = vmul.f32 %v1500_v12, %v619_v23  ;;  %v817_v26 = vmul.f32 %v1500_v12, %v699_v24  ;;  %v621_v27 = vpop.f32.mrb[10].mxu0  ;;  %v701_v28 = vpop.f32.mrb[10].mxu1 }
 0x12c   : > { %v866_v29 = vadd.f32 %v1502_v13, %v784_v21  ;;  %v898_v30 = vadd.f32 %v1502_v13, %v816_v22  ;;  %v786_v31 = vmul.f32 %v1498_v11, %v621_v27  ;;  %v818_v32 = vmul.f32 %v1498_v11, %v701_v28  ;;  %v623_v33 = vpop.f32.mrb[11].mxu0  ;;  %v703_v34 = vpop.f32.mrb[11].mxu1 }
 0x12d   : > { %v867_v35 = vadd.f32 %v1504_v16, %v785_v25  ;;  %v899_v36 = vadd.f32 %v1504_v16, %v817_v26  ;;  %v787_v37 = vmul.f32 %v1500_v12, %v623_v33  ;;  %v819_v38 = vmul.f32 %v1500_v12, %v703_v34 }
 0x12e   : > { %v930_v39 = vmax.f32 %v866_v29, 0.0  ;;  %v962_v40 = vmax.f32 %v898_v30, 0.0  ;;  %v868_v41 = vadd.f32 %v1502_v13, %v786_v31  ;;  %v900_v42 = vadd.f32 %v1502_v13, %v818_v32 }
 0x12f   : > { %v931_v43 = vmax.f32 %v867_v35, 0.0  ;;  %v963_v44 = vmax.f32 %v899_v36, 0.0  ;;  %v869_v45 = vadd.f32 %v1504_v16, %v787_v37  ;;  %v901_v46 = vadd.f32 %v1504_v16, %v819_v38 }
 0x130   : > { %994 = vst [vmem:[%s1518_s10 + $0x40] sm:$0xff] %v930_v39  ;;  %1026 = vst [vmem:[%s1518_s10 + $0x140] sm:$0xff] %v962_v40  ;;  %v932_v47 = vmax.f32 %v868_v41, 0.0  ;;  %v964_v48 = vmax.f32 %v900_v42, 0.0 }
 0x131   : > { %995 = vst [vmem:[%s1518_s10 + $0x48] sm:$0xff] %v931_v43  ;;  %1027 = vst [vmem:[%s1518_s10 + $0x148] sm:$0xff] %v963_v44  ;;  %v933_v49 = vmax.f32 %v869_v45, 0.0  ;;  %v965_v50 = vmax.f32 %v901_v46, 0.0  ;;  %v627_v51 = vpop.f32.mrb[12].mxu0  ;;  %v707_v52 = vpop.f32.mrb[12].mxu1 }
 0x132   : > { %996 = vst [vmem:[%s1518_s10 + $0x50] sm:$0xff] %v932_v47  ;;  %1028 = vst [vmem:[%s1518_s10 + $0x150] sm:$0xff] %v964_v48  ;;  %v788_v53 = vmul.f32 %v1498_v11, %v627_v51  ;;  %v820_v54 = vmul.f32 %v1498_v11, %v707_v52  ;;  %v629_v55 = vpop.f32.mrb[13].mxu0  ;;  %v709_v56 = vpop.f32.mrb[13].mxu1 }
 0x133   : > { %997 = vst [vmem:[%s1518_s10 + $0x58] sm:$0xff] %v933_v49  ;;  %1029 = vst [vmem:[%s1518_s10 + $0x158] sm:$0xff] %v965_v50  ;;  %v789_v57 = vmul.f32 %v1500_v12, %v629_v55  ;;  %v821_v58 = vmul.f32 %v1500_v12, %v709_v56  ;;  %v631_v59 = vpop.f32.mrb[14].mxu0  ;;  %v711_v60 = vpop.f32.mrb[14].mxu1 }
 0x134   : > { %v870_v61 = vadd.f32 %v1502_v13, %v788_v53  ;;  %v902_v62 = vadd.f32 %v1502_v13, %v820_v54  ;;  %v790_v63 = vmul.f32 %v1498_v11, %v631_v59  ;;  %v822_v0 = vmul.f32 %v1498_v11, %v711_v60  ;;  %v633_v1 = vpop.f32.mrb[15].mxu0  ;;  %v713_v2 = vpop.f32.mrb[15].mxu1 }
 0x135   : > { %v871_v3 = vadd.f32 %v1504_v16, %v789_v57  ;;  %v903_v4 = vadd.f32 %v1504_v16, %v821_v58  ;;  %v791_v5 = vmul.f32 %v1500_v12, %v633_v1  ;;  %v823_v6 = vmul.f32 %v1500_v12, %v713_v2 }
 0x136   : > { %v934_v7 = vmax.f32 %v870_v61, 0.0  ;;  %v966_v8 = vmax.f32 %v902_v62, 0.0  ;;  %v872_v9 = vadd.f32 %v1502_v13, %v790_v63  ;;  %v904_v10 = vadd.f32 %v1502_v13, %v822_v0 }
 0x137   : > { %v935_v14 = vmax.f32 %v871_v3, 0.0  ;;  %v967_v15 = vmax.f32 %v903_v4, 0.0  ;;  %v873_v17 = vadd.f32 %v1504_v16, %v791_v5  ;;  %v905_v18 = vadd.f32 %v1504_v16, %v823_v6 }
 0x138   : > { %998 = vst [vmem:[%s1518_s10 + $0x60] sm:$0xff] %v934_v7  ;;  %1030 = vst [vmem:[%s1518_s10 + $0x160] sm:$0xff] %v966_v8  ;;  %v936_v19 = vmax.f32 %v872_v9, 0.0  ;;  %v968_v20 = vmax.f32 %v904_v10, 0.0 }
 0x139   : > { %999 = vst [vmem:[%s1518_s10 + $0x68] sm:$0xff] %v935_v14  ;;  %1031 = vst [vmem:[%s1518_s10 + $0x168] sm:$0xff] %v967_v15  ;;  %v937_v21 = vmax.f32 %v873_v17, 0.0  ;;  %v969_v22 = vmax.f32 %v905_v18, 0.0  ;;  %v637_v23 = vpop.f32.mrb[16].mxu0  ;;  %v717_v24 = vpop.f32.mrb[16].mxu1 }
 0x13a   : > { %1000 = vst [vmem:[%s1518_s10 + $0x70] sm:$0xff] %v936_v19  ;;  %1032 = vst [vmem:[%s1518_s10 + $0x170] sm:$0xff] %v968_v20  ;;  %v792_v25 = vmul.f32 %v1498_v11, %v637_v23  ;;  %v824_v26 = vmul.f32 %v1498_v11, %v717_v24  ;;  %v639_v27 = vpop.f32.mrb[17].mxu0  ;;  %v719_v28 = vpop.f32.mrb[17].mxu1 }
 0x13b   : > { %1001 = vst [vmem:[%s1518_s10 + $0x78] sm:$0xff] %v937_v21  ;;  %1033 = vst [vmem:[%s1518_s10 + $0x178] sm:$0xff] %v969_v22  ;;  %v793_v29 = vmul.f32 %v1500_v12, %v639_v27  ;;  %v825_v30 = vmul.f32 %v1500_v12, %v719_v28  ;;  %v641_v31 = vpop.f32.mrb[18].mxu0  ;;  %v721_v32 = vpop.f32.mrb[18].mxu1 }
 0x13c   : > { %v874_v33 = vadd.f32 %v1502_v13, %v792_v25  ;;  %v906_v34 = vadd.f32 %v1502_v13, %v824_v26  ;;  %v794_v35 = vmul.f32 %v1498_v11, %v641_v31  ;;  %v826_v36 = vmul.f32 %v1498_v11, %v721_v32  ;;  %v643_v37 = vpop.f32.mrb[19].mxu0  ;;  %v723_v38 = vpop.f32.mrb[19].mxu1 }
 0x13d   : > { %v875_v39 = vadd.f32 %v1504_v16, %v793_v29  ;;  %v907_v40 = vadd.f32 %v1504_v16, %v825_v30  ;;  %v795_v41 = vmul.f32 %v1500_v12, %v643_v37  ;;  %v827_v42 = vmul.f32 %v1500_v12, %v723_v38 }
 0x13e   : > { %v938_v43 = vmax.f32 %v874_v33, 0.0  ;;  %v970_v44 = vmax.f32 %v906_v34, 0.0  ;;  %v876_v45 = vadd.f32 %v1502_v13, %v794_v35  ;;  %v908_v46 = vadd.f32 %v1502_v13, %v826_v36 }
 0x13f   : > { %v939_v47 = vmax.f32 %v875_v39, 0.0  ;;  %v971_v48 = vmax.f32 %v907_v40, 0.0  ;;  %v877_v49 = vadd.f32 %v1504_v16, %v795_v41  ;;  %v909_v50 = vadd.f32 %v1504_v16, %v827_v42 }
 0x140   : > { %1002 = vst [vmem:[%s1518_s10 + $0x80] sm:$0xff] %v938_v43  ;;  %1034 = vst [vmem:[%s1518_s10 + $0x180] sm:$0xff] %v970_v44  ;;  %v940_v51 = vmax.f32 %v876_v45, 0.0  ;;  %v972_v52 = vmax.f32 %v908_v46, 0.0 }
 0x141   : > { %1003 = vst [vmem:[%s1518_s10 + $0x88] sm:$0xff] %v939_v47  ;;  %1035 = vst [vmem:[%s1518_s10 + $0x188] sm:$0xff] %v971_v48  ;;  %v941_v53 = vmax.f32 %v877_v49, 0.0  ;;  %v973_v54 = vmax.f32 %v909_v50, 0.0  ;;  %v647_v55 = vpop.f32.mrb[20].mxu0  ;;  %v727_v56 = vpop.f32.mrb[20].mxu1 }
 0x142   : > { %1004 = vst [vmem:[%s1518_s10 + $0x90] sm:$0xff] %v940_v51  ;;  %1036 = vst [vmem:[%s1518_s10 + $0x190] sm:$0xff] %v972_v52  ;;  %v796_v57 = vmul.f32 %v1498_v11, %v647_v55  ;;  %v828_v58 = vmul.f32 %v1498_v11, %v727_v56  ;;  %v649_v59 = vpop.f32.mrb[21].mxu0  ;;  %v729_v60 = vpop.f32.mrb[21].mxu1 }
 0x143   : > { %1005 = vst [vmem:[%s1518_s10 + $0x98] sm:$0xff] %v941_v53  ;;  %1037 = vst [vmem:[%s1518_s10 + $0x198] sm:$0xff] %v973_v54  ;;  %v797_v61 = vmul.f32 %v1500_v12, %v649_v59  ;;  %v829_v62 = vmul.f32 %v1500_v12, %v729_v60  ;;  %v651_v63 = vpop.f32.mrb[22].mxu0  ;;  %v731_v0 = vpop.f32.mrb[22].mxu1 }
 0x144   : > { %v878_v1 = vadd.f32 %v1502_v13, %v796_v57  ;;  %v910_v2 = vadd.f32 %v1502_v13, %v828_v58  ;;  %v798_v3 = vmul.f32 %v1498_v11, %v651_v63  ;;  %v830_v4 = vmul.f32 %v1498_v11, %v731_v0  ;;  %v653_v5 = vpop.f32.mrb[23].mxu0  ;;  %v733_v6 = vpop.f32.mrb[23].mxu1 }
 0x145   : > { %v879_v7 = vadd.f32 %v1504_v16, %v797_v61  ;;  %v911_v8 = vadd.f32 %v1504_v16, %v829_v62  ;;  %v799_v9 = vmul.f32 %v1500_v12, %v653_v5  ;;  %v831_v10 = vmul.f32 %v1500_v12, %v733_v6 }
 0x146   : > { %v942_v14 = vmax.f32 %v878_v1, 0.0  ;;  %v974_v15 = vmax.f32 %v910_v2, 0.0  ;;  %v880_v17 = vadd.f32 %v1502_v13, %v798_v3  ;;  %v912_v18 = vadd.f32 %v1502_v13, %v830_v4 }
 0x147   : > { %v943_v19 = vmax.f32 %v879_v7, 0.0  ;;  %v975_v20 = vmax.f32 %v911_v8, 0.0  ;;  %v881_v21 = vadd.f32 %v1504_v16, %v799_v9  ;;  %v913_v22 = vadd.f32 %v1504_v16, %v831_v10 }
 0x148   : > { %1006 = vst [vmem:[%s1518_s10 + $0xa0] sm:$0xff] %v942_v14  ;;  %1038 = vst [vmem:[%s1518_s10 + $0x1a0] sm:$0xff] %v974_v15  ;;  %v944_v23 = vmax.f32 %v880_v17, 0.0  ;;  %v976_v24 = vmax.f32 %v912_v18, 0.0 }
 0x149   : > { %1007 = vst [vmem:[%s1518_s10 + $0xa8] sm:$0xff] %v943_v19  ;;  %1039 = vst [vmem:[%s1518_s10 + $0x1a8] sm:$0xff] %v975_v20  ;;  %v945_v25 = vmax.f32 %v881_v21, 0.0  ;;  %v977_v26 = vmax.f32 %v913_v22, 0.0  ;;  %v657_v27 = vpop.f32.mrb[24].mxu0  ;;  %v737_v28 = vpop.f32.mrb[24].mxu1 }
 0x14a   : > { %1008 = vst [vmem:[%s1518_s10 + $0xb0] sm:$0xff] %v944_v23  ;;  %1040 = vst [vmem:[%s1518_s10 + $0x1b0] sm:$0xff] %v976_v24  ;;  %v800_v29 = vmul.f32 %v1498_v11, %v657_v27  ;;  %v832_v30 = vmul.f32 %v1498_v11, %v737_v28  ;;  %v659_v31 = vpop.f32.mrb[25].mxu0  ;;  %v739_v32 = vpop.f32.mrb[25].mxu1 }
 0x14b   : > { %1009 = vst [vmem:[%s1518_s10 + $0xb8] sm:$0xff] %v945_v25  ;;  %1041 = vst [vmem:[%s1518_s10 + $0x1b8] sm:$0xff] %v977_v26  ;;  %v801_v33 = vmul.f32 %v1500_v12, %v659_v31  ;;  %v833_v34 = vmul.f32 %v1500_v12, %v739_v32  ;;  %v661_v35 = vpop.f32.mrb[26].mxu0  ;;  %v741_v36 = vpop.f32.mrb[26].mxu1 }
 0x14c   : > { %v882_v37 = vadd.f32 %v1502_v13, %v800_v29  ;;  %v914_v38 = vadd.f32 %v1502_v13, %v832_v30  ;;  %v802_v39 = vmul.f32 %v1498_v11, %v661_v35  ;;  %v834_v40 = vmul.f32 %v1498_v11, %v741_v36  ;;  %v663_v41 = vpop.f32.mrb[27].mxu0  ;;  %v743_v42 = vpop.f32.mrb[27].mxu1 }
 0x14d   : > { %v883_v43 = vadd.f32 %v1504_v16, %v801_v33  ;;  %v915_v44 = vadd.f32 %v1504_v16, %v833_v34  ;;  %v803_v45 = vmul.f32 %v1500_v12, %v663_v41  ;;  %v835_v46 = vmul.f32 %v1500_v12, %v743_v42 }
 0x14e   : > { %v946_v47 = vmax.f32 %v882_v37, 0.0  ;;  %v978_v48 = vmax.f32 %v914_v38, 0.0  ;;  %v884_v49 = vadd.f32 %v1502_v13, %v802_v39  ;;  %v916_v50 = vadd.f32 %v1502_v13, %v834_v40 }
 0x14f   : > { %v947_v51 = vmax.f32 %v883_v43, 0.0  ;;  %v979_v52 = vmax.f32 %v915_v44, 0.0  ;;  %v885_v53 = vadd.f32 %v1504_v16, %v803_v45  ;;  %v917_v54 = vadd.f32 %v1504_v16, %v835_v46 }
 0x150   : > { %1010 = vst [vmem:[%s1518_s10 + $0xc0] sm:$0xff] %v946_v47  ;;  %1042 = vst [vmem:[%s1518_s10 + $0x1c0] sm:$0xff] %v978_v48  ;;  %v948_v55 = vmax.f32 %v884_v49, 0.0  ;;  %v980_v56 = vmax.f32 %v916_v50, 0.0 }
 0x151   : > { %1011 = vst [vmem:[%s1518_s10 + $0xc8] sm:$0xff] %v947_v51  ;;  %1043 = vst [vmem:[%s1518_s10 + $0x1c8] sm:$0xff] %v979_v52  ;;  %v949_v57 = vmax.f32 %v885_v53, 0.0  ;;  %v981_v58 = vmax.f32 %v917_v54, 0.0  ;;  %v667_v59 = vpop.f32.mrb[28].mxu0  ;;  %v747_v60 = vpop.f32.mrb[28].mxu1 }
 0x152   : > { %1012 = vst [vmem:[%s1518_s10 + $0xd0] sm:$0xff] %v948_v55  ;;  %1044 = vst [vmem:[%s1518_s10 + $0x1d0] sm:$0xff] %v980_v56  ;;  %v804_v61 = vmul.f32 %v1498_v11, %v667_v59  ;;  %v836_v62 = vmul.f32 %v1498_v11, %v747_v60  ;;  %v669_v63 = vpop.f32.mrb[29].mxu0  ;;  %v749_v0 = vpop.f32.mrb[29].mxu1 }
 0x153   : > { %1013 = vst [vmem:[%s1518_s10 + $0xd8] sm:$0xff] %v949_v57  ;;  %1045 = vst [vmem:[%s1518_s10 + $0x1d8] sm:$0xff] %v981_v58  ;;  %v805_v1 = vmul.f32 %v1500_v12, %v669_v63  ;;  %v837_v2 = vmul.f32 %v1500_v12, %v749_v0  ;;  %v671_v3 = vpop.f32.mrb[30].mxu0  ;;  %v751_v4 = vpop.f32.mrb[30].mxu1 }
 0x154   : > { %v886_v5 = vadd.f32 %v1502_v13, %v804_v61  ;;  %v918_v6 = vadd.f32 %v1502_v13, %v836_v62  ;;  %v806_v7 = vmul.f32 %v1498_v11, %v671_v3  ;;  %v838_v8 = vmul.f32 %v1498_v11, %v751_v4  ;;  %v673_v9 = vpop.f32.mrb[31].mxu0  ;;  %v753_v10 = vpop.f32.mrb[31].mxu1 }
 0x155   : > { %v887_v14 = vadd.f32 %v1504_v16, %v805_v1  ;;  %v919_v15 = vadd.f32 %v1504_v16, %v837_v2  ;;  %v807_v17 = vmul.f32 %v1500_v12, %v673_v9  ;;  %v839_v18 = vmul.f32 %v1500_v12, %v753_v10 }
 0x156   : > { %v950_v19 = vmax.f32 %v886_v5, 0.0  ;;  %v982_v20 = vmax.f32 %v918_v6, 0.0  ;;  %v888_v21 = vadd.f32 %v1502_v13, %v806_v7  ;;  %v920_v11 = vadd.f32 %v1502_v13, %v838_v8 }
 0x157   : > { %v951_v22 = vmax.f32 %v887_v14, 0.0  ;;  %v983_v23 = vmax.f32 %v919_v15, 0.0  ;;  %v889_v24 = vadd.f32 %v1504_v16, %v807_v17  ;;  %v921_v25 = vadd.f32 %v1504_v16, %v839_v18 }
 0x158   : > { %1014 = vst [vmem:[%s1518_s10 + $0xe0] sm:$0xff] %v950_v19  ;;  %1046 = vst [vmem:[%s1518_s10 + $0x1e0] sm:$0xff] %v982_v20  ;;  %v952_v26 = vmax.f32 %v888_v21, 0.0  ;;  %v984_v12 = vmax.f32 %v920_v11, 0.0 }
 0x159   : > { %1015 = vst [vmem:[%s1518_s10 + $0xe8] sm:$0xff] %v951_v22  ;;  %1047 = vst [vmem:[%s1518_s10 + $0x1e8] sm:$0xff] %v983_v23  ;;  %v953_v27 = vmax.f32 %v889_v24, 0.0  ;;  %v985_v28 = vmax.f32 %v921_v25, 0.0 }
 0x15a   : > { %1016 = vst [vmem:[%s1518_s10 + $0xf0] sm:$0xff] %v952_v26  ;;  %1048 = vst [vmem:[%s1518_s10 + $0x1f0] sm:$0xff] %v984_v12 }
 0x15b   : > { %1017 = vst [vmem:[%s1518_s10 + $0xf8] sm:$0xff] %v953_v27  ;;  %1049 = vst [vmem:[%s1518_s10 + $0x1f8] sm:$0xff] %v985_v28 }
 0x15c PF: > { %s13_s12 = sadd.s32 1, %s1329_s12  }
 0x15d   : > { %p10_p4 = scmp.ge.s32.totalorder %s13_s12, 16  }
 0x15f   :  { %12 = sbr.rel (!%p10_p4) target bundleno = 1 (0x1), region = 62 }

// kernel: _lambda_.6
= control target key start
LH: loop header
LB: loop body
LE: loop exit
PB: predicated region body
PF: predicated region fallthrough
CT: control target
= control target key end

     0   :  { %s8282_s12 = smov 0   ;;  %s9744_s0 = inlined_call_operand.vmem [shape: bf16[768,2432], index: 0, kind: input, shape index: {}]   ;;  %s9745_s1 = inlined_call_operand.vmem [shape: bf16[2432,256], index: 1, kind: input, shape index: {}]   ;;  %s9746_s2 = inlined_call_operand.vmem [shape: f32[2,256], index: 2, kind: input, shape index: {}]   ;;  %s9747_s3 = inlined_call_operand.vmem [shape: f32[768,256], index: 3, kind: output, shape index: {}]  }
   0x1 LB: > { %s6142_s13 = sadd.s32 4294967295, %s8259_s12   ;;  %p6146_p0 = scmp.ge.s32.totalorder %s8259_s12, 1  ;;  %s8259_s12 = sphi %s8282_s12, %s13_s12  }
   0x2   : > { %p139_p1 = scmp.lt.s32.totalorder %s8259_s12, 4 }
   0x4   : > { %p140_p2 = pnand %p6146_p0, %p139_p1 }
   0x5   : > { %v7349_v0 = vld [vmem:[%s9745_s1 + $0x4] ss:$8 sps:$4 sm:$0xff] (!%p140_p2)   ;;  %v7353_v2 = vld [vmem:[%s9745_s1] ss:$8 sps:$4 sm:$0xff] (!%p140_p2)   ;;  %v7355_v4 = vld [vmem:[%s9745_s1 + $0x14] ss:$8 sps:$4 sm:$0xff] (!%p140_p2)  }
   0x6   : > { %143 = sbr.rel (%p140_p2) target bundleno = 927 (0x39f), region = 32  ;;  %v7351_v1 = vld [vmem:[%s9745_s1 + $0x504] ss:$8 sps:$4 sm:$0xff] (!%p140_p2)   ;;  %3860 = vmatprep.subr.bf16.mxu1 (!%p140_p2), %v7349_v0  ;;  %v7354_v3 = vld [vmem:[%s9745_s1 + $0x500] ss:$8 sps:$4 sm:$0xff] (!%p140_p2)   ;;  %s6147_s24 = sshll.u32 (!%p140_p2), %s6142_s13, 5 }
   0x7   : > { %4825 = vmatprep.subr.bf16.mxu0 (!%p140_p2), %v7351_v1  ;;  %3861 = vmatpush1.bf16.msra.mxu1 (!%p140_p2), %v7353_v2  ;;  %v7357_v5 = vld [vmem:[%s9745_s1 + $0x514] ss:$8 sps:$4 sm:$0xff] (!%p140_p2)   ;;  %v7359_v6 = vld [vmem:[%s9745_s1 + $0x10] ss:$8 sps:$4 sm:$0xff] (!%p140_p2)   ;;  %v7361_v8 = vld [vmem:[%s9745_s1 + $0x24] ss:$8 sps:$4 sm:$0xff] (!%p140_p2)  }
   0x8   : > { %4826 = vmatpush1.bf16.msra.mxu0 (!%p140_p2), %v7354_v3  ;;  %3862 = vmatprep.subr.bf16.mxu1 (!%p140_p2), %v7355_v4  ;;  %v7360_v7 = vld [vmem:[%s9745_s1 + $0x510] ss:$8 sps:$4 sm:$0xff] (!%p140_p2)   ;;  %v7363_v9 = vld [vmem:[%s9745_s1 + $0x524] ss:$8 sps:$4 sm:$0xff] (!%p140_p2)   ;;  %v7365_v10 = vld [vmem:[%s9745_s1 + $0x20] ss:$8 sps:$4 sm:$0xff] (!%p140_p2)  }
   0x9   : > { %4827 = vmatprep.subr.bf16.mxu0 (!%p140_p2), %v7357_v5  ;;  %v7366_v11 = vld [vmem:[%s9745_s1 + $0x520] ss:$8 sps:$4 sm:$0xff] (!%p140_p2)   ;;  %v7367_v12 = vld [vmem:[%s9745_s1 + $0x34] ss:$8 sps:$4 sm:$0xff] (!%p140_p2)   ;;  %v7371_v14 = vld [vmem:[%s9745_s1 + $0x30] ss:$8 sps:$4 sm:$0xff] (!%p140_p2)  }
   0xa   : > { %v7369_v13 = vld [vmem:[%s9745_s1 + $0x534] ss:$8 sps:$4 sm:$0xff] (!%p140_p2)   ;;  %v7372_v15 = vld [vmem:[%s9745_s1 + $0x530] ss:$8 sps:$4 sm:$0xff] (!%p140_p2)   ;;  %v7373_v16 = vld [vmem:[%s9745_s1 + $0x44] ss:$8 sps:$4 sm:$0xff] (!%p140_p2)  }
   0xb   : > { %3863 = vmatpush1.bf16.msra.mxu1 (!%p140_p2), %v7359_v6  ;;  %v7375_v17 = vld [vmem:[%s9745_s1 + $0x544] ss:$8 sps:$4 sm:$0xff] (!%p140_p2)   ;;  %v7377_v18 = vld [vmem:[%s9745_s1 + $0x40] ss:$8 sps:$4 sm:$0xff] (!%p140_p2)   ;;  %v7379_v20 = vld [vmem:[%s9745_s1 + $0x54] ss:$8 sps:$4 sm:$0xff] (!%p140_p2)  }
   0xc   : > { %4828 = vmatpush1.bf16.msra.mxu0 (!%p140_p2), %v7360_v7  ;;  %3864 = vmatprep.subr.bf16.mxu1 (!%p140_p2), %v7361_v8  ;;  %v7378_v19 = vld [vmem:[%s9745_s1 + $0x540] ss:$8 sps:$4 sm:$0xff] (!%p140_p2)   ;;  %v7381_v21 = vld [vmem:[%s9745_s1 + $0x554] ss:$8 sps:$4 sm:$0xff] (!%p140_p2)   ;;  %v7383_v22 = vld [vmem:[%s9745_s1 + $0x50] ss:$8 sps:$4 sm:$0xff] (!%p140_p2)  }
   0xd   : > { %4829 = vmatprep.subr.bf16.mxu0 %v7363_v9  ;;  %v7384_v23 = vld [vmem:[%s9745_s1 + $0x550] ss:$8 sps:$4 sm:$0xff]   ;;  %v7385_v24 = vld [vmem:[%s9745_s1 + $0x64] ss:$8 sps:$4 sm:$0xff]   ;;  %v7389_v26 = vld [vmem:[%s9745_s1 + $0x60] ss:$8 sps:$4 sm:$0xff]  }
   0xe   : > { %v7387_v25 = vld [vmem:[%s9745_s1 + $0x564] ss:$8 sps:$4 sm:$0xff]   ;;  %v7390_v27 = vld [vmem:[%s9745_s1 + $0x560] ss:$8 sps:$4 sm:$0xff]   ;;  %v7391_v28 = vld [vmem:[%s9745_s1 + $0x74] ss:$8 sps:$4 sm:$0xff]  }
   0xf   : > { %3865 = vmatpush1.bf16.msra.mxu1 %v7365_v10  ;;  %v7393_v29 = vld [vmem:[%s9745_s1 + $0x574] ss:$8 sps:$4 sm:$0xff]   ;;  %v7395_v30 = vld [vmem:[%s9745_s1 + $0x70] ss:$8 sps:$4 sm:$0xff]   ;;  %v7397_v32 = vld [vmem:[%s9745_s1 + $0x84] ss:$8 sps:$4 sm:$0xff]  }
  0x10   : > { %4830 = vmatpush1.bf16.msra.mxu0 %v7366_v11  ;;  %3866 = vmatprep.subr.bf16.mxu1 %v7367_v12  ;;  %v7396_v31 = vld [vmem:[%s9745_s1 + $0x570] ss:$8 sps:$4 sm:$0xff]   ;;  %p166_p3 = scmp.lt.s32.totalorder %s6147_s24, 95  ;;  %v7399_v33 = vld [vmem:[%s9745_s1 + $0x584] ss:$8 sps:$4 sm:$0xff]  }
  0x11   : > { %4831 = vmatprep.subr.bf16.mxu0 %v7369_v13  ;;  %v7401_v34 = vld [vmem:[%s9745_s1 + $0x80] ss:$8 sps:$4 sm:$0xff]   ;;  %v7403_v36 = vld [vmem:[%s9745_s1 + $0x94] ss:$8 sps:$4 sm:$0xff]   ;;  %v7407_v38 = vld [vmem:[%s9745_s1 + $0x90] ss:$8 sps:$4 sm:$0xff]  }
  0x12   : > { %v7402_v35 = vld [vmem:[%s9745_s1 + $0x580] ss:$8 sps:$4 sm:$0xff]   ;;  %s9749_s24 = smov (!%p166_p3, %s6147_s24), 95  ;;  %v7405_v37 = vld [vmem:[%s9745_s1 + $0x594] ss:$8 sps:$4 sm:$0xff]  }
  0x13   : > { %3867 = vmatpush1.bf16.msra.mxu1 %v7371_v14  ;;  %v7408_v39 = vld [vmem:[%s9745_s1 + $0x590] ss:$8 sps:$4 sm:$0xff]   ;;  %v7409_v40 = vld [vmem:[%s9745_s1 + $0xa4] ss:$8 sps:$4 sm:$0xff]   ;;  %s7339_s21 = smul.u32 76, %s9749_s24 }
  0x14   : > { %4832 = vmatpush1.bf16.msra.mxu0 %v7372_v15  ;;  %3868 = vmatprep.subr.bf16.mxu1 %v7373_v16  ;;  %v7411_v41 = vld [vmem:[%s9745_s1 + $0x5a4] ss:$8 sps:$4 sm:$0xff]   ;;  %v7413_v42 = vld [vmem:[%s9745_s1 + $0xa0] ss:$8 sps:$4 sm:$0xff]   ;;  %v7415_v44 = vld [vmem:[%s9745_s1 + $0xb4] ss:$8 sps:$4 sm:$0xff]  }
  0x15   : > { %4833 = vmatprep.subr.bf16.mxu0 %v7375_v17  ;;  %v7414_v43 = vld [vmem:[%s9745_s1 + $0x5a0] ss:$8 sps:$4 sm:$0xff]   ;;  %s8433_s13 = scalar_lea.vmem %s9744_s0, %s7339_s21  ;;  %v7417_v45 = vld [vmem:[%s9745_s1 + $0x5b4] ss:$8 sps:$4 sm:$0xff]   ;;  %v7419_v46 = vld [vmem:[%s9745_s1 + $0xb0] ss:$8 sps:$4 sm:$0xff]  }
  0x16   : > { %v7420_v47 = vld [vmem:[%s9745_s1 + $0x5b0] ss:$8 sps:$4 sm:$0xff]   ;;  %v7421_v48 = vld [vmem:[%s9745_s1 + $0xc4] ss:$8 sps:$4 sm:$0xff]   ;;  %v7425_v52 = vld [vmem:[%s9745_s1 + $0xc0] ss:$8 sps:$4 sm:$0xff]  }
  0x17   : > { %3869 = vmatpush1.bf16.msra.mxu1 %v7377_v18  ;;  %v7447_v49 = vld [vmem:[%s8433_s13 + $0x4] ss:$76 sps:$4 sm:$0xff]   ;;  %v7450_v51 = vld [vmem:[%s8433_s13 + $0x2c] ss:$76 sps:$4 sm:$0xff]   ;;  %v7426_v53 = vld [vmem:[%s9745_s1 + $0x5c0] ss:$8 sps:$4 sm:$0xff]  }
  0x18   : > { %4834 = vmatpush1.bf16.msra.mxu0 %v7378_v19  ;;  %3870 = vmatprep.subr.bf16.mxu1 %v7379_v20  ;;  %v7423_v50 = vld [vmem:[%s9745_s1 + $0x5c4] ss:$8 sps:$4 sm:$0xff]   ;;  %v7427_v54 = vld [vmem:[%s9745_s1 + $0xd4] ss:$8 sps:$4 sm:$0xff]   ;;  %v7431_v56 = vld [vmem:[%s9745_s1 + $0xd0] ss:$8 sps:$4 sm:$0xff]  }
  0x19   : > { %4835 = vmatprep.subr.bf16.mxu0 %v7381_v21  ;;  %3892 = vmatprep.mubr.bf16.mxu1 %v7447_v49  ;;  %v7429_v55 = vld [vmem:[%s9745_s1 + $0x5d4] ss:$8 sps:$4 sm:$0xff]   ;;  %v7432_v57 = vld [vmem:[%s9745_s1 + $0x5d0] ss:$8 sps:$4 sm:$0xff]   ;;  %v7433_v58 = vld [vmem:[%s9745_s1 + $0xe4] ss:$8 sps:$4 sm:$0xff]  }
  0x1a   : > { %4857 = vmatprep.mubr.bf16.mxu0 %v7450_v51  ;;  %v7435_v59 = vld [vmem:[%s9745_s1 + $0x5e4] ss:$8 sps:$4 sm:$0xff]   ;;  %v7437_v60 = vld [vmem:[%s9745_s1 + $0xe0] ss:$8 sps:$4 sm:$0xff]   ;;  %v7439_v62 = vld [vmem:[%s9745_s1 + $0xf4] ss:$8 sps:$4 sm:$0xff]  }
  0x1b   : > { %3871 = vmatpush1.bf16.msra.mxu1 %v7383_v22  ;;  %v7438_v61 = vld [vmem:[%s9745_s1 + $0x5e0] ss:$8 sps:$4 sm:$0xff]   ;;  %v7441_v63 = vld [vmem:[%s9745_s1 + $0x5f4] ss:$8 sps:$4 sm:$0xff]   ;;  %v7443_v0 = vld [vmem:[%s9745_s1 + $0xf0] ss:$8 sps:$4 sm:$0xff]  }
  0x1c   : > { %4836 = vmatpush1.bf16.msra.mxu0 %v7384_v23  ;;  %3872 = vmatprep.subr.bf16.mxu1 %v7385_v24  ;;  %v7444_v1 = vld [vmem:[%s9745_s1 + $0x5f0] ss:$8 sps:$4 sm:$0xff]   ;;  %v7453_v2 = vld [vmem:[%s9745_s1 + $0x104] ss:$8 sps:$4 sm:$0xff]   ;;  %v7448_v5 = vld [vmem:[%s8433_s13 + $0x28] ss:$76 sps:$4 sm:$0xff]  }
  0x1d   : > { %4837 = vmatprep.subr.bf16.mxu0 %v7387_v25  ;;  %v7445_v3 = vld [vmem:[%s8433_s13] ss:$76 sps:$4 sm:$0xff]   ;;  %v7457_v8 = vld [vmem:[%s8433_s13 + $0x9c] ss:$76 sps:$4 sm:$0xff]   ;;  %v7459_v9 = vld [vmem:[%s8433_s13 + $0xc4] ss:$76 sps:$4 sm:$0xff]  }
  0x1e   : > { %v7456_v4 = vld [vmem:[%s9745_s1 + $0x604] ss:$8 sps:$4 sm:$0xff]   ;;  %v7451_v6 = vld [vmem:[%s9745_s1 + $0x100] ss:$8 sps:$4 sm:$0xff]   ;;  %v7464_v10 = vld [vmem:[%s9745_s1 + $0x114] ss:$8 sps:$4 sm:$0xff]  }
  0x1f   : > { %3873 = vmatpush1.bf16.msra.mxu1 %v7389_v26  ;;  %v7454_v7 = vld [vmem:[%s9745_s1 + $0x600] ss:$8 sps:$4 sm:$0xff]   ;;  %v7468_v11 = vld [vmem:[%s9745_s1 + $0x614] ss:$8 sps:$4 sm:$0xff]   ;;  %v7462_v12 = vld [vmem:[%s9745_s1 + $0x110] ss:$8 sps:$4 sm:$0xff]  }
  0x20   : > { %4838 = vmatpush1.bf16.msra.mxu0 %v7390_v27  ;;  %3874 = vmatprep.subr.bf16.mxu1 %v7391_v28  ;;  %v7466_v13 = vld [vmem:[%s9745_s1 + $0x610] ss:$8 sps:$4 sm:$0xff]   ;;  %v7476_v14 = vld [vmem:[%s9745_s1 + $0x124] ss:$8 sps:$4 sm:$0xff]   ;;  %v7469_v18 = vld [vmem:[%s8433_s13 + $0x134] ss:$76 sps:$4 sm:$0xff]  }
  0x21   : > { %4839 = vmatprep.subr.bf16.mxu0 %v7393_v29  ;;  %v7480_v15 = vld [vmem:[%s9745_s1 + $0x624] ss:$8 sps:$4 sm:$0xff]   ;;  %v7471_v19 = vld [vmem:[%s8433_s13 + $0x15c] ss:$76 sps:$4 sm:$0xff]   ;;  %v7486_v24 = vld [vmem:[%s9745_s1 + $0x130] ss:$8 sps:$4 sm:$0xff]  }
  0x22   : > { %v7461_v16 = vld [vmem:[%s8433_s13 + $0x98] ss:$76 sps:$4 sm:$0xff]   ;;  %v7465_v17 = vld [vmem:[%s8433_s13 + $0xc0] ss:$76 sps:$4 sm:$0xff]   ;;  %v7488_v22 = vld [vmem:[%s9745_s1 + $0x134] ss:$8 sps:$4 sm:$0xff]  }
  0x23   : > { %3875 = vmatpush1.bf16.msra.mxu1 %v7395_v30  ;;  %v7474_v20 = vld [vmem:[%s9745_s1 + $0x120] ss:$8 sps:$4 sm:$0xff]   ;;  %v7492_v23 = vld [vmem:[%s9745_s1 + $0x634] ss:$8 sps:$4 sm:$0xff]   ;;  %v7477_v26 = vld [vmem:[%s8433_s13 + $0x158] ss:$76 sps:$4 sm:$0xff]  }
  0x24   : > { %4840 = vmatpush1.bf16.msra.mxu0 %v7396_v31  ;;  %3876 = vmatprep.subr.bf16.mxu1 %v7397_v32  ;;  %v7478_v21 = vld [vmem:[%s9745_s1 + $0x620] ss:$8 sps:$4 sm:$0xff]   ;;  %v7473_v25 = vld [vmem:[%s8433_s13 + $0x130] ss:$76 sps:$4 sm:$0xff]   ;;  %v7481_v28 = vld [vmem:[%s8433_s13 + $0x1cc] ss:$76 sps:$4 sm:$0xff]  }
  0x25   : > { %4841 = vmatprep.subr.bf16.mxu0 %v7399_v33  ;;  %v7490_v27 = vld [vmem:[%s9745_s1 + $0x630] ss:$8 sps:$4 sm:$0xff]   ;;  %v7500_v29 = vld [vmem:[%s9745_s1 + $0x144] ss:$8 sps:$4 sm:$0xff]   ;;  %v7483_v31 = vld [vmem:[%s8433_s13 + $0x1f4] ss:$76 sps:$4 sm:$0xff]  }
  0x26   : > { %v7504_v30 = vld [vmem:[%s9745_s1 + $0x644] ss:$8 sps:$4 sm:$0xff]   ;;  %v7498_v32 = vld [vmem:[%s9745_s1 + $0x140] ss:$8 sps:$4 sm:$0xff]   ;;  %v7538_v51 = vld [vmem:[%s9745_s1 + $0x670] ss:$8 sps:$4 sm:$0xff]  }
  0x27   : > { %3877 = vmatpush1.bf16.msra.mxu1 %v7401_v34  ;;  %v7502_v33 = vld [vmem:[%s9745_s1 + $0x640] ss:$8 sps:$4 sm:$0xff]   ;;  %v7512_v34 = vld [vmem:[%s9745_s1 + $0x154] ss:$8 sps:$4 sm:$0xff]  }
  0x28   : > { %4842 = vmatpush1.bf16.msra.mxu0 %v7402_v35  ;;  %3878 = vmatprep.subr.bf16.mxu1 %v7403_v36  ;;  %v7516_v35 = vld [vmem:[%s9745_s1 + $0x654] ss:$8 sps:$4 sm:$0xff]   ;;  %v7510_v36 = vld [vmem:[%s9745_s1 + $0x150] ss:$8 sps:$4 sm:$0xff]   ;;  %v7497_v49 = vld [vmem:[%s8433_s13 + $0x260] ss:$76 sps:$4 sm:$0xff]  }
  0x29   : > { %4843 = vmatprep.subr.bf16.mxu0 %v7405_v37  ;;  %v7514_v37 = vld [vmem:[%s9745_s1 + $0x650] ss:$8 sps:$4 sm:$0xff]  }
  0x2b   : > { %3879 = vmatpush1.bf16.msra.mxu1 %v7407_v38  ;;  %v7485_v38 = vld [vmem:[%s8433_s13 + $0x1c8] ss:$76 sps:$4 sm:$0xff]  }
  0x2c   : > { %4844 = vmatpush1.bf16.msra.mxu0 %v7408_v39  ;;  %3880 = vmatprep.subr.bf16.mxu1 %v7409_v40  ;;  %v7524_v39 = vld [vmem:[%s9745_s1 + $0x164] ss:$8 sps:$4 sm:$0xff]  }
  0x2d   : > { %4845 = vmatprep.subr.bf16.mxu0 %v7411_v41  ;;  %v7528_v40 = vld [vmem:[%s9745_s1 + $0x664] ss:$8 sps:$4 sm:$0xff]   ;;  %v7489_v41 = vld [vmem:[%s8433_s13 + $0x1f0] ss:$76 sps:$4 sm:$0xff]  }
  0x2f   : > { %3881 = vmatpush1.bf16.msra.mxu1 %v7413_v42  ;;  %v7493_v42 = vld [vmem:[%s8433_s13 + $0x264] ss:$76 sps:$4 sm:$0xff]  }
  0x30   : > { %4846 = vmatpush1.bf16.msra.mxu0 %v7414_v43  ;;  %3882 = vmatprep.subr.bf16.mxu1 %v7415_v44  ;;  %v7495_v43 = vld [vmem:[%s8433_s13 + $0x28c] ss:$76 sps:$4 sm:$0xff]   ;;  %v7522_v44 = vld [vmem:[%s9745_s1 + $0x160] ss:$8 sps:$4 sm:$0xff]  }
  0x31   : > { %4847 = vmatprep.subr.bf16.mxu0 %v7417_v45  ;;  %v7526_v45 = vld [vmem:[%s9745_s1 + $0x660] ss:$8 sps:$4 sm:$0xff]  }
  0x33   : > { %3883 = vmatpush1.bf16.msra.mxu1 %v7419_v46  ;;  %v7536_v46 = vld [vmem:[%s9745_s1 + $0x174] ss:$8 sps:$4 sm:$0xff]  }
  0x34   : > { %4848 = vmatpush1.bf16.msra.mxu0 %v7420_v47  ;;  %3884 = vmatprep.subr.bf16.mxu1 %v7421_v48  ;;  %v7540_v47 = vld [vmem:[%s9745_s1 + $0x674] ss:$8 sps:$4 sm:$0xff]   ;;  %v7534_v48 = vld [vmem:[%s9745_s1 + $0x170] ss:$8 sps:$4 sm:$0xff]  }
  0x35   : > { %4849 = vmatprep.subr.bf16.mxu0 %v7423_v50  ;;  %v7501_v50 = vld [vmem:[%s8433_s13 + $0x288] ss:$76 sps:$4 sm:$0xff]  }
  0x37   : > { %3885 = vmatpush1.bf16.msra.mxu1 %v7425_v52  ;;  %v7505_v52 = vld [vmem:[%s8433_s13 + $0x2fc] ss:$76 sps:$4 sm:$0xff]  }
  0x38   : > { %4850 = vmatpush1.bf16.msra.mxu0 %v7426_v53  ;;  %3886 = vmatprep.subr.bf16.mxu1 %v7427_v54  ;;  %v7548_v53 = vld [vmem:[%s9745_s1 + $0x184] ss:$8 sps:$4 sm:$0xff]  }
  0x39   : > { %4851 = vmatprep.subr.bf16.mxu0 %v7429_v55  ;;  %v7552_v54 = vld [vmem:[%s9745_s1 + $0x684] ss:$8 sps:$4 sm:$0xff]  }
  0x3a   : > { %v7507_v55 = vld [vmem:[%s8433_s13 + $0x324] ss:$76 sps:$4 sm:$0xff]  }
  0x3b   : > { %3887 = vmatpush1.bf16.msra.mxu1 %v7431_v56  ;;  %v7546_v56 = vld [vmem:[%s9745_s1 + $0x180] ss:$8 sps:$4 sm:$0xff]  }
  0x3c   : > { %4852 = vmatpush1.bf16.msra.mxu0 %v7432_v57  ;;  %3888 = vmatprep.subr.bf16.mxu1 %v7433_v58  ;;  %v7550_v57 = vld [vmem:[%s9745_s1 + $0x680] ss:$8 sps:$4 sm:$0xff]   ;;  %v7560_v58 = vld [vmem:[%s9745_s1 + $0x194] ss:$8 sps:$4 sm:$0xff]  }
  0x3d   : > { %4853 = vmatprep.subr.bf16.mxu0 %v7435_v59  ;;  %v7564_v59 = vld [vmem:[%s9745_s1 + $0x694] ss:$8 sps:$4 sm:$0xff]  }
  0x3f   : > { %3889 = vmatpush1.bf16.msra.mxu1 %v7437_v60  ;;  %v7558_v60 = vld [vmem:[%s9745_s1 + $0x190] ss:$8 sps:$4 sm:$0xff]  }
  0x40   : > { %4854 = vmatpush1.bf16.msra.mxu0 %v7438_v61  ;;  %3890 = vmatprep.subr.bf16.mxu1 %v7439_v62  ;;  %v7562_v61 = vld [vmem:[%s9745_s1 + $0x690] ss:$8 sps:$4 sm:$0xff]  }
  0x41   : > { %4855 = vmatprep.subr.bf16.mxu0 %v7441_v63  ;;  %v7509_v62 = vld [vmem:[%s8433_s13 + $0x2f8] ss:$76 sps:$4 sm:$0xff]  }
  0x42   : > { %v7572_v63 = vld [vmem:[%s9745_s1 + $0x1a4] ss:$8 sps:$4 sm:$0xff]  }
  0x43   : > { %3891 = vmatpush1.bf16.msra.mxu1 %v7443_v0  ;;  %v7576_v0 = vld [vmem:[%s9745_s1 + $0x6a4] ss:$8 sps:$4 sm:$0xff]  }
  0x44   : > { %4856 = vmatpush1.bf16.msra.mxu0 %v7444_v1  ;;  %4053 = vmatprep.subr.bf16.mxu1 %v7453_v2  ;;  %v7513_v1 = vld [vmem:[%s8433_s13 + $0x320] ss:$76 sps:$4 sm:$0xff]  }
  0x45   : > { %5018 = vmatprep.subr.bf16.mxu0 %v7456_v4  ;;  %v7517_v2 = vld [vmem:[%s8433_s13 + $0x394] ss:$76 sps:$4 sm:$0xff]  }
  0x46   : > { %3893 = vmatmul.mubr.bf16.vlgmr.msra.gmra.mrb[0].mxu1 %v7445_v3  ;;  %v7519_v3 = vld [vmem:[%s8433_s13 + $0x3bc] ss:$76 sps:$4 sm:$0xff]  }
  0x47   : > { %4858 = vmatmul.mubr.bf16.vlgmr.msra.gmra.mrb[0].mxu0 %v7448_v5  ;;  %4054 = vmatpush1.bf16.msra.mxu1 %v7451_v6  ;;  %v7570_v4 = vld [vmem:[%s9745_s1 + $0x1a0] ss:$8 sps:$4 sm:$0xff]   ;;  %v7584_v6 = vld [vmem:[%s9745_s1 + $0x1b4] ss:$8 sps:$4 sm:$0xff]  }
  0x48   : > { %5019 = vmatpush1.bf16.msra.mxu0 %v7454_v7  ;;  %3902 = vmatprep.mubr.bf16.mxu1 %v7457_v8  ;;  %v7574_v5 = vld [vmem:[%s9745_s1 + $0x6a0] ss:$8 sps:$4 sm:$0xff]   ;;  %v7588_v7 = vld [vmem:[%s9745_s1 + $0x6b4] ss:$8 sps:$4 sm:$0xff]   ;;  %v7582_v8 = vld [vmem:[%s9745_s1 + $0x1b0] ss:$8 sps:$4 sm:$0xff]  }
  0x49   : > { %4867 = vmatprep.mubr.bf16.mxu0 %v7459_v9  ;;  %4055 = vmatprep.subr.bf16.mxu1 %v7464_v10  ;;  %v7521_v9 = vld [vmem:[%s8433_s13 + $0x390] ss:$76 sps:$4 sm:$0xff]   ;;  %v7525_v10 = vld [vmem:[%s8433_s13 + $0x3b8] ss:$76 sps:$4 sm:$0xff]  }
  0x4a   : > { %5020 = vmatprep.subr.bf16.mxu0 %v7468_v11  ;;  %v7586_v11 = vld [vmem:[%s9745_s1 + $0x6b0] ss:$8 sps:$4 sm:$0xff]  }
  0x4b   : > { %4056 = vmatpush1.bf16.msra.mxu1 %v7462_v12  ;;  %v7529_v12 = vld [vmem:[%s8433_s13 + $0x42c] ss:$76 sps:$4 sm:$0xff]  }
  0x4c   : > { %5021 = vmatpush1.bf16.msra.mxu0 %v7466_v13  ;;  %4057 = vmatprep.subr.bf16.mxu1 %v7476_v14  ;;  %v7596_v13 = vld [vmem:[%s9745_s1 + $0x1c4] ss:$8 sps:$4 sm:$0xff]   ;;  %v7531_v14 = vld [vmem:[%s8433_s13 + $0x454] ss:$76 sps:$4 sm:$0xff]  }
  0x4d   : > { %5022 = vmatprep.subr.bf16.mxu0 %v7480_v15  ;;  %v7600_v15 = vld [vmem:[%s9745_s1 + $0x6c4] ss:$8 sps:$4 sm:$0xff]  }
  0x4e   : > { %3903 = vmatmul.mubr.bf16.gmra.mrb[4].mxu1 %v7461_v16  ;;  %v7594_v16 = vld [vmem:[%s9745_s1 + $0x1c0] ss:$8 sps:$4 sm:$0xff]  }
  0x4f   : > { %4868 = vmatmul.mubr.bf16.gmra.mrb[4].mxu0 %v7465_v17  ;;  %3912 = vmatprep.mubr.bf16.mxu1 %v7469_v18  ;;  %v7598_v17 = vld [vmem:[%s9745_s1 + $0x6c0] ss:$8 sps:$4 sm:$0xff]   ;;  %v7606_v18 = vld [vmem:[%s9745_s1 + $0x1d0] ss:$8 sps:$4 sm:$0xff]  }
  0x50   : > { %4877 = vmatprep.mubr.bf16.mxu0 %v7471_v19  ;;  %4058 = vmatpush1.bf16.msra.mxu1 %v7474_v20  ;;  %v7608_v19 = vld [vmem:[%s9745_s1 + $0x1d4] ss:$8 sps:$4 sm:$0xff]   ;;  %v7610_v20 = vld [vmem:[%s9745_s1 + $0x6d0] ss:$8 sps:$4 sm:$0xff]  }
  0x51   : > { %5023 = vmatpush1.bf16.msra.mxu0 %v7478_v21  ;;  %4059 = vmatprep.subr.bf16.mxu1 %v7488_v22  ;;  %v7612_v21 = vld [vmem:[%s9745_s1 + $0x6d4] ss:$8 sps:$4 sm:$0xff]  }
  0x52   : > { %5024 = vmatprep.subr.bf16.mxu0 %v7492_v23  ;;  %v7533_v22 = vld [vmem:[%s8433_s13 + $0x428] ss:$76 sps:$4 sm:$0xff]   ;;  %v7537_v23 = vld [vmem:[%s8433_s13 + $0x450] ss:$76 sps:$4 sm:$0xff]  }
  0x54   : > { %4060 = vmatpush1.bf16.msra.mxu1 %v7486_v24  ;;  %v7541_v24 = vld [vmem:[%s8433_s13 + $0x4c4] ss:$76 sps:$4 sm:$0xff]  }
  0x55   : > { %5025 = vmatpush1.bf16.msra.mxu0 %v7490_v27  ;;  %4061 = vmatprep.subr.bf16.mxu1 %v7500_v29  ;;  %v7618_v27 = vld [vmem:[%s9745_s1 + $0x1e0] ss:$8 sps:$4 sm:$0xff]   ;;  %v7624_v29 = vld [vmem:[%s9745_s1 + $0x6e4] ss:$8 sps:$4 sm:$0xff]  }
  0x56   : > { %5026 = vmatprep.subr.bf16.mxu0 %v7504_v30  ;;  %3913 = vmatmul.mubr.bf16.gmra.mrb[8].mxu1 %v7473_v25  ;;  %v7543_v25 = vld [vmem:[%s8433_s13 + $0x4ec] ss:$76 sps:$4 sm:$0xff]  }
  0x57   : > { %4878 = vmatmul.mubr.bf16.gmra.mrb[8].mxu0 %v7477_v26  ;;  %3922 = vmatprep.mubr.bf16.mxu1 %v7481_v28  ;;  %v7620_v26 = vld [vmem:[%s9745_s1 + $0x1e4] ss:$8 sps:$4 sm:$0xff]   ;;  %v7622_v28 = vld [vmem:[%s9745_s1 + $0x6e0] ss:$8 sps:$4 sm:$0xff]  }
  0x58   : > { %4887 = vmatprep.mubr.bf16.mxu0 %v7483_v31  ;;  %4062 = vmatpush1.bf16.msra.mxu1 %v7498_v32  ;;  %v7545_v30 = vld [vmem:[%s8433_s13 + $0x4c0] ss:$76 sps:$4 sm:$0xff]   ;;  %v7549_v31 = vld [vmem:[%s8433_s13 + $0x4e8] ss:$76 sps:$4 sm:$0xff]   ;;  %v7630_v32 = vld [vmem:[%s9745_s1 + $0x1f0] ss:$8 sps:$4 sm:$0xff]  }
  0x59   : > { %5027 = vmatpush1.bf16.msra.mxu0 %v7502_v33  ;;  %4063 = vmatprep.subr.bf16.mxu1 %v7512_v34  ;;  %v7553_v33 = vld [vmem:[%s8433_s13 + $0x55c] ss:$76 sps:$4 sm:$0xff]  }
  0x5a   : > { %5028 = vmatprep.subr.bf16.mxu0 %v7516_v35  ;;  %v7632_v34 = vld [vmem:[%s9745_s1 + $0x1f4] ss:$8 sps:$4 sm:$0xff]   ;;  %v7634_v35 = vld [vmem:[%s9745_s1 + $0x6f0] ss:$8 sps:$4 sm:$0xff]  }
  0x5c   : > { %4064 = vmatpush1.bf16.msra.mxu1 %v7510_v36  ;;  %v7636_v36 = vld [vmem:[%s9745_s1 + $0x6f4] ss:$8 sps:$4 sm:$0xff]  }
  0x5d   : > { %5029 = vmatpush1.bf16.msra.mxu0 %v7514_v37  ;;  %4065 = vmatprep.subr.bf16.mxu1 %v7524_v39  ;;  %v7555_v37 = vld [vmem:[%s8433_s13 + $0x584] ss:$76 sps:$4 sm:$0xff]  }
  0x5e   : > { %5030 = vmatprep.subr.bf16.mxu0 %v7528_v40  ;;  %3923 = vmatmul.mubr.bf16.gmra.mrb[12].mxu1 %v7485_v38  ;;  %v7645_v38 = vld [vmem:[%s9745_s1 + $0x204] ss:$8 sps:$4 sm:$0xff]  }
  0x5f   : > { %4888 = vmatmul.mubr.bf16.gmra.mrb[12].mxu0 %v7489_v41  ;;  %3932 = vmatprep.mubr.bf16.mxu1 %v7493_v42  ;;  %v7648_v39 = vld [vmem:[%s9745_s1 + $0x704] ss:$8 sps:$4 sm:$0xff]   ;;  %v7565_v42 = vld [vmem:[%s8433_s13 + $0x5f4] ss:$76 sps:$4 sm:$0xff]  }
  0x60   : > { %4897 = vmatprep.mubr.bf16.mxu0 %v7495_v43  ;;  %4066 = vmatpush1.bf16.msra.mxu1 %v7522_v44  ;;  %v7557_v40 = vld [vmem:[%s8433_s13 + $0x558] ss:$76 sps:$4 sm:$0xff]   ;;  %v7561_v41 = vld [vmem:[%s8433_s13 + $0x580] ss:$76 sps:$4 sm:$0xff]   ;;  %v7567_v43 = vld [vmem:[%s8433_s13 + $0x61c] ss:$76 sps:$4 sm:$0xff]  }
  0x61   : > { %5031 = vmatpush1.bf16.msra.mxu0 %v7526_v45  ;;  %4067 = vmatprep.subr.bf16.mxu1 %v7536_v46  ;;  %v7569_v44 = vld [vmem:[%s8433_s13 + $0x5f0] ss:$76 sps:$4 sm:$0xff]   ;;  %v7573_v45 = vld [vmem:[%s8433_s13 + $0x618] ss:$76 sps:$4 sm:$0xff]  }
  0x62   : > { %5032 = vmatprep.subr.bf16.mxu0 %v7540_v47  ;;  %v7577_v46 = vld [vmem:[%s8433_s13 + $0x68c] ss:$76 sps:$4 sm:$0xff]   ;;  %v7579_v47 = vld [vmem:[%s8433_s13 + $0x6b4] ss:$76 sps:$4 sm:$0xff]  }
  0x64   : > { %4068 = vmatpush1.bf16.msra.mxu1 %v7534_v48  ;;  %v7581_v48 = vld [vmem:[%s8433_s13 + $0x688] ss:$76 sps:$4 sm:$0xff]  }
  0x65   : > { %5033 = vmatpush1.bf16.msra.mxu0 %v7538_v51  ;;  %4069 = vmatprep.subr.bf16.mxu1 %v7548_v53  ;;  %v7591_v51 = vld [vmem:[%s8433_s13 + $0x74c] ss:$76 sps:$4 sm:$0xff]   ;;  %v7597_v53 = vld [vmem:[%s8433_s13 + $0x748] ss:$76 sps:$4 sm:$0xff]  }
  0x66   : > { %5034 = vmatprep.subr.bf16.mxu0 %v7552_v54  ;;  %3933 = vmatmul.mubr.bf16.gmra.mrb[16].mxu1 %v7497_v49  ;;  %v7585_v49 = vld [vmem:[%s8433_s13 + $0x6b0] ss:$76 sps:$4 sm:$0xff]  }
  0x67   : > { %4898 = vmatmul.mubr.bf16.gmra.mrb[16].mxu0 %v7501_v50  ;;  %3942 = vmatprep.mubr.bf16.mxu1 %v7505_v52  ;;  %v7589_v50 = vld [vmem:[%s8433_s13 + $0x724] ss:$76 sps:$4 sm:$0xff]   ;;  %v7593_v52 = vld [vmem:[%s8433_s13 + $0x720] ss:$76 sps:$4 sm:$0xff]   ;;  %v7601_v54 = vld [vmem:[%s8433_s13 + $0x7bc] ss:$76 sps:$4 sm:$0xff]  }
  0x68   : > { %4907 = vmatprep.mubr.bf16.mxu0 %v7507_v55  ;;  %4070 = vmatpush1.bf16.msra.mxu1 %v7546_v56  ;;  %v7603_v55 = vld [vmem:[%s8433_s13 + $0x7e4] ss:$76 sps:$4 sm:$0xff]  }
  0x69   : > { %5035 = vmatpush1.bf16.msra.mxu0 %v7550_v57  ;;  %4071 = vmatprep.subr.bf16.mxu1 %v7560_v58  ;;  %v7605_v56 = vld [vmem:[%s8433_s13 + $0x7b8] ss:$76 sps:$4 sm:$0xff]   ;;  %v7609_v57 = vld [vmem:[%s8433_s13 + $0x7e0] ss:$76 sps:$4 sm:$0xff]  }
  0x6a   : > { %5036 = vmatprep.subr.bf16.mxu0 %v7564_v59  ;;  %v7613_v58 = vld [vmem:[%s8433_s13 + $0x854] ss:$76 sps:$4 sm:$0xff]   ;;  %v7615_v59 = vld [vmem:[%s8433_s13 + $0x87c] ss:$76 sps:$4 sm:$0xff]  }
  0x6c   : > { %4072 = vmatpush1.bf16.msra.mxu1 %v7558_v60  ;;  %v7617_v60 = vld [vmem:[%s8433_s13 + $0x850] ss:$76 sps:$4 sm:$0xff]  }
  0x6d   : > { %5037 = vmatpush1.bf16.msra.mxu0 %v7562_v61  ;;  %4073 = vmatprep.subr.bf16.mxu1 %v7572_v63  ;;  %v7621_v61 = vld [vmem:[%s8433_s13 + $0x878] ss:$76 sps:$4 sm:$0xff]   ;;  %v7627_v63 = vld [vmem:[%s8433_s13 + $0x914] ss:$76 sps:$4 sm:$0xff]  }
  0x6e   : > { %5038 = vmatprep.subr.bf16.mxu0 %v7576_v0  ;;  %3943 = vmatmul.mubr.bf16.gmra.mrb[20].mxu1 %v7509_v62  ;;  %v7625_v62 = vld [vmem:[%s8433_s13 + $0x8ec] ss:$76 sps:$4 sm:$0xff]   ;;  %v7629_v0 = vld [vmem:[%s8433_s13 + $0x8e8] ss:$76 sps:$4 sm:$0xff]  }
  0x6f   : > { %4908 = vmatmul.mubr.bf16.gmra.mrb[20].mxu0 %v7513_v1  ;;  %3952 = vmatprep.mubr.bf16.mxu1 %v7517_v2  ;;  %v7633_v1 = vld [vmem:[%s8433_s13 + $0x910] ss:$76 sps:$4 sm:$0xff]   ;;  %v7639_v2 = vld [vmem:[%s8433_s13 + $0xc] ss:$76 sps:$4 sm:$0xff]  }
  0x70   : > { %4917 = vmatprep.mubr.bf16.mxu0 %v7519_v3  ;;  %4074 = vmatpush1.bf16.msra.mxu1 %v7570_v4  ;;  %v7642_v3 = vld [vmem:[%s8433_s13 + $0x34] ss:$76 sps:$4 sm:$0xff]  }
  0x71   : > { %5039 = vmatpush1.bf16.msra.mxu0 %v7574_v5  ;;  %4075 = vmatprep.subr.bf16.mxu1 %v7584_v6  ;;  %v7637_v4 = vld [vmem:[%s8433_s13 + $0x8] ss:$76 sps:$4 sm:$0xff]   ;;  %v7640_v5 = vld [vmem:[%s8433_s13 + $0x30] ss:$76 sps:$4 sm:$0xff]  }
  0x72   : > { %5040 = vmatprep.subr.bf16.mxu0 %v7588_v7  ;;  %v7643_v6 = vld [vmem:[%s9745_s1 + $0x200] ss:$8 sps:$4 sm:$0xff]  }
  0x73   : > { %v7646_v7 = vld [vmem:[%s9745_s1 + $0x700] ss:$8 sps:$4 sm:$0xff]  }
  0x74   : > { %4076 = vmatpush1.bf16.msra.mxu1 %v7582_v8  ;;  %v7649_v8 = vld [vmem:[%s8433_s13 + $0xa4] ss:$76 sps:$4 sm:$0xff]  }
  0x75   : > { %5041 = vmatpush1.bf16.msra.mxu0 %v7586_v11  ;;  %4077 = vmatprep.subr.bf16.mxu1 %v7596_v13  ;;  %v7660_v11 = vld [vmem:[%s9745_s1 + $0x714] ss:$8 sps:$4 sm:$0xff]   ;;  %v7658_v13 = vld [vmem:[%s9745_s1 + $0x710] ss:$8 sps:$4 sm:$0xff]  }
  0x76   : > { %5042 = vmatprep.subr.bf16.mxu0 %v7600_v15  ;;  %3953 = vmatmul.mubr.bf16.gmra.mrb[24].mxu1 %v7521_v9  ;;  %v7651_v9 = vld [vmem:[%s8433_s13 + $0xcc] ss:$76 sps:$4 sm:$0xff]  }
  0x77   : > { %4918 = vmatmul.mubr.bf16.gmra.mrb[24].mxu0 %v7525_v10  ;;  %3962 = vmatprep.mubr.bf16.mxu1 %v7529_v12  ;;  %v7656_v10 = vld [vmem:[%s9745_s1 + $0x214] ss:$8 sps:$4 sm:$0xff]   ;;  %v7654_v12 = vld [vmem:[%s9745_s1 + $0x210] ss:$8 sps:$4 sm:$0xff]   ;;  %v7672_v15 = vld [vmem:[%s9745_s1 + $0x724] ss:$8 sps:$4 sm:$0xff]  }
  0x78   : > { %4927 = vmatprep.mubr.bf16.mxu0 %v7531_v14  ;;  %4078 = vmatpush1.bf16.msra.mxu1 %v7594_v16  ;;  %v7668_v14 = vld [vmem:[%s9745_s1 + $0x224] ss:$8 sps:$4 sm:$0xff]  }
  0x79   : > { %5043 = vmatpush1.bf16.msra.mxu0 %v7598_v17  ;;  %4079 = vmatprep.subr.bf16.mxu1 %v7608_v19  ;;  %v7653_v16 = vld [vmem:[%s8433_s13 + $0xa0] ss:$76 sps:$4 sm:$0xff]   ;;  %v7657_v17 = vld [vmem:[%s8433_s13 + $0xc8] ss:$76 sps:$4 sm:$0xff]   ;;  %v7663_v19 = vld [vmem:[%s8433_s13 + $0x164] ss:$76 sps:$4 sm:$0xff]  }
  0x7a   : > { %5044 = vmatprep.subr.bf16.mxu0 %v7612_v21  ;;  %v7670_v21 = vld [vmem:[%s9745_s1 + $0x720] ss:$8 sps:$4 sm:$0xff]  }
  0x7c   : > { %4080 = vmatpush1.bf16.msra.mxu1 %v7606_v18  ;;  %v7661_v18 = vld [vmem:[%s8433_s13 + $0x13c] ss:$76 sps:$4 sm:$0xff]  }
  0x7d   : > { %5045 = vmatpush1.bf16.msra.mxu0 %v7610_v20  ;;  %4081 = vmatprep.subr.bf16.mxu1 %v7620_v26  ;;  %v7666_v20 = vld [vmem:[%s9745_s1 + $0x220] ss:$8 sps:$4 sm:$0xff]  }
  0x7e   : > { %3963 = vmatmul.mubr.bf16.gmra.mrb[28].mxu1 %v7533_v22  ;;  %5046 = vmatprep.subr.bf16.mxu0 %v7624_v29  ;;  %v7680_v22 = vld [vmem:[%s9745_s1 + $0x234] ss:$8 sps:$4 sm:$0xff]   ;;  %v7669_v26 = vld [vmem:[%s8433_s13 + $0x160] ss:$76 sps:$4 sm:$0xff]  }
  0x7f   : > { %4928 = vmatmul.mubr.bf16.gmra.mrb[28].mxu0 %v7537_v23  ;;  %3972 = vmatprep.mubr.bf16.mxu1 %v7541_v24  ;;  %v7684_v23 = vld [vmem:[%s9745_s1 + $0x734] ss:$8 sps:$4 sm:$0xff]   ;;  %v7678_v24 = vld [vmem:[%s9745_s1 + $0x230] ss:$8 sps:$4 sm:$0xff]   ;;  %v7692_v29 = vld [vmem:[%s9745_s1 + $0x244] ss:$8 sps:$4 sm:$0xff]  }
  0x80   : > { %4937 = vmatprep.mubr.bf16.mxu0 %v7543_v25  ;;  %4082 = vmatpush1.bf16.msra.mxu1 %v7618_v27  ;;  %v7665_v25 = vld [vmem:[%s8433_s13 + $0x138] ss:$76 sps:$4 sm:$0xff]  }
  0x81   : > { %5047 = vmatpush1.bf16.msra.mxu0 %v7622_v28  ;;  %4083 = vmatprep.subr.bf16.mxu1 %v7632_v34  ;;  %v7682_v27 = vld [vmem:[%s9745_s1 + $0x730] ss:$8 sps:$4 sm:$0xff]   ;;  %v7673_v28 = vld [vmem:[%s8433_s13 + $0x1d4] ss:$76 sps:$4 sm:$0xff]  }
  0x82   : > { %5048 = vmatprep.subr.bf16.mxu0 %v7636_v36  ;;  %v7704_v34 = vld [vmem:[%s9745_s1 + $0x254] ss:$8 sps:$4 sm:$0xff]   ;;  %v7702_v36 = vld [vmem:[%s9745_s1 + $0x250] ss:$8 sps:$4 sm:$0xff]  }
  0x84   : > { %4084 = vmatpush1.bf16.msra.mxu1 %v7630_v32  ;;  %v7690_v32 = vld [vmem:[%s9745_s1 + $0x240] ss:$8 sps:$4 sm:$0xff]  }
  0x85   : > { %5049 = vmatpush1.bf16.msra.mxu0 %v7634_v35  ;;  %4246 = vmatprep.subr.bf16.mxu1 %v7645_v38  ;;  %v7708_v35 = vld [vmem:[%s9745_s1 + $0x754] ss:$8 sps:$4 sm:$0xff]   ;;  %v7681_v38 = vld [vmem:[%s8433_s13 + $0x1f8] ss:$76 sps:$4 sm:$0xff]  }
  0x86   : > { %3973 = vmatmul.mubr.bf16.gmra.mrb[32].mxu1 %v7545_v30  ;;  %5211 = vmatprep.subr.bf16.mxu0 %v7648_v39  ;;  %v7696_v30 = vld [vmem:[%s9745_s1 + $0x744] ss:$8 sps:$4 sm:$0xff]   ;;  %v7706_v39 = vld [vmem:[%s9745_s1 + $0x750] ss:$8 sps:$4 sm:$0xff]  }
  0x87   : > { %4938 = vmatmul.mubr.bf16.gmra.mrb[32].mxu0 %v7549_v31  ;;  %3982 = vmatprep.mubr.bf16.mxu1 %v7553_v33  ;;  %v7675_v31 = vld [vmem:[%s8433_s13 + $0x1fc] ss:$76 sps:$4 sm:$0xff]  }
  0x88   : > { %4947 = vmatprep.mubr.bf16.mxu0 %v7555_v37  ;;  %v7694_v33 = vld [vmem:[%s9745_s1 + $0x740] ss:$8 sps:$4 sm:$0xff]   ;;  %v7677_v37 = vld [vmem:[%s8433_s13 + $0x1d0] ss:$76 sps:$4 sm:$0xff]  }
  0x8e   : > { %3983 = vmatmul.mubr.bf16.gmra.mrb[36].mxu1 %v7557_v40  ;;  %v7716_v40 = vld [vmem:[%s9745_s1 + $0x264] ss:$8 sps:$4 sm:$0xff]  }
  0x8f   : > { %4948 = vmatmul.mubr.bf16.gmra.mrb[36].mxu0 %v7561_v41  ;;  %3992 = vmatprep.mubr.bf16.mxu1 %v7565_v42  ;;  %v7720_v41 = vld [vmem:[%s9745_s1 + $0x764] ss:$8 sps:$4 sm:$0xff]  }
  0x90   : > { %4957 = vmatprep.mubr.bf16.mxu0 %v7567_v43  ;;  %v7685_v42 = vld [vmem:[%s8433_s13 + $0x26c] ss:$76 sps:$4 sm:$0xff]   ;;  %v7687_v43 = vld [vmem:[%s8433_s13 + $0x294] ss:$76 sps:$4 sm:$0xff]  }
  0x96   : > { %3993 = vmatmul.mubr.bf16.gmra.mrb[40].mxu1 %v7569_v44  ;;  %v7714_v44 = vld [vmem:[%s9745_s1 + $0x260] ss:$8 sps:$4 sm:$0xff]  }
  0x97   : > { %4958 = vmatmul.mubr.bf16.gmra.mrb[40].mxu0 %v7573_v45  ;;  %4002 = vmatprep.mubr.bf16.mxu1 %v7577_v46  ;;  %v7718_v45 = vld [vmem:[%s9745_s1 + $0x760] ss:$8 sps:$4 sm:$0xff]   ;;  %v7728_v46 = vld [vmem:[%s9745_s1 + $0x274] ss:$8 sps:$4 sm:$0xff]  }
  0x98   : > { %4967 = vmatprep.mubr.bf16.mxu0 %v7579_v47  ;;  %v7732_v47 = vld [vmem:[%s9745_s1 + $0x774] ss:$8 sps:$4 sm:$0xff]  }
  0x9e   : > { %4003 = vmatmul.mubr.bf16.gmra.mrb[44].mxu1 %v7581_v48  ;;  %v7726_v48 = vld [vmem:[%s9745_s1 + $0x270] ss:$8 sps:$4 sm:$0xff]  }
  0x9f   : > { %4968 = vmatmul.mubr.bf16.gmra.mrb[44].mxu0 %v7585_v49  ;;  %4012 = vmatprep.mubr.bf16.mxu1 %v7589_v50  ;;  %v7689_v49 = vld [vmem:[%s8433_s13 + $0x268] ss:$76 sps:$4 sm:$0xff]   ;;  %v7693_v50 = vld [vmem:[%s8433_s13 + $0x290] ss:$76 sps:$4 sm:$0xff]  }
  0xa0   : > { %4977 = vmatprep.mubr.bf16.mxu0 %v7591_v51  ;;  %v7730_v51 = vld [vmem:[%s9745_s1 + $0x770] ss:$8 sps:$4 sm:$0xff]  }
  0xa6   : > { %4013 = vmatmul.mubr.bf16.gmra.mrb[48].mxu1 %v7593_v52  ;;  %v7697_v52 = vld [vmem:[%s8433_s13 + $0x304] ss:$76 sps:$4 sm:$0xff]  }
  0xa7   : > { %4978 = vmatmul.mubr.bf16.gmra.mrb[48].mxu0 %v7597_v53  ;;  %4022 = vmatprep.mubr.bf16.mxu1 %v7601_v54  ;;  %v7740_v53 = vld [vmem:[%s9745_s1 + $0x284] ss:$8 sps:$4 sm:$0xff]  }
  0xa8   : > { %4987 = vmatprep.mubr.bf16.mxu0 %v7603_v55  ;;  %v7744_v54 = vld [vmem:[%s9745_s1 + $0x784] ss:$8 sps:$4 sm:$0xff]  }
  0xa9   : > { %v7699_v55 = vld [vmem:[%s8433_s13 + $0x32c] ss:$76 sps:$4 sm:$0xff]  }
  0xae   : > { %4023 = vmatmul.mubr.bf16.gmra.mrb[52].mxu1 %v7605_v56  ;;  %v7738_v56 = vld [vmem:[%s9745_s1 + $0x280] ss:$8 sps:$4 sm:$0xff]  }
  0xaf   : > { %4988 = vmatmul.mubr.bf16.gmra.mrb[52].mxu0 %v7609_v57  ;;  %4032 = vmatprep.mubr.bf16.mxu1 %v7613_v58  ;;  %v7742_v57 = vld [vmem:[%s9745_s1 + $0x780] ss:$8 sps:$4 sm:$0xff]   ;;  %v7752_v58 = vld [vmem:[%s9745_s1 + $0x294] ss:$8 sps:$4 sm:$0xff]  }
  0xb0   : > { %4997 = vmatprep.mubr.bf16.mxu0 %v7615_v59  ;;  %v7756_v59 = vld [vmem:[%s9745_s1 + $0x794] ss:$8 sps:$4 sm:$0xff]  }
  0xb6   : > { %4033 = vmatmul.mubr.bf16.gmra.mrb[56].mxu1 %v7617_v60  ;;  %v7750_v60 = vld [vmem:[%s9745_s1 + $0x290] ss:$8 sps:$4 sm:$0xff]  }
  0xb7   : > { %4998 = vmatmul.mubr.bf16.gmra.mrb[56].mxu0 %v7621_v61  ;;  %4042 = vmatprep.mubr.bf16.mxu1 %v7625_v62  ;;  %v7754_v61 = vld [vmem:[%s9745_s1 + $0x790] ss:$8 sps:$4 sm:$0xff]   ;;  %v7701_v62 = vld [vmem:[%s8433_s13 + $0x300] ss:$76 sps:$4 sm:$0xff]  }
  0xb8   : > { %5007 = vmatprep.mubr.bf16.mxu0 %v7627_v63  ;;  %v7764_v63 = vld [vmem:[%s9745_s1 + $0x2a4] ss:$8 sps:$4 sm:$0xff]  }
  0xbe   : > { %4043 = vmatmul.mubr.bf16.gmra.mrb[60].mxu1 %v7629_v0  ;;  %v7768_v0 = vld [vmem:[%s9745_s1 + $0x7a4] ss:$8 sps:$4 sm:$0xff]  }
  0xbf   : > { %5008 = vmatmul.mubr.bf16.gmra.mrb[60].mxu0 %v7633_v1  ;;  %4085 = vmatprep.mubr.bf16.mxu1 %v7639_v2  ;;  %v7705_v1 = vld [vmem:[%s8433_s13 + $0x328] ss:$76 sps:$4 sm:$0xff]  }
  0xc0   : > { %5050 = vmatprep.mubr.bf16.mxu0 %v7642_v3  ;;  %v7709_v2 = vld [vmem:[%s8433_s13 + $0x39c] ss:$76 sps:$4 sm:$0xff]   ;;  %v7711_v3 = vld [vmem:[%s8433_s13 + $0x3c4] ss:$76 sps:$4 sm:$0xff]  }
  0xc6   : > { %4086 = vmatmul.mubr.bf16.vlgmr.msra.gmra.mrb[0].mxu1 %v7637_v4  ;;  %v7762_v4 = vld [vmem:[%s9745_s1 + $0x2a0] ss:$8 sps:$4 sm:$0xff]  }
  0xc7   : > { %5051 = vmatmul.mubr.bf16.vlgmr.msra.gmra.mrb[0].mxu0 %v7640_v5  ;;  %4247 = vmatpush1.bf16.msra.mxu1 %v7643_v6  ;;  %v7766_v5 = vld [vmem:[%s9745_s1 + $0x7a0] ss:$8 sps:$4 sm:$0xff]   ;;  %v7776_v6 = vld [vmem:[%s9745_s1 + $0x2b4] ss:$8 sps:$4 sm:$0xff]  }
  0xc8   : > { %5212 = vmatpush1.bf16.msra.mxu0 %v7646_v7  ;;  %4095 = vmatprep.mubr.bf16.mxu1 %v7649_v8  ;;  %v7780_v7 = vld [vmem:[%s9745_s1 + $0x7b4] ss:$8 sps:$4 sm:$0xff]   ;;  %v7774_v8 = vld [vmem:[%s9745_s1 + $0x2b0] ss:$8 sps:$4 sm:$0xff]  }
  0xc9   : > { %5060 = vmatprep.mubr.bf16.mxu0 %v7651_v9  ;;  %4248 = vmatprep.subr.bf16.mxu1 %v7656_v10  ;;  %v7713_v9 = vld [vmem:[%s8433_s13 + $0x398] ss:$76 sps:$4 sm:$0xff]   ;;  %v7717_v10 = vld [vmem:[%s8433_s13 + $0x3c0] ss:$76 sps:$4 sm:$0xff]  }
  0xca   : > { %5213 = vmatprep.subr.bf16.mxu0 %v7660_v11  ;;  %v7778_v11 = vld [vmem:[%s9745_s1 + $0x7b0] ss:$8 sps:$4 sm:$0xff]  }
  0xcb   : > { %4249 = vmatpush1.bf16.msra.mxu1 %v7654_v12  ;;  %v7721_v12 = vld [vmem:[%s8433_s13 + $0x434] ss:$76 sps:$4 sm:$0xff]  }
  0xcc   : > { %5214 = vmatpush1.bf16.msra.mxu0 %v7658_v13  ;;  %4250 = vmatprep.subr.bf16.mxu1 %v7668_v14  ;;  %v7788_v13 = vld [vmem:[%s9745_s1 + $0x2c4] ss:$8 sps:$4 sm:$0xff]  }
  0xcd   : > { %5215 = vmatprep.subr.bf16.mxu0 %v7672_v15  ;;  %v7792_v14 = vld [vmem:[%s9745_s1 + $0x7c4] ss:$8 sps:$4 sm:$0xff]   ;;  %v7723_v15 = vld [vmem:[%s8433_s13 + $0x45c] ss:$76 sps:$4 sm:$0xff]  }
  0xce   : > { %4096 = vmatmul.mubr.bf16.gmra.mrb[4].mxu1 %v7653_v16  ;;  %v7786_v16 = vld [vmem:[%s9745_s1 + $0x2c0] ss:$8 sps:$4 sm:$0xff]  }
  0xcf   : > { %5061 = vmatmul.mubr.bf16.gmra.mrb[4].mxu0 %v7657_v17  ;;  %4105 = vmatprep.mubr.bf16.mxu1 %v7661_v18  ;;  %v7790_v17 = vld [vmem:[%s9745_s1 + $0x7c0] ss:$8 sps:$4 sm:$0xff]   ;;  %v7800_v18 = vld [vmem:[%s9745_s1 + $0x2d4] ss:$8 sps:$4 sm:$0xff]  }
  0xd0   : > { %5070 = vmatprep.mubr.bf16.mxu0 %v7663_v19  ;;  %4251 = vmatpush1.bf16.msra.mxu1 %v7666_v20  ;;  %v7804_v19 = vld [vmem:[%s9745_s1 + $0x7d4] ss:$8 sps:$4 sm:$0xff]   ;;  %v7798_v20 = vld [vmem:[%s9745_s1 + $0x2d0] ss:$8 sps:$4 sm:$0xff]  }
  0xd1   : > { %5216 = vmatpush1.bf16.msra.mxu0 %v7670_v21  ;;  %4252 = vmatprep.subr.bf16.mxu1 %v7680_v22  ;;  %v7802_v21 = vld [vmem:[%s9745_s1 + $0x7d0] ss:$8 sps:$4 sm:$0xff]  }
  0xd2   : > { %5217 = vmatprep.subr.bf16.mxu0 %v7684_v23  ;;  %v7725_v22 = vld [vmem:[%s8433_s13 + $0x430] ss:$76 sps:$4 sm:$0xff]   ;;  %v7812_v23 = vld [vmem:[%s9745_s1 + $0x2e4] ss:$8 sps:$4 sm:$0xff]  }
  0xd4   : > { %4253 = vmatpush1.bf16.msra.mxu1 %v7678_v24  ;;  %v7816_v24 = vld [vmem:[%s9745_s1 + $0x7e4] ss:$8 sps:$4 sm:$0xff]  }
  0xd5   : > { %5218 = vmatpush1.bf16.msra.mxu0 %v7682_v27  ;;  %4254 = vmatprep.subr.bf16.mxu1 %v7692_v29  ;;  %v7735_v27 = vld [vmem:[%s8433_s13 + $0x4f4] ss:$76 sps:$4 sm:$0xff]  }
  0xd6   : > { %5219 = vmatprep.subr.bf16.mxu0 %v7696_v30  ;;  %4106 = vmatmul.mubr.bf16.gmra.mrb[8].mxu1 %v7665_v25  ;;  %v7729_v25 = vld [vmem:[%s8433_s13 + $0x458] ss:$76 sps:$4 sm:$0xff]   ;;  %v7814_v29 = vld [vmem:[%s9745_s1 + $0x7e0] ss:$8 sps:$4 sm:$0xff]   ;;  %v7824_v30 = vld [vmem:[%s9745_s1 + $0x2f4] ss:$8 sps:$4 sm:$0xff]  }
  0xd7   : > { %5071 = vmatmul.mubr.bf16.gmra.mrb[8].mxu0 %v7669_v26  ;;  %4115 = vmatprep.mubr.bf16.mxu1 %v7673_v28  ;;  %v7733_v26 = vld [vmem:[%s8433_s13 + $0x4cc] ss:$76 sps:$4 sm:$0xff]   ;;  %v7810_v28 = vld [vmem:[%s9745_s1 + $0x2e0] ss:$8 sps:$4 sm:$0xff]  }
  0xd8   : > { %5080 = vmatprep.mubr.bf16.mxu0 %v7675_v31  ;;  %4255 = vmatpush1.bf16.msra.mxu1 %v7690_v32  ;;  %v7828_v31 = vld [vmem:[%s9745_s1 + $0x7f4] ss:$8 sps:$4 sm:$0xff]   ;;  %v7822_v32 = vld [vmem:[%s9745_s1 + $0x2f0] ss:$8 sps:$4 sm:$0xff]  }
  0xd9   : > { %5220 = vmatpush1.bf16.msra.mxu0 %v7694_v33  ;;  %4256 = vmatprep.subr.bf16.mxu1 %v7704_v34  ;;  %v7737_v33 = vld [vmem:[%s8433_s13 + $0x4c8] ss:$76 sps:$4 sm:$0xff]   ;;  %v7826_v34 = vld [vmem:[%s9745_s1 + $0x7f0] ss:$8 sps:$4 sm:$0xff]  }
  0xda   : > { %5221 = vmatprep.subr.bf16.mxu0 %v7708_v35  ;;  %v7837_v35 = vld [vmem:[%s9745_s1 + $0x304] ss:$8 sps:$4 sm:$0xff]  }
  0xdc   : > { %4257 = vmatpush1.bf16.msra.mxu1 %v7702_v36  ;;  %v7840_v36 = vld [vmem:[%s9745_s1 + $0x804] ss:$8 sps:$4 sm:$0xff]  }
  0xdd   : > { %5222 = vmatpush1.bf16.msra.mxu0 %v7706_v39  ;;  %4258 = vmatprep.subr.bf16.mxu1 %v7716_v40  ;;  %v7747_v39 = vld [vmem:[%s8433_s13 + $0x58c] ss:$76 sps:$4 sm:$0xff]  }
  0xde   : > { %5223 = vmatprep.subr.bf16.mxu0 %v7720_v41  ;;  %4116 = vmatmul.mubr.bf16.gmra.mrb[12].mxu1 %v7677_v37  ;;  %v7741_v37 = vld [vmem:[%s8433_s13 + $0x4f0] ss:$76 sps:$4 sm:$0xff]   ;;  %v7749_v40 = vld [vmem:[%s8433_s13 + $0x560] ss:$76 sps:$4 sm:$0xff]   ;;  %v7753_v41 = vld [vmem:[%s8433_s13 + $0x588] ss:$76 sps:$4 sm:$0xff]  }
  0xdf   : > { %5081 = vmatmul.mubr.bf16.gmra.mrb[12].mxu0 %v7681_v38  ;;  %4125 = vmatprep.mubr.bf16.mxu1 %v7685_v42  ;;  %v7745_v38 = vld [vmem:[%s8433_s13 + $0x564] ss:$76 sps:$4 sm:$0xff]   ;;  %v7757_v42 = vld [vmem:[%s8433_s13 + $0x5fc] ss:$76 sps:$4 sm:$0xff]  }
  0xe0   : > { %5090 = vmatprep.mubr.bf16.mxu0 %v7687_v43  ;;  %4259 = vmatpush1.bf16.msra.mxu1 %v7714_v44  ;;  %v7759_v43 = vld [vmem:[%s8433_s13 + $0x624] ss:$76 sps:$4 sm:$0xff]  }
  0xe1   : > { %5224 = vmatpush1.bf16.msra.mxu0 %v7718_v45  ;;  %4260 = vmatprep.subr.bf16.mxu1 %v7728_v46  ;;  %v7761_v44 = vld [vmem:[%s8433_s13 + $0x5f8] ss:$76 sps:$4 sm:$0xff]   ;;  %v7765_v45 = vld [vmem:[%s8433_s13 + $0x620] ss:$76 sps:$4 sm:$0xff]  }
  0xe2   : > { %5225 = vmatprep.subr.bf16.mxu0 %v7732_v47  ;;  %v7769_v46 = vld [vmem:[%s8433_s13 + $0x694] ss:$76 sps:$4 sm:$0xff]   ;;  %v7771_v47 = vld [vmem:[%s8433_s13 + $0x6bc] ss:$76 sps:$4 sm:$0xff]  }
  0xe4   : > { %4261 = vmatpush1.bf16.msra.mxu1 %v7726_v48  ;;  %v7773_v48 = vld [vmem:[%s8433_s13 + $0x690] ss:$76 sps:$4 sm:$0xff]  }
  0xe5   : > { %5226 = vmatpush1.bf16.msra.mxu0 %v7730_v51  ;;  %4262 = vmatprep.subr.bf16.mxu1 %v7740_v53  ;;  %v7783_v51 = vld [vmem:[%s8433_s13 + $0x754] ss:$76 sps:$4 sm:$0xff]   ;;  %v7789_v53 = vld [vmem:[%s8433_s13 + $0x750] ss:$76 sps:$4 sm:$0xff]  }
  0xe6   : > { %5227 = vmatprep.subr.bf16.mxu0 %v7744_v54  ;;  %4126 = vmatmul.mubr.bf16.gmra.mrb[16].mxu1 %v7689_v49  ;;  %v7777_v49 = vld [vmem:[%s8433_s13 + $0x6b8] ss:$76 sps:$4 sm:$0xff]  }
  0xe7   : > { %5091 = vmatmul.mubr.bf16.gmra.mrb[16].mxu0 %v7693_v50  ;;  %4135 = vmatprep.mubr.bf16.mxu1 %v7697_v52  ;;  %v7781_v50 = vld [vmem:[%s8433_s13 + $0x72c] ss:$76 sps:$4 sm:$0xff]   ;;  %v7785_v52 = vld [vmem:[%s8433_s13 + $0x728] ss:$76 sps:$4 sm:$0xff]   ;;  %v7793_v54 = vld [vmem:[%s8433_s13 + $0x7c4] ss:$76 sps:$4 sm:$0xff]  }
  0xe8   : > { %5100 = vmatprep.mubr.bf16.mxu0 %v7699_v55  ;;  %4263 = vmatpush1.bf16.msra.mxu1 %v7738_v56  ;;  %v7795_v55 = vld [vmem:[%s8433_s13 + $0x7ec] ss:$76 sps:$4 sm:$0xff]  }
  0xe9   : > { %5228 = vmatpush1.bf16.msra.mxu0 %v7742_v57  ;;  %4264 = vmatprep.subr.bf16.mxu1 %v7752_v58  ;;  %v7797_v56 = vld [vmem:[%s8433_s13 + $0x7c0] ss:$76 sps:$4 sm:$0xff]   ;;  %v7801_v57 = vld [vmem:[%s8433_s13 + $0x7e8] ss:$76 sps:$4 sm:$0xff]  }
  0xea   : > { %5229 = vmatprep.subr.bf16.mxu0 %v7756_v59  ;;  %v7805_v58 = vld [vmem:[%s8433_s13 + $0x85c] ss:$76 sps:$4 sm:$0xff]   ;;  %v7807_v59 = vld [vmem:[%s8433_s13 + $0x884] ss:$76 sps:$4 sm:$0xff]  }
  0xec   : > { %4265 = vmatpush1.bf16.msra.mxu1 %v7750_v60  ;;  %v7809_v60 = vld [vmem:[%s8433_s13 + $0x858] ss:$76 sps:$4 sm:$0xff]  }
  0xed   : > { %5230 = vmatpush1.bf16.msra.mxu0 %v7754_v61  ;;  %4266 = vmatprep.subr.bf16.mxu1 %v7764_v63  ;;  %v7813_v61 = vld [vmem:[%s8433_s13 + $0x880] ss:$76 sps:$4 sm:$0xff]   ;;  %v7819_v63 = vld [vmem:[%s8433_s13 + $0x91c] ss:$76 sps:$4 sm:$0xff]  }
  0xee   : > { %5231 = vmatprep.subr.bf16.mxu0 %v7768_v0  ;;  %4136 = vmatmul.mubr.bf16.gmra.mrb[20].mxu1 %v7701_v62  ;;  %v7817_v62 = vld [vmem:[%s8433_s13 + $0x8f4] ss:$76 sps:$4 sm:$0xff]   ;;  %v7821_v0 = vld [vmem:[%s8433_s13 + $0x8f0] ss:$76 sps:$4 sm:$0xff]  }
  0xef   : > { %5101 = vmatmul.mubr.bf16.gmra.mrb[20].mxu0 %v7705_v1  ;;  %4145 = vmatprep.mubr.bf16.mxu1 %v7709_v2  ;;  %v7825_v1 = vld [vmem:[%s8433_s13 + $0x918] ss:$76 sps:$4 sm:$0xff]   ;;  %v7831_v2 = vld [vmem:[%s8433_s13 + $0x14] ss:$76 sps:$4 sm:$0xff]  }
  0xf0   : > { %5110 = vmatprep.mubr.bf16.mxu0 %v7711_v3  ;;  %4267 = vmatpush1.bf16.msra.mxu1 %v7762_v4  ;;  %v7834_v3 = vld [vmem:[%s8433_s13 + $0x3c] ss:$76 sps:$4 sm:$0xff]  }
  0xf1   : > { %5232 = vmatpush1.bf16.msra.mxu0 %v7766_v5  ;;  %4268 = vmatprep.subr.bf16.mxu1 %v7776_v6  ;;  %v7829_v4 = vld [vmem:[%s8433_s13 + $0x10] ss:$76 sps:$4 sm:$0xff]   ;;  %v7832_v5 = vld [vmem:[%s8433_s13 + $0x38] ss:$76 sps:$4 sm:$0xff]   ;;  %v7835_v6 = vld [vmem:[%s9745_s1 + $0x300] ss:$8 sps:$4 sm:$0xff]  }
  0xf2   : > { %5233 = vmatprep.subr.bf16.mxu0 %v7780_v7  ;;  %v7838_v7 = vld [vmem:[%s9745_s1 + $0x800] ss:$8 sps:$4 sm:$0xff]  }
  0xf4   : > { %4269 = vmatpush1.bf16.msra.mxu1 %v7774_v8  ;;  %v7841_v8 = vld [vmem:[%s8433_s13 + $0xac] ss:$76 sps:$4 sm:$0xff]  }
  0xf5   : > { %5234 = vmatpush1.bf16.msra.mxu0 %v7778_v11  ;;  %4270 = vmatprep.subr.bf16.mxu1 %v7788_v13  ;;  %v7852_v11 = vld [vmem:[%s9745_s1 + $0x814] ss:$8 sps:$4 sm:$0xff]   ;;  %v7850_v13 = vld [vmem:[%s9745_s1 + $0x810] ss:$8 sps:$4 sm:$0xff]  }
  0xf6   : > { %5235 = vmatprep.subr.bf16.mxu0 %v7792_v14  ;;  %4146 = vmatmul.mubr.bf16.gmra.mrb[24].mxu1 %v7713_v9  ;;  %v7843_v9 = vld [vmem:[%s8433_s13 + $0xd4] ss:$76 sps:$4 sm:$0xff]  }
  0xf7   : > { %5111 = vmatmul.mubr.bf16.gmra.mrb[24].mxu0 %v7717_v10  ;;  %4155 = vmatprep.mubr.bf16.mxu1 %v7721_v12  ;;  %v7848_v10 = vld [vmem:[%s9745_s1 + $0x314] ss:$8 sps:$4 sm:$0xff]   ;;  %v7846_v12 = vld [vmem:[%s9745_s1 + $0x310] ss:$8 sps:$4 sm:$0xff]  }
  0xf8   : > { %5120 = vmatprep.mubr.bf16.mxu0 %v7723_v15  ;;  %4271 = vmatpush1.bf16.msra.mxu1 %v7786_v16  ;;  %v7845_v14 = vld [vmem:[%s8433_s13 + $0xa8] ss:$76 sps:$4 sm:$0xff]   ;;  %v7849_v15 = vld [vmem:[%s8433_s13 + $0xd0] ss:$76 sps:$4 sm:$0xff]   ;;  %v7860_v16 = vld [vmem:[%s9745_s1 + $0x324] ss:$8 sps:$4 sm:$0xff]  }
  0xf9   : > { %5236 = vmatpush1.bf16.msra.mxu0 %v7790_v17  ;;  %4272 = vmatprep.subr.bf16.mxu1 %v7800_v18  ;;  %v7864_v17 = vld [vmem:[%s9745_s1 + $0x824] ss:$8 sps:$4 sm:$0xff]  }
  0xfa   : > { %5237 = vmatprep.subr.bf16.mxu0 %v7804_v19  ;;  %v7853_v18 = vld [vmem:[%s8433_s13 + $0x144] ss:$76 sps:$4 sm:$0xff]   ;;  %v7855_v19 = vld [vmem:[%s8433_s13 + $0x16c] ss:$76 sps:$4 sm:$0xff]  }
  0xfc   : > { %4273 = vmatpush1.bf16.msra.mxu1 %v7798_v20  ;;  %v7858_v20 = vld [vmem:[%s9745_s1 + $0x320] ss:$8 sps:$4 sm:$0xff]  }
  0xfd   : > { %5238 = vmatpush1.bf16.msra.mxu0 %v7802_v21  ;;  %4274 = vmatprep.subr.bf16.mxu1 %v7812_v23  ;;  %v7862_v21 = vld [vmem:[%s9745_s1 + $0x820] ss:$8 sps:$4 sm:$0xff]   ;;  %v7876_v23 = vld [vmem:[%s9745_s1 + $0x834] ss:$8 sps:$4 sm:$0xff]  }
  0xfe   : > { %5239 = vmatprep.subr.bf16.mxu0 %v7816_v24  ;;  %4156 = vmatmul.mubr.bf16.gmra.mrb[28].mxu1 %v7725_v22  ;;  %v7872_v22 = vld [vmem:[%s9745_s1 + $0x334] ss:$8 sps:$4 sm:$0xff]   ;;  %v7870_v24 = vld [vmem:[%s9745_s1 + $0x330] ss:$8 sps:$4 sm:$0xff]  }
  0xff   : > { %5121 = vmatmul.mubr.bf16.gmra.mrb[28].mxu0 %v7729_v25  ;;  %4165 = vmatprep.mubr.bf16.mxu1 %v7733_v26  ;;  %v7874_v25 = vld [vmem:[%s9745_s1 + $0x830] ss:$8 sps:$4 sm:$0xff]   ;;  %v7884_v26 = vld [vmem:[%s9745_s1 + $0x344] ss:$8 sps:$4 sm:$0xff]  }
 0x100   : > { %5130 = vmatprep.mubr.bf16.mxu0 %v7735_v27  ;;  %4275 = vmatpush1.bf16.msra.mxu1 %v7810_v28  ;;  %v7888_v27 = vld [vmem:[%s9745_s1 + $0x844] ss:$8 sps:$4 sm:$0xff]  }
 0x101   : > { %5240 = vmatpush1.bf16.msra.mxu0 %v7814_v29  ;;  %4276 = vmatprep.subr.bf16.mxu1 %v7824_v30  ;;  %v7857_v28 = vld [vmem:[%s8433_s13 + $0x140] ss:$76 sps:$4 sm:$0xff]   ;;  %v7861_v29 = vld [vmem:[%s8433_s13 + $0x168] ss:$76 sps:$4 sm:$0xff]  }
 0x102   : > { %5241 = vmatprep.subr.bf16.mxu0 %v7828_v31  ;;  %v7865_v30 = vld [vmem:[%s8433_s13 + $0x1dc] ss:$76 sps:$4 sm:$0xff]   ;;  %v7867_v31 = vld [vmem:[%s8433_s13 + $0x204] ss:$76 sps:$4 sm:$0xff]  }
 0x104   : > { %4277 = vmatpush1.bf16.msra.mxu1 %v7822_v32  ;;  %v7882_v32 = vld [vmem:[%s9745_s1 + $0x340] ss:$8 sps:$4 sm:$0xff]  }
 0x105   : > { %5242 = vmatpush1.bf16.msra.mxu0 %v7826_v34  ;;  %4439 = vmatprep.subr.bf16.mxu1 %v7837_v35  ;;  %v7896_v34 = vld [vmem:[%s9745_s1 + $0x354] ss:$8 sps:$4 sm:$0xff]  }
 0x106   : > { %5404 = vmatprep.subr.bf16.mxu0 %v7840_v36  ;;  %4166 = vmatmul.mubr.bf16.gmra.mrb[32].mxu1 %v7737_v33  ;;  %v7886_v33 = vld [vmem:[%s9745_s1 + $0x840] ss:$8 sps:$4 sm:$0xff]   ;;  %v7900_v35 = vld [vmem:[%s9745_s1 + $0x854] ss:$8 sps:$4 sm:$0xff]   ;;  %v7894_v36 = vld [vmem:[%s9745_s1 + $0x350] ss:$8 sps:$4 sm:$0xff]  }
 0x107   : > { %5131 = vmatmul.mubr.bf16.gmra.mrb[32].mxu0 %v7741_v37  ;;  %4175 = vmatprep.mubr.bf16.mxu1 %v7745_v38  ;;  %v7898_v37 = vld [vmem:[%s9745_s1 + $0x850] ss:$8 sps:$4 sm:$0xff]   ;;  %v7908_v38 = vld [vmem:[%s9745_s1 + $0x364] ss:$8 sps:$4 sm:$0xff]  }
 0x108   : > { %5140 = vmatprep.mubr.bf16.mxu0 %v7747_v39  ;;  %v7869_v39 = vld [vmem:[%s8433_s13 + $0x1d8] ss:$76 sps:$4 sm:$0xff]  }
 0x10e   : > { %4176 = vmatmul.mubr.bf16.gmra.mrb[36].mxu1 %v7749_v40  ;;  %v7873_v40 = vld [vmem:[%s8433_s13 + $0x200] ss:$76 sps:$4 sm:$0xff]  }
 0x10f   : > { %5141 = vmatmul.mubr.bf16.gmra.mrb[36].mxu0 %v7753_v41  ;;  %4185 = vmatprep.mubr.bf16.mxu1 %v7757_v42  ;;  %v7912_v41 = vld [vmem:[%s9745_s1 + $0x864] ss:$8 sps:$4 sm:$0xff]   ;;  %v7877_v42 = vld [vmem:[%s8433_s13 + $0x274] ss:$76 sps:$4 sm:$0xff]  }
 0x110   : > { %5150 = vmatprep.mubr.bf16.mxu0 %v7759_v43  ;;  %v7879_v43 = vld [vmem:[%s8433_s13 + $0x29c] ss:$76 sps:$4 sm:$0xff]  }
 0x116   : > { %4186 = vmatmul.mubr.bf16.gmra.mrb[40].mxu1 %v7761_v44  ;;  %v7906_v44 = vld [vmem:[%s9745_s1 + $0x360] ss:$8 sps:$4 sm:$0xff]  }
 0x117   : > { %5151 = vmatmul.mubr.bf16.gmra.mrb[40].mxu0 %v7765_v45  ;;  %4195 = vmatprep.mubr.bf16.mxu1 %v7769_v46  ;;  %v7910_v45 = vld [vmem:[%s9745_s1 + $0x860] ss:$8 sps:$4 sm:$0xff]   ;;  %v7920_v46 = vld [vmem:[%s9745_s1 + $0x374] ss:$8 sps:$4 sm:$0xff]  }
 0x118   : > { %5160 = vmatprep.mubr.bf16.mxu0 %v7771_v47  ;;  %v7924_v47 = vld [vmem:[%s9745_s1 + $0x874] ss:$8 sps:$4 sm:$0xff]  }
 0x11e   : > { %4196 = vmatmul.mubr.bf16.gmra.mrb[44].mxu1 %v7773_v48  ;;  %v7918_v48 = vld [vmem:[%s9745_s1 + $0x370] ss:$8 sps:$4 sm:$0xff]  }
 0x11f   : > { %5161 = vmatmul.mubr.bf16.gmra.mrb[44].mxu0 %v7777_v49  ;;  %4205 = vmatprep.mubr.bf16.mxu1 %v7781_v50  ;;  %v7922_v49 = vld [vmem:[%s9745_s1 + $0x870] ss:$8 sps:$4 sm:$0xff]   ;;  %v7932_v50 = vld [vmem:[%s9745_s1 + $0x384] ss:$8 sps:$4 sm:$0xff]  }
 0x120   : > { %5170 = vmatprep.mubr.bf16.mxu0 %v7783_v51  ;;  %v7936_v51 = vld [vmem:[%s9745_s1 + $0x884] ss:$8 sps:$4 sm:$0xff]  }
 0x126   : > { %4206 = vmatmul.mubr.bf16.gmra.mrb[48].mxu1 %v7785_v52  ;;  %v7881_v52 = vld [vmem:[%s8433_s13 + $0x270] ss:$76 sps:$4 sm:$0xff]  }
 0x127   : > { %5171 = vmatmul.mubr.bf16.gmra.mrb[48].mxu0 %v7789_v53  ;;  %4215 = vmatprep.mubr.bf16.mxu1 %v7793_v54  ;;  %v7885_v53 = vld [vmem:[%s8433_s13 + $0x298] ss:$76 sps:$4 sm:$0xff]  }
 0x128   : > { %5180 = vmatprep.mubr.bf16.mxu0 %v7795_v55  ;;  %v7889_v54 = vld [vmem:[%s8433_s13 + $0x30c] ss:$76 sps:$4 sm:$0xff]   ;;  %v7891_v55 = vld [vmem:[%s8433_s13 + $0x334] ss:$76 sps:$4 sm:$0xff]  }
 0x12e   : > { %4216 = vmatmul.mubr.bf16.gmra.mrb[52].mxu1 %v7797_v56  ;;  %v7930_v56 = vld [vmem:[%s9745_s1 + $0x380] ss:$8 sps:$4 sm:$0xff]  }
 0x12f   : > { %5181 = vmatmul.mubr.bf16.gmra.mrb[52].mxu0 %v7801_v57  ;;  %4225 = vmatprep.mubr.bf16.mxu1 %v7805_v58  ;;  %v7934_v57 = vld [vmem:[%s9745_s1 + $0x880] ss:$8 sps:$4 sm:$0xff]   ;;  %v7944_v58 = vld [vmem:[%s9745_s1 + $0x394] ss:$8 sps:$4 sm:$0xff]  }
 0x130   : > { %5190 = vmatprep.mubr.bf16.mxu0 %v7807_v59  ;;  %v7948_v59 = vld [vmem:[%s9745_s1 + $0x894] ss:$8 sps:$4 sm:$0xff]  }
 0x136   : > { %4226 = vmatmul.mubr.bf16.gmra.mrb[56].mxu1 %v7809_v60  ;;  %v7942_v60 = vld [vmem:[%s9745_s1 + $0x390] ss:$8 sps:$4 sm:$0xff]  }
 0x137   : > { %5191 = vmatmul.mubr.bf16.gmra.mrb[56].mxu0 %v7813_v61  ;;  %4235 = vmatprep.mubr.bf16.mxu1 %v7817_v62  ;;  %v7946_v61 = vld [vmem:[%s9745_s1 + $0x890] ss:$8 sps:$4 sm:$0xff]   ;;  %v7956_v62 = vld [vmem:[%s9745_s1 + $0x3a4] ss:$8 sps:$4 sm:$0xff]  }
 0x138   : > { %5200 = vmatprep.mubr.bf16.mxu0 %v7819_v63  ;;  %v7893_v63 = vld [vmem:[%s8433_s13 + $0x308] ss:$76 sps:$4 sm:$0xff]  }
 0x13e   : > { %4236 = vmatmul.mubr.bf16.gmra.mrb[60].mxu1 %v7821_v0  ;;  %v7897_v0 = vld [vmem:[%s8433_s13 + $0x330] ss:$76 sps:$4 sm:$0xff]  }
 0x13f   : > { %5201 = vmatmul.mubr.bf16.gmra.mrb[60].mxu0 %v7825_v1  ;;  %4278 = vmatprep.mubr.bf16.mxu1 %v7831_v2  ;;  %v7960_v1 = vld [vmem:[%s9745_s1 + $0x8a4] ss:$8 sps:$4 sm:$0xff]  }
 0x140   : > { %5243 = vmatprep.mubr.bf16.mxu0 %v7834_v3  ;;  %v7901_v2 = vld [vmem:[%s8433_s13 + $0x3a4] ss:$76 sps:$4 sm:$0xff]   ;;  %v7903_v3 = vld [vmem:[%s8433_s13 + $0x3cc] ss:$76 sps:$4 sm:$0xff]  }
 0x146   : > { %4279 = vmatmul.mubr.bf16.vlgmr.msra.gmra.mrb[0].mxu1 %v7829_v4  ;;  %v7954_v4 = vld [vmem:[%s9745_s1 + $0x3a0] ss:$8 sps:$4 sm:$0xff]  }
 0x147   : > { %5244 = vmatmul.mubr.bf16.vlgmr.msra.gmra.mrb[0].mxu0 %v7832_v5  ;;  %4440 = vmatpush1.bf16.msra.mxu1 %v7835_v6  ;;  %v7958_v5 = vld [vmem:[%s9745_s1 + $0x8a0] ss:$8 sps:$4 sm:$0xff]   ;;  %v7968_v6 = vld [vmem:[%s9745_s1 + $0x3b4] ss:$8 sps:$4 sm:$0xff]  }
 0x148   : > { %5405 = vmatpush1.bf16.msra.mxu0 %v7838_v7  ;;  %4288 = vmatprep.mubr.bf16.mxu1 %v7841_v8  ;;  %v7972_v7 = vld [vmem:[%s9745_s1 + $0x8b4] ss:$8 sps:$4 sm:$0xff]   ;;  %v7966_v8 = vld [vmem:[%s9745_s1 + $0x3b0] ss:$8 sps:$4 sm:$0xff]  }
 0x149   : > { %5253 = vmatprep.mubr.bf16.mxu0 %v7843_v9  ;;  %4441 = vmatprep.subr.bf16.mxu1 %v7848_v10  ;;  %v7970_v9 = vld [vmem:[%s9745_s1 + $0x8b0] ss:$8 sps:$4 sm:$0xff]   ;;  %v7980_v10 = vld [vmem:[%s9745_s1 + $0x3c4] ss:$8 sps:$4 sm:$0xff]  }
 0x14a   : > { %5406 = vmatprep.subr.bf16.mxu0 %v7852_v11  ;;  %v7984_v11 = vld [vmem:[%s9745_s1 + $0x8c4] ss:$8 sps:$4 sm:$0xff]  }
 0x14b   : > { %4442 = vmatpush1.bf16.msra.mxu1 %v7846_v12  ;;  %v7905_v12 = vld [vmem:[%s8433_s13 + $0x3a0] ss:$76 sps:$4 sm:$0xff]  }
 0x14c   : > { %5407 = vmatpush1.bf16.msra.mxu0 %v7850_v13  ;;  %4443 = vmatprep.subr.bf16.mxu1 %v7860_v16  ;;  %v7909_v13 = vld [vmem:[%s8433_s13 + $0x3c8] ss:$76 sps:$4 sm:$0xff]  }
 0x14d   : > { %5408 = vmatprep.subr.bf16.mxu0 %v7864_v17  ;;  %v7978_v16 = vld [vmem:[%s9745_s1 + $0x3c0] ss:$8 sps:$4 sm:$0xff]  }
 0x14e   : > { %4289 = vmatmul.mubr.bf16.gmra.mrb[4].mxu1 %v7845_v14  ;;  %v7913_v14 = vld [vmem:[%s8433_s13 + $0x43c] ss:$76 sps:$4 sm:$0xff]  }
 0x14f   : > { %5254 = vmatmul.mubr.bf16.gmra.mrb[4].mxu0 %v7849_v15  ;;  %4298 = vmatprep.mubr.bf16.mxu1 %v7853_v18  ;;  %v7915_v15 = vld [vmem:[%s8433_s13 + $0x464] ss:$76 sps:$4 sm:$0xff]   ;;  %v7982_v17 = vld [vmem:[%s9745_s1 + $0x8c0] ss:$8 sps:$4 sm:$0xff]   ;;  %v7992_v18 = vld [vmem:[%s9745_s1 + $0x3d4] ss:$8 sps:$4 sm:$0xff]  }
 0x150   : > { %5263 = vmatprep.mubr.bf16.mxu0 %v7855_v19  ;;  %4444 = vmatpush1.bf16.msra.mxu1 %v7858_v20  ;;  %v7996_v19 = vld [vmem:[%s9745_s1 + $0x8d4] ss:$8 sps:$4 sm:$0xff]   ;;  %v7990_v20 = vld [vmem:[%s9745_s1 + $0x3d0] ss:$8 sps:$4 sm:$0xff]  }
 0x151   : > { %5409 = vmatpush1.bf16.msra.mxu0 %v7862_v21  ;;  %4445 = vmatprep.subr.bf16.mxu1 %v7872_v22  ;;  %v7994_v21 = vld [vmem:[%s9745_s1 + $0x8d0] ss:$8 sps:$4 sm:$0xff]   ;;  %v8004_v22 = vld [vmem:[%s9745_s1 + $0x3e4] ss:$8 sps:$4 sm:$0xff]  }
 0x152   : > { %5410 = vmatprep.subr.bf16.mxu0 %v7876_v23  ;;  %v8008_v23 = vld [vmem:[%s9745_s1 + $0x8e4] ss:$8 sps:$4 sm:$0xff]  }
 0x154   : > { %4446 = vmatpush1.bf16.msra.mxu1 %v7870_v24  ;;  %v7917_v24 = vld [vmem:[%s8433_s13 + $0x438] ss:$76 sps:$4 sm:$0xff]  }
 0x155   : > { %5411 = vmatpush1.bf16.msra.mxu0 %v7874_v25  ;;  %4447 = vmatprep.subr.bf16.mxu1 %v7884_v26  ;;  %v7921_v25 = vld [vmem:[%s8433_s13 + $0x460] ss:$76 sps:$4 sm:$0xff]  }
 0x156   : > { %5412 = vmatprep.subr.bf16.mxu0 %v7888_v27  ;;  %4299 = vmatmul.mubr.bf16.gmra.mrb[8].mxu1 %v7857_v28  ;;  %v7925_v26 = vld [vmem:[%s8433_s13 + $0x4d4] ss:$76 sps:$4 sm:$0xff]   ;;  %v7927_v27 = vld [vmem:[%s8433_s13 + $0x4fc] ss:$76 sps:$4 sm:$0xff]  }
 0x157   : > { %5264 = vmatmul.mubr.bf16.gmra.mrb[8].mxu0 %v7861_v29  ;;  %4308 = vmatprep.mubr.bf16.mxu1 %v7865_v30  ;;  %v8002_v28 = vld [vmem:[%s9745_s1 + $0x3e0] ss:$8 sps:$4 sm:$0xff]   ;;  %v8016_v30 = vld [vmem:[%s9745_s1 + $0x3f4] ss:$8 sps:$4 sm:$0xff]  }
 0x158   : > { %5273 = vmatprep.mubr.bf16.mxu0 %v7867_v31  ;;  %4448 = vmatpush1.bf16.msra.mxu1 %v7882_v32  ;;  %v8006_v29 = vld [vmem:[%s9745_s1 + $0x8e0] ss:$8 sps:$4 sm:$0xff]   ;;  %v8020_v31 = vld [vmem:[%s9745_s1 + $0x8f4] ss:$8 sps:$4 sm:$0xff]   ;;  %v8014_v32 = vld [vmem:[%s9745_s1 + $0x3f0] ss:$8 sps:$4 sm:$0xff]  }
 0x159   : > { %5413 = vmatpush1.bf16.msra.mxu0 %v7886_v33  ;;  %4449 = vmatprep.subr.bf16.mxu1 %v7896_v34  ;;  %v8018_v33 = vld [vmem:[%s9745_s1 + $0x8f0] ss:$8 sps:$4 sm:$0xff]   ;;  %v8029_v34 = vld [vmem:[%s9745_s1 + $0x404] ss:$8 sps:$4 sm:$0xff]  }
 0x15a   : > { %5414 = vmatprep.subr.bf16.mxu0 %v7900_v35  ;;  %v8032_v35 = vld [vmem:[%s9745_s1 + $0x904] ss:$8 sps:$4 sm:$0xff]  }
 0x15c   : > { %4450 = vmatpush1.bf16.msra.mxu1 %v7894_v36  ;;  %v7929_v36 = vld [vmem:[%s8433_s13 + $0x4d0] ss:$76 sps:$4 sm:$0xff]  }
 0x15d   : > { %5415 = vmatpush1.bf16.msra.mxu0 %v7898_v37  ;;  %4451 = vmatprep.subr.bf16.mxu1 %v7908_v38  ;;  %v7933_v37 = vld [vmem:[%s8433_s13 + $0x4f8] ss:$76 sps:$4 sm:$0xff]  }
 0x15e   : > { %5416 = vmatprep.subr.bf16.mxu0 %v7912_v41  ;;  %4309 = vmatmul.mubr.bf16.gmra.mrb[12].mxu1 %v7869_v39  ;;  %v7937_v38 = vld [vmem:[%s8433_s13 + $0x56c] ss:$76 sps:$4 sm:$0xff]   ;;  %v7939_v39 = vld [vmem:[%s8433_s13 + $0x594] ss:$76 sps:$4 sm:$0xff]   ;;  %v7945_v41 = vld [vmem:[%s8433_s13 + $0x590] ss:$76 sps:$4 sm:$0xff]  }
 0x15f   : > { %5274 = vmatmul.mubr.bf16.gmra.mrb[12].mxu0 %v7873_v40  ;;  %4318 = vmatprep.mubr.bf16.mxu1 %v7877_v42  ;;  %v7941_v40 = vld [vmem:[%s8433_s13 + $0x568] ss:$76 sps:$4 sm:$0xff]   ;;  %v7949_v42 = vld [vmem:[%s8433_s13 + $0x604] ss:$76 sps:$4 sm:$0xff]  }
 0x160   : > { %5283 = vmatprep.mubr.bf16.mxu0 %v7879_v43  ;;  %4452 = vmatpush1.bf16.msra.mxu1 %v7906_v44  ;;  %v7951_v43 = vld [vmem:[%s8433_s13 + $0x62c] ss:$76 sps:$4 sm:$0xff]  }
 0x161   : > { %5417 = vmatpush1.bf16.msra.mxu0 %v7910_v45  ;;  %4453 = vmatprep.subr.bf16.mxu1 %v7920_v46  ;;  %v7953_v44 = vld [vmem:[%s8433_s13 + $0x600] ss:$76 sps:$4 sm:$0xff]   ;;  %v7957_v45 = vld [vmem:[%s8433_s13 + $0x628] ss:$76 sps:$4 sm:$0xff]  }
 0x162   : > { %5418 = vmatprep.subr.bf16.mxu0 %v7924_v47  ;;  %v7961_v46 = vld [vmem:[%s8433_s13 + $0x69c] ss:$76 sps:$4 sm:$0xff]   ;;  %v7963_v47 = vld [vmem:[%s8433_s13 + $0x6c4] ss:$76 sps:$4 sm:$0xff]  }
 0x164   : > { %4454 = vmatpush1.bf16.msra.mxu1 %v7918_v48  ;;  %v7965_v48 = vld [vmem:[%s8433_s13 + $0x698] ss:$76 sps:$4 sm:$0xff]  }
 0x165   : > { %5419 = vmatpush1.bf16.msra.mxu0 %v7922_v49  ;;  %4455 = vmatprep.subr.bf16.mxu1 %v7932_v50  ;;  %v7969_v49 = vld [vmem:[%s8433_s13 + $0x6c0] ss:$76 sps:$4 sm:$0xff]  }
 0x166   : > { %5420 = vmatprep.subr.bf16.mxu0 %v7936_v51  ;;  %4319 = vmatmul.mubr.bf16.gmra.mrb[16].mxu1 %v7881_v52  ;;  %v7973_v50 = vld [vmem:[%s8433_s13 + $0x734] ss:$76 sps:$4 sm:$0xff]   ;;  %v7975_v51 = vld [vmem:[%s8433_s13 + $0x75c] ss:$76 sps:$4 sm:$0xff]  }
 0x167   : > { %5284 = vmatmul.mubr.bf16.gmra.mrb[16].mxu0 %v7885_v53  ;;  %4328 = vmatprep.mubr.bf16.mxu1 %v7889_v54  ;;  %v7977_v52 = vld [vmem:[%s8433_s13 + $0x730] ss:$76 sps:$4 sm:$0xff]   ;;  %v7981_v53 = vld [vmem:[%s8433_s13 + $0x758] ss:$76 sps:$4 sm:$0xff]  }
 0x168   : > { %5293 = vmatprep.mubr.bf16.mxu0 %v7891_v55  ;;  %4456 = vmatpush1.bf16.msra.mxu1 %v7930_v56  ;;  %v7985_v54 = vld [vmem:[%s8433_s13 + $0x7cc] ss:$76 sps:$4 sm:$0xff]   ;;  %v7987_v55 = vld [vmem:[%s8433_s13 + $0x7f4] ss:$76 sps:$4 sm:$0xff]  }
 0x169   : > { %5421 = vmatpush1.bf16.msra.mxu0 %v7934_v57  ;;  %4457 = vmatprep.subr.bf16.mxu1 %v7944_v58  ;;  %v7989_v56 = vld [vmem:[%s8433_s13 + $0x7c8] ss:$76 sps:$4 sm:$0xff]   ;;  %v7993_v57 = vld [vmem:[%s8433_s13 + $0x7f0] ss:$76 sps:$4 sm:$0xff]  }
 0x16a   : > { %5422 = vmatprep.subr.bf16.mxu0 %v7948_v59  ;;  %v7997_v58 = vld [vmem:[%s8433_s13 + $0x864] ss:$76 sps:$4 sm:$0xff]   ;;  %v7999_v59 = vld [vmem:[%s8433_s13 + $0x88c] ss:$76 sps:$4 sm:$0xff]  }
 0x16c   : > { %4458 = vmatpush1.bf16.msra.mxu1 %v7942_v60  ;;  %v8001_v60 = vld [vmem:[%s8433_s13 + $0x860] ss:$76 sps:$4 sm:$0xff]  }
 0x16d   : > { %5423 = vmatpush1.bf16.msra.mxu0 %v7946_v61  ;;  %4459 = vmatprep.subr.bf16.mxu1 %v7956_v62  ;;  %v8005_v61 = vld [vmem:[%s8433_s13 + $0x888] ss:$76 sps:$4 sm:$0xff]  }
 0x16e   : > { %5424 = vmatprep.subr.bf16.mxu0 %v7960_v1  ;;  %4329 = vmatmul.mubr.bf16.gmra.mrb[20].mxu1 %v7893_v63  ;;  %v8009_v62 = vld [vmem:[%s8433_s13 + $0x8fc] ss:$76 sps:$4 sm:$0xff]   ;;  %v8011_v63 = vld [vmem:[%s8433_s13 + $0x924] ss:$76 sps:$4 sm:$0xff]   ;;  %v8017_v1 = vld [vmem:[%s8433_s13 + $0x920] ss:$76 sps:$4 sm:$0xff]  }
 0x16f   : > { %5294 = vmatmul.mubr.bf16.gmra.mrb[20].mxu0 %v7897_v0  ;;  %4338 = vmatprep.mubr.bf16.mxu1 %v7901_v2  ;;  %v8013_v0 = vld [vmem:[%s8433_s13 + $0x8f8] ss:$76 sps:$4 sm:$0xff]   ;;  %v8023_v2 = vld [vmem:[%s8433_s13 + $0x1c] ss:$76 sps:$4 sm:$0xff]  }
 0x170   : > { %5303 = vmatprep.mubr.bf16.mxu0 %v7903_v3  ;;  %4460 = vmatpush1.bf16.msra.mxu1 %v7954_v4  ;;  %v8026_v3 = vld [vmem:[%s8433_s13 + $0x44] ss:$76 sps:$4 sm:$0xff]  }
 0x171   : > { %5425 = vmatpush1.bf16.msra.mxu0 %v7958_v5  ;;  %4461 = vmatprep.subr.bf16.mxu1 %v7968_v6  ;;  %v8021_v4 = vld [vmem:[%s8433_s13 + $0x18] ss:$76 sps:$4 sm:$0xff]   ;;  %v8024_v5 = vld [vmem:[%s8433_s13 + $0x40] ss:$76 sps:$4 sm:$0xff]  }
 0x172   : > { %5426 = vmatprep.subr.bf16.mxu0 %v7972_v7  ;;  %v8027_v6 = vld [vmem:[%s9745_s1 + $0x400] ss:$8 sps:$4 sm:$0xff]  }
 0x173   : > { %v8030_v7 = vld [vmem:[%s9745_s1 + $0x900] ss:$8 sps:$4 sm:$0xff]  }
 0x174   : > { %4462 = vmatpush1.bf16.msra.mxu1 %v7966_v8  ;;  %v8033_v8 = vld [vmem:[%s8433_s13 + $0xb4] ss:$76 sps:$4 sm:$0xff]  }
 0x175   : > { %5427 = vmatpush1.bf16.msra.mxu0 %v7970_v9  ;;  %4463 = vmatprep.subr.bf16.mxu1 %v7980_v10  ;;  %v8035_v9 = vld [vmem:[%s8433_s13 + $0xdc] ss:$76 sps:$4 sm:$0xff]  }
 0x176   : > { %5428 = vmatprep.subr.bf16.mxu0 %v7984_v11  ;;  %4339 = vmatmul.mubr.bf16.gmra.mrb[24].mxu1 %v7905_v12  ;;  %v8040_v10 = vld [vmem:[%s9745_s1 + $0x414] ss:$8 sps:$4 sm:$0xff]   ;;  %v8038_v12 = vld [vmem:[%s9745_s1 + $0x410] ss:$8 sps:$4 sm:$0xff]  }
 0x177   : > { %5304 = vmatmul.mubr.bf16.gmra.mrb[24].mxu0 %v7909_v13  ;;  %4348 = vmatprep.mubr.bf16.mxu1 %v7913_v14  ;;  %v8053_v11 = vld [vmem:[%s9745_s1 + $0x914] ss:$8 sps:$4 sm:$0xff]   ;;  %v8051_v13 = vld [vmem:[%s9745_s1 + $0x910] ss:$8 sps:$4 sm:$0xff]   ;;  %v8049_v14 = vld [vmem:[%s9745_s1 + $0x424] ss:$8 sps:$4 sm:$0xff]  }
 0x178   : > { %5313 = vmatprep.mubr.bf16.mxu0 %v7915_v15  ;;  %4464 = vmatpush1.bf16.msra.mxu1 %v7978_v16  ;;  %v8074_v15 = vld [vmem:[%s9745_s1 + $0x924] ss:$8 sps:$4 sm:$0xff]   ;;  %v8037_v16 = vld [vmem:[%s8433_s13 + $0xb0] ss:$76 sps:$4 sm:$0xff]  }
 0x179   : > { %5429 = vmatpush1.bf16.msra.mxu0 %v7982_v17  ;;  %4465 = vmatprep.subr.bf16.mxu1 %v7992_v18  ;;  %v8041_v17 = vld [vmem:[%s8433_s13 + $0xd8] ss:$76 sps:$4 sm:$0xff]  }
 0x17a   : > { %5430 = vmatprep.subr.bf16.mxu0 %v7996_v19  ;;  %v8042_v18 = vld [vmem:[%s8433_s13 + $0x14c] ss:$76 sps:$4 sm:$0xff]   ;;  %v8044_v19 = vld [vmem:[%s8433_s13 + $0x174] ss:$76 sps:$4 sm:$0xff]  }
 0x17c   : > { %4466 = vmatpush1.bf16.msra.mxu1 %v7990_v20  ;;  %v8047_v20 = vld [vmem:[%s9745_s1 + $0x420] ss:$8 sps:$4 sm:$0xff]  }
 0x17d   : > { %5431 = vmatpush1.bf16.msra.mxu0 %v7994_v21  ;;  %4467 = vmatprep.subr.bf16.mxu1 %v8004_v22  ;;  %v8072_v21 = vld [vmem:[%s9745_s1 + $0x920] ss:$8 sps:$4 sm:$0xff]   ;;  %v8061_v22 = vld [vmem:[%s9745_s1 + $0x434] ss:$8 sps:$4 sm:$0xff]  }
 0x17e   : > { %5432 = vmatprep.subr.bf16.mxu0 %v8008_v23  ;;  %4349 = vmatmul.mubr.bf16.gmra.mrb[28].mxu1 %v7917_v24  ;;  %v8095_v23 = vld [vmem:[%s9745_s1 + $0x934] ss:$8 sps:$4 sm:$0xff]   ;;  %v8059_v24 = vld [vmem:[%s9745_s1 + $0x430] ss:$8 sps:$4 sm:$0xff]  }
 0x17f   : > { %5314 = vmatmul.mubr.bf16.gmra.mrb[28].mxu0 %v7921_v25  ;;  %4358 = vmatprep.mubr.bf16.mxu1 %v7925_v26  ;;  %v8093_v25 = vld [vmem:[%s9745_s1 + $0x930] ss:$8 sps:$4 sm:$0xff]   ;;  %v8070_v26 = vld [vmem:[%s9745_s1 + $0x444] ss:$8 sps:$4 sm:$0xff]  }
 0x180   : > { %5323 = vmatprep.mubr.bf16.mxu0 %v7927_v27  ;;  %4468 = vmatpush1.bf16.msra.mxu1 %v8002_v28  ;;  %v8116_v27 = vld [vmem:[%s9745_s1 + $0x944] ss:$8 sps:$4 sm:$0xff]   ;;  %v8046_v28 = vld [vmem:[%s8433_s13 + $0x148] ss:$76 sps:$4 sm:$0xff]  }
 0x181   : > { %5433 = vmatpush1.bf16.msra.mxu0 %v8006_v29  ;;  %4469 = vmatprep.subr.bf16.mxu1 %v8016_v30  ;;  %v8050_v29 = vld [vmem:[%s8433_s13 + $0x170] ss:$76 sps:$4 sm:$0xff]  }
 0x182   : > { %5434 = vmatprep.subr.bf16.mxu0 %v8020_v31  ;;  %v8054_v30 = vld [vmem:[%s8433_s13 + $0x1e4] ss:$76 sps:$4 sm:$0xff]   ;;  %v8056_v31 = vld [vmem:[%s8433_s13 + $0x20c] ss:$76 sps:$4 sm:$0xff]  }
 0x184   : > { %4470 = vmatpush1.bf16.msra.mxu1 %v8014_v32  ;;  %v8068_v32 = vld [vmem:[%s9745_s1 + $0x440] ss:$8 sps:$4 sm:$0xff]  }
 0x185   : > { %5435 = vmatpush1.bf16.msra.mxu0 %v8018_v33  ;;  %4632 = vmatprep.subr.bf16.mxu1 %v8029_v34  ;;  %v8114_v33 = vld [vmem:[%s9745_s1 + $0x940] ss:$8 sps:$4 sm:$0xff]   ;;  %v8082_v34 = vld [vmem:[%s9745_s1 + $0x454] ss:$8 sps:$4 sm:$0xff]  }
 0x186   : > { %5597 = vmatprep.subr.bf16.mxu0 %v8032_v35  ;;  %4359 = vmatmul.mubr.bf16.gmra.mrb[32].mxu1 %v7929_v36  ;;  %v8137_v35 = vld [vmem:[%s9745_s1 + $0x954] ss:$8 sps:$4 sm:$0xff]   ;;  %v8080_v36 = vld [vmem:[%s9745_s1 + $0x450] ss:$8 sps:$4 sm:$0xff]  }
 0x187   : > { %5324 = vmatmul.mubr.bf16.gmra.mrb[32].mxu0 %v7933_v37  ;;  %4368 = vmatprep.mubr.bf16.mxu1 %v7937_v38  ;;  %v8135_v37 = vld [vmem:[%s9745_s1 + $0x950] ss:$8 sps:$4 sm:$0xff]   ;;  %v8091_v38 = vld [vmem:[%s9745_s1 + $0x464] ss:$8 sps:$4 sm:$0xff]  }
 0x188   : > { %5333 = vmatprep.mubr.bf16.mxu0 %v7939_v39  ;;  %v8158_v39 = vld [vmem:[%s9745_s1 + $0x964] ss:$8 sps:$4 sm:$0xff]  }
 0x18e   : > { %4369 = vmatmul.mubr.bf16.gmra.mrb[36].mxu1 %v7941_v40  ;;  %v8058_v40 = vld [vmem:[%s8433_s13 + $0x1e0] ss:$76 sps:$4 sm:$0xff]  }
 0x18f   : > { %5334 = vmatmul.mubr.bf16.gmra.mrb[36].mxu0 %v7945_v41  ;;  %4378 = vmatprep.mubr.bf16.mxu1 %v7949_v42  ;;  %v8062_v41 = vld [vmem:[%s8433_s13 + $0x208] ss:$76 sps:$4 sm:$0xff]  }
 0x190   : > { %5343 = vmatprep.mubr.bf16.mxu0 %v7951_v43  ;;  %v8063_v42 = vld [vmem:[%s8433_s13 + $0x27c] ss:$76 sps:$4 sm:$0xff]   ;;  %v8065_v43 = vld [vmem:[%s8433_s13 + $0x2a4] ss:$76 sps:$4 sm:$0xff]  }
 0x196   : > { %4379 = vmatmul.mubr.bf16.gmra.mrb[40].mxu1 %v7953_v44  ;;  %v8089_v44 = vld [vmem:[%s9745_s1 + $0x460] ss:$8 sps:$4 sm:$0xff]  }
 0x197   : > { %5344 = vmatmul.mubr.bf16.gmra.mrb[40].mxu0 %v7957_v45  ;;  %4388 = vmatprep.mubr.bf16.mxu1 %v7961_v46  ;;  %v8156_v45 = vld [vmem:[%s9745_s1 + $0x960] ss:$8 sps:$4 sm:$0xff]   ;;  %v8103_v46 = vld [vmem:[%s9745_s1 + $0x474] ss:$8 sps:$4 sm:$0xff]  }
 0x198   : > { %5353 = vmatprep.mubr.bf16.mxu0 %v7963_v47  ;;  %v8179_v47 = vld [vmem:[%s9745_s1 + $0x974] ss:$8 sps:$4 sm:$0xff]  }
 0x19e   : > { %4389 = vmatmul.mubr.bf16.gmra.mrb[44].mxu1 %v7965_v48  ;;  %v8101_v48 = vld [vmem:[%s9745_s1 + $0x470] ss:$8 sps:$4 sm:$0xff]  }
 0x19f   : > { %5354 = vmatmul.mubr.bf16.gmra.mrb[44].mxu0 %v7969_v49  ;;  %4398 = vmatprep.mubr.bf16.mxu1 %v7973_v50  ;;  %v8177_v49 = vld [vmem:[%s9745_s1 + $0x970] ss:$8 sps:$4 sm:$0xff]   ;;  %v8112_v50 = vld [vmem:[%s9745_s1 + $0x484] ss:$8 sps:$4 sm:$0xff]  }
 0x1a0   : > { %5363 = vmatprep.mubr.bf16.mxu0 %v7975_v51  ;;  %v8067_v51 = vld [vmem:[%s8433_s13 + $0x278] ss:$76 sps:$4 sm:$0xff]  }
 0x1a6   : > { %4399 = vmatmul.mubr.bf16.gmra.mrb[48].mxu1 %v7977_v52  ;;  %v8071_v52 = vld [vmem:[%s8433_s13 + $0x2a0] ss:$76 sps:$4 sm:$0xff]  }
 0x1a7   : > { %5364 = vmatmul.mubr.bf16.gmra.mrb[48].mxu0 %v7981_v53  ;;  %4408 = vmatprep.mubr.bf16.mxu1 %v7985_v54  ;;  %v8075_v53 = vld [vmem:[%s8433_s13 + $0x314] ss:$76 sps:$4 sm:$0xff]   ;;  %v8077_v54 = vld [vmem:[%s8433_s13 + $0x33c] ss:$76 sps:$4 sm:$0xff]  }
 0x1a8   : > { %5373 = vmatprep.mubr.bf16.mxu0 %v7987_v55  ;;  %v8110_v55 = vld [vmem:[%s9745_s1 + $0x480] ss:$8 sps:$4 sm:$0xff]  }
 0x1ae   : > { %4409 = vmatmul.mubr.bf16.gmra.mrb[52].mxu1 %v7989_v56  ;;  %v8124_v56 = vld [vmem:[%s9745_s1 + $0x494] ss:$8 sps:$4 sm:$0xff]  }
 0x1af   : > { %5374 = vmatmul.mubr.bf16.gmra.mrb[52].mxu0 %v7993_v57  ;;  %4418 = vmatprep.mubr.bf16.mxu1 %v7997_v58  ;;  %v8122_v57 = vld [vmem:[%s9745_s1 + $0x490] ss:$8 sps:$4 sm:$0xff]   ;;  %v8133_v58 = vld [vmem:[%s9745_s1 + $0x4a4] ss:$8 sps:$4 sm:$0xff]  }
 0x1b0   : > { %5383 = vmatprep.mubr.bf16.mxu0 %v7999_v59  ;;  %v8079_v59 = vld [vmem:[%s8433_s13 + $0x310] ss:$76 sps:$4 sm:$0xff]  }
 0x1b6   : > { %4419 = vmatmul.mubr.bf16.gmra.mrb[56].mxu1 %v8001_v60  ;;  %v8083_v60 = vld [vmem:[%s8433_s13 + $0x338] ss:$76 sps:$4 sm:$0xff]  }
 0x1b7   : > { %5384 = vmatmul.mubr.bf16.gmra.mrb[56].mxu0 %v8005_v61  ;;  %4428 = vmatprep.mubr.bf16.mxu1 %v8009_v62  ;;  %v8084_v61 = vld [vmem:[%s8433_s13 + $0x3ac] ss:$76 sps:$4 sm:$0xff]   ;;  %v8086_v62 = vld [vmem:[%s8433_s13 + $0x3d4] ss:$76 sps:$4 sm:$0xff]  }
 0x1b8   : > { %5393 = vmatprep.mubr.bf16.mxu0 %v8011_v63  ;;  %v8131_v63 = vld [vmem:[%s9745_s1 + $0x4a0] ss:$8 sps:$4 sm:$0xff]  }
 0x1be   : > { %4429 = vmatmul.mubr.bf16.gmra.mrb[60].mxu1 %v8013_v0  ;;  %v8145_v0 = vld [vmem:[%s9745_s1 + $0x4b4] ss:$8 sps:$4 sm:$0xff]  }
 0x1bf   : > { %5394 = vmatmul.mubr.bf16.gmra.mrb[60].mxu0 %v8017_v1  ;;  %4471 = vmatprep.mubr.bf16.mxu1 %v8023_v2  ;;  %v8143_v1 = vld [vmem:[%s9745_s1 + $0x4b0] ss:$8 sps:$4 sm:$0xff]   ;;  %v8154_v2 = vld [vmem:[%s9745_s1 + $0x4c4] ss:$8 sps:$4 sm:$0xff]  }
 0x1c0   : > { %5436 = vmatprep.mubr.bf16.mxu0 %v8026_v3  ;;  %v8088_v3 = vld [vmem:[%s8433_s13 + $0x3a8] ss:$76 sps:$4 sm:$0xff]  }
 0x1c6   : > { %4472 = vmatmul.mubr.bf16.vlgmr.msra.gmra.mrb[0].mxu1 %v8021_v4  ;;  %v8092_v4 = vld [vmem:[%s8433_s13 + $0x3d0] ss:$76 sps:$4 sm:$0xff]  }
 0x1c7   : > { %5437 = vmatmul.mubr.bf16.vlgmr.msra.gmra.mrb[0].mxu0 %v8024_v5  ;;  %4633 = vmatpush1.bf16.msra.mxu1 %v8027_v6  ;;  %v8096_v5 = vld [vmem:[%s8433_s13 + $0x444] ss:$76 sps:$4 sm:$0xff]   ;;  %v8098_v6 = vld [vmem:[%s8433_s13 + $0x46c] ss:$76 sps:$4 sm:$0xff]  }
 0x1c8   : > { %5598 = vmatpush1.bf16.msra.mxu0 %v8030_v7  ;;  %4481 = vmatprep.mubr.bf16.mxu1 %v8033_v8  ;;  %v8152_v7 = vld [vmem:[%s9745_s1 + $0x4c0] ss:$8 sps:$4 sm:$0xff]   ;;  %v8166_v8 = vld [vmem:[%s9745_s1 + $0x4d4] ss:$8 sps:$4 sm:$0xff]  }
 0x1c9   : > { %5446 = vmatprep.mubr.bf16.mxu0 %v8035_v9  ;;  %4634 = vmatprep.subr.bf16.mxu1 %v8040_v10  ;;  %v8164_v9 = vld [vmem:[%s9745_s1 + $0x4d0] ss:$8 sps:$4 sm:$0xff]   ;;  %v8175_v10 = vld [vmem:[%s9745_s1 + $0x4e4] ss:$8 sps:$4 sm:$0xff]  }
 0x1ca   : > { %5599 = vmatprep.subr.bf16.mxu0 %v8053_v11  ;;  %v8100_v11 = vld [vmem:[%s8433_s13 + $0x440] ss:$76 sps:$4 sm:$0xff]  }
 0x1cb   : > { %4635 = vmatpush1.bf16.msra.mxu1 %v8038_v12  ;;  %v8104_v12 = vld [vmem:[%s8433_s13 + $0x468] ss:$76 sps:$4 sm:$0xff]  }
 0x1cc   : > { %5600 = vmatpush1.bf16.msra.mxu0 %v8051_v13  ;;  %4636 = vmatprep.subr.bf16.mxu1 %v8049_v14  ;;  %v8105_v13 = vld [vmem:[%s8433_s13 + $0x4dc] ss:$76 sps:$4 sm:$0xff]   ;;  %v8107_v14 = vld [vmem:[%s8433_s13 + $0x504] ss:$76 sps:$4 sm:$0xff]  }
 0x1cd   : > { %5601 = vmatprep.subr.bf16.mxu0 %v8074_v15  ;;  %v8173_v15 = vld [vmem:[%s9745_s1 + $0x4e0] ss:$8 sps:$4 sm:$0xff]  }
 0x1ce   : > { %4482 = vmatmul.mubr.bf16.gmra.mrb[4].mxu1 %v8037_v16  ;;  %v8187_v16 = vld [vmem:[%s9745_s1 + $0x4f4] ss:$8 sps:$4 sm:$0xff]  }
 0x1cf   : > { %5447 = vmatmul.mubr.bf16.gmra.mrb[4].mxu0 %v8041_v17  ;;  %4491 = vmatprep.mubr.bf16.mxu1 %v8042_v18  ;;  %v8185_v17 = vld [vmem:[%s9745_s1 + $0x4f0] ss:$8 sps:$4 sm:$0xff]  }
 0x1d0   : > { %5456 = vmatprep.mubr.bf16.mxu0 %v8044_v19  ;;  %4637 = vmatpush1.bf16.msra.mxu1 %v8047_v20  ;;  %v8109_v18 = vld [vmem:[%s8433_s13 + $0x4d8] ss:$76 sps:$4 sm:$0xff]   ;;  %v8113_v19 = vld [vmem:[%s8433_s13 + $0x500] ss:$76 sps:$4 sm:$0xff]  }
 0x1d1   : > { %5602 = vmatpush1.bf16.msra.mxu0 %v8072_v21  ;;  %4638 = vmatprep.subr.bf16.mxu1 %v8061_v22  ;;  %v8117_v20 = vld [vmem:[%s8433_s13 + $0x574] ss:$76 sps:$4 sm:$0xff]   ;;  %v8119_v21 = vld [vmem:[%s8433_s13 + $0x59c] ss:$76 sps:$4 sm:$0xff]  }
 0x1d2   : > { %5603 = vmatprep.subr.bf16.mxu0 %v8095_v23  ;;  %v8121_v22 = vld [vmem:[%s8433_s13 + $0x570] ss:$76 sps:$4 sm:$0xff]   ;;  %v8125_v23 = vld [vmem:[%s8433_s13 + $0x598] ss:$76 sps:$4 sm:$0xff]  }
 0x1d4   : > { %4639 = vmatpush1.bf16.msra.mxu1 %v8059_v24  ;;  %v8126_v24 = vld [vmem:[%s8433_s13 + $0x60c] ss:$76 sps:$4 sm:$0xff]  }
 0x1d5   : > { %5604 = vmatpush1.bf16.msra.mxu0 %v8093_v25  ;;  %4640 = vmatprep.subr.bf16.mxu1 %v8070_v26  ;;  %v8128_v25 = vld [vmem:[%s8433_s13 + $0x634] ss:$76 sps:$4 sm:$0xff]  }
 0x1d6   : > { %5605 = vmatprep.subr.bf16.mxu0 %v8116_v27  ;;  %4492 = vmatmul.mubr.bf16.gmra.mrb[8].mxu1 %v8046_v28  ;;  %v8130_v26 = vld [vmem:[%s8433_s13 + $0x608] ss:$76 sps:$4 sm:$0xff]   ;;  %v8134_v27 = vld [vmem:[%s8433_s13 + $0x630] ss:$76 sps:$4 sm:$0xff]  }
 0x1d7   : > { %5457 = vmatmul.mubr.bf16.gmra.mrb[8].mxu0 %v8050_v29  ;;  %4501 = vmatprep.mubr.bf16.mxu1 %v8054_v30  ;;  %v8138_v28 = vld [vmem:[%s8433_s13 + $0x6a4] ss:$76 sps:$4 sm:$0xff]   ;;  %v8140_v29 = vld [vmem:[%s8433_s13 + $0x6cc] ss:$76 sps:$4 sm:$0xff]  }
 0x1d8   : > { %5466 = vmatprep.mubr.bf16.mxu0 %v8056_v31  ;;  %4641 = vmatpush1.bf16.msra.mxu1 %v8068_v32  ;;  %v8142_v30 = vld [vmem:[%s8433_s13 + $0x6a0] ss:$76 sps:$4 sm:$0xff]   ;;  %v8146_v31 = vld [vmem:[%s8433_s13 + $0x6c8] ss:$76 sps:$4 sm:$0xff]  }
 0x1d9   : > { %5606 = vmatpush1.bf16.msra.mxu0 %v8114_v33  ;;  %4642 = vmatprep.subr.bf16.mxu1 %v8082_v34  ;;  %v8147_v32 = vld [vmem:[%s8433_s13 + $0x73c] ss:$76 sps:$4 sm:$0xff]   ;;  %v8149_v33 = vld [vmem:[%s8433_s13 + $0x764] ss:$76 sps:$4 sm:$0xff]  }
 0x1da   : > { %5607 = vmatprep.subr.bf16.mxu0 %v8137_v35  ;;  %v8151_v34 = vld [vmem:[%s8433_s13 + $0x738] ss:$76 sps:$4 sm:$0xff]   ;;  %v8155_v35 = vld [vmem:[%s8433_s13 + $0x760] ss:$76 sps:$4 sm:$0xff]  }
 0x1dc   : > { %4643 = vmatpush1.bf16.msra.mxu1 %v8080_v36  ;;  %v8159_v36 = vld [vmem:[%s8433_s13 + $0x7d4] ss:$76 sps:$4 sm:$0xff]  }
 0x1dd   : > { %5608 = vmatpush1.bf16.msra.mxu0 %v8135_v37  ;;  %4644 = vmatprep.subr.bf16.mxu1 %v8091_v38  ;;  %v8161_v37 = vld [vmem:[%s8433_s13 + $0x7fc] ss:$76 sps:$4 sm:$0xff]  }
 0x1de   : > { %5609 = vmatprep.subr.bf16.mxu0 %v8158_v39  ;;  %4502 = vmatmul.mubr.bf16.gmra.mrb[12].mxu1 %v8058_v40  ;;  %v8163_v38 = vld [vmem:[%s8433_s13 + $0x7d0] ss:$76 sps:$4 sm:$0xff]   ;;  %v8167_v39 = vld [vmem:[%s8433_s13 + $0x7f8] ss:$76 sps:$4 sm:$0xff]  }
 0x1df   : > { %5467 = vmatmul.mubr.bf16.gmra.mrb[12].mxu0 %v8062_v41  ;;  %4511 = vmatprep.mubr.bf16.mxu1 %v8063_v42  ;;  %v8168_v40 = vld [vmem:[%s8433_s13 + $0x86c] ss:$76 sps:$4 sm:$0xff]   ;;  %v8170_v41 = vld [vmem:[%s8433_s13 + $0x894] ss:$76 sps:$4 sm:$0xff]  }
 0x1e0   : > { %5476 = vmatprep.mubr.bf16.mxu0 %v8065_v43  ;;  %4645 = vmatpush1.bf16.msra.mxu1 %v8089_v44  ;;  %v8172_v42 = vld [vmem:[%s8433_s13 + $0x868] ss:$76 sps:$4 sm:$0xff]   ;;  %v8176_v43 = vld [vmem:[%s8433_s13 + $0x890] ss:$76 sps:$4 sm:$0xff]  }
 0x1e1   : > { %5610 = vmatpush1.bf16.msra.mxu0 %v8156_v45  ;;  %4646 = vmatprep.subr.bf16.mxu1 %v8103_v46  ;;  %v8180_v44 = vld [vmem:[%s8433_s13 + $0x904] ss:$76 sps:$4 sm:$0xff]   ;;  %v8182_v45 = vld [vmem:[%s8433_s13 + $0x92c] ss:$76 sps:$4 sm:$0xff]  }
 0x1e2   : > { %5611 = vmatprep.subr.bf16.mxu0 %v8179_v47  ;;  %v8184_v46 = vld [vmem:[%s8433_s13 + $0x900] ss:$76 sps:$4 sm:$0xff]   ;;  %v8188_v47 = vld [vmem:[%s8433_s13 + $0x928] ss:$76 sps:$4 sm:$0xff]  }
 0x1e4   : > { %4647 = vmatpush1.bf16.msra.mxu1 %v8101_v48  ;;  %v8191_v48 = vld [vmem:[%s8433_s13 + $0x24] ss:$76 sps:$4 sm:$0xff]  }
 0x1e5   : > { %5612 = vmatpush1.bf16.msra.mxu0 %v8177_v49  ;;  %4648 = vmatprep.subr.bf16.mxu1 %v8112_v50  ;;  %v8261_v49 = vmov 0   ;;  %v8189_v50 = vld [vmem:[%s8433_s13 + $0x20] ss:$76 sps:$4 sm:$0xff]  }
 0x1e6   : > { %4512 = vmatmul.mubr.bf16.gmra.mrb[16].mxu1 %v8067_v51  ;;  %v8192_v51 = vld [vmem:[%s8433_s13 + $0x48] ss:$76 sps:$4 sm:$0xff]  }
 0x1e7   : > { %5477 = vmatmul.mubr.bf16.gmra.mrb[16].mxu0 %v8071_v52  ;;  %4521 = vmatprep.mubr.bf16.mxu1 %v8075_v53  ;;  %v8193_v52 = vld [vmem:[%s8433_s13 + $0xbc] ss:$76 sps:$4 sm:$0xff]   ;;  %v8195_v53 = vld [vmem:[%s8433_s13 + $0xb8] ss:$76 sps:$4 sm:$0xff]  }
 0x1e8   : > { %5486 = vmatprep.mubr.bf16.mxu0 %v8077_v54  ;;  %4649 = vmatpush1.bf16.msra.mxu1 %v8110_v55  ;;  %v8196_v54 = vld [vmem:[%s8433_s13 + $0xe0] ss:$76 sps:$4 sm:$0xff]  }
 0x1e9   : > { %4650 = vmatprep.subr.bf16.mxu1 %v8124_v56  ;;  %v8197_v55 = vld [vmem:[%s8433_s13 + $0x154] ss:$76 sps:$4 sm:$0xff]   ;;  %v8199_v56 = vld [vmem:[%s8433_s13 + $0x150] ss:$76 sps:$4 sm:$0xff]  }
 0x1ec   : > { %4651 = vmatpush1.bf16.msra.mxu1 %v8122_v57  ;;  %v8200_v57 = vld [vmem:[%s8433_s13 + $0x178] ss:$76 sps:$4 sm:$0xff]  }
 0x1ed   : > { %4652 = vmatprep.subr.bf16.mxu1 %v8133_v58  ;;  %v8201_v58 = vld [vmem:[%s8433_s13 + $0x1ec] ss:$76 sps:$4 sm:$0xff]  }
 0x1ee   : > { %4522 = vmatmul.mubr.bf16.gmra.mrb[20].mxu1 %v8079_v59  ;;  %v8203_v59 = vld [vmem:[%s8433_s13 + $0x1e8] ss:$76 sps:$4 sm:$0xff]  }
 0x1ef   : > { %5487 = vmatmul.mubr.bf16.gmra.mrb[20].mxu0 %v8083_v60  ;;  %4531 = vmatprep.mubr.bf16.mxu1 %v8084_v61  ;;  %v8204_v60 = vld [vmem:[%s8433_s13 + $0x210] ss:$76 sps:$4 sm:$0xff]  }
 0x1f0   : > { %5496 = vmatprep.mubr.bf16.mxu0 %v8086_v62  ;;  %4653 = vmatpush1.bf16.msra.mxu1 %v8131_v63  ;;  %v8205_v61 = vld [vmem:[%s8433_s13 + $0x284] ss:$76 sps:$4 sm:$0xff]   ;;  %v8207_v62 = vld [vmem:[%s8433_s13 + $0x280] ss:$76 sps:$4 sm:$0xff]   ;;  %v8208_v63 = vld [vmem:[%s8433_s13 + $0x2a8] ss:$76 sps:$4 sm:$0xff]  }
 0x1f1   : > { %4654 = vmatprep.subr.bf16.mxu1 %v8145_v0  ;;  %v8209_v0 = vld [vmem:[%s8433_s13 + $0x31c] ss:$76 sps:$4 sm:$0xff]  }
 0x1f4   : > { %4655 = vmatpush1.bf16.msra.mxu1 %v8143_v1  ;;  %v8211_v1 = vld [vmem:[%s8433_s13 + $0x318] ss:$76 sps:$4 sm:$0xff]  }
 0x1f5   : > { %4656 = vmatprep.subr.bf16.mxu1 %v8154_v2  ;;  %v8212_v2 = vld [vmem:[%s8433_s13 + $0x340] ss:$76 sps:$4 sm:$0xff]  }
 0x1f6   : > { %4532 = vmatmul.mubr.bf16.gmra.mrb[24].mxu1 %v8088_v3  ;;  %v8213_v3 = vld [vmem:[%s8433_s13 + $0x3b4] ss:$76 sps:$4 sm:$0xff]  }
 0x1f7   : > { %5497 = vmatmul.mubr.bf16.gmra.mrb[24].mxu0 %v8092_v4  ;;  %4541 = vmatprep.mubr.bf16.mxu1 %v8096_v5  ;;  %v8215_v4 = vld [vmem:[%s8433_s13 + $0x3b0] ss:$76 sps:$4 sm:$0xff]   ;;  %v8216_v5 = vld [vmem:[%s8433_s13 + $0x3d8] ss:$76 sps:$4 sm:$0xff]  }
 0x1f8   : > { %5506 = vmatprep.mubr.bf16.mxu0 %v8098_v6  ;;  %4657 = vmatpush1.bf16.msra.mxu1 %v8152_v7  ;;  %v8217_v6 = vld [vmem:[%s8433_s13 + $0x44c] ss:$76 sps:$4 sm:$0xff]   ;;  %v8219_v7 = vld [vmem:[%s8433_s13 + $0x448] ss:$76 sps:$4 sm:$0xff]  }
 0x1f9   : > { %4658 = vmatprep.subr.bf16.mxu1 %v8166_v8  ;;  %v8220_v8 = vld [vmem:[%s8433_s13 + $0x470] ss:$76 sps:$4 sm:$0xff]  }
 0x1fc   : > { %4659 = vmatpush1.bf16.msra.mxu1 %v8164_v9  ;;  %v8221_v9 = vld [vmem:[%s8433_s13 + $0x4e4] ss:$76 sps:$4 sm:$0xff]  }
 0x1fd   : > { %4660 = vmatprep.subr.bf16.mxu1 %v8175_v10  ;;  %v8223_v10 = vld [vmem:[%s8433_s13 + $0x4e0] ss:$76 sps:$4 sm:$0xff]  }
 0x1fe   : > { %4542 = vmatmul.mubr.bf16.gmra.mrb[28].mxu1 %v8100_v11  ;;  %v8224_v11 = vld [vmem:[%s8433_s13 + $0x508] ss:$76 sps:$4 sm:$0xff]  }
 0x1ff   : > { %5507 = vmatmul.mubr.bf16.gmra.mrb[28].mxu0 %v8104_v12  ;;  %4551 = vmatprep.mubr.bf16.mxu1 %v8105_v13  ;;  %v8225_v12 = vld [vmem:[%s8433_s13 + $0x57c] ss:$76 sps:$4 sm:$0xff]   ;;  %v8227_v13 = vld [vmem:[%s8433_s13 + $0x578] ss:$76 sps:$4 sm:$0xff]  }
 0x200   : > { %5516 = vmatprep.mubr.bf16.mxu0 %v8107_v14  ;;  %4661 = vmatpush1.bf16.msra.mxu1 %v8173_v15  ;;  %v8228_v14 = vld [vmem:[%s8433_s13 + $0x5a0] ss:$76 sps:$4 sm:$0xff]  }
 0x201   : > { %4662 = vmatprep.subr.bf16.mxu1 %v8187_v16  ;;  %v8229_v15 = vld [vmem:[%s8433_s13 + $0x614] ss:$76 sps:$4 sm:$0xff]   ;;  %v8231_v16 = vld [vmem:[%s8433_s13 + $0x610] ss:$76 sps:$4 sm:$0xff]  }
 0x204   : > { %4663 = vmatpush1.bf16.msra.mxu1 %v8185_v17  ;;  %v8232_v17 = vld [vmem:[%s8433_s13 + $0x638] ss:$76 sps:$4 sm:$0xff]  }
 0x206   : > { %4552 = vmatmul.mubr.bf16.gmra.mrb[32].mxu1 %v8109_v18  ;;  %v8233_v18 = vld [vmem:[%s8433_s13 + $0x6ac] ss:$76 sps:$4 sm:$0xff]  }
 0x207   : > { %5517 = vmatmul.mubr.bf16.gmra.mrb[32].mxu0 %v8113_v19  ;;  %4561 = vmatprep.mubr.bf16.mxu1 %v8117_v20  ;;  %v8235_v19 = vld [vmem:[%s8433_s13 + $0x6a8] ss:$76 sps:$4 sm:$0xff]   ;;  %v8236_v20 = vld [vmem:[%s8433_s13 + $0x6d0] ss:$76 sps:$4 sm:$0xff]  }
 0x208   : > { %5526 = vmatprep.mubr.bf16.mxu0 %v8119_v21  ;;  %v8237_v21 = vld [vmem:[%s8433_s13 + $0x744] ss:$76 sps:$4 sm:$0xff]  }
 0x20e   : > { %4562 = vmatmul.mubr.bf16.gmra.mrb[36].mxu1 %v8121_v22  ;;  %v8239_v22 = vld [vmem:[%s8433_s13 + $0x740] ss:$76 sps:$4 sm:$0xff]  }
 0x20f   : > { %5527 = vmatmul.mubr.bf16.gmra.mrb[36].mxu0 %v8125_v23  ;;  %4571 = vmatprep.mubr.bf16.mxu1 %v8126_v24  ;;  %v8240_v23 = vld [vmem:[%s8433_s13 + $0x768] ss:$76 sps:$4 sm:$0xff]  }
 0x210   : > { %5536 = vmatprep.mubr.bf16.mxu0 %v8128_v25  ;;  %v8241_v24 = vld [vmem:[%s8433_s13 + $0x7dc] ss:$76 sps:$4 sm:$0xff]   ;;  %v8243_v25 = vld [vmem:[%s8433_s13 + $0x7d8] ss:$76 sps:$4 sm:$0xff]  }
 0x216   : > { %4572 = vmatmul.mubr.bf16.gmra.mrb[40].mxu1 %v8130_v26  ;;  %v8244_v26 = vld [vmem:[%s8433_s13 + $0x800] ss:$76 sps:$4 sm:$0xff]  }
 0x217   : > { %5537 = vmatmul.mubr.bf16.gmra.mrb[40].mxu0 %v8134_v27  ;;  %4581 = vmatprep.mubr.bf16.mxu1 %v8138_v28  ;;  %v8245_v27 = vld [vmem:[%s8433_s13 + $0x874] ss:$76 sps:$4 sm:$0xff]   ;;  %v8247_v28 = vld [vmem:[%s8433_s13 + $0x870] ss:$76 sps:$4 sm:$0xff]  }
 0x218   : > { %5546 = vmatprep.mubr.bf16.mxu0 %v8140_v29  ;;  %v8248_v29 = vld [vmem:[%s8433_s13 + $0x898] ss:$76 sps:$4 sm:$0xff]  }
 0x21e   : > { %4582 = vmatmul.mubr.bf16.gmra.mrb[44].mxu1 %v8142_v30  ;;  %v8249_v30 = vld [vmem:[%s8433_s13 + $0x90c] ss:$76 sps:$4 sm:$0xff]  }
 0x21f   : > { %5547 = vmatmul.mubr.bf16.gmra.mrb[44].mxu0 %v8146_v31  ;;  %4591 = vmatprep.mubr.bf16.mxu1 %v8147_v32  ;;  %v8251_v31 = vld [vmem:[%s8433_s13 + $0x908] ss:$76 sps:$4 sm:$0xff]   ;;  %v8252_v32 = vld [vmem:[%s8433_s13 + $0x930] ss:$76 sps:$4 sm:$0xff]   ;;  %s6762_s13 = sshll.u32 %s9749_s24, 4 }
 0x220   : > { %5556 = vmatprep.mubr.bf16.mxu0 %v8149_v33  ;;  %v5792_v33 = vlaneseq  ;;  %s9551_s27 = scalar_lea.vmem %s9747_s3, %s6762_s13 }
 0x226   : > { %4592 = vmatmul.mubr.bf16.gmra.mrb[48].mxu1 %v8151_v34  ;;  %v5793_v34 = vshrl.u32 %v5792_v33, 7 }
 0x227   : > { %5557 = vmatmul.mubr.bf16.gmra.mrb[48].mxu0 %v8155_v35  ;;  %4601 = vmatprep.mubr.bf16.mxu1 %v8159_v36  ;;  %v5790_v36 = vld [vmem:[%s9746_s2] sm:$0xf] }
 0x228   : > { %5566 = vmatprep.mubr.bf16.mxu0 %v8161_v37  ;;  %v5794_v35 = vsub.s32 0, %v5793_v34  ;;  %v5798_v37 = vsub.s32 2, %v5793_v34 }
 0x22e   : > { %4602 = vmatmul.mubr.bf16.gmra.mrb[52].mxu1 %v8163_v38  ;;  %v5876_v38 = vsub.s32 1, %v5793_v34 }
 0x22f   : > { %5567 = vmatmul.mubr.bf16.gmra.mrb[52].mxu0 %v8167_v39  ;;  %4611 = vmatprep.mubr.bf16.mxu1 %v8168_v40  ;;  %v5880_v39 = vsub.s32 3, %v5793_v34  ;;  %v5795_v40 = vrot.slane %v5790_v36, %v5794_v35 }
 0x230   : > { %5576 = vmatprep.mubr.bf16.mxu0 %v8170_v41  ;;  %v5799_v41 = vrot.slane %v5790_v36, %v5798_v37 }
 0x236   : > { %4612 = vmatmul.mubr.bf16.gmra.mrb[56].mxu1 %v8172_v42  ;;  %v5877_v42 = vrot.slane %v5790_v36, %v5876_v38 }
 0x237   : > { %5577 = vmatmul.mubr.bf16.gmra.mrb[56].mxu0 %v8176_v43  ;;  %4621 = vmatprep.mubr.bf16.mxu1 %v8180_v44  ;;  %v5881_v43 = vrot.slane %v5790_v36, %v5880_v39  ;;  %v9535_v44 = vrot.slane %v5795_v40, %v5794_v35 }
 0x238   : > { %5586 = vmatprep.mubr.bf16.mxu0 %v8182_v45 }
 0x23e   : > { %4622 = vmatmul.mubr.bf16.gmra.mrb[60].mxu1 %v8184_v46 }
 0x23f   : > { %5587 = vmatmul.mubr.bf16.gmra.mrb[60].mxu0 %v8188_v47  ;;  %4664 = vmatprep.mubr.bf16.mxu1 %v8191_v48  ;;  %v9537_v47 = vrot.slane %v5799_v41, %v5794_v35 }
 0x240   : > { %5629 = vmatprep.mubr.bf16.mxu0 %v8261_v49 }
 0x246   : > { %4665 = vmatmul.mubr.bf16.vlgmr.msra.gmra.mrb[0].mxu1 %v8189_v50 }
 0x247   : > { %5630 = vmatmul.mubr.bf16.vlgmr.msra.gmra.mrb[0].mxu0 %v8192_v51  ;;  %4674 = vmatprep.mubr.bf16.mxu1 %v8193_v52 }
 0x248   : > { %5639 = vmatprep.mubr.bf16.mxu0 %v8261_v49 }
 0x24e   : > { %4675 = vmatmul.mubr.bf16.gmra.mrb[4].mxu1 %v8195_v53  ;;  %v9541_v53 = vrot.slane %v5881_v43, %v5876_v38 }
 0x24f   : > { %5640 = vmatmul.mubr.bf16.gmra.mrb[4].mxu0 %v8196_v54  ;;  %4684 = vmatprep.mubr.bf16.mxu1 %v8197_v55 }
 0x250   : > { %5649 = vmatprep.mubr.bf16.mxu0 %v8261_v49 }
 0x256   : > { %4685 = vmatmul.mubr.bf16.gmra.mrb[8].mxu1 %v8199_v56 }
 0x257   : > { %5650 = vmatmul.mubr.bf16.gmra.mrb[8].mxu0 %v8200_v57  ;;  %4694 = vmatprep.mubr.bf16.mxu1 %v8201_v58 }
 0x258   : > { %5659 = vmatprep.mubr.bf16.mxu0 %v8261_v49 }
 0x25e   : > { %4695 = vmatmul.mubr.bf16.gmra.mrb[12].mxu1 %v8203_v59 }
 0x25f   : > { %5660 = vmatmul.mubr.bf16.gmra.mrb[12].mxu0 %v8204_v60  ;;  %4704 = vmatprep.mubr.bf16.mxu1 %v8205_v61 }
 0x260   : > { %5669 = vmatprep.mubr.bf16.mxu0 %v8261_v49 }
 0x266   : > { %4705 = vmatmul.mubr.bf16.gmra.mrb[16].mxu1 %v8207_v62 }
 0x267   : > { %5670 = vmatmul.mubr.bf16.gmra.mrb[16].mxu0 %v8208_v63  ;;  %4714 = vmatprep.mubr.bf16.mxu1 %v8209_v0 }
 0x268   : > { %5679 = vmatprep.mubr.bf16.mxu0 %v8261_v49 }
 0x26e   : > { %4715 = vmatmul.mubr.bf16.gmra.mrb[20].mxu1 %v8211_v1 }
 0x26f   : > { %5680 = vmatmul.mubr.bf16.gmra.mrb[20].mxu0 %v8212_v2  ;;  %4724 = vmatprep.mubr.bf16.mxu1 %v8213_v3 }
 0x270   : > { %5689 = vmatprep.mubr.bf16.mxu0 %v8261_v49 }
 0x276   : > { %4725 = vmatmul.mubr.bf16.gmra.mrb[24].mxu1 %v8215_v4 }
 0x277   : > { %5690 = vmatmul.mubr.bf16.gmra.mrb[24].mxu0 %v8216_v5  ;;  %4734 = vmatprep.mubr.bf16.mxu1 %v8217_v6 }
 0x278   : > { %5699 = vmatprep.mubr.bf16.mxu0 %v8261_v49 }
 0x27e   : > { %4735 = vmatmul.mubr.bf16.gmra.mrb[28].mxu1 %v8219_v7 }
 0x27f   : > { %5700 = vmatmul.mubr.bf16.gmra.mrb[28].mxu0 %v8220_v8  ;;  %4744 = vmatprep.mubr.bf16.mxu1 %v8221_v9 }
 0x280   : > { %5709 = vmatprep.mubr.bf16.mxu0 %v8261_v49 }
 0x286   : > { %4745 = vmatmul.mubr.bf16.gmra.mrb[32].mxu1 %v8223_v10 }
 0x287   : > { %5710 = vmatmul.mubr.bf16.gmra.mrb[32].mxu0 %v8224_v11  ;;  %4754 = vmatprep.mubr.bf16.mxu1 %v8225_v12 }
 0x288   : > { %5719 = vmatprep.mubr.bf16.mxu0 %v8261_v49 }
 0x28e   : > { %4755 = vmatmul.mubr.bf16.gmra.mrb[36].mxu1 %v8227_v13 }
 0x28f   : > { %5720 = vmatmul.mubr.bf16.gmra.mrb[36].mxu0 %v8228_v14  ;;  %4764 = vmatprep.mubr.bf16.mxu1 %v8229_v15 }
 0x290   : > { %5729 = vmatprep.mubr.bf16.mxu0 %v8261_v49 }
 0x296   : > { %4765 = vmatmul.mubr.bf16.gmra.mrb[40].mxu1 %v8231_v16 }
 0x297   : > { %5730 = vmatmul.mubr.bf16.gmra.mrb[40].mxu0 %v8232_v17  ;;  %4774 = vmatprep.mubr.bf16.mxu1 %v8233_v18 }
 0x298   : > { %5739 = vmatprep.mubr.bf16.mxu0 %v8261_v49 }
 0x29e   : > { %4775 = vmatmul.mubr.bf16.gmra.mrb[44].mxu1 %v8235_v19 }
 0x29f   : > { %5740 = vmatmul.mubr.bf16.gmra.mrb[44].mxu0 %v8236_v20  ;;  %4784 = vmatprep.mubr.bf16.mxu1 %v8237_v21 }
 0x2a0   : > { %5749 = vmatprep.mubr.bf16.mxu0 %v8261_v49 }
 0x2a6   : > { %4785 = vmatmul.mubr.bf16.gmra.mrb[48].mxu1 %v8239_v22 }
 0x2a7   : > { %5750 = vmatmul.mubr.bf16.gmra.mrb[48].mxu0 %v8240_v23  ;;  %4794 = vmatprep.mubr.bf16.mxu1 %v8241_v24 }
 0x2a8   : > { %5759 = vmatprep.mubr.bf16.mxu0 %v8261_v49 }
 0x2ae   : > { %4795 = vmatmul.mubr.bf16.gmra.mrb[52].mxu1 %v8243_v25 }
 0x2af   : > { %5760 = vmatmul.mubr.bf16.gmra.mrb[52].mxu0 %v8244_v26  ;;  %4804 = vmatprep.mubr.bf16.mxu1 %v8245_v27 }
 0x2b0   : > { %5769 = vmatprep.mubr.bf16.mxu0 %v8261_v49 }
 0x2b6   : > { %4805 = vmatmul.mubr.bf16.gmra.mrb[56].mxu1 %v8247_v28 }
 0x2b7   : > { %5770 = vmatmul.mubr.bf16.gmra.mrb[56].mxu0 %v8248_v29  ;;  %4814 = vmatprep.mubr.bf16.mxu1 %v8249_v30 }
 0x2b8   : > { %5779 = vmatprep.mubr.bf16.mxu0 %v8261_v49  ;;  %v9539_v49 = vrot.slane %v5877_v42, %v5876_v38 }
 0x2be   : > { %4815 = vmatmul.mubr.bf16.gmra.mrb[60].mxu1 %v8251_v31 }
 0x2bf   : > { %5780 = vmatmul.mubr.bf16.gmra.mrb[60].mxu0 %v8252_v32 }
 0x319   : > { %v4666_v45 = vpop.f32.mrb[0].mxu1 }
 0x31a   : > { %v5631_v46 = vpop.f32.mrb[0].mxu0  ;;  %v4668_v50 = vpop.f32.mrb[1].mxu1 }
 0x31b   : > { %v6763_v48 = vadd.f32 %v5631_v46, %v4666_v45  ;;  %v5633_v51 = vpop.f32.mrb[1].mxu0  ;;  %v4670_v54 = vpop.f32.mrb[2].mxu1 }
 0x31c   : > { %v6764_v52 = vadd.f32 %v5633_v51, %v4668_v50  ;;  %v5635_v55 = vpop.f32.mrb[2].mxu0  ;;  %v4672_v58 = vpop.f32.mrb[3].mxu1 }
 0x31d   : > { %v5810_v56 = vmul.f32 %v6763_v48, %v9535_v44  ;;  %v6765_v57 = vadd.f32 %v5635_v55, %v4670_v54  ;;  %v5637_v59 = vpop.f32.mrb[3].mxu0 }
 0x31e   : > { %v5811_v60 = vmul.f32 %v6764_v52, %v9537_v47  ;;  %v6766_v61 = vadd.f32 %v5637_v59, %v4672_v58 }
 0x31f   : > { %v5892_v62 = vadd.f32 %v9539_v49, %v5810_v56  ;;  %v5812_v63 = vmul.f32 %v6765_v57, %v9535_v44 }
 0x320   : > { %v5893_v0 = vadd.f32 %v9541_v53, %v5811_v60  ;;  %v5813_v1 = vmul.f32 %v6766_v61, %v9537_v47 }
 0x321   : > { %v5956_v2 = vmax.f32 %v5892_v62, 0.0  ;;  %v5894_v3 = vadd.f32 %v9539_v49, %v5812_v63  ;;  %v4676_v6 = vpop.f32.mrb[4].mxu1 }
 0x322   : > { %v5957_v4 = vmax.f32 %v5893_v0, 0.0  ;;  %v5895_v5 = vadd.f32 %v9541_v53, %v5813_v1  ;;  %v5641_v7 = vpop.f32.mrb[4].mxu0  ;;  %v4678_v10 = vpop.f32.mrb[5].mxu1 }
 0x323   : > { %6020 = vst [vmem:[%s9551_s27] sm:$0xff] %v5956_v2  ;;  %v5958_v8 = vmax.f32 %v5894_v3, 0.0  ;;  %v6767_v9 = vadd.f32 %v5641_v7, %v4676_v6  ;;  %v5643_v11 = vpop.f32.mrb[5].mxu0  ;;  %v4680_v14 = vpop.f32.mrb[6].mxu1 }
 0x324   : > { %6021 = vst [vmem:[%s9551_s27 + $0x8] sm:$0xff] %v5957_v4  ;;  %v5959_v12 = vmax.f32 %v5895_v5, 0.0  ;;  %v6768_v13 = vadd.f32 %v5643_v11, %v4678_v10  ;;  %v5645_v15 = vpop.f32.mrb[6].mxu0  ;;  %v4682_v18 = vpop.f32.mrb[7].mxu1 }
 0x325   : > { %6022 = vst [vmem:[%s9551_s27 + $0x10] sm:$0xff] %v5958_v8  ;;  %v5814_v16 = vmul.f32 %v6767_v9, %v9535_v44  ;;  %v6769_v17 = vadd.f32 %v5645_v15, %v4680_v14  ;;  %v5647_v19 = vpop.f32.mrb[7].mxu0 }
 0x326   : > { %6023 = vst [vmem:[%s9551_s27 + $0x18] sm:$0xff] %v5959_v12  ;;  %v5815_v20 = vmul.f32 %v6768_v13, %v9537_v47  ;;  %v6770_v21 = vadd.f32 %v5647_v19, %v4682_v18 }
 0x327   : > { %v5896_v22 = vadd.f32 %v9539_v49, %v5814_v16  ;;  %v5816_v23 = vmul.f32 %v6769_v17, %v9535_v44 }
 0x328   : > { %v5897_v24 = vadd.f32 %v9541_v53, %v5815_v20  ;;  %v5817_v25 = vmul.f32 %v6770_v21, %v9537_v47 }
 0x329   : > { %v5960_v26 = vmax.f32 %v5896_v22, 0.0  ;;  %v5898_v27 = vadd.f32 %v9539_v49, %v5816_v23  ;;  %v4686_v30 = vpop.f32.mrb[8].mxu1 }
 0x32a   : > { %v5961_v28 = vmax.f32 %v5897_v24, 0.0  ;;  %v5899_v29 = vadd.f32 %v9541_v53, %v5817_v25  ;;  %v5651_v31 = vpop.f32.mrb[8].mxu0  ;;  %v4688_v34 = vpop.f32.mrb[9].mxu1 }
 0x32b   : > { %6024 = vst [vmem:[%s9551_s27 + $0x20] sm:$0xff] %v5960_v26  ;;  %v5962_v32 = vmax.f32 %v5898_v27, 0.0  ;;  %v6771_v33 = vadd.f32 %v5651_v31, %v4686_v30  ;;  %v5653_v35 = vpop.f32.mrb[9].mxu0  ;;  %v4690_v38 = vpop.f32.mrb[10].mxu1 }
 0x32c   : > { %6025 = vst [vmem:[%s9551_s27 + $0x28] sm:$0xff] %v5961_v28  ;;  %v5963_v36 = vmax.f32 %v5899_v29, 0.0  ;;  %v6772_v37 = vadd.f32 %v5653_v35, %v4688_v34  ;;  %v5655_v39 = vpop.f32.mrb[10].mxu0  ;;  %v4692_v42 = vpop.f32.mrb[11].mxu1 }
 0x32d   : > { %6026 = vst [vmem:[%s9551_s27 + $0x30] sm:$0xff] %v5962_v32  ;;  %v5818_v40 = vmul.f32 %v6771_v33, %v9535_v44  ;;  %v6773_v41 = vadd.f32 %v5655_v39, %v4690_v38  ;;  %v5657_v43 = vpop.f32.mrb[11].mxu0 }
 0x32e   : > { %6027 = vst [vmem:[%s9551_s27 + $0x38] sm:$0xff] %v5963_v36  ;;  %v5819_v45 = vmul.f32 %v6772_v37, %v9537_v47  ;;  %v6774_v46 = vadd.f32 %v5657_v43, %v4692_v42 }
 0x32f   : > { %v5900_v48 = vadd.f32 %v9539_v49, %v5818_v40  ;;  %v5820_v50 = vmul.f32 %v6773_v41, %v9535_v44 }
 0x330   : > { %v5901_v51 = vadd.f32 %v9541_v53, %v5819_v45  ;;  %v5821_v52 = vmul.f32 %v6774_v46, %v9537_v47 }
 0x331   : > { %v5964_v54 = vmax.f32 %v5900_v48, 0.0  ;;  %v5902_v55 = vadd.f32 %v9539_v49, %v5820_v50  ;;  %v4696_v58 = vpop.f32.mrb[12].mxu1 }
 0x332   : > { %v5965_v56 = vmax.f32 %v5901_v51, 0.0  ;;  %v5903_v57 = vadd.f32 %v9541_v53, %v5821_v52  ;;  %v5661_v59 = vpop.f32.mrb[12].mxu0  ;;  %v4698_v62 = vpop.f32.mrb[13].mxu1 }
 0x333   : > { %6028 = vst [vmem:[%s9551_s27 + $0x40] sm:$0xff] %v5964_v54  ;;  %v5966_v60 = vmax.f32 %v5902_v55, 0.0  ;;  %v6775_v61 = vadd.f32 %v5661_v59, %v4696_v58  ;;  %v5663_v63 = vpop.f32.mrb[13].mxu0  ;;  %v4700_v2 = vpop.f32.mrb[14].mxu1 }
 0x334   : > { %6029 = vst [vmem:[%s9551_s27 + $0x48] sm:$0xff] %v5965_v56  ;;  %v5967_v0 = vmax.f32 %v5903_v57, 0.0  ;;  %v6776_v1 = vadd.f32 %v5663_v63, %v4698_v62  ;;  %v5665_v3 = vpop.f32.mrb[14].mxu0  ;;  %v4702_v6 = vpop.f32.mrb[15].mxu1 }
 0x335   : > { %6030 = vst [vmem:[%s9551_s27 + $0x50] sm:$0xff] %v5966_v60  ;;  %v5822_v4 = vmul.f32 %v6775_v61, %v9535_v44  ;;  %v6777_v5 = vadd.f32 %v5665_v3, %v4700_v2  ;;  %v5667_v7 = vpop.f32.mrb[15].mxu0 }
 0x336   : > { %6031 = vst [vmem:[%s9551_s27 + $0x58] sm:$0xff] %v5967_v0  ;;  %v5823_v8 = vmul.f32 %v6776_v1, %v9537_v47  ;;  %v6778_v9 = vadd.f32 %v5667_v7, %v4702_v6 }
 0x337   : > { %v5904_v10 = vadd.f32 %v9539_v49, %v5822_v4  ;;  %v5824_v11 = vmul.f32 %v6777_v5, %v9535_v44 }
 0x338   : > { %v5905_v12 = vadd.f32 %v9541_v53, %v5823_v8  ;;  %v5825_v13 = vmul.f32 %v6778_v9, %v9537_v47 }
 0x339   : > { %v5968_v14 = vmax.f32 %v5904_v10, 0.0  ;;  %v5906_v15 = vadd.f32 %v9539_v49, %v5824_v11  ;;  %v4706_v18 = vpop.f32.mrb[16].mxu1 }
 0x33a   : > { %v5969_v16 = vmax.f32 %v5905_v12, 0.0  ;;  %v5907_v17 = vadd.f32 %v9541_v53, %v5825_v13  ;;  %v5671_v19 = vpop.f32.mrb[16].mxu0  ;;  %v4708_v22 = vpop.f32.mrb[17].mxu1 }
 0x33b   : > { %6032 = vst [vmem:[%s9551_s27 + $0x60] sm:$0xff] %v5968_v14  ;;  %v5970_v20 = vmax.f32 %v5906_v15, 0.0  ;;  %v6779_v21 = vadd.f32 %v5671_v19, %v4706_v18  ;;  %v5673_v23 = vpop.f32.mrb[17].mxu0  ;;  %v4710_v26 = vpop.f32.mrb[18].mxu1 }
 0x33c   : > { %6033 = vst [vmem:[%s9551_s27 + $0x68] sm:$0xff] %v5969_v16  ;;  %v5971_v24 = vmax.f32 %v5907_v17, 0.0  ;;  %v6780_v25 = vadd.f32 %v5673_v23, %v4708_v22  ;;  %v5675_v27 = vpop.f32.mrb[18].mxu0  ;;  %v4712_v30 = vpop.f32.mrb[19].mxu1 }
 0x33d   : > { %6034 = vst [vmem:[%s9551_s27 + $0x70] sm:$0xff] %v5970_v20  ;;  %v5826_v28 = vmul.f32 %v6779_v21, %v9535_v44  ;;  %v6781_v29 = vadd.f32 %v5675_v27, %v4710_v26  ;;  %v5677_v31 = vpop.f32.mrb[19].mxu0 }
 0x33e   : > { %6035 = vst [vmem:[%s9551_s27 + $0x78] sm:$0xff] %v5971_v24  ;;  %v5827_v32 = vmul.f32 %v6780_v25, %v9537_v47  ;;  %v6782_v33 = vadd.f32 %v5677_v31, %v4712_v30 }
 0x33f   : > { %v5908_v34 = vadd.f32 %v9539_v49, %v5826_v28  ;;  %v5828_v35 = vmul.f32 %v6781_v29, %v9535_v44 }
 0x340   : > { %v5909_v36 = vadd.f32 %v9541_v53, %v5827_v32  ;;  %v5829_v37 = vmul.f32 %v6782_v33, %v9537_v47 }
 0x341   : > { %v5972_v38 = vmax.f32 %v5908_v34, 0.0  ;;  %v5910_v39 = vadd.f32 %v9539_v49, %v5828_v35  ;;  %v4716_v42 = vpop.f32.mrb[20].mxu1 }
 0x342   : > { %v5973_v40 = vmax.f32 %v5909_v36, 0.0  ;;  %v5911_v41 = vadd.f32 %v9541_v53, %v5829_v37  ;;  %v5681_v43 = vpop.f32.mrb[20].mxu0  ;;  %v4718_v48 = vpop.f32.mrb[21].mxu1 }
 0x343   : > { %6036 = vst [vmem:[%s9551_s27 + $0x80] sm:$0xff] %v5972_v38  ;;  %v5974_v45 = vmax.f32 %v5910_v39, 0.0  ;;  %v6783_v46 = vadd.f32 %v5681_v43, %v4716_v42  ;;  %v5683_v50 = vpop.f32.mrb[21].mxu0  ;;  %v4720_v54 = vpop.f32.mrb[22].mxu1 }
 0x344   : > { %6037 = vst [vmem:[%s9551_s27 + $0x88] sm:$0xff] %v5973_v40  ;;  %v5975_v51 = vmax.f32 %v5911_v41, 0.0  ;;  %v6784_v52 = vadd.f32 %v5683_v50, %v4718_v48  ;;  %v5685_v55 = vpop.f32.mrb[22].mxu0  ;;  %v4722_v58 = vpop.f32.mrb[23].mxu1 }
 0x345   : > { %6038 = vst [vmem:[%s9551_s27 + $0x90] sm:$0xff] %v5974_v45  ;;  %v5830_v56 = vmul.f32 %v6783_v46, %v9535_v44  ;;  %v6785_v57 = vadd.f32 %v5685_v55, %v4720_v54  ;;  %v5687_v59 = vpop.f32.mrb[23].mxu0 }
 0x346   : > { %6039 = vst [vmem:[%s9551_s27 + $0x98] sm:$0xff] %v5975_v51  ;;  %v5831_v60 = vmul.f32 %v6784_v52, %v9537_v47  ;;  %v6786_v61 = vadd.f32 %v5687_v59, %v4722_v58 }
 0x347   : > { %v5912_v62 = vadd.f32 %v9539_v49, %v5830_v56  ;;  %v5832_v63 = vmul.f32 %v6785_v57, %v9535_v44 }
 0x348   : > { %v5913_v0 = vadd.f32 %v9541_v53, %v5831_v60  ;;  %v5833_v1 = vmul.f32 %v6786_v61, %v9537_v47 }
 0x349   : > { %v5976_v2 = vmax.f32 %v5912_v62, 0.0  ;;  %v5914_v3 = vadd.f32 %v9539_v49, %v5832_v63  ;;  %v4726_v6 = vpop.f32.mrb[24].mxu1 }
 0x34a   : > { %v5977_v4 = vmax.f32 %v5913_v0, 0.0  ;;  %v5915_v5 = vadd.f32 %v9541_v53, %v5833_v1  ;;  %v5691_v7 = vpop.f32.mrb[24].mxu0  ;;  %v4728_v10 = vpop.f32.mrb[25].mxu1 }
 0x34b   : > { %6040 = vst [vmem:[%s9551_s27 + $0xa0] sm:$0xff] %v5976_v2  ;;  %v5978_v8 = vmax.f32 %v5914_v3, 0.0  ;;  %v6787_v9 = vadd.f32 %v5691_v7, %v4726_v6  ;;  %v5693_v11 = vpop.f32.mrb[25].mxu0  ;;  %v4730_v14 = vpop.f32.mrb[26].mxu1 }
 0x34c   : > { %6041 = vst [vmem:[%s9551_s27 + $0xa8] sm:$0xff] %v5977_v4  ;;  %v5979_v12 = vmax.f32 %v5915_v5, 0.0  ;;  %v6788_v13 = vadd.f32 %v5693_v11, %v4728_v10  ;;  %v5695_v15 = vpop.f32.mrb[26].mxu0  ;;  %v4732_v18 = vpop.f32.mrb[27].mxu1 }
 0x34d   : > { %6042 = vst [vmem:[%s9551_s27 + $0xb0] sm:$0xff] %v5978_v8  ;;  %v5834_v16 = vmul.f32 %v6787_v9, %v9535_v44  ;;  %v6789_v17 = vadd.f32 %v5695_v15, %v4730_v14  ;;  %v5697_v19 = vpop.f32.mrb[27].mxu0 }
 0x34e   : > { %6043 = vst [vmem:[%s9551_s27 + $0xb8] sm:$0xff] %v5979_v12  ;;  %v5835_v20 = vmul.f32 %v6788_v13, %v9537_v47  ;;  %v6790_v21 = vadd.f32 %v5697_v19, %v4732_v18 }
 0x34f   : > { %v5916_v22 = vadd.f32 %v9539_v49, %v5834_v16  ;;  %v5836_v23 = vmul.f32 %v6789_v17, %v9535_v44 }
 0x350   : > { %v5917_v24 = vadd.f32 %v9541_v53, %v5835_v20  ;;  %v5837_v25 = vmul.f32 %v6790_v21, %v9537_v47 }
 0x351   : > { %v5980_v26 = vmax.f32 %v5916_v22, 0.0  ;;  %v5918_v27 = vadd.f32 %v9539_v49, %v5836_v23  ;;  %v4736_v30 = vpop.f32.mrb[28].mxu1 }
 0x352   : > { %v5981_v28 = vmax.f32 %v5917_v24, 0.0  ;;  %v5919_v29 = vadd.f32 %v9541_v53, %v5837_v25  ;;  %v5701_v31 = vpop.f32.mrb[28].mxu0  ;;  %v4738_v34 = vpop.f32.mrb[29].mxu1 }
 0x353   : > { %6044 = vst [vmem:[%s9551_s27 + $0xc0] sm:$0xff] %v5980_v26  ;;  %v5982_v32 = vmax.f32 %v5918_v27, 0.0  ;;  %v6791_v33 = vadd.f32 %v5701_v31, %v4736_v30  ;;  %v5703_v35 = vpop.f32.mrb[29].mxu0  ;;  %v4740_v38 = vpop.f32.mrb[30].mxu1 }
 0x354   : > { %6045 = vst [vmem:[%s9551_s27 + $0xc8] sm:$0xff] %v5981_v28  ;;  %v5983_v36 = vmax.f32 %v5919_v29, 0.0  ;;  %v6792_v37 = vadd.f32 %v5703_v35, %v4738_v34  ;;  %v5705_v39 = vpop.f32.mrb[30].mxu0  ;;  %v4742_v42 = vpop.f32.mrb[31].mxu1 }
 0x355   : > { %6046 = vst [vmem:[%s9551_s27 + $0xd0] sm:$0xff] %v5982_v32  ;;  %v5838_v40 = vmul.f32 %v6791_v33, %v9535_v44  ;;  %v6793_v41 = vadd.f32 %v5705_v39, %v4740_v38  ;;  %v5707_v43 = vpop.f32.mrb[31].mxu0 }
 0x356   : > { %6047 = vst [vmem:[%s9551_s27 + $0xd8] sm:$0xff] %v5983_v36  ;;  %v5839_v45 = vmul.f32 %v6792_v37, %v9537_v47  ;;  %v6794_v46 = vadd.f32 %v5707_v43, %v4742_v42 }
 0x357   : > { %v5920_v48 = vadd.f32 %v9539_v49, %v5838_v40  ;;  %v5840_v50 = vmul.f32 %v6793_v41, %v9535_v44 }
 0x358   : > { %v5921_v51 = vadd.f32 %v9541_v53, %v5839_v45  ;;  %v5841_v52 = vmul.f32 %v6794_v46, %v9537_v47 }
 0x359   : > { %v5984_v54 = vmax.f32 %v5920_v48, 0.0  ;;  %v5922_v55 = vadd.f32 %v9539_v49, %v5840_v50  ;;  %v4746_v58 = vpop.f32.mrb[32].mxu1 }
 0x35a   : > { %v5985_v56 = vmax.f32 %v5921_v51, 0.0  ;;  %v5923_v57 = vadd.f32 %v9541_v53, %v5841_v52  ;;  %v5711_v59 = vpop.f32.mrb[32].mxu0  ;;  %v4748_v62 = vpop.f32.mrb[33].mxu1 }
 0x35b   : > { %6048 = vst [vmem:[%s9551_s27 + $0xe0] sm:$0xff] %v5984_v54  ;;  %v5986_v60 = vmax.f32 %v5922_v55, 0.0  ;;  %v6795_v61 = vadd.f32 %v5711_v59, %v4746_v58  ;;  %v5713_v63 = vpop.f32.mrb[33].mxu0  ;;  %v4750_v2 = vpop.f32.mrb[34].mxu1 }
 0x35c   : > { %6049 = vst [vmem:[%s9551_s27 + $0xe8] sm:$0xff] %v5985_v56  ;;  %v5987_v0 = vmax.f32 %v5923_v57, 0.0  ;;  %v6796_v1 = vadd.f32 %v5713_v63, %v4748_v62  ;;  %v5715_v3 = vpop.f32.mrb[34].mxu0  ;;  %v4752_v6 = vpop.f32.mrb[35].mxu1 }
 0x35d   : > { %6050 = vst [vmem:[%s9551_s27 + $0xf0] sm:$0xff] %v5986_v60  ;;  %v5842_v4 = vmul.f32 %v6795_v61, %v9535_v44  ;;  %v6797_v5 = vadd.f32 %v5715_v3, %v4750_v2  ;;  %v5717_v7 = vpop.f32.mrb[35].mxu0 }
 0x35e   : > { %6051 = vst [vmem:[%s9551_s27 + $0xf8] sm:$0xff] %v5987_v0  ;;  %v5843_v8 = vmul.f32 %v6796_v1, %v9537_v47  ;;  %v6798_v9 = vadd.f32 %v5717_v7, %v4752_v6 }
 0x35f   : > { %v5924_v10 = vadd.f32 %v9539_v49, %v5842_v4  ;;  %v5844_v11 = vmul.f32 %v6797_v5, %v9535_v44 }
 0x360   : > { %v5925_v12 = vadd.f32 %v9541_v53, %v5843_v8  ;;  %v5845_v13 = vmul.f32 %v6798_v9, %v9537_v47 }
 0x361   : > { %v5988_v14 = vmax.f32 %v5924_v10, 0.0  ;;  %v5926_v15 = vadd.f32 %v9539_v49, %v5844_v11  ;;  %v4756_v18 = vpop.f32.mrb[36].mxu1 }
 0x362   : > { %v5989_v16 = vmax.f32 %v5925_v12, 0.0  ;;  %v5927_v17 = vadd.f32 %v9541_v53, %v5845_v13  ;;  %v5721_v19 = vpop.f32.mrb[36].mxu0  ;;  %v4758_v22 = vpop.f32.mrb[37].mxu1 }
 0x363   : > { %6052 = vst [vmem:[%s9551_s27 + $0x100] sm:$0xff] %v5988_v14  ;;  %v5990_v20 = vmax.f32 %v5926_v15, 0.0  ;;  %v6799_v21 = vadd.f32 %v5721_v19, %v4756_v18  ;;  %v5723_v23 = vpop.f32.mrb[37].mxu0  ;;  %v4760_v26 = vpop.f32.mrb[38].mxu1 }
 0x364   : > { %6053 = vst [vmem:[%s9551_s27 + $0x108] sm:$0xff] %v5989_v16  ;;  %v5991_v24 = vmax.f32 %v5927_v17, 0.0  ;;  %v6800_v25 = vadd.f32 %v5723_v23, %v4758_v22  ;;  %v5725_v27 = vpop.f32.mrb[38].mxu0  ;;  %v4762_v30 = vpop.f32.mrb[39].mxu1 }
 0x365   : > { %6054 = vst [vmem:[%s9551_s27 + $0x110] sm:$0xff] %v5990_v20  ;;  %v5846_v28 = vmul.f32 %v6799_v21, %v9535_v44  ;;  %v6801_v29 = vadd.f32 %v5725_v27, %v4760_v26  ;;  %v5727_v31 = vpop.f32.mrb[39].mxu0 }
 0x366   : > { %6055 = vst [vmem:[%s9551_s27 + $0x118] sm:$0xff] %v5991_v24  ;;  %v5847_v32 = vmul.f32 %v6800_v25, %v9537_v47  ;;  %v6802_v33 = vadd.f32 %v5727_v31, %v4762_v30 }
 0x367   : > { %v5928_v34 = vadd.f32 %v9539_v49, %v5846_v28  ;;  %v5848_v35 = vmul.f32 %v6801_v29, %v9535_v44 }
 0x368   : > { %v5929_v36 = vadd.f32 %v9541_v53, %v5847_v32  ;;  %v5849_v37 = vmul.f32 %v6802_v33, %v9537_v47 }
 0x369   : > { %v5992_v38 = vmax.f32 %v5928_v34, 0.0  ;;  %v5930_v39 = vadd.f32 %v9539_v49, %v5848_v35  ;;  %v4766_v42 = vpop.f32.mrb[40].mxu1 }
 0x36a   : > { %v5993_v40 = vmax.f32 %v5929_v36, 0.0  ;;  %v5931_v41 = vadd.f32 %v9541_v53, %v5849_v37  ;;  %v5731_v43 = vpop.f32.mrb[40].mxu0  ;;  %v4768_v48 = vpop.f32.mrb[41].mxu1 }
 0x36b   : > { %6056 = vst [vmem:[%s9551_s27 + $0x120] sm:$0xff] %v5992_v38  ;;  %v5994_v45 = vmax.f32 %v5930_v39, 0.0  ;;  %v6803_v46 = vadd.f32 %v5731_v43, %v4766_v42  ;;  %v5733_v50 = vpop.f32.mrb[41].mxu0  ;;  %v4770_v54 = vpop.f32.mrb[42].mxu1 }
 0x36c   : > { %6057 = vst [vmem:[%s9551_s27 + $0x128] sm:$0xff] %v5993_v40  ;;  %v5995_v51 = vmax.f32 %v5931_v41, 0.0  ;;  %v6804_v52 = vadd.f32 %v5733_v50, %v4768_v48  ;;  %v5735_v55 = vpop.f32.mrb[42].mxu0  ;;  %v4772_v58 = vpop.f32.mrb[43].mxu1 }
 0x36d   : > { %6058 = vst [vmem:[%s9551_s27 + $0x130] sm:$0xff] %v5994_v45  ;;  %v5850_v56 = vmul.f32 %v6803_v46, %v9535_v44  ;;  %v6805_v57 = vadd.f32 %v5735_v55, %v4770_v54  ;;  %v5737_v59 = vpop.f32.mrb[43].mxu0 }
 0x36e   : > { %6059 = vst [vmem:[%s9551_s27 + $0x138] sm:$0xff] %v5995_v51  ;;  %v5851_v60 = vmul.f32 %v6804_v52, %v9537_v47  ;;  %v6806_v61 = vadd.f32 %v5737_v59, %v4772_v58 }
 0x36f   : > { %v5932_v62 = vadd.f32 %v9539_v49, %v5850_v56  ;;  %v5852_v63 = vmul.f32 %v6805_v57, %v9535_v44 }
 0x370   : > { %v5933_v0 = vadd.f32 %v9541_v53, %v5851_v60  ;;  %v5853_v1 = vmul.f32 %v6806_v61, %v9537_v47 }
 0x371   : > { %v5996_v2 = vmax.f32 %v5932_v62, 0.0  ;;  %v5934_v3 = vadd.f32 %v9539_v49, %v5852_v63  ;;  %v4776_v6 = vpop.f32.mrb[44].mxu1 }
 0x372   : > { %v5997_v4 = vmax.f32 %v5933_v0, 0.0  ;;  %v5935_v5 = vadd.f32 %v9541_v53, %v5853_v1  ;;  %v5741_v7 = vpop.f32.mrb[44].mxu0  ;;  %v4778_v10 = vpop.f32.mrb[45].mxu1 }
 0x373   : > { %6060 = vst [vmem:[%s9551_s27 + $0x140] sm:$0xff] %v5996_v2  ;;  %v5998_v8 = vmax.f32 %v5934_v3, 0.0  ;;  %v6807_v9 = vadd.f32 %v5741_v7, %v4776_v6  ;;  %v5743_v11 = vpop.f32.mrb[45].mxu0  ;;  %v4780_v14 = vpop.f32.mrb[46].mxu1 }
 0x374   : > { %6061 = vst [vmem:[%s9551_s27 + $0x148] sm:$0xff] %v5997_v4  ;;  %v5999_v12 = vmax.f32 %v5935_v5, 0.0  ;;  %v6808_v13 = vadd.f32 %v5743_v11, %v4778_v10  ;;  %v5745_v15 = vpop.f32.mrb[46].mxu0  ;;  %v4782_v18 = vpop.f32.mrb[47].mxu1 }
 0x375   : > { %6062 = vst [vmem:[%s9551_s27 + $0x150] sm:$0xff] %v5998_v8  ;;  %v5854_v16 = vmul.f32 %v6807_v9, %v9535_v44  ;;  %v6809_v17 = vadd.f32 %v5745_v15, %v4780_v14  ;;  %v5747_v19 = vpop.f32.mrb[47].mxu0 }
 0x376   : > { %6063 = vst [vmem:[%s9551_s27 + $0x158] sm:$0xff] %v5999_v12  ;;  %v5855_v20 = vmul.f32 %v6808_v13, %v9537_v47  ;;  %v6810_v21 = vadd.f32 %v5747_v19, %v4782_v18 }
 0x377   : > { %v5936_v22 = vadd.f32 %v9539_v49, %v5854_v16  ;;  %v5856_v23 = vmul.f32 %v6809_v17, %v9535_v44 }
 0x378   : > { %v5937_v24 = vadd.f32 %v9541_v53, %v5855_v20  ;;  %v5857_v25 = vmul.f32 %v6810_v21, %v9537_v47 }
 0x379   : > { %v6000_v26 = vmax.f32 %v5936_v22, 0.0  ;;  %v5938_v27 = vadd.f32 %v9539_v49, %v5856_v23  ;;  %v4786_v30 = vpop.f32.mrb[48].mxu1 }
 0x37a   : > { %v6001_v28 = vmax.f32 %v5937_v24, 0.0  ;;  %v5939_v29 = vadd.f32 %v9541_v53, %v5857_v25  ;;  %v5751_v31 = vpop.f32.mrb[48].mxu0  ;;  %v4788_v34 = vpop.f32.mrb[49].mxu1 }
 0x37b   : > { %6064 = vst [vmem:[%s9551_s27 + $0x160] sm:$0xff] %v6000_v26  ;;  %v6002_v32 = vmax.f32 %v5938_v27, 0.0  ;;  %v6811_v33 = vadd.f32 %v5751_v31, %v4786_v30  ;;  %v5753_v35 = vpop.f32.mrb[49].mxu0  ;;  %v4790_v38 = vpop.f32.mrb[50].mxu1 }
 0x37c   : > { %6065 = vst [vmem:[%s9551_s27 + $0x168] sm:$0xff] %v6001_v28  ;;  %v6003_v36 = vmax.f32 %v5939_v29, 0.0  ;;  %v6812_v37 = vadd.f32 %v5753_v35, %v4788_v34  ;;  %v5755_v39 = vpop.f32.mrb[50].mxu0  ;;  %v4792_v42 = vpop.f32.mrb[51].mxu1 }
 0x37d   : > { %6066 = vst [vmem:[%s9551_s27 + $0x170] sm:$0xff] %v6002_v32  ;;  %v5858_v40 = vmul.f32 %v6811_v33, %v9535_v44  ;;  %v6813_v41 = vadd.f32 %v5755_v39, %v4790_v38  ;;  %v5757_v43 = vpop.f32.mrb[51].mxu0 }
 0x37e   : > { %6067 = vst [vmem:[%s9551_s27 + $0x178] sm:$0xff] %v6003_v36  ;;  %v5859_v45 = vmul.f32 %v6812_v37, %v9537_v47  ;;  %v6814_v46 = vadd.f32 %v5757_v43, %v4792_v42 }
 0x37f   : > { %v5940_v48 = vadd.f32 %v9539_v49, %v5858_v40  ;;  %v5860_v50 = vmul.f32 %v6813_v41, %v9535_v44 }
 0x380   : > { %v5941_v51 = vadd.f32 %v9541_v53, %v5859_v45  ;;  %v5861_v52 = vmul.f32 %v6814_v46, %v9537_v47 }
 0x381   : > { %v6004_v54 = vmax.f32 %v5940_v48, 0.0  ;;  %v5942_v55 = vadd.f32 %v9539_v49, %v5860_v50  ;;  %v4796_v58 = vpop.f32.mrb[52].mxu1 }
 0x382   : > { %v6005_v56 = vmax.f32 %v5941_v51, 0.0  ;;  %v5943_v57 = vadd.f32 %v9541_v53, %v5861_v52  ;;  %v5761_v59 = vpop.f32.mrb[52].mxu0  ;;  %v4798_v62 = vpop.f32.mrb[53].mxu1 }
 0x383   : > { %6068 = vst [vmem:[%s9551_s27 + $0x180] sm:$0xff] %v6004_v54  ;;  %v6006_v60 = vmax.f32 %v5942_v55, 0.0  ;;  %v6815_v61 = vadd.f32 %v5761_v59, %v4796_v58  ;;  %v5763_v63 = vpop.f32.mrb[53].mxu0  ;;  %v4800_v2 = vpop.f32.mrb[54].mxu1 }
 0x384   : > { %6069 = vst [vmem:[%s9551_s27 + $0x188] sm:$0xff] %v6005_v56  ;;  %v6007_v0 = vmax.f32 %v5943_v57, 0.0  ;;  %v6816_v1 = vadd.f32 %v5763_v63, %v4798_v62  ;;  %v5765_v3 = vpop.f32.mrb[54].mxu0  ;;  %v4802_v6 = vpop.f32.mrb[55].mxu1 }
 0x385   : > { %6070 = vst [vmem:[%s9551_s27 + $0x190] sm:$0xff] %v6006_v60  ;;  %v5862_v4 = vmul.f32 %v6815_v61, %v9535_v44  ;;  %v6817_v5 = vadd.f32 %v5765_v3, %v4800_v2  ;;  %v5767_v7 = vpop.f32.mrb[55].mxu0 }
 0x386   : > { %6071 = vst [vmem:[%s9551_s27 + $0x198] sm:$0xff] %v6007_v0  ;;  %v5863_v8 = vmul.f32 %v6816_v1, %v9537_v47  ;;  %v6818_v9 = vadd.f32 %v5767_v7, %v4802_v6 }
 0x387   : > { %v5944_v10 = vadd.f32 %v9539_v49, %v5862_v4  ;;  %v5864_v11 = vmul.f32 %v6817_v5, %v9535_v44 }
 0x388   : > { %v5945_v12 = vadd.f32 %v9541_v53, %v5863_v8  ;;  %v5865_v13 = vmul.f32 %v6818_v9, %v9537_v47 }
 0x389   : > { %v6008_v14 = vmax.f32 %v5944_v10, 0.0  ;;  %v5946_v15 = vadd.f32 %v9539_v49, %v5864_v11  ;;  %v4806_v18 = vpop.f32.mrb[56].mxu1 }
 0x38a   : > { %v6009_v16 = vmax.f32 %v5945_v12, 0.0  ;;  %v5947_v17 = vadd.f32 %v9541_v53, %v5865_v13  ;;  %v5771_v19 = vpop.f32.mrb[56].mxu0  ;;  %v4808_v22 = vpop.f32.mrb[57].mxu1 }
 0x38b   : > { %6072 = vst [vmem:[%s9551_s27 + $0x1a0] sm:$0xff] %v6008_v14  ;;  %v6010_v20 = vmax.f32 %v5946_v15, 0.0  ;;  %v6819_v21 = vadd.f32 %v5771_v19, %v4806_v18  ;;  %v5773_v23 = vpop.f32.mrb[57].mxu0  ;;  %v4810_v26 = vpop.f32.mrb[58].mxu1 }
 0x38c   : > { %6073 = vst [vmem:[%s9551_s27 + $0x1a8] sm:$0xff] %v6009_v16  ;;  %v6011_v24 = vmax.f32 %v5947_v17, 0.0  ;;  %v6820_v25 = vadd.f32 %v5773_v23, %v4808_v22  ;;  %v5775_v27 = vpop.f32.mrb[58].mxu0  ;;  %v4812_v30 = vpop.f32.mrb[59].mxu1 }
 0x38d   : > { %6074 = vst [vmem:[%s9551_s27 + $0x1b0] sm:$0xff] %v6010_v20  ;;  %v5866_v28 = vmul.f32 %v6819_v21, %v9535_v44  ;;  %v6821_v29 = vadd.f32 %v5775_v27, %v4810_v26  ;;  %v5777_v31 = vpop.f32.mrb[59].mxu0 }
 0x38e   : > { %6075 = vst [vmem:[%s9551_s27 + $0x1b8] sm:$0xff] %v6011_v24  ;;  %v5867_v32 = vmul.f32 %v6820_v25, %v9537_v47  ;;  %v6822_v33 = vadd.f32 %v5777_v31, %v4812_v30 }
 0x38f   : > { %v5948_v34 = vadd.f32 %v9539_v49, %v5866_v28  ;;  %v5868_v35 = vmul.f32 %v6821_v29, %v9535_v44 }
 0x390   : > { %v5949_v36 = vadd.f32 %v9541_v53, %v5867_v32  ;;  %v5869_v37 = vmul.f32 %v6822_v33, %v9537_v47 }
 0x391   : > { %v6012_v38 = vmax.f32 %v5948_v34, 0.0  ;;  %v5950_v39 = vadd.f32 %v9539_v49, %v5868_v35  ;;  %v4816_v42 = vpop.f32.mrb[60].mxu1 }
 0x392   : > { %v6013_v40 = vmax.f32 %v5949_v36, 0.0  ;;  %v5951_v41 = vadd.f32 %v9541_v53, %v5869_v37  ;;  %v5781_v43 = vpop.f32.mrb[60].mxu0  ;;  %v4818_v48 = vpop.f32.mrb[61].mxu1 }
 0x393   : > { %6076 = vst [vmem:[%s9551_s27 + $0x1c0] sm:$0xff] %v6012_v38  ;;  %v6014_v45 = vmax.f32 %v5950_v39, 0.0  ;;  %v6823_v46 = vadd.f32 %v5781_v43, %v4816_v42  ;;  %v5783_v50 = vpop.f32.mrb[61].mxu0  ;;  %v4820_v54 = vpop.f32.mrb[62].mxu1 }
 0x394   : > { %6077 = vst [vmem:[%s9551_s27 + $0x1c8] sm:$0xff] %v6013_v40  ;;  %v6015_v51 = vmax.f32 %v5951_v41, 0.0  ;;  %v6824_v52 = vadd.f32 %v5783_v50, %v4818_v48  ;;  %v5785_v55 = vpop.f32.mrb[62].mxu0  ;;  %v4822_v58 = vpop.f32.mrb[63].mxu1 }
 0x395   : > { %6078 = vst [vmem:[%s9551_s27 + $0x1d0] sm:$0xff] %v6014_v45  ;;  %v5870_v56 = vmul.f32 %v6823_v46, %v9535_v44  ;;  %v6825_v57 = vadd.f32 %v5785_v55, %v4820_v54  ;;  %v5787_v59 = vpop.f32.mrb[63].mxu0 }
 0x396   : > { %6079 = vst [vmem:[%s9551_s27 + $0x1d8] sm:$0xff] %v6015_v51  ;;  %v5871_v60 = vmul.f32 %v6824_v52, %v9537_v47  ;;  %v6826_v61 = vadd.f32 %v5787_v59, %v4822_v58 }
 0x397   : > { %v5952_v62 = vadd.f32 %v9539_v49, %v5870_v56  ;;  %v5872_v63 = vmul.f32 %v6825_v57, %v9535_v44 }
 0x398   : > { %v5953_v0 = vadd.f32 %v9541_v53, %v5871_v60  ;;  %v5873_v1 = vmul.f32 %v6826_v61, %v9537_v47 }
 0x399   : > { %v6016_v2 = vmax.f32 %v5952_v62, 0.0  ;;  %v5954_v3 = vadd.f32 %v9539_v49, %v5872_v63 }
 0x39a   : > { %v6017_v4 = vmax.f32 %v5953_v0, 0.0  ;;  %v5955_v5 = vadd.f32 %v9541_v53, %v5873_v1 }
 0x39b   : > { %6080 = vst [vmem:[%s9551_s27 + $0x1e0] sm:$0xff] %v6016_v2  ;;  %v6018_v6 = vmax.f32 %v5954_v3, 0.0 }
 0x39c   : > { %6081 = vst [vmem:[%s9551_s27 + $0x1e8] sm:$0xff] %v6017_v4  ;;  %v6019_v7 = vmax.f32 %v5955_v5, 0.0 }
 0x39d   : > { %6082 = vst [vmem:[%s9551_s27 + $0x1f0] sm:$0xff] %v6018_v6 }
 0x39e   : > { %6083 = vst [vmem:[%s9551_s27 + $0x1f8] sm:$0xff] %v6019_v7 }
 0x39f PF: > { %s13_s12 = sadd.s32 1, %s8259_s12  }
 0x3a0   : > { %p10_p4 = scmp.ge.s32.totalorder %s13_s12, 5  }
 0x3a2   :  { %12 = sbr.rel (!%p10_p4) target bundleno = 1 (0x1), region = 62 }

// kernel: _lambda_.7
= control target key start
LH: loop header
LB: loop body
LE: loop exit
PB: predicated region body
PF: predicated region fallthrough
CT: control target
= control target key end

     0   :  { %vm9448_vm0 = vmmov 0   ;;  %s12440_s1 = inlined_call_operand.vmem [shape: bf16[3200,384], index: 1, kind: input, shape index: {}]   ;;  %s12441_s0 = inlined_call_operand.vmem [shape: bf16[72,3200], index: 0, kind: input, shape index: {}]   ;;  %s12442_s2 = inlined_call_operand.vmem [shape: f32[2,384], index: 2, kind: input, shape index: {}]   ;;  %s12443_s3 = inlined_call_operand.vmem [shape: f32[72,384], index: 3, kind: output, shape index: {}]  }
   0x1   :  { %v8448_v0 = vld [vmem:[%s12440_s1 + $0x4] ss:$12 sps:$4 sm:$0xff]   ;;  %v8452_v2 = vld [vmem:[%s12440_s1] ss:$12 sps:$4 sm:$0xff]   ;;  %v8454_v4 = vld [vmem:[%s12440_s1 + $0x1c] ss:$12 sps:$4 sm:$0xff]  }
   0x2   :  { %v8450_v1 = vld [vmem:[%s12440_s1 + $0x304] ss:$12 sps:$4 sm:$0xff]   ;;  %4724 = vmatprep.subr.bf16.mxu1 %v8448_v0  ;;  %v8453_v3 = vld [vmem:[%s12440_s1 + $0x300] ss:$12 sps:$4 sm:$0xff]   ;;  %v8456_v5 = vld [vmem:[%s12440_s1 + $0x31c] ss:$12 sps:$4 sm:$0xff]  }
   0x3   :  { %4886 = vmatprep.subr.bf16.mxu0 %v8450_v1  ;;  %4725 = vmatpush1.bf16.msra.mxu1 %v8452_v2  ;;  %v8458_v6 = vld [vmem:[%s12440_s1 + $0x18] ss:$12 sps:$4 sm:$0xff]   ;;  %v8460_v8 = vld [vmem:[%s12440_s1 + $0x34] ss:$12 sps:$4 sm:$0xff]   ;;  %v8464_v10 = vld [vmem:[%s12440_s1 + $0x30] ss:$12 sps:$4 sm:$0xff]  }
   0x4   :  { %4887 = vmatpush1.bf16.msra.mxu0 %v8453_v3  ;;  %4726 = vmatprep.subr.bf16.mxu1 %v8454_v4  ;;  %v8459_v7 = vld [vmem:[%s12440_s1 + $0x318] ss:$12 sps:$4 sm:$0xff]   ;;  %v8462_v9 = vld [vmem:[%s12440_s1 + $0x334] ss:$12 sps:$4 sm:$0xff]   ;;  %v8465_v11 = vld [vmem:[%s12440_s1 + $0x330] ss:$12 sps:$4 sm:$0xff]  }
   0x5   :  { %4888 = vmatprep.subr.bf16.mxu0 %v8456_v5  ;;  %v8466_v12 = vld [vmem:[%s12440_s1 + $0x4c] ss:$12 sps:$4 sm:$0xff]   ;;  %v8470_v14 = vld [vmem:[%s12440_s1 + $0x48] ss:$12 sps:$4 sm:$0xff]   ;;  %v8472_v16 = vld [vmem:[%s12440_s1 + $0x64] ss:$12 sps:$4 sm:$0xff]  }
   0x6   :  { %v8468_v13 = vld [vmem:[%s12440_s1 + $0x34c] ss:$12 sps:$4 sm:$0xff]   ;;  %v8471_v15 = vld [vmem:[%s12440_s1 + $0x348] ss:$12 sps:$4 sm:$0xff]   ;;  %v8474_v17 = vld [vmem:[%s12440_s1 + $0x364] ss:$12 sps:$4 sm:$0xff]  }
   0x7   :  { %4727 = vmatpush1.bf16.msra.mxu1 %v8458_v6  ;;  %v8476_v18 = vld [vmem:[%s12440_s1 + $0x60] ss:$12 sps:$4 sm:$0xff]   ;;  %v8478_v20 = vld [vmem:[%s12440_s1 + $0x7c] ss:$12 sps:$4 sm:$0xff]   ;;  %v8482_v22 = vld [vmem:[%s12440_s1 + $0x78] ss:$12 sps:$4 sm:$0xff]  }
   0x8   :  { %4889 = vmatpush1.bf16.msra.mxu0 %v8459_v7  ;;  %4728 = vmatprep.subr.bf16.mxu1 %v8460_v8  ;;  %v8477_v19 = vld [vmem:[%s12440_s1 + $0x360] ss:$12 sps:$4 sm:$0xff]   ;;  %v8480_v21 = vld [vmem:[%s12440_s1 + $0x37c] ss:$12 sps:$4 sm:$0xff]   ;;  %v8483_v23 = vld [vmem:[%s12440_s1 + $0x378] ss:$12 sps:$4 sm:$0xff]  }
   0x9   :  { %4890 = vmatprep.subr.bf16.mxu0 %v8462_v9  ;;  %v8484_v24 = vld [vmem:[%s12440_s1 + $0x94] ss:$12 sps:$4 sm:$0xff]   ;;  %v8488_v26 = vld [vmem:[%s12440_s1 + $0x90] ss:$12 sps:$4 sm:$0xff]   ;;  %v8490_v28 = vld [vmem:[%s12440_s1 + $0xac] ss:$12 sps:$4 sm:$0xff]  }
   0xa   :  { %v8486_v25 = vld [vmem:[%s12440_s1 + $0x394] ss:$12 sps:$4 sm:$0xff]   ;;  %v8489_v27 = vld [vmem:[%s12440_s1 + $0x390] ss:$12 sps:$4 sm:$0xff]   ;;  %v8492_v29 = vld [vmem:[%s12440_s1 + $0x3ac] ss:$12 sps:$4 sm:$0xff]  }
   0xb   :  { %4729 = vmatpush1.bf16.msra.mxu1 %v8464_v10  ;;  %v8494_v30 = vld [vmem:[%s12440_s1 + $0xa8] ss:$12 sps:$4 sm:$0xff]   ;;  %v8496_v32 = vld [vmem:[%s12440_s1 + $0xc4] ss:$12 sps:$4 sm:$0xff]   ;;  %v8500_v34 = vld [vmem:[%s12440_s1 + $0xc0] ss:$12 sps:$4 sm:$0xff]  }
   0xc   :  { %4891 = vmatpush1.bf16.msra.mxu0 %v8465_v11  ;;  %4730 = vmatprep.subr.bf16.mxu1 %v8466_v12  ;;  %v8495_v31 = vld [vmem:[%s12440_s1 + $0x3a8] ss:$12 sps:$4 sm:$0xff]   ;;  %v8498_v33 = vld [vmem:[%s12440_s1 + $0x3c4] ss:$12 sps:$4 sm:$0xff]   ;;  %v8501_v35 = vld [vmem:[%s12440_s1 + $0x3c0] ss:$12 sps:$4 sm:$0xff]  }
   0xd   :  { %4892 = vmatprep.subr.bf16.mxu0 %v8468_v13  ;;  %v8502_v36 = vld [vmem:[%s12440_s1 + $0xdc] ss:$12 sps:$4 sm:$0xff]   ;;  %v8506_v38 = vld [vmem:[%s12440_s1 + $0xd8] ss:$12 sps:$4 sm:$0xff]   ;;  %v8508_v40 = vld [vmem:[%s12440_s1 + $0xf4] ss:$12 sps:$4 sm:$0xff]  }
   0xe   :  { %v8504_v37 = vld [vmem:[%s12440_s1 + $0x3dc] ss:$12 sps:$4 sm:$0xff]   ;;  %v8507_v39 = vld [vmem:[%s12440_s1 + $0x3d8] ss:$12 sps:$4 sm:$0xff]   ;;  %v8510_v41 = vld [vmem:[%s12440_s1 + $0x3f4] ss:$12 sps:$4 sm:$0xff]  }
   0xf   :  { %4731 = vmatpush1.bf16.msra.mxu1 %v8470_v14  ;;  %v8512_v42 = vld [vmem:[%s12440_s1 + $0xf0] ss:$12 sps:$4 sm:$0xff]   ;;  %v8514_v44 = vld [vmem:[%s12440_s1 + $0x10c] ss:$12 sps:$4 sm:$0xff]   ;;  %v8518_v46 = vld [vmem:[%s12440_s1 + $0x108] ss:$12 sps:$4 sm:$0xff]  }
  0x10   :  { %4893 = vmatpush1.bf16.msra.mxu0 %v8471_v15  ;;  %4732 = vmatprep.subr.bf16.mxu1 %v8472_v16  ;;  %v8513_v43 = vld [vmem:[%s12440_s1 + $0x3f0] ss:$12 sps:$4 sm:$0xff]   ;;  %v8516_v45 = vld [vmem:[%s12440_s1 + $0x40c] ss:$12 sps:$4 sm:$0xff]   ;;  %v8519_v47 = vld [vmem:[%s12440_s1 + $0x408] ss:$12 sps:$4 sm:$0xff]  }
  0x11   :  { %4894 = vmatprep.subr.bf16.mxu0 %v8474_v17  ;;  %v8546_v48 = vld [vmem:[%s12441_s0 + $0x4] ss:$100 sps:$4 sm:$0xff]   ;;  %v8552_v51 = vld [vmem:[%s12441_s0 + $0x14] ss:$100 sps:$4 sm:$0xff]   ;;  %v8524_v52 = vld [vmem:[%s12440_s1 + $0x120] ss:$12 sps:$4 sm:$0xff]  }
  0x12   :  { %v8520_v49 = vld [vmem:[%s12440_s1 + $0x124] ss:$12 sps:$4 sm:$0xff]   ;;  %4756 = vmatprep.mubr.bf16.mxu1 %v8546_v48  ;;  %v8525_v53 = vld [vmem:[%s12440_s1 + $0x420] ss:$12 sps:$4 sm:$0xff]   ;;  %v8526_v54 = vld [vmem:[%s12440_s1 + $0x13c] ss:$12 sps:$4 sm:$0xff]   ;;  %4918 = vmatprep.mubr.bf16.mxu0 %v8552_v51 }
  0x13   :  { %4733 = vmatpush1.bf16.msra.mxu1 %v8476_v18  ;;  %v8522_v50 = vld [vmem:[%s12440_s1 + $0x424] ss:$12 sps:$4 sm:$0xff]   ;;  %v8528_v55 = vld [vmem:[%s12440_s1 + $0x43c] ss:$12 sps:$4 sm:$0xff]   ;;  %v8532_v58 = vld [vmem:[%s12440_s1 + $0x154] ss:$12 sps:$4 sm:$0xff]  }
  0x14   :  { %4895 = vmatpush1.bf16.msra.mxu0 %v8477_v19  ;;  %4734 = vmatprep.subr.bf16.mxu1 %v8478_v20  ;;  %v8530_v56 = vld [vmem:[%s12440_s1 + $0x138] ss:$12 sps:$4 sm:$0xff]   ;;  %v8534_v59 = vld [vmem:[%s12440_s1 + $0x454] ss:$12 sps:$4 sm:$0xff]   ;;  %v8536_v60 = vld [vmem:[%s12440_s1 + $0x150] ss:$12 sps:$4 sm:$0xff]  }
  0x15   :  { %4896 = vmatprep.subr.bf16.mxu0 %v8480_v21  ;;  %v8531_v57 = vld [vmem:[%s12440_s1 + $0x438] ss:$12 sps:$4 sm:$0xff]   ;;  %v8537_v61 = vld [vmem:[%s12440_s1 + $0x450] ss:$12 sps:$4 sm:$0xff]   ;;  %v8542_v0 = vld [vmem:[%s12440_s1 + $0x168] ss:$12 sps:$4 sm:$0xff]  }
  0x16   :  { %v8538_v62 = vld [vmem:[%s12440_s1 + $0x16c] ss:$12 sps:$4 sm:$0xff]   ;;  %v8543_v1 = vld [vmem:[%s12440_s1 + $0x468] ss:$12 sps:$4 sm:$0xff]   ;;  %v8549_v2 = vld [vmem:[%s12440_s1 + $0x184] ss:$12 sps:$4 sm:$0xff]  }
  0x17   :  { %4735 = vmatpush1.bf16.msra.mxu1 %v8482_v22  ;;  %v8540_v63 = vld [vmem:[%s12440_s1 + $0x46c] ss:$12 sps:$4 sm:$0xff]   ;;  %v8555_v3 = vld [vmem:[%s12440_s1 + $0x484] ss:$12 sps:$4 sm:$0xff]   ;;  %v8558_v8 = vld [vmem:[%s12440_s1 + $0x19c] ss:$12 sps:$4 sm:$0xff]  }
  0x18   :  { %4897 = vmatpush1.bf16.msra.mxu0 %v8483_v23  ;;  %4736 = vmatprep.subr.bf16.mxu1 %v8484_v24  ;;  %v9677_v4 = vld [vmem:[%s12441_s0] ss:$100 sps:$4 sm:$0xff]   ;;  %v8550_v6 = vld [vmem:[%s12441_s0 + $0x10] ss:$100 sps:$4 sm:$0xff]   ;;  %v8561_v9 = vld [vmem:[%s12440_s1 + $0x49c] ss:$12 sps:$4 sm:$0xff]  }
  0x19   :  { %4898 = vmatprep.subr.bf16.mxu0 %v8486_v25  ;;  %v8547_v5 = vld [vmem:[%s12440_s1 + $0x180] ss:$12 sps:$4 sm:$0xff]   ;;  %v8556_v10 = vld [vmem:[%s12440_s1 + $0x198] ss:$12 sps:$4 sm:$0xff]   ;;  %v8562_v15 = vld [vmem:[%s12440_s1 + $0x1b0] ss:$12 sps:$4 sm:$0xff]  }
  0x1a   :  { %v8553_v7 = vld [vmem:[%s12440_s1 + $0x480] ss:$12 sps:$4 sm:$0xff]   ;;  %v8559_v11 = vld [vmem:[%s12440_s1 + $0x498] ss:$12 sps:$4 sm:$0xff]   ;;  %v8565_v17 = vld [vmem:[%s12440_s1 + $0x4b0] ss:$12 sps:$4 sm:$0xff]  }
  0x1b   :  { %4737 = vmatpush1.bf16.msra.mxu1 %v8488_v26  ;;  %v9704_v12 = vld [vmem:[%s12441_s0 + $0xcc] ss:$100 sps:$4 sm:$0xff]   ;;  %v8564_v13 = vld [vmem:[%s12440_s1 + $0x1b4] ss:$12 sps:$4 sm:$0xff]   ;;  %v8609_v19 = vld [vmem:[%s12441_s0 + $0xd8] ss:$100 sps:$4 sm:$0xff]  }
  0x1c   :  { %4899 = vmatpush1.bf16.msra.mxu0 %v8489_v27  ;;  %4738 = vmatprep.subr.bf16.mxu1 %v8490_v28  ;;  %v8567_v14 = vld [vmem:[%s12440_s1 + $0x4b4] ss:$12 sps:$4 sm:$0xff]   ;;  %v9725_v18 = vld [vmem:[%s12441_s0 + $0xc8] ss:$100 sps:$4 sm:$0xff]   ;;  %v8576_v25 = vld [vmem:[%s12440_s1 + $0x1e4] ss:$12 sps:$4 sm:$0xff]  }
  0x1d   :  { %4900 = vmatprep.subr.bf16.mxu0 %v8492_v29  ;;  %v8604_v16 = vld [vmem:[%s12441_s0 + $0xdc] ss:$100 sps:$4 sm:$0xff]   ;;  %v8570_v20 = vld [vmem:[%s12440_s1 + $0x1cc] ss:$12 sps:$4 sm:$0xff]   ;;  %v8568_v22 = vld [vmem:[%s12440_s1 + $0x1c8] ss:$12 sps:$4 sm:$0xff]  }
  0x1e   :  { %v8573_v21 = vld [vmem:[%s12440_s1 + $0x4cc] ss:$12 sps:$4 sm:$0xff]   ;;  %v8571_v23 = vld [vmem:[%s12440_s1 + $0x4c8] ss:$12 sps:$4 sm:$0xff]   ;;  %v8579_v26 = vld [vmem:[%s12440_s1 + $0x4e4] ss:$12 sps:$4 sm:$0xff]  }
  0x1f   :  { %4739 = vmatpush1.bf16.msra.mxu1 %v8494_v30  ;;  %v9746_v24 = vld [vmem:[%s12441_s0 + $0x194] ss:$100 sps:$4 sm:$0xff]   ;;  %v8574_v27 = vld [vmem:[%s12440_s1 + $0x1e0] ss:$12 sps:$4 sm:$0xff]   ;;  %v8622_v28 = vld [vmem:[%s12441_s0 + $0x1a4] ss:$100 sps:$4 sm:$0xff]  }
  0x20   :  { %4901 = vmatpush1.bf16.msra.mxu0 %v8495_v31  ;;  %4740 = vmatprep.subr.bf16.mxu1 %v8496_v32  ;;  %v8577_v29 = vld [vmem:[%s12440_s1 + $0x4e0] ss:$12 sps:$4 sm:$0xff]   ;;  %v9767_v30 = vld [vmem:[%s12441_s0 + $0x190] ss:$100 sps:$4 sm:$0xff]   ;;  %v8582_v32 = vld [vmem:[%s12440_s1 + $0x1fc] ss:$12 sps:$4 sm:$0xff]  }
  0x21   :  { %4902 = vmatprep.subr.bf16.mxu0 %v8498_v33  ;;  %v8627_v31 = vld [vmem:[%s12441_s0 + $0x1a0] ss:$100 sps:$4 sm:$0xff]   ;;  %v8585_v33 = vld [vmem:[%s12440_s1 + $0x4fc] ss:$12 sps:$4 sm:$0xff]  }
  0x22   :  { %v8603_v51 = vld [vmem:[%s12440_s1 + $0x244] ss:$12 sps:$4 sm:$0xff]  }
  0x23   :  { %4741 = vmatpush1.bf16.msra.mxu1 %v8500_v34  ;;  %v8580_v34 = vld [vmem:[%s12440_s1 + $0x1f8] ss:$12 sps:$4 sm:$0xff]  }
  0x24   :  { %4903 = vmatpush1.bf16.msra.mxu0 %v8501_v35  ;;  %4742 = vmatprep.subr.bf16.mxu1 %v8502_v36  ;;  %v8583_v35 = vld [vmem:[%s12440_s1 + $0x4f8] ss:$12 sps:$4 sm:$0xff]   ;;  %v9788_v36 = vld [vmem:[%s12441_s0 + $0x25c] ss:$100 sps:$4 sm:$0xff]  }
  0x25   :  { %4904 = vmatprep.subr.bf16.mxu0 %v8504_v37  ;;  %v8588_v37 = vld [vmem:[%s12440_s1 + $0x214] ss:$12 sps:$4 sm:$0xff]  }
  0x27   :  { %4743 = vmatpush1.bf16.msra.mxu1 %v8506_v38  ;;  %v8591_v38 = vld [vmem:[%s12440_s1 + $0x514] ss:$12 sps:$4 sm:$0xff]  }
  0x28   :  { %4905 = vmatpush1.bf16.msra.mxu0 %v8507_v39  ;;  %4744 = vmatprep.subr.bf16.mxu1 %v8508_v40  ;;  %v8586_v39 = vld [vmem:[%s12440_s1 + $0x210] ss:$12 sps:$4 sm:$0xff]  }
  0x29   :  { %4906 = vmatprep.subr.bf16.mxu0 %v8510_v41  ;;  %v8640_v40 = vld [vmem:[%s12441_s0 + $0x26c] ss:$100 sps:$4 sm:$0xff]  }
  0x2a   :  { %v8589_v41 = vld [vmem:[%s12440_s1 + $0x510] ss:$12 sps:$4 sm:$0xff]  }
  0x2b   :  { %4745 = vmatpush1.bf16.msra.mxu1 %v8512_v42  ;;  %v9809_v42 = vld [vmem:[%s12441_s0 + $0x258] ss:$100 sps:$4 sm:$0xff]  }
  0x2c   :  { %4907 = vmatpush1.bf16.msra.mxu0 %v8513_v43  ;;  %4746 = vmatprep.subr.bf16.mxu1 %v8514_v44  ;;  %v8645_v43 = vld [vmem:[%s12441_s0 + $0x268] ss:$100 sps:$4 sm:$0xff]  }
  0x2d   :  { %4908 = vmatprep.subr.bf16.mxu0 %v8516_v45  ;;  %v8594_v44 = vld [vmem:[%s12440_s1 + $0x22c] ss:$12 sps:$4 sm:$0xff]  }
  0x2e   :  { %v8597_v45 = vld [vmem:[%s12440_s1 + $0x52c] ss:$12 sps:$4 sm:$0xff]  }
  0x2f   :  { %4747 = vmatpush1.bf16.msra.mxu1 %v8518_v46  ;;  %v119_v46 = vld [vmem:[%s12441_s0 + $0x320] sm:$0xff] }
  0x30   :  { %4909 = vmatpush1.bf16.msra.mxu0 %v8519_v47  ;;  %4748 = vmatprep.subr.bf16.mxu1 %v8520_v49  ;;  %v8592_v47 = vld [vmem:[%s12440_s1 + $0x228] ss:$12 sps:$4 sm:$0xff]   ;;  %v9827_v48 = vcombine.high %v119_v46, %v119_v46 }
  0x31   :  { %4910 = vmatprep.subr.bf16.mxu0 %v8522_v50  ;;  %v8595_v49 = vld [vmem:[%s12440_s1 + $0x528] ss:$12 sps:$4 sm:$0xff]  }
  0x32   :  { %v121_v50 = vld [vmem:[%s12441_s0 + $0x330] sm:$0xff] }
  0x33   :  { %4749 = vmatpush1.bf16.msra.mxu1 %v8524_v52  ;;  %v8608_v52 = vld [vmem:[%s12440_s1 + $0x544] ss:$12 sps:$4 sm:$0xff]  }
  0x34   :  { %4911 = vmatpush1.bf16.msra.mxu0 %v8525_v53  ;;  %4750 = vmatprep.subr.bf16.mxu1 %v8526_v54  ;;  %v9841_v53 = vcombine.high %v121_v50, %v121_v50  ;;  %v9844_v54 = vcombine.low %v119_v46, %v119_v46  ;;  %v8699_v46 = vld [vmem:[%s12440_s1 + $0xf8] ss:$12 sps:$4 sm:$0xff]  }
  0x35   :  { %4912 = vmatprep.subr.bf16.mxu0 %v8528_v55  ;;  %v9847_v55 = vcombine.low %v121_v50, %v121_v50  ;;  %v10015_v50 = vld [vmem:[%s12441_s0 + $0x19c] ss:$100 sps:$4 sm:$0xff]  }
  0x37   :  { %4751 = vmatpush1.bf16.msra.mxu1 %v8530_v56  ;;  %v8601_v56 = vld [vmem:[%s12440_s1 + $0x240] ss:$12 sps:$4 sm:$0xff]  }
  0x38   :  { %4913 = vmatpush1.bf16.msra.mxu0 %v8531_v57  ;;  %4752 = vmatprep.subr.bf16.mxu1 %v8532_v58  ;;  %v8606_v57 = vld [vmem:[%s12440_s1 + $0x540] ss:$12 sps:$4 sm:$0xff]   ;;  %v8612_v58 = vld [vmem:[%s12440_s1 + $0x25c] ss:$12 sps:$4 sm:$0xff]  }
  0x39   :  { %4914 = vmatprep.subr.bf16.mxu0 %v8534_v59  ;;  %v8615_v59 = vld [vmem:[%s12440_s1 + $0x55c] ss:$12 sps:$4 sm:$0xff]  }
  0x3b   :  { %4753 = vmatpush1.bf16.msra.mxu1 %v8536_v60  ;;  %v9864_v60 = vld [vmem:[%s12441_s0 + $0xc] ss:$100 sps:$4 sm:$0xff]  }
  0x3c   :  { %4915 = vmatpush1.bf16.msra.mxu0 %v8537_v61  ;;  %4754 = vmatprep.subr.bf16.mxu1 %v8538_v62  ;;  %v8673_v61 = vld [vmem:[%s12441_s0 + $0x1c] ss:$100 sps:$4 sm:$0xff]   ;;  %v8610_v62 = vld [vmem:[%s12440_s1 + $0x258] ss:$12 sps:$4 sm:$0xff]  }
  0x3d   :  { %4916 = vmatprep.subr.bf16.mxu0 %v8540_v63  ;;  %v8613_v63 = vld [vmem:[%s12440_s1 + $0x558] ss:$12 sps:$4 sm:$0xff]  }
  0x3f   :  { %4755 = vmatpush1.bf16.msra.mxu1 %v8542_v0  ;;  %v8621_v0 = vld [vmem:[%s12440_s1 + $0x274] ss:$12 sps:$4 sm:$0xff]  }
  0x40   :  { %4917 = vmatpush1.bf16.msra.mxu0 %v8543_v1  ;;  %4805 = vmatprep.subr.bf16.mxu1 %v8549_v2  ;;  %v8626_v1 = vld [vmem:[%s12440_s1 + $0x574] ss:$12 sps:$4 sm:$0xff]   ;;  %v8619_v2 = vld [vmem:[%s12440_s1 + $0x270] ss:$12 sps:$4 sm:$0xff]  }
  0x41   :  { %4967 = vmatprep.subr.bf16.mxu0 %v8555_v3  ;;  %v8624_v3 = vld [vmem:[%s12440_s1 + $0x570] ss:$12 sps:$4 sm:$0xff]  }
  0x42   :  { %4757 = vmatmul.mubr.bf16.vlgmr.msra.gmra.mrb[0].mxu1 %v9677_v4 }
  0x43   :  { %4919 = vmatmul.mubr.bf16.vlgmr.msra.gmra.mrb[0].mxu0 %v8550_v6  ;;  %4806 = vmatpush1.bf16.msra.mxu1 %v8547_v5  ;;  %v8630_v5 = vld [vmem:[%s12440_s1 + $0x28c] ss:$12 sps:$4 sm:$0xff]  }
  0x44   :  { %4968 = vmatpush1.bf16.msra.mxu0 %v8553_v7  ;;  %4807 = vmatprep.subr.bf16.mxu1 %v8558_v8  ;;  %v8633_v6 = vld [vmem:[%s12440_s1 + $0x58c] ss:$12 sps:$4 sm:$0xff]   ;;  %v8628_v7 = vld [vmem:[%s12440_s1 + $0x288] ss:$12 sps:$4 sm:$0xff]  }
  0x45   :  { %4969 = vmatprep.subr.bf16.mxu0 %v8561_v9  ;;  %4766 = vmatprep.mubr.bf16.mxu1 %v9704_v12  ;;  %v8631_v8 = vld [vmem:[%s12440_s1 + $0x588] ss:$12 sps:$4 sm:$0xff]   ;;  %v8639_v9 = vld [vmem:[%s12440_s1 + $0x2a4] ss:$12 sps:$4 sm:$0xff]  }
  0x46   :  { %4928 = vmatprep.mubr.bf16.mxu0 %v8604_v16  ;;  %v8646_v16 = vld [vmem:[%s12440_s1 + $0x2b8] ss:$12 sps:$4 sm:$0xff]  }
  0x47   :  { %4808 = vmatpush1.bf16.msra.mxu1 %v8556_v10  ;;  %v8644_v10 = vld [vmem:[%s12440_s1 + $0x5a4] ss:$12 sps:$4 sm:$0xff]  }
  0x48   :  { %4970 = vmatpush1.bf16.msra.mxu0 %v8559_v11  ;;  %4809 = vmatprep.subr.bf16.mxu1 %v8564_v13  ;;  %v8637_v11 = vld [vmem:[%s12440_s1 + $0x2a0] ss:$12 sps:$4 sm:$0xff]  }
  0x49   :  { %4971 = vmatprep.subr.bf16.mxu0 %v8567_v14  ;;  %v8642_v13 = vld [vmem:[%s12440_s1 + $0x5a0] ss:$12 sps:$4 sm:$0xff]   ;;  %v8648_v14 = vld [vmem:[%s12440_s1 + $0x2bc] ss:$12 sps:$4 sm:$0xff]  }
  0x4a   :  { %4767 = vmatmul.mubr.bf16.gmra.mrb[4].mxu1 %v9725_v18 }
  0x4b   :  { %4929 = vmatmul.mubr.bf16.gmra.mrb[4].mxu0 %v8609_v19  ;;  %4810 = vmatpush1.bf16.msra.mxu1 %v8562_v15  ;;  %v8651_v15 = vld [vmem:[%s12440_s1 + $0x5bc] ss:$12 sps:$4 sm:$0xff]   ;;  %v8656_v19 = vld [vmem:[%s12440_s1 + $0x2d4] ss:$12 sps:$4 sm:$0xff]  }
  0x4c   :  { %4972 = vmatpush1.bf16.msra.mxu0 %v8565_v17  ;;  %4811 = vmatprep.subr.bf16.mxu1 %v8570_v20  ;;  %v8649_v17 = vld [vmem:[%s12440_s1 + $0x5b8] ss:$12 sps:$4 sm:$0xff]   ;;  %v8660_v20 = vld [vmem:[%s12440_s1 + $0x5d4] ss:$12 sps:$4 sm:$0xff]  }
  0x4d   :  { %4973 = vmatprep.subr.bf16.mxu0 %v8573_v21  ;;  %4776 = vmatprep.mubr.bf16.mxu1 %v9746_v24  ;;  %v8654_v21 = vld [vmem:[%s12440_s1 + $0x2d0] ss:$12 sps:$4 sm:$0xff]  }
  0x4e   :  { %4938 = vmatprep.mubr.bf16.mxu0 %v8622_v28  ;;  %v8676_v28 = vld [vmem:[%s12440_s1 + $0x604] ss:$12 sps:$4 sm:$0xff]  }
  0x4f   :  { %4812 = vmatpush1.bf16.msra.mxu1 %v8568_v22  ;;  %v8658_v22 = vld [vmem:[%s12440_s1 + $0x5d0] ss:$12 sps:$4 sm:$0xff]  }
  0x50   :  { %4974 = vmatpush1.bf16.msra.mxu0 %v8571_v23  ;;  %4813 = vmatprep.subr.bf16.mxu1 %v8576_v25  ;;  %v8664_v23 = vld [vmem:[%s12440_s1 + $0x2ec] ss:$12 sps:$4 sm:$0xff]  }
  0x51   :  { %4975 = vmatprep.subr.bf16.mxu0 %v8579_v26  ;;  %v8667_v25 = vld [vmem:[%s12440_s1 + $0x5ec] ss:$12 sps:$4 sm:$0xff]   ;;  %v8662_v26 = vld [vmem:[%s12440_s1 + $0x2e8] ss:$12 sps:$4 sm:$0xff]  }
  0x52   :  { %4777 = vmatmul.mubr.bf16.gmra.mrb[8].mxu1 %v9767_v30 }
  0x53   :  { %4939 = vmatmul.mubr.bf16.gmra.mrb[8].mxu0 %v8627_v31  ;;  %4814 = vmatpush1.bf16.msra.mxu1 %v8574_v27  ;;  %v8665_v27 = vld [vmem:[%s12440_s1 + $0x5e8] ss:$12 sps:$4 sm:$0xff]  }
  0x54   :  { %4976 = vmatpush1.bf16.msra.mxu0 %v8577_v29  ;;  %4815 = vmatprep.subr.bf16.mxu1 %v8582_v32  ;;  %v9956_v29 = vld [vmem:[%s12441_s0 + $0x8] ss:$100 sps:$4 sm:$0xff]   ;;  %v8671_v32 = vld [vmem:[%s12441_s0 + $0x18] ss:$100 sps:$4 sm:$0xff]  }
  0x55   :  { %4977 = vmatprep.subr.bf16.mxu0 %v8585_v33  ;;  %4786 = vmatprep.mubr.bf16.mxu1 %v9788_v36  ;;  %v8686_v31 = vld [vmem:[%s12440_s1 + $0xc8] ss:$12 sps:$4 sm:$0xff]   ;;  %v8674_v33 = vld [vmem:[%s12440_s1 + $0x600] ss:$12 sps:$4 sm:$0xff]  }
  0x56   :  { %4948 = vmatprep.mubr.bf16.mxu0 %v8640_v40  ;;  %v8677_v40 = vld [vmem:[%s12440_s1 + $0x618] ss:$12 sps:$4 sm:$0xff]  }
  0x57   :  { %4816 = vmatpush1.bf16.msra.mxu1 %v8580_v34  ;;  %v8679_v34 = vld [vmem:[%s12440_s1 + $0x61c] ss:$12 sps:$4 sm:$0xff]  }
  0x58   :  { %4978 = vmatpush1.bf16.msra.mxu0 %v8583_v35  ;;  %4817 = vmatprep.subr.bf16.mxu1 %v8588_v37  ;;  %v9973_v35 = vld [vmem:[%s12441_s0 + $0xd4] ss:$100 sps:$4 sm:$0xff]  }
  0x59   :  { %4979 = vmatprep.subr.bf16.mxu0 %v8591_v38  ;;  %v8687_v37 = vld [vmem:[%s12440_s1 + $0x8] ss:$12 sps:$4 sm:$0xff]   ;;  %v8691_v38 = vld [vmem:[%s12440_s1 + $0xe0] ss:$12 sps:$4 sm:$0xff]  }
  0x5a   :  { %4787 = vmatmul.mubr.bf16.gmra.mrb[12].mxu1 %v9809_v42 }
  0x5b   :  { %4949 = vmatmul.mubr.bf16.gmra.mrb[12].mxu0 %v8645_v43  ;;  %4818 = vmatpush1.bf16.msra.mxu1 %v8586_v39  ;;  %v8721_v39 = vld [vmem:[%s12441_s0 + $0xe4] ss:$100 sps:$4 sm:$0xff]   ;;  %v9995_v43 = vld [vmem:[%s12441_s0 + $0xd0] ss:$100 sps:$4 sm:$0xff]  }
  0x5c   :  { %4980 = vmatpush1.bf16.msra.mxu0 %v8589_v41  ;;  %4819 = vmatprep.subr.bf16.mxu1 %v8594_v44  ;;  %v8685_v41 = vld [vmem:[%s12440_s1 + $0x634] ss:$12 sps:$4 sm:$0xff]  }
  0x5d   :  { %4981 = vmatprep.subr.bf16.mxu0 %v8597_v45  ;;  %4796 = vmatprep.mubr.bf16.mxu1 %v9827_v48  ;;  %v8692_v44 = vld [vmem:[%s12440_s1 + $0x20] ss:$12 sps:$4 sm:$0xff]   ;;  %v8683_v45 = vld [vmem:[%s12440_s1 + $0x630] ss:$12 sps:$4 sm:$0xff]  }
  0x5e   :  { %4958 = vmatprep.mubr.bf16.mxu0 %v9841_v53 }
  0x5f   :  { %4820 = vmatpush1.bf16.msra.mxu1 %v8592_v47  ;;  %v8727_v47 = vld [vmem:[%s12441_s0 + $0xe0] ss:$100 sps:$4 sm:$0xff]  }
  0x60   :  { %4982 = vmatpush1.bf16.msra.mxu0 %v8595_v49  ;;  %4821 = vmatprep.subr.bf16.mxu1 %v8603_v51  ;;  %v8690_v49 = vld [vmem:[%s12440_s1 + $0x64c] ss:$12 sps:$4 sm:$0xff]  }
  0x61   :  { %4983 = vmatprep.subr.bf16.mxu0 %v8608_v52  ;;  %v8700_v51 = vld [vmem:[%s12440_s1 + $0x38] ss:$12 sps:$4 sm:$0xff]   ;;  %v8704_v52 = vld [vmem:[%s12440_s1 + $0x110] ss:$12 sps:$4 sm:$0xff]  }
  0x62   :  { %4797 = vmatmul.mubr.bf16.gmra.mrb[16].mxu1 %v9844_v54 }
  0x63   :  { %4959 = vmatmul.mubr.bf16.gmra.mrb[16].mxu0 %v9847_v55  ;;  %4822 = vmatpush1.bf16.msra.mxu1 %v8601_v56  ;;  %v8734_v56 = vld [vmem:[%s12441_s0 + $0x1ac] ss:$100 sps:$4 sm:$0xff]  }
  0x64   :  { %4984 = vmatpush1.bf16.msra.mxu0 %v8606_v57  ;;  %4823 = vmatprep.subr.bf16.mxu1 %v8612_v58  ;;  %v8688_v57 = vld [vmem:[%s12440_s1 + $0x648] ss:$12 sps:$4 sm:$0xff]   ;;  %v10034_v58 = vld [vmem:[%s12441_s0 + $0x198] ss:$100 sps:$4 sm:$0xff]  }
  0x65   :  { %4985 = vmatprep.subr.bf16.mxu0 %v8615_v59  ;;  %4837 = vmatprep.mubr.bf16.mxu1 %v9864_v60  ;;  %v8698_v59 = vld [vmem:[%s12440_s1 + $0x664] ss:$12 sps:$4 sm:$0xff]  }
  0x66   :  { %4999 = vmatprep.mubr.bf16.mxu0 %v8673_v61  ;;  %v8705_v61 = vld [vmem:[%s12440_s1 + $0x50] ss:$12 sps:$4 sm:$0xff]  }
  0x67   :  { %4824 = vmatpush1.bf16.msra.mxu1 %v8610_v62  ;;  %v8696_v62 = vld [vmem:[%s12440_s1 + $0x660] ss:$12 sps:$4 sm:$0xff]  }
  0x68   :  { %4986 = vmatpush1.bf16.msra.mxu0 %v8613_v63  ;;  %4825 = vmatprep.subr.bf16.mxu1 %v8621_v0  ;;  %v8712_v63 = vld [vmem:[%s12440_s1 + $0x128] ss:$12 sps:$4 sm:$0xff]  }
  0x69   :  { %4987 = vmatprep.subr.bf16.mxu0 %v8626_v1  ;;  %v8703_v0 = vld [vmem:[%s12440_s1 + $0x67c] ss:$12 sps:$4 sm:$0xff]  }
  0x6a   :  { %v8739_v1 = vld [vmem:[%s12441_s0 + $0x1a8] ss:$100 sps:$4 sm:$0xff]  }
  0x6b   :  { %4826 = vmatpush1.bf16.msra.mxu1 %v8619_v2  ;;  %v10057_v2 = vld [vmem:[%s12441_s0 + $0x264] ss:$100 sps:$4 sm:$0xff]  }
  0x6c   :  { %4988 = vmatpush1.bf16.msra.mxu0 %v8624_v3  ;;  %4827 = vmatprep.subr.bf16.mxu1 %v8630_v5  ;;  %v8713_v3 = vld [vmem:[%s12440_s1 + $0x68] ss:$12 sps:$4 sm:$0xff]   ;;  %v8701_v5 = vld [vmem:[%s12440_s1 + $0x678] ss:$12 sps:$4 sm:$0xff]  }
  0x6d   :  { %4989 = vmatprep.subr.bf16.mxu0 %v8633_v6  ;;  %v8717_v6 = vld [vmem:[%s12440_s1 + $0x140] ss:$12 sps:$4 sm:$0xff]  }
  0x6f   :  { %4828 = vmatpush1.bf16.msra.mxu1 %v8628_v7  ;;  %v8743_v7 = vld [vmem:[%s12441_s0 + $0x274] ss:$100 sps:$4 sm:$0xff]  }
  0x70   :  { %4990 = vmatpush1.bf16.msra.mxu0 %v8631_v8  ;;  %4829 = vmatprep.subr.bf16.mxu1 %v8639_v9  ;;  %v8711_v8 = vld [vmem:[%s12440_s1 + $0x694] ss:$12 sps:$4 sm:$0xff]  }
  0x71   :  { %4991 = vmatprep.subr.bf16.mxu0 %v8644_v10  ;;  %v8718_v9 = vld [vmem:[%s12440_s1 + $0x80] ss:$12 sps:$4 sm:$0xff]  }
  0x72   :  { %v120_v10 = vld [vmem:[%s12441_s0 + $0x328] sm:$0xff] }
  0x73   :  { %4830 = vmatpush1.bf16.msra.mxu1 %v8637_v11  ;;  %v10085_v11 = vld [vmem:[%s12441_s0 + $0x260] ss:$100 sps:$4 sm:$0xff]  }
  0x74   :  { %4992 = vmatpush1.bf16.msra.mxu0 %v8642_v13  ;;  %4831 = vmatprep.subr.bf16.mxu1 %v8648_v14  ;;  %v8726_v13 = vld [vmem:[%s12440_s1 + $0x158] ss:$12 sps:$4 sm:$0xff]   ;;  %v8709_v14 = vld [vmem:[%s12440_s1 + $0x690] ss:$12 sps:$4 sm:$0xff]  }
  0x75   :  { %4993 = vmatprep.subr.bf16.mxu0 %v8651_v15  ;;  %v8749_v15 = vld [vmem:[%s12441_s0 + $0x270] ss:$100 sps:$4 sm:$0xff]  }
  0x77   :  { %4832 = vmatpush1.bf16.msra.mxu1 %v8646_v16  ;;  %v122_v16 = vld [vmem:[%s12441_s0 + $0x338] sm:$0xff] }
  0x78   :  { %4994 = vmatpush1.bf16.msra.mxu0 %v8649_v17  ;;  %4833 = vmatprep.subr.bf16.mxu1 %v8656_v19  ;;  %v8716_v17 = vld [vmem:[%s12440_s1 + $0x6ac] ss:$12 sps:$4 sm:$0xff]   ;;  %v10102_v19 = vcombine.high %v120_v10, %v120_v10 }
  0x79   :  { %4995 = vmatprep.subr.bf16.mxu0 %v8660_v20  ;;  %v8728_v20 = vld [vmem:[%s12440_s1 + $0x98] ss:$12 sps:$4 sm:$0xff]  }
  0x7b   :  { %4834 = vmatpush1.bf16.msra.mxu1 %v8654_v21  ;;  %v8732_v21 = vld [vmem:[%s12440_s1 + $0x170] ss:$12 sps:$4 sm:$0xff]  }
  0x7c   :  { %4996 = vmatpush1.bf16.msra.mxu0 %v8658_v22  ;;  %4835 = vmatprep.subr.bf16.mxu1 %v8664_v23  ;;  %v10110_v22 = vcombine.high %v122_v16, %v122_v16  ;;  %v8714_v23 = vld [vmem:[%s12440_s1 + $0x6a8] ss:$12 sps:$4 sm:$0xff]  }
  0x7d   :  { %4997 = vmatprep.subr.bf16.mxu0 %v8667_v25  ;;  %v8725_v25 = vld [vmem:[%s12440_s1 + $0x6c4] ss:$12 sps:$4 sm:$0xff]  }
  0x7f   :  { %4836 = vmatpush1.bf16.msra.mxu1 %v8662_v26  ;;  %v8733_v26 = vld [vmem:[%s12440_s1 + $0xb0] ss:$12 sps:$4 sm:$0xff]  }
  0x80   :  { %4998 = vmatpush1.bf16.msra.mxu0 %v8665_v27  ;;  %7606 = vmatprep.subr.bf16.mxu1 %v8686_v31  ;;  %v8748_v27 = vld [vmem:[%s12440_s1 + $0x248] ss:$12 sps:$4 sm:$0xff]   ;;  %v8723_v31 = vld [vmem:[%s12440_s1 + $0x6c0] ss:$12 sps:$4 sm:$0xff]  }
  0x81   :  { %5048 = vmatprep.subr.bf16.mxu0 %v8676_v28  ;;  %v10127_v28 = vcombine.low %v120_v10, %v120_v10  ;;  %v8807_v10 = vld [vmem:[%s12441_s0 + $0xec] ss:$100 sps:$4 sm:$0xff]  }
  0x82   :  { %4838 = vmatmul.mubr.bf16.vlgmr.msra.gmra.mrb[0].mxu1 %v9956_v29 }
  0x83   :  { %5000 = vmatmul.mubr.bf16.vlgmr.msra.gmra.mrb[0].mxu0 %v8671_v32  ;;  %4847 = vmatprep.mubr.bf16.mxu1 %v9973_v35  ;;  %v10132_v32 = vcombine.low %v122_v16, %v122_v16  ;;  %v8781_v16 = vld [vmem:[%s12440_s1 + $0x7b0] ss:$12 sps:$4 sm:$0xff]  }
  0x84   :  { %5049 = vmatpush1.bf16.msra.mxu0 %v8674_v33  ;;  %7607 = vmatpush3.bf16.msra.mxu1 %v8687_v37  ;;  %v8731_v33 = vld [vmem:[%s12440_s1 + $0x6dc] ss:$12 sps:$4 sm:$0xff]   ;;  %v8729_v37 = vld [vmem:[%s12440_s1 + $0x6d8] ss:$12 sps:$4 sm:$0xff]  }
  0x85   :  { %5050 = vmatprep.subr.bf16.mxu0 %v8679_v34  ;;  %7608 = vmatprep.subr.bf16.mxu1 %v8691_v38  ;;  %v8770_v34 = vld [vmem:[%s12441_s0 + $0x24] ss:$100 sps:$4 sm:$0xff]  }
  0x86   :  { %5009 = vmatprep.mubr.bf16.mxu0 %v8721_v39  ;;  %v9421_v38 = vld [vmem:[%s12441_s0 + $0x4] ss:$100 sps:$4 sm:$0xff]   ;;  %v8738_v39 = vld [vmem:[%s12440_s1 + $0x6f4] ss:$12 sps:$4 sm:$0xff]  }
  0x88   :  { %5051 = vmatpush1.bf16.msra.mxu0 %v8677_v40  ;;  %7609 = vmatpush3.bf16.msra.mxu1 %v8692_v44  ;;  %v8736_v40 = vld [vmem:[%s12440_s1 + $0x6f0] ss:$12 sps:$4 sm:$0xff]   ;;  %v8750_v44 = vld [vmem:[%s12440_s1 + $0x188] ss:$12 sps:$4 sm:$0xff]  }
  0x89   :  { %5052 = vmatprep.subr.bf16.mxu0 %v8685_v41  ;;  %7610 = vmatprep.subr.bf16.mxu1 %v8699_v46  ;;  %v8742_v41 = vld [vmem:[%s12440_s1 + $0x70c] ss:$12 sps:$4 sm:$0xff]   ;;  %v8740_v46 = vld [vmem:[%s12440_s1 + $0x708] ss:$12 sps:$4 sm:$0xff]  }
  0x8a   :  { %4848 = vmatmul.mubr.bf16.gmra.mrb[4].mxu1 %v9995_v43 }
  0x8b   :  { %5010 = vmatmul.mubr.bf16.gmra.mrb[4].mxu0 %v8727_v47  ;;  %4857 = vmatprep.mubr.bf16.mxu1 %v10015_v50  ;;  %v8747_v47 = vld [vmem:[%s12440_s1 + $0x724] ss:$12 sps:$4 sm:$0xff]  }
  0x8c   :  { %5053 = vmatpush1.bf16.msra.mxu0 %v8683_v45  ;;  %7611 = vmatpush3.bf16.msra.mxu1 %v8700_v51  ;;  %v8754_v45 = vld [vmem:[%s12440_s1 + $0x260] ss:$12 sps:$4 sm:$0xff]  }
  0x8d   :  { %5054 = vmatprep.subr.bf16.mxu0 %v8690_v49  ;;  %7612 = vmatprep.subr.bf16.mxu1 %v8704_v52  ;;  %v8755_v49 = vld [vmem:[%s12440_s1 + $0x1a0] ss:$12 sps:$4 sm:$0xff]   ;;  %v8762_v52 = vld [vmem:[%s12440_s1 + $0x1b8] ss:$12 sps:$4 sm:$0xff]  }
  0x8e   :  { %5019 = vmatprep.mubr.bf16.mxu0 %v8734_v56  ;;  %v8745_v51 = vld [vmem:[%s12440_s1 + $0x720] ss:$12 sps:$4 sm:$0xff]   ;;  %v8766_v56 = vld [vmem:[%s12440_s1 + $0x290] ss:$12 sps:$4 sm:$0xff]  }
  0x90   :  { %5055 = vmatpush1.bf16.msra.mxu0 %v8688_v57  ;;  %7613 = vmatpush3.bf16.msra.mxu1 %v8705_v61  ;;  %v8751_v57 = vld [vmem:[%s12440_s1 + $0x738] ss:$12 sps:$4 sm:$0xff]   ;;  %v8767_v61 = vld [vmem:[%s12440_s1 + $0x1d0] ss:$12 sps:$4 sm:$0xff]  }
  0x91   :  { %5056 = vmatprep.subr.bf16.mxu0 %v8698_v59  ;;  %7614 = vmatprep.subr.bf16.mxu1 %v8712_v63  ;;  %v8759_v59 = vld [vmem:[%s12440_s1 + $0x754] ss:$12 sps:$4 sm:$0xff]  }
  0x92   :  { %4858 = vmatmul.mubr.bf16.gmra.mrb[8].mxu1 %v10034_v58  ;;  %v8775_v63 = vld [vmem:[%s12440_s1 + $0x1e8] ss:$12 sps:$4 sm:$0xff]  }
  0x93   :  { %5020 = vmatmul.mubr.bf16.gmra.mrb[8].mxu0 %v8739_v1  ;;  %4867 = vmatprep.mubr.bf16.mxu1 %v10057_v2  ;;  %v8763_v1 = vld [vmem:[%s12440_s1 + $0x768] ss:$12 sps:$4 sm:$0xff]  }
  0x94   :  { %5057 = vmatpush1.bf16.msra.mxu0 %v8696_v62  ;;  %7615 = vmatpush3.bf16.msra.mxu1 %v8713_v3  ;;  %v8757_v62 = vld [vmem:[%s12440_s1 + $0x750] ss:$12 sps:$4 sm:$0xff]  }
  0x95   :  { %5058 = vmatprep.subr.bf16.mxu0 %v8703_v0  ;;  %7616 = vmatprep.subr.bf16.mxu1 %v8717_v6  ;;  %v8779_v0 = vld [vmem:[%s12440_s1 + $0x2c0] ss:$12 sps:$4 sm:$0xff]   ;;  %v8773_v3 = vld [vmem:[%s12440_s1 + $0x784] ss:$12 sps:$4 sm:$0xff]  }
  0x96   :  { %5029 = vmatprep.mubr.bf16.mxu0 %v8743_v7  ;;  %v8771_v6 = vld [vmem:[%s12440_s1 + $0x780] ss:$12 sps:$4 sm:$0xff]   ;;  %v8778_v7 = vld [vmem:[%s12440_s1 + $0x79c] ss:$12 sps:$4 sm:$0xff]  }
  0x98   :  { %5059 = vmatpush1.bf16.msra.mxu0 %v8701_v5  ;;  %7617 = vmatpush3.bf16.msra.mxu1 %v8718_v9  ;;  %v8768_v5 = vld [vmem:[%s12441_s0 + $0x20] ss:$100 sps:$4 sm:$0xff]   ;;  %v8789_v9 = vld [vmem:[%s12440_s1 + $0x2f0] ss:$12 sps:$4 sm:$0xff]  }
  0x99   :  { %5060 = vmatprep.subr.bf16.mxu0 %v8711_v8  ;;  %7618 = vmatprep.subr.bf16.mxu1 %v8726_v13  ;;  %v8785_v8 = vld [vmem:[%s12440_s1 + $0x218] ss:$12 sps:$4 sm:$0xff]  }
  0x9a   :  { %4868 = vmatmul.mubr.bf16.gmra.mrb[12].mxu1 %v10085_v11  ;;  %v8776_v13 = vld [vmem:[%s12440_s1 + $0x798] ss:$12 sps:$4 sm:$0xff]  }
  0x9b   :  { %5030 = vmatmul.mubr.bf16.gmra.mrb[12].mxu0 %v8749_v15  ;;  %4877 = vmatprep.mubr.bf16.mxu1 %v10102_v19  ;;  %v8790_v15 = vld [vmem:[%s12440_s1 + $0x230] ss:$12 sps:$4 sm:$0xff]  }
  0x9c   :  { %5061 = vmatpush1.bf16.msra.mxu0 %v8709_v14  ;;  %7619 = vmatpush3.bf16.msra.mxu1 %v8728_v20  ;;  %v8783_v14 = vld [vmem:[%s12440_s1 + $0x7b4] ss:$12 sps:$4 sm:$0xff]  }
  0x9d   :  { %5062 = vmatprep.subr.bf16.mxu0 %v8716_v17  ;;  %7620 = vmatprep.subr.bf16.mxu1 %v8732_v21  ;;  %v8788_v17 = vld [vmem:[%s12440_s1 + $0x7cc] ss:$12 sps:$4 sm:$0xff]   ;;  %v8786_v21 = vld [vmem:[%s12440_s1 + $0x7c8] ss:$12 sps:$4 sm:$0xff]  }
  0x9e   :  { %5039 = vmatprep.mubr.bf16.mxu0 %v10110_v22  ;;  %v8820_v20 = vld [vmem:[%s12441_s0 + $0x1b4] ss:$100 sps:$4 sm:$0xff]  }
  0xa0   :  { %5063 = vmatpush1.bf16.msra.mxu0 %v8714_v23  ;;  %7621 = vmatpush3.bf16.msra.mxu1 %v8733_v26  ;;  %v8793_v23 = vld [vmem:[%s12440_s1 + $0x7e4] ss:$12 sps:$4 sm:$0xff]  }
  0xa1   :  { %5064 = vmatprep.subr.bf16.mxu0 %v8725_v25  ;;  %7652 = vmatprep.subr.bf16.mxu1 %v8748_v27  ;;  %v8791_v25 = vld [vmem:[%s12440_s1 + $0x7e0] ss:$12 sps:$4 sm:$0xff]   ;;  %v8826_v26 = vld [vmem:[%s12441_s0 + $0x1b0] ss:$100 sps:$4 sm:$0xff]  }
  0xa2   :  { %4878 = vmatmul.mubr.bf16.gmra.mrb[16].mxu1 %v10127_v28  ;;  %v8805_v27 = vld [vmem:[%s12440_s1 + $0x3e0] ss:$12 sps:$4 sm:$0xff]  }
  0xa3   :  { %5040 = vmatmul.mubr.bf16.gmra.mrb[16].mxu0 %v10132_v32  ;;  %5809 = vmatprep.mubr.bf16.mxu1 %v9421_v38  ;;  %v123_v38 = vld [vmem:[%s12441_s0 + $0x340] sm:$0xff] }
  0xa4   :  { %5065 = vmatpush1.bf16.msra.mxu0 %v8723_v31  ;;  %5080 = vmatprep.mubr.bf16.mxu0 %v8770_v34  ;;  %v8833_v31 = vld [vmem:[%s12441_s0 + $0x27c] ss:$100 sps:$4 sm:$0xff]  }
  0xa5   :  { %5066 = vmatprep.subr.bf16.mxu0 %v8731_v33  ;;  %v8794_v33 = vld [vmem:[%s12440_s1 + $0x7f8] ss:$12 sps:$4 sm:$0xff]   ;;  %v8799_v34 = vld [vmem:[%s12440_s1 + $0x814] ss:$12 sps:$4 sm:$0xff]  }
  0xa8   :  { %5067 = vmatpush1.bf16.msra.mxu0 %v8729_v37  ;;  %v8806_v37 = vld [vmem:[%s12440_s1 + $0x320] ss:$12 sps:$4 sm:$0xff]  }
  0xa9   :  { %5068 = vmatprep.subr.bf16.mxu0 %v8738_v39  ;;  %v8797_v39 = vld [vmem:[%s12440_s1 + $0x810] ss:$12 sps:$4 sm:$0xff]  }
  0xaa   :  { %5810 = vmatmul.mubr.bf16.vlgmr.msra.gmra.mrb[20].mxu1 %v9677_v4  ;;  %v8760_v4 = vld [vmem:[%s12440_s1 + $0x278] ss:$12 sps:$4 sm:$0xff]  }
  0xab   :  { %5817 = vmatprep.mubr.bf16.mxu1 %v9704_v12  ;;  %7653 = vmatpush3.bf16.msra.mxu1 %v8750_v44  ;;  %v8753_v12 = vld [vmem:[%s12440_s1 + $0x73c] ss:$12 sps:$4 sm:$0xff]  }
  0xac   :  { %5069 = vmatpush1.bf16.msra.mxu0 %v8736_v40  ;;  %7654 = vmatprep.subr.bf16.mxu1 %v8754_v45  ;;  %v8804_v40 = vld [vmem:[%s12440_s1 + $0x82c] ss:$12 sps:$4 sm:$0xff]   ;;  %v8818_v44 = vld [vmem:[%s12440_s1 + $0x410] ss:$12 sps:$4 sm:$0xff]   ;;  %v10331_v45 = vcombine.high %v123_v38, %v123_v38 }
  0xad   :  { %5070 = vmatprep.subr.bf16.mxu0 %v8742_v41  ;;  %v8814_v41 = vld [vmem:[%s12440_s1 + $0x338] ss:$12 sps:$4 sm:$0xff]  }
  0xaf   :  { %7655 = vmatpush3.bf16.msra.mxu1 %v8755_v49  ;;  %v8819_v49 = vld [vmem:[%s12440_s1 + $0x350] ss:$12 sps:$4 sm:$0xff]  }
  0xb0   :  { %5071 = vmatpush1.bf16.msra.mxu0 %v8740_v46  ;;  %7656 = vmatprep.subr.bf16.mxu1 %v8760_v4  ;;  %v8802_v46 = vld [vmem:[%s12440_s1 + $0x828] ss:$12 sps:$4 sm:$0xff]   ;;  %v10351_v4 = vcombine.low %v123_v38, %v123_v38  ;;  %v10514_v38 = vld [vmem:[%s12441_s0 + $0x1bc] ss:$100 sps:$4 sm:$0xff]  }
  0xb1   :  { %5072 = vmatprep.subr.bf16.mxu0 %v8747_v47  ;;  %v8811_v47 = vld [vmem:[%s12440_s1 + $0x844] ss:$12 sps:$4 sm:$0xff]  }
  0xb2   :  { %5818 = vmatmul.mubr.bf16.gmra.mrb[24].mxu1 %v9725_v18  ;;  %v8774_v18 = vld [vmem:[%s12440_s1 + $0x2a8] ss:$12 sps:$4 sm:$0xff]  }
  0xb3   :  { %5825 = vmatprep.mubr.bf16.mxu1 %v9746_v24  ;;  %7657 = vmatpush3.bf16.msra.mxu1 %v8762_v52  ;;  %v8765_v24 = vld [vmem:[%s12440_s1 + $0x76c] ss:$12 sps:$4 sm:$0xff]  }
  0xb4   :  { %5073 = vmatpush1.bf16.msra.mxu0 %v8745_v51  ;;  %7658 = vmatprep.subr.bf16.mxu1 %v8766_v56  ;;  %v8817_v51 = vld [vmem:[%s12440_s1 + $0x85c] ss:$12 sps:$4 sm:$0xff]   ;;  %v8831_v52 = vld [vmem:[%s12440_s1 + $0x440] ss:$12 sps:$4 sm:$0xff]  }
  0xb5   :  { %5074 = vmatprep.subr.bf16.mxu0 %v8753_v12  ;;  %v8827_v12 = vld [vmem:[%s12440_s1 + $0x368] ss:$12 sps:$4 sm:$0xff]   ;;  %v8856_v56 = vld [vmem:[%s12441_s0 + $0x2c] ss:$100 sps:$4 sm:$0xff]  }
  0xb7   :  { %7659 = vmatpush3.bf16.msra.mxu1 %v8767_v61  ;;  %v8832_v61 = vld [vmem:[%s12440_s1 + $0x380] ss:$12 sps:$4 sm:$0xff]  }
  0xb8   :  { %5075 = vmatpush1.bf16.msra.mxu0 %v8751_v57  ;;  %7660 = vmatprep.subr.bf16.mxu1 %v8774_v18  ;;  %v8815_v57 = vld [vmem:[%s12440_s1 + $0x858] ss:$12 sps:$4 sm:$0xff]  }
  0xb9   :  { %5076 = vmatprep.subr.bf16.mxu0 %v8759_v59  ;;  %v8824_v59 = vld [vmem:[%s12440_s1 + $0x874] ss:$12 sps:$4 sm:$0xff]   ;;  %v8830_v18 = vld [vmem:[%s12440_s1 + $0x88c] ss:$12 sps:$4 sm:$0xff]  }
  0xba   :  { %5826 = vmatmul.mubr.bf16.gmra.mrb[28].mxu1 %v9767_v30  ;;  %v8780_v30 = vld [vmem:[%s12440_s1 + $0x200] ss:$12 sps:$4 sm:$0xff]  }
  0xbb   :  { %5833 = vmatprep.mubr.bf16.mxu1 %v9788_v36  ;;  %7661 = vmatpush3.bf16.msra.mxu1 %v8775_v63  ;;  %v8784_v36 = vld [vmem:[%s12440_s1 + $0x2d8] ss:$12 sps:$4 sm:$0xff]   ;;  %v8828_v63 = vld [vmem:[%s12440_s1 + $0x888] ss:$12 sps:$4 sm:$0xff]  }
  0xbc   :  { %5077 = vmatpush1.bf16.msra.mxu0 %v8757_v62  ;;  %7662 = vmatprep.subr.bf16.mxu1 %v8779_v0  ;;  %v8840_v62 = vld [vmem:[%s12440_s1 + $0x398] ss:$12 sps:$4 sm:$0xff]  }
  0xbd   :  { %5078 = vmatprep.subr.bf16.mxu0 %v8765_v24  ;;  %v8844_v24 = vld [vmem:[%s12440_s1 + $0x470] ss:$12 sps:$4 sm:$0xff]  }
  0xbe   :  { %v8837_v0 = vld [vmem:[%s12440_s1 + $0x8a4] ss:$12 sps:$4 sm:$0xff]  }
  0xbf   :  { %7663 = vmatpush3.bf16.msra.mxu1 %v8780_v30  ;;  %v9422_v30 = vld [vmem:[%s12441_s0 + $0x14] ss:$100 sps:$4 sm:$0xff]  }
  0xc0   :  { %5079 = vmatpush1.bf16.msra.mxu0 %v8763_v1  ;;  %7664 = vmatprep.subr.bf16.mxu1 %v8784_v36  ;;  %v8845_v1 = vld [vmem:[%s12440_s1 + $0x3b0] ss:$12 sps:$4 sm:$0xff]  }
  0xc1   :  { %5129 = vmatprep.subr.bf16.mxu0 %v8773_v3  ;;  %v8843_v3 = vld [vmem:[%s12440_s1 + $0x8bc] ss:$12 sps:$4 sm:$0xff]  }
  0xc2   :  { %5834 = vmatmul.mubr.bf16.gmra.mrb[32].mxu1 %v9809_v42  ;;  %v8800_v42 = vld [vmem:[%s12440_s1 + $0x3c8] ss:$12 sps:$4 sm:$0xff]   ;;  %v8847_v36 = vld [vmem:[%s12440_s1 + $0x8d0] ss:$12 sps:$4 sm:$0xff]  }
  0xc3   :  { %5081 = vmatmul.mubr.bf16.vlgmr.msra.gmra.mrb[0].mxu0 %v8768_v5  ;;  %5841 = vmatprep.mubr.bf16.mxu1 %v9827_v48  ;;  %v8813_v48 = vld [vmem:[%s12441_s0 + $0xe8] ss:$100 sps:$4 sm:$0xff]   ;;  %v8841_v5 = vld [vmem:[%s12440_s1 + $0x8b8] ss:$12 sps:$4 sm:$0xff]  }
  0xc4   :  { %5130 = vmatpush1.bf16.msra.mxu0 %v8771_v6  ;;  %7665 = vmatpush3.bf16.msra.mxu1 %v8785_v8  ;;  %v8849_v6 = vld [vmem:[%s12440_s1 + $0x8d4] ss:$12 sps:$4 sm:$0xff]  }
  0xc5   :  { %5131 = vmatprep.subr.bf16.mxu0 %v8778_v7  ;;  %7666 = vmatprep.subr.bf16.mxu1 %v8789_v9  ;;  %v8861_v7 = vld [vmem:[%s12440_s1 + $0x488] ss:$12 sps:$4 sm:$0xff]   ;;  %v8865_v8 = vld [vmem:[%s12440_s1 + $0x560] ss:$12 sps:$4 sm:$0xff]  }
  0xc6   :  { %5090 = vmatprep.mubr.bf16.mxu0 %v8807_v10  ;;  %v9423_v9 = vld [vmem:[%s12441_s0 + $0x10] ss:$100 sps:$4 sm:$0xff]  }
  0xc7   :  { %v8851_v10 = vld [vmem:[%s12440_s1 + $0x8e8] ss:$12 sps:$4 sm:$0xff]  }
  0xc8   :  { %5132 = vmatpush1.bf16.msra.mxu0 %v8776_v13  ;;  %7667 = vmatpush3.bf16.msra.mxu1 %v8790_v15  ;;  %v9424_v13 = vld [vmem:[%s12441_s0 + $0xdc] ss:$100 sps:$4 sm:$0xff]   ;;  %v8859_v15 = vld [vmem:[%s12440_s1 + $0x904] ss:$12 sps:$4 sm:$0xff]  }
  0xc9   :  { %5133 = vmatprep.subr.bf16.mxu0 %v8783_v14  ;;  %7698 = vmatprep.subr.bf16.mxu1 %v8800_v42  ;;  %v10446_v14 = vld [vmem:[%s12441_s0 + $0x28] ss:$100 sps:$4 sm:$0xff]  }
  0xca   :  { %5842 = vmatmul.mubr.bf16.gmra.mrb[36].mxu1 %v9844_v54  ;;  %v8796_v54 = vld [vmem:[%s12440_s1 + $0x7fc] ss:$12 sps:$4 sm:$0xff]   ;;  %v8866_v42 = vld [vmem:[%s12440_s1 + $0x4a0] ss:$12 sps:$4 sm:$0xff]  }
  0xcb   :  { %5091 = vmatmul.mubr.bf16.gmra.mrb[4].mxu0 %v8813_v48  ;;  %5881 = vmatprep.mubr.bf16.mxu1 %v9864_v60  ;;  %v8801_v60 = vld [vmem:[%s12440_s1 + $0x308] ss:$12 sps:$4 sm:$0xff]   ;;  %v8857_v48 = vld [vmem:[%s12440_s1 + $0x900] ss:$12 sps:$4 sm:$0xff]  }
  0xcc   :  { %5134 = vmatpush1.bf16.msra.mxu0 %v8781_v16  ;;  %5100 = vmatprep.mubr.bf16.mxu0 %v8820_v20  ;;  %v8870_v16 = vld [vmem:[%s12440_s1 + $0x578] ss:$12 sps:$4 sm:$0xff]  }
  0xcd   :  { %5135 = vmatprep.subr.bf16.mxu0 %v8788_v17  ;;  %v8864_v17 = vld [vmem:[%s12440_s1 + $0x91c] ss:$12 sps:$4 sm:$0xff]   ;;  %v8871_v20 = vld [vmem:[%s12440_s1 + $0x4b8] ss:$12 sps:$4 sm:$0xff]  }
  0xd0   :  { %5136 = vmatpush1.bf16.msra.mxu0 %v8786_v21  ;;  %v8875_v21 = vld [vmem:[%s12440_s1 + $0x590] ss:$12 sps:$4 sm:$0xff]  }
  0xd1   :  { %5137 = vmatprep.subr.bf16.mxu0 %v8793_v23  ;;  %v10472_v23 = vld [vmem:[%s12441_s0 + $0xf4] ss:$100 sps:$4 sm:$0xff]  }
  0xd2   :  { %5882 = vmatmul.mubr.bf16.vlgmr.msra.gmra.mrb[40].mxu1 %v9956_v29  ;;  %v8812_v29 = vld [vmem:[%s12440_s1 + $0x3f8] ss:$12 sps:$4 sm:$0xff]  }
  0xd3   :  { %5101 = vmatmul.mubr.bf16.gmra.mrb[8].mxu0 %v8826_v26  ;;  %5889 = vmatprep.mubr.bf16.mxu1 %v9973_v35  ;;  %v8839_v35 = vld [vmem:[%s12441_s0 + $0x278] ss:$100 sps:$4 sm:$0xff]   ;;  %v9426_v26 = vld [vmem:[%s12441_s0 + $0x1a4] ss:$100 sps:$4 sm:$0xff]  }
  0xd4   :  { %5138 = vmatpush1.bf16.msra.mxu0 %v8791_v25  ;;  %7699 = vmatpush3.bf16.msra.mxu1 %v8801_v60  ;;  %v9425_v25 = vld [vmem:[%s12441_s0 + $0xd8] ss:$100 sps:$4 sm:$0xff]   ;;  %v8869_v60 = vld [vmem:[%s12440_s1 + $0x934] ss:$12 sps:$4 sm:$0xff]  }
  0xd5   :  { %5139 = vmatprep.subr.bf16.mxu0 %v8796_v54  ;;  %7700 = vmatprep.subr.bf16.mxu1 %v8805_v27  ;;  %v8862_v54 = vld [vmem:[%s12440_s1 + $0x918] ss:$12 sps:$4 sm:$0xff]   ;;  %v8876_v27 = vld [vmem:[%s12440_s1 + $0x4d0] ss:$12 sps:$4 sm:$0xff]  }
  0xd6   :  { %5110 = vmatprep.mubr.bf16.mxu0 %v8833_v31  ;;  %v8867_v31 = vld [vmem:[%s12440_s1 + $0x930] ss:$12 sps:$4 sm:$0xff]  }
  0xd8   :  { %5140 = vmatpush1.bf16.msra.mxu0 %v8794_v33  ;;  %7701 = vmatpush3.bf16.msra.mxu1 %v8806_v37  ;;  %v8880_v33 = vld [vmem:[%s12440_s1 + $0x5a8] ss:$12 sps:$4 sm:$0xff]  }
  0xd9   :  { %5141 = vmatprep.subr.bf16.mxu0 %v8799_v34  ;;  %7702 = vmatprep.subr.bf16.mxu1 %v8812_v29  ;;  %v8874_v34 = vld [vmem:[%s12440_s1 + $0x94c] ss:$12 sps:$4 sm:$0xff]   ;;  %v10503_v37 = vld [vmem:[%s12441_s0 + $0xf0] ss:$100 sps:$4 sm:$0xff]  }
  0xda   :  { %5890 = vmatmul.mubr.bf16.gmra.mrb[44].mxu1 %v9995_v43  ;;  %v8825_v43 = vld [vmem:[%s12440_s1 + $0x428] ss:$12 sps:$4 sm:$0xff]  }
  0xdb   :  { %5111 = vmatmul.mubr.bf16.gmra.mrb[12].mxu0 %v8839_v35  ;;  %5897 = vmatprep.mubr.bf16.mxu1 %v10015_v50  ;;  %v8809_v50 = vld [vmem:[%s12440_s1 + $0x840] ss:$12 sps:$4 sm:$0xff]   ;;  %v8881_v29 = vld [vmem:[%s12440_s1 + $0x4e8] ss:$12 sps:$4 sm:$0xff]  }
  0xdc   :  { %5142 = vmatpush1.bf16.msra.mxu0 %v8797_v39  ;;  %7703 = vmatpush3.bf16.msra.mxu1 %v8814_v41  ;;  %v8885_v35 = vld [vmem:[%s12440_s1 + $0x5c0] ss:$12 sps:$4 sm:$0xff]  }
  0xdd   :  { %5143 = vmatprep.subr.bf16.mxu0 %v8804_v40  ;;  %7704 = vmatprep.subr.bf16.mxu1 %v8818_v44  ;;  %v9427_v39 = vld [vmem:[%s12441_s0 + $0x1a0] ss:$100 sps:$4 sm:$0xff]   ;;  %v8872_v40 = vld [vmem:[%s12440_s1 + $0x948] ss:$12 sps:$4 sm:$0xff]   ;;  %v9428_v41 = vld [vmem:[%s12441_s0 + $0x26c] ss:$100 sps:$4 sm:$0xff]  }
  0xde   :  { %5120 = vmatprep.mubr.bf16.mxu0 %v10331_v45  ;;  %v8879_v44 = vld [vmem:[%s12440_s1 + $0x964] ss:$12 sps:$4 sm:$0xff]  }
  0xe0   :  { %5144 = vmatpush1.bf16.msra.mxu0 %v8802_v46  ;;  %7705 = vmatpush3.bf16.msra.mxu1 %v8819_v49  ;;  %v8886_v46 = vld [vmem:[%s12440_s1 + $0x500] ss:$12 sps:$4 sm:$0xff]   ;;  %v8890_v49 = vld [vmem:[%s12440_s1 + $0x5d8] ss:$12 sps:$4 sm:$0xff]  }
  0xe1   :  { %5145 = vmatprep.subr.bf16.mxu0 %v8811_v47  ;;  %7706 = vmatprep.subr.bf16.mxu1 %v8825_v43  ;;  %v8877_v47 = vld [vmem:[%s12440_s1 + $0x960] ss:$12 sps:$4 sm:$0xff]   ;;  %v10542_v43 = vld [vmem:[%s12441_s0 + $0x1b8] ss:$100 sps:$4 sm:$0xff]  }
  0xe2   :  { %5898 = vmatmul.mubr.bf16.gmra.mrb[48].mxu1 %v10034_v58  ;;  %v8838_v58 = vld [vmem:[%s12440_s1 + $0x458] ss:$12 sps:$4 sm:$0xff]  }
  0xe3   :  { %5121 = vmatmul.mubr.bf16.gmra.mrb[16].mxu0 %v10351_v4  ;;  %5905 = vmatprep.mubr.bf16.mxu1 %v10057_v2  ;;  %v8822_v2 = vld [vmem:[%s12440_s1 + $0x870] ss:$12 sps:$4 sm:$0xff]  }
  0xe4   :  { %5146 = vmatpush1.bf16.msra.mxu0 %v8809_v50  ;;  %7707 = vmatpush3.bf16.msra.mxu1 %v8827_v12  ;;  %v8884_v50 = vld [vmem:[%s12440_s1 + $0x97c] ss:$12 sps:$4 sm:$0xff]  }
  0xe5   :  { %5147 = vmatprep.subr.bf16.mxu0 %v8817_v51  ;;  %7708 = vmatprep.subr.bf16.mxu1 %v8831_v52  ;;  %v8891_v51 = vld [vmem:[%s12440_s1 + $0x518] ss:$12 sps:$4 sm:$0xff]   ;;  %v8895_v12 = vld [vmem:[%s12440_s1 + $0x5f0] ss:$12 sps:$4 sm:$0xff]  }
  0xe6   :  { %5161 = vmatprep.mubr.bf16.mxu0 %v8856_v56  ;;  %v10556_v52 = vld [vmem:[%s12441_s0 + $0x284] ss:$100 sps:$4 sm:$0xff]  }
  0xe7   :  { %v9429_v56 = vld [vmem:[%s12441_s0 + $0x268] ss:$100 sps:$4 sm:$0xff]  }
  0xe8   :  { %5148 = vmatpush1.bf16.msra.mxu0 %v8815_v57  ;;  %7709 = vmatpush3.bf16.msra.mxu1 %v8832_v61  ;;  %v8882_v57 = vld [vmem:[%s12440_s1 + $0x978] ss:$12 sps:$4 sm:$0xff]   ;;  %v8896_v61 = vld [vmem:[%s12440_s1 + $0x530] ss:$12 sps:$4 sm:$0xff]  }
  0xe9   :  { %5149 = vmatprep.subr.bf16.mxu0 %v8824_v59  ;;  %7710 = vmatprep.subr.bf16.mxu1 %v8838_v58  ;;  %v8889_v59 = vld [vmem:[%s12440_s1 + $0x994] ss:$12 sps:$4 sm:$0xff]  }
  0xea   :  { %5906 = vmatmul.mubr.bf16.gmra.mrb[52].mxu1 %v10085_v11  ;;  %v8860_v11 = vld [vmem:[%s12440_s1 + $0x548] ss:$12 sps:$4 sm:$0xff]  }
  0xeb   :  { %5913 = vmatprep.mubr.bf16.mxu1 %v10102_v19  ;;  %v8835_v19 = vld [vmem:[%s12440_s1 + $0x8a0] ss:$12 sps:$4 sm:$0xff]   ;;  %v8911_v58 = vld [vmem:[%s12440_s1 + $0x6c8] ss:$12 sps:$4 sm:$0xff]  }
  0xec   :  { %5150 = vmatpush1.bf16.msra.mxu0 %v8822_v2  ;;  %7711 = vmatpush3.bf16.msra.mxu1 %v8840_v62  ;;  %v10582_v2 = vld [vmem:[%s12441_s0 + $0x280] ss:$100 sps:$4 sm:$0xff]   ;;  %v8894_v62 = vld [vmem:[%s12440_s1 + $0x9ac] ss:$12 sps:$4 sm:$0xff]  }
  0xed   :  { %5151 = vmatprep.subr.bf16.mxu0 %v8830_v18  ;;  %7712 = vmatprep.subr.bf16.mxu1 %v8844_v24  ;;  %v8887_v18 = vld [vmem:[%s12440_s1 + $0x990] ss:$12 sps:$4 sm:$0xff]  }
  0xf0   :  { %5152 = vmatpush1.bf16.msra.mxu0 %v8828_v63  ;;  %7713 = vmatpush3.bf16.msra.mxu1 %v8845_v1  ;;  %v8892_v63 = vld [vmem:[%s12440_s1 + $0x9a8] ss:$12 sps:$4 sm:$0xff]   ;;  %v8901_v1 = vld [vmem:[%s12440_s1 + $0x9c4] ss:$12 sps:$4 sm:$0xff]  }
  0xf1   :  { %5153 = vmatprep.subr.bf16.mxu0 %v8837_v0  ;;  %7744 = vmatprep.subr.bf16.mxu1 %v8860_v11  ;;  %v9430_v0 = vld [vmem:[%s12441_s0 + $0x1c] ss:$100 sps:$4 sm:$0xff]  }
  0xf2   :  { %5914 = vmatmul.mubr.bf16.gmra.mrb[56].mxu1 %v10127_v28  ;;  %v8853_v28 = vld [vmem:[%s12440_s1 + $0x8ec] ss:$12 sps:$4 sm:$0xff]   ;;  %v8905_v11 = vld [vmem:[%s12440_s1 + $0x9dc] ss:$12 sps:$4 sm:$0xff]  }
  0xf3   :  { %5953 = vmatprep.mubr.bf16.mxu1 %v9422_v30  ;;  %v10621_v30 = vld [vmem:[%s12441_s0 + $0x34] ss:$100 sps:$4 sm:$0xff]  }
  0xf4   :  { %5154 = vmatpush1.bf16.msra.mxu0 %v8835_v19 }
  0xf5   :  { %5155 = vmatprep.subr.bf16.mxu0 %v8843_v3  ;;  %v8913_v3 = vld [vmem:[%s12440_s1 + $0x608] ss:$12 sps:$4 sm:$0xff]  }
  0xf8   :  { %5156 = vmatpush1.bf16.msra.mxu0 %v8841_v5  ;;  %v8917_v5 = vld [vmem:[%s12440_s1 + $0x6e0] ss:$12 sps:$4 sm:$0xff]  }
  0xf9   :  { %5157 = vmatprep.subr.bf16.mxu0 %v8849_v6  ;;  %v9431_v6 = vld [vmem:[%s12441_s0 + $0x18] ss:$100 sps:$4 sm:$0xff]  }
  0xfa   :  { %5954 = vmatmul.mubr.bf16.vlgmr.msra.gmra.mrb[60].mxu1 %v9423_v9  ;;  %v8924_v9 = vld [vmem:[%s12440_s1 + $0x6f8] ss:$12 sps:$4 sm:$0xff]  }
  0xfb   :  { %5961 = vmatprep.mubr.bf16.mxu1 %v9424_v13  ;;  %7745 = vmatpush3.bf16.msra.mxu1 %v8861_v7  ;;  %v8910_v7 = vld [vmem:[%s12440_s1 + $0x9f4] ss:$12 sps:$4 sm:$0xff]   ;;  %v8916_v13 = vld [vmem:[%s12440_s1 + $0xa0c] ss:$12 sps:$4 sm:$0xff]  }
  0xfc   :  { %5158 = vmatpush1.bf16.msra.mxu0 %v8847_v36  ;;  %7746 = vmatprep.subr.bf16.mxu1 %v8865_v8  ;;  %v8903_v36 = vld [vmem:[%s12440_s1 + $0x9d8] ss:$12 sps:$4 sm:$0xff]   ;;  %v8918_v8 = vld [vmem:[%s12440_s1 + $0x620] ss:$12 sps:$4 sm:$0xff]  }
  0xfd   :  { %5159 = vmatprep.subr.bf16.mxu0 %v8853_v28  ;;  %v9432_v28 = vld [vmem:[%s12441_s0 + $0xe4] ss:$100 sps:$4 sm:$0xff]  }
  0xff   :  { %7747 = vmatpush3.bf16.msra.mxu1 %v8866_v42  ;;  %v8930_v42 = vld [vmem:[%s12440_s1 + $0x710] ss:$12 sps:$4 sm:$0xff]  }
 0x100   :  { %5160 = vmatpush1.bf16.msra.mxu0 %v8851_v10  ;;  %7748 = vmatprep.subr.bf16.mxu1 %v8870_v16  ;;  %v8908_v10 = vld [vmem:[%s12440_s1 + $0x9f0] ss:$12 sps:$4 sm:$0xff]   ;;  %v8914_v16 = vld [vmem:[%s12440_s1 + $0xa08] ss:$12 sps:$4 sm:$0xff]  }
 0x101   :  { %5210 = vmatprep.subr.bf16.mxu0 %v8859_v15  ;;  %v8926_v15 = vld [vmem:[%s12440_s1 + $0x638] ss:$12 sps:$4 sm:$0xff]  }
 0x102   :  { %5962 = vmatmul.mubr.bf16.gmra.mrb[64].mxu1 %v9425_v25  ;;  %v8936_v25 = vld [vmem:[%s12440_s1 + $0x728] ss:$12 sps:$4 sm:$0xff]  }
 0x103   :  { %5162 = vmatmul.mubr.bf16.vlgmr.msra.gmra.mrb[0].mxu0 %v10446_v14  ;;  %5969 = vmatprep.mubr.bf16.mxu1 %v9426_v26  ;;  %v8929_v26 = vld [vmem:[%s12440_s1 + $0xa3c] ss:$12 sps:$4 sm:$0xff]  }
 0x104   :  { %5211 = vmatpush1.bf16.msra.mxu0 %v8857_v48  ;;  %7749 = vmatpush3.bf16.msra.mxu1 %v8871_v20  ;;  %v9433_v48 = vld [vmem:[%s12441_s0 + $0xe0] ss:$100 sps:$4 sm:$0xff]  }
 0x105   :  { %5212 = vmatprep.subr.bf16.mxu0 %v8864_v17  ;;  %7750 = vmatprep.subr.bf16.mxu1 %v8875_v21  ;;  %v9434_v17 = vld [vmem:[%s12441_s0 + $0x1ac] ss:$100 sps:$4 sm:$0xff]  }
 0x106   :  { %5171 = vmatprep.mubr.bf16.mxu0 %v10472_v23  ;;  %v8923_v20 = vld [vmem:[%s12440_s1 + $0xa24] ss:$12 sps:$4 sm:$0xff]  }
 0x107   :  { %v8931_v21 = vld [vmem:[%s12440_s1 + $0x650] ss:$12 sps:$4 sm:$0xff]  }
 0x108   :  { %5213 = vmatpush1.bf16.msra.mxu0 %v8862_v54  ;;  %7751 = vmatpush3.bf16.msra.mxu1 %v8876_v27  ;;  %v8921_v54 = vld [vmem:[%s12440_s1 + $0xa20] ss:$12 sps:$4 sm:$0xff]  }
 0x109   :  { %5214 = vmatprep.subr.bf16.mxu0 %v8869_v60  ;;  %7752 = vmatprep.subr.bf16.mxu1 %v8880_v33  ;;  %v8938_v60 = vld [vmem:[%s12440_s1 + $0x668] ss:$12 sps:$4 sm:$0xff]   ;;  %v8942_v27 = vld [vmem:[%s12440_s1 + $0x740] ss:$12 sps:$4 sm:$0xff]   ;;  %v8927_v33 = vld [vmem:[%s12440_s1 + $0xa38] ss:$12 sps:$4 sm:$0xff]  }
 0x10a   :  { %5970 = vmatmul.mubr.bf16.gmra.mrb[68].mxu1 %v9427_v39  ;;  %v8950_v39 = vld [vmem:[%s12440_s1 + $0x758] ss:$12 sps:$4 sm:$0xff]  }
 0x10b   :  { %5172 = vmatmul.mubr.bf16.gmra.mrb[4].mxu0 %v10503_v37  ;;  %5977 = vmatprep.mubr.bf16.mxu1 %v9428_v41  ;;  %v8941_v41 = vld [vmem:[%s12440_s1 + $0xa6c] ss:$12 sps:$4 sm:$0xff]  }
 0x10c   :  { %5215 = vmatpush1.bf16.msra.mxu0 %v8867_v31  ;;  %7753 = vmatpush3.bf16.msra.mxu1 %v8881_v29  ;;  %v9435_v31 = vld [vmem:[%s12441_s0 + $0x1a8] ss:$100 sps:$4 sm:$0xff]   ;;  %v8935_v29 = vld [vmem:[%s12440_s1 + $0xa54] ss:$12 sps:$4 sm:$0xff]  }
 0x10d   :  { %5216 = vmatprep.subr.bf16.mxu0 %v8874_v34  ;;  %7754 = vmatprep.subr.bf16.mxu1 %v8885_v35  ;;  %v9436_v34 = vld [vmem:[%s12441_s0 + $0x274] ss:$100 sps:$4 sm:$0xff]   ;;  %v8943_v35 = vld [vmem:[%s12440_s1 + $0x680] ss:$12 sps:$4 sm:$0xff]  }
 0x10e   :  { %5181 = vmatprep.mubr.bf16.mxu0 %v10514_v38 }
 0x110   :  { %5217 = vmatpush1.bf16.msra.mxu0 %v8872_v40  ;;  %7755 = vmatpush3.bf16.msra.mxu1 %v8886_v46  ;;  %v8933_v40 = vld [vmem:[%s12440_s1 + $0xa50] ss:$12 sps:$4 sm:$0xff]  }
 0x111   :  { %5218 = vmatprep.subr.bf16.mxu0 %v8879_v44  ;;  %7756 = vmatprep.subr.bf16.mxu1 %v8890_v49  ;;  %v8951_v44 = vld [vmem:[%s12440_s1 + $0x698] ss:$12 sps:$4 sm:$0xff]   ;;  %v8955_v46 = vld [vmem:[%s12440_s1 + $0x770] ss:$12 sps:$4 sm:$0xff]   ;;  %v8939_v49 = vld [vmem:[%s12440_s1 + $0xa68] ss:$12 sps:$4 sm:$0xff]  }
 0x112   :  { %5978 = vmatmul.mubr.bf16.gmra.mrb[72].mxu1 %v9429_v56  ;;  %v10734_v56 = vld [vmem:[%s12441_s0 + $0x30] ss:$100 sps:$4 sm:$0xff]  }
 0x113   :  { %5182 = vmatmul.mubr.bf16.gmra.mrb[8].mxu0 %v10542_v43  ;;  %5985 = vmatprep.mubr.bf16.mxu1 %v9841_v53  ;;  %v124_v53 = vld [vmem:[%s12441_s0 + $0x348] sm:$0xff] }
 0x114   :  { %5219 = vmatpush1.bf16.msra.mxu0 %v8877_v47  ;;  %7757 = vmatpush3.bf16.msra.mxu1 %v8891_v51  ;;  %v10590_v24 = vcombine.high %v124_v53, %v124_v53  ;;  %v10610_v19 = vcombine.low %v124_v53, %v124_v53  ;;  %v9437_v47 = vld [vmem:[%s12441_s0 + $0x270] ss:$100 sps:$4 sm:$0xff]  }
 0x115   :  { %5220 = vmatprep.subr.bf16.mxu0 %v8884_v50  ;;  %7758 = vmatprep.subr.bf16.mxu1 %v8895_v12  ;;  %v8949_v50 = vld [vmem:[%s12440_s1 + $0xa84] ss:$12 sps:$4 sm:$0xff]   ;;  %v8966_v12 = vld [vmem:[%s12440_s1 + $0x848] ss:$12 sps:$4 sm:$0xff]  }
 0x116   :  { %5191 = vmatprep.mubr.bf16.mxu0 %v10556_v52  ;;  %v8956_v51 = vld [vmem:[%s12440_s1 + $0x6b0] ss:$12 sps:$4 sm:$0xff]   ;;  %v8959_v53 = vld [vmem:[%s12440_s1 + $0xab4] ss:$12 sps:$4 sm:$0xff]  }
 0x118   :  { %5221 = vmatpush1.bf16.msra.mxu0 %v8882_v57  ;;  %7759 = vmatpush3.bf16.msra.mxu1 %v8896_v61  ;;  %v8954_v57 = vld [vmem:[%s12440_s1 + $0xa9c] ss:$12 sps:$4 sm:$0xff]   ;;  %v8952_v61 = vld [vmem:[%s12440_s1 + $0xa98] ss:$12 sps:$4 sm:$0xff]  }
 0x119   :  { %5222 = vmatprep.subr.bf16.mxu0 %v8889_v59  ;;  %7790 = vmatprep.subr.bf16.mxu1 %v8911_v58  ;;  %v10745_v59 = vld [vmem:[%s12441_s0 + $0xfc] ss:$100 sps:$4 sm:$0xff]   ;;  %v9438_v58 = vld [vmem:[%s12441_s0 + $0x24] ss:$100 sps:$4 sm:$0xff]  }
 0x11a   :  { %5986 = vmatmul.mubr.bf16.gmra.mrb[76].mxu1 %v9847_v55  ;;  %v8899_v55 = vld [vmem:[%s12440_s1 + $0x9c0] ss:$12 sps:$4 sm:$0xff]  }
 0x11b   :  { %5192 = vmatmul.mubr.bf16.gmra.mrb[12].mxu0 %v10582_v2  ;;  %6025 = vmatprep.mubr.bf16.mxu1 %v9430_v0  ;;  %v8971_v0 = vld [vmem:[%s12440_s1 + $0x860] ss:$12 sps:$4 sm:$0xff]  }
 0x11c   :  { %5223 = vmatpush1.bf16.msra.mxu0 %v8887_v18  ;;  %5201 = vmatprep.mubr.bf16.mxu0 %v10590_v24  ;;  %v10765_v18 = vld [vmem:[%s12441_s0 + $0xf8] ss:$100 sps:$4 sm:$0xff]  }
 0x11d   :  { %5224 = vmatprep.subr.bf16.mxu0 %v8894_v62  ;;  %v8962_v62 = vld [vmem:[%s12440_s1 + $0xacc] ss:$12 sps:$4 sm:$0xff]  }
 0x120   :  { %5225 = vmatpush1.bf16.msra.mxu0 %v8892_v63  ;;  %v8967_v63 = vld [vmem:[%s12440_s1 + $0x788] ss:$12 sps:$4 sm:$0xff]  }
 0x121   :  { %5226 = vmatprep.subr.bf16.mxu0 %v8901_v1  ;;  %v10779_v1 = vld [vmem:[%s12441_s0 + $0x1c4] ss:$100 sps:$4 sm:$0xff]  }
 0x122   :  { %6026 = vmatmul.mubr.bf16.vlgmr.msra.gmra.mrb[80].mxu1 %v9431_v6  ;;  %v8972_v6 = vld [vmem:[%s12440_s1 + $0x7a0] ss:$12 sps:$4 sm:$0xff]  }
 0x123   :  { %5202 = vmatmul.mubr.bf16.gmra.mrb[16].mxu0 %v10610_v19  ;;  %6033 = vmatprep.mubr.bf16.mxu1 %v9432_v28  ;;  %v10804_v28 = vld [vmem:[%s12441_s0 + $0x1c0] ss:$100 sps:$4 sm:$0xff]  }
 0x124   :  { %5227 = vmatpush1.bf16.msra.mxu0 %v8899_v55  ;;  %7791 = vmatpush3.bf16.msra.mxu1 %v8913_v3  ;;  %v9439_v55 = vld [vmem:[%s12441_s0 + $0x20] ss:$100 sps:$4 sm:$0xff]   ;;  %v9440_v3 = vld [vmem:[%s12441_s0 + $0xec] ss:$100 sps:$4 sm:$0xff]  }
 0x125   :  { %5228 = vmatprep.subr.bf16.mxu0 %v8905_v11  ;;  %7792 = vmatprep.subr.bf16.mxu1 %v8917_v5  ;;  %v8960_v11 = vld [vmem:[%s12440_s1 + $0xac8] ss:$12 sps:$4 sm:$0xff]   ;;  %v8965_v5 = vld [vmem:[%s12440_s1 + $0xae4] ss:$12 sps:$4 sm:$0xff]  }
 0x126   :  { %5242 = vmatprep.mubr.bf16.mxu0 %v10621_v30 }
 0x128   :  { %5229 = vmatpush1.bf16.msra.mxu0 %v8903_v36  ;;  %7793 = vmatpush3.bf16.msra.mxu1 %v8918_v8  ;;  %v8976_v36 = vld [vmem:[%s12440_s1 + $0x878] ss:$12 sps:$4 sm:$0xff]   ;;  %v8970_v8 = vld [vmem:[%s12440_s1 + $0xafc] ss:$12 sps:$4 sm:$0xff]  }
 0x129   :  { %5230 = vmatprep.subr.bf16.mxu0 %v8910_v7  ;;  %7794 = vmatprep.subr.bf16.mxu1 %v8924_v9  ;;  %v8963_v7 = vld [vmem:[%s12440_s1 + $0xae0] ss:$12 sps:$4 sm:$0xff]   ;;  %v8977_v9 = vld [vmem:[%s12440_s1 + $0x7b8] ss:$12 sps:$4 sm:$0xff]  }
 0x12a   :  { %6034 = vmatmul.mubr.bf16.gmra.mrb[84].mxu1 %v9433_v48  ;;  %v8975_v48 = vld [vmem:[%s12440_s1 + $0xb14] ss:$12 sps:$4 sm:$0xff]  }
 0x12b   :  { %6041 = vmatprep.mubr.bf16.mxu1 %v9434_v17  ;;  %v8982_v17 = vld [vmem:[%s12440_s1 + $0x7d0] ss:$12 sps:$4 sm:$0xff]  }
 0x12c   :  { %5231 = vmatpush1.bf16.msra.mxu0 %v8908_v10  ;;  %7795 = vmatpush3.bf16.msra.mxu1 %v8926_v15  ;;  %v8981_v10 = vld [vmem:[%s12440_s1 + $0x890] ss:$12 sps:$4 sm:$0xff]  }
 0x12d   :  { %5232 = vmatprep.subr.bf16.mxu0 %v8916_v13  ;;  %7796 = vmatprep.subr.bf16.mxu1 %v8930_v42  ;;  %v8968_v13 = vld [vmem:[%s12440_s1 + $0xaf8] ss:$12 sps:$4 sm:$0xff]   ;;  %v10824_v15 = vld [vmem:[%s12441_s0 + $0x28c] ss:$100 sps:$4 sm:$0xff]  }
 0x12e   :  { %v9441_v42 = vld [vmem:[%s12441_s0 + $0xe8] ss:$100 sps:$4 sm:$0xff]  }
 0x130   :  { %5233 = vmatpush1.bf16.msra.mxu0 %v8914_v16  ;;  %7797 = vmatpush3.bf16.msra.mxu1 %v8931_v21  ;;  %v9442_v16 = vld [vmem:[%s12441_s0 + $0x1b4] ss:$100 sps:$4 sm:$0xff]  }
 0x131   :  { %5234 = vmatprep.subr.bf16.mxu0 %v8923_v20  ;;  %7798 = vmatprep.subr.bf16.mxu1 %v8936_v25  ;;  %v8988_v20 = vld [vmem:[%s12440_s1 + $0x8a8] ss:$12 sps:$4 sm:$0xff]   ;;  %v8973_v25 = vld [vmem:[%s12440_s1 + $0xb10] ss:$12 sps:$4 sm:$0xff]  }
 0x132   :  { %6042 = vmatmul.mubr.bf16.gmra.mrb[88].mxu1 %v9435_v31  ;;  %v8980_v31 = vld [vmem:[%s12440_s1 + $0xb2c] ss:$12 sps:$4 sm:$0xff]  }
 0x133   :  { %6049 = vmatprep.mubr.bf16.mxu1 %v9436_v34 }
 0x134   :  { %5235 = vmatpush1.bf16.msra.mxu0 %v8921_v54  ;;  %7799 = vmatpush3.bf16.msra.mxu1 %v8938_v60  ;;  %v10851_v54 = vld [vmem:[%s12441_s0 + $0x288] ss:$100 sps:$4 sm:$0xff]   ;;  %v125_v60 = vld [vmem:[%s12441_s0 + $0x350] sm:$0xff] }
 0x135   :  { %5236 = vmatprep.subr.bf16.mxu0 %v8929_v26  ;;  %7800 = vmatprep.subr.bf16.mxu1 %v8942_v27 }
 0x138   :  { %5237 = vmatpush1.bf16.msra.mxu0 %v8927_v33  ;;  %7801 = vmatpush3.bf16.msra.mxu1 %v8943_v35  ;;  %v8990_v33 = vld [vmem:[%s12440_s1 + $0x7e8] ss:$12 sps:$4 sm:$0xff]   ;;  %v10871_v35 = vcombine.high %v125_v60, %v125_v60 }
 0x139   :  { %5238 = vmatprep.subr.bf16.mxu0 %v8935_v29  ;;  %7802 = vmatprep.subr.bf16.mxu1 %v8950_v39  ;;  %v8994_v29 = vld [vmem:[%s12440_s1 + $0x8c0] ss:$12 sps:$4 sm:$0xff]   ;;  %v9443_v39 = vld [vmem:[%s12441_s0 + $0x1b0] ss:$100 sps:$4 sm:$0xff]  }
 0x13a   :  { %6050 = vmatmul.mubr.bf16.gmra.mrb[92].mxu1 %v9437_v47 }
 0x13b   :  { %6057 = vmatprep.mubr.bf16.mxu1 %v10110_v22  ;;  %v8947_v22 = vld [vmem:[%s12440_s1 + $0xa80] ss:$12 sps:$4 sm:$0xff]  }
 0x13c   :  { %5239 = vmatpush1.bf16.msra.mxu0 %v8933_v40  ;;  %7803 = vmatpush3.bf16.msra.mxu1 %v8951_v44  ;;  %v8978_v40 = vld [vmem:[%s12440_s1 + $0xb28] ss:$12 sps:$4 sm:$0xff]   ;;  %v8987_v44 = vld [vmem:[%s12440_s1 + $0xb44] ss:$12 sps:$4 sm:$0xff]  }
 0x13d   :  { %5240 = vmatprep.subr.bf16.mxu0 %v8941_v41  ;;  %7804 = vmatprep.subr.bf16.mxu1 %v8955_v46  ;;  %v9444_v41 = vld [vmem:[%s12441_s0 + $0x27c] ss:$100 sps:$4 sm:$0xff]  }
 0x13e   :  { %v8995_v46 = vld [vmem:[%s12440_s1 + $0x800] ss:$12 sps:$4 sm:$0xff]  }
 0x140   :  { %5241 = vmatpush1.bf16.msra.mxu0 %v8939_v49  ;;  %7805 = vmatpush3.bf16.msra.mxu1 %v8956_v51  ;;  %v9001_v49 = vld [vmem:[%s12440_s1 + $0x8d8] ss:$12 sps:$4 sm:$0xff]   ;;  %v8985_v51 = vld [vmem:[%s12440_s1 + $0xb40] ss:$12 sps:$4 sm:$0xff]  }
 0x141   :  { %5291 = vmatprep.subr.bf16.mxu0 %v8949_v50  ;;  %7836 = vmatprep.subr.bf16.mxu1 %v8966_v12  ;;  %v10900_v12 = vcombine.low %v125_v60, %v125_v60  ;;  %v9015_v60 = vld [vmem:[%s12440_s1 + $0xbb8] ss:$12 sps:$4 sm:$0xff]  }
 0x142   :  { %6058 = vmatmul.mubr.bf16.gmra.mrb[96].mxu1 %v10132_v32  ;;  %v8957_v32 = vld [vmem:[%s12440_s1 + $0xab0] ss:$12 sps:$4 sm:$0xff]  }
 0x143   :  { %5243 = vmatmul.mubr.bf16.vlgmr.msra.gmra.mrb[0].mxu0 %v10734_v56  ;;  %6097 = vmatprep.mubr.bf16.mxu1 %v9438_v58 }
 0x144   :  { %5292 = vmatpush1.bf16.msra.mxu0 %v8947_v22  ;;  %5252 = vmatprep.mubr.bf16.mxu0 %v10745_v59 }
 0x145   :  { %5293 = vmatprep.subr.bf16.mxu0 %v8954_v57  ;;  %v8993_v57 = vld [vmem:[%s12440_s1 + $0xb5c] ss:$12 sps:$4 sm:$0xff]  }
 0x148   :  { %5294 = vmatpush1.bf16.msra.mxu0 %v8952_v61  ;;  %v9003_v61 = vld [vmem:[%s12440_s1 + $0x818] ss:$12 sps:$4 sm:$0xff]  }
 0x149   :  { %5295 = vmatprep.subr.bf16.mxu0 %v8959_v53  ;;  %v9007_v53 = vld [vmem:[%s12440_s1 + $0x8f0] ss:$12 sps:$4 sm:$0xff]  }
 0x14a   :  { %6098 = vmatmul.mubr.bf16.vlgmr.msra.gmra.mrb[100].mxu1 %v9439_v55  ;;  %v9008_v55 = vld [vmem:[%s12440_s1 + $0x830] ss:$12 sps:$4 sm:$0xff]  }
 0x14b   :  { %5253 = vmatmul.mubr.bf16.gmra.mrb[4].mxu0 %v10765_v18  ;;  %6105 = vmatprep.mubr.bf16.mxu1 %v9440_v3  ;;  %v9022_v3 = vld [vmem:[%s12440_s1 + $0x9c8] ss:$12 sps:$4 sm:$0xff]  }
 0x14c   :  { %5296 = vmatpush1.bf16.msra.mxu0 %v8957_v32  ;;  %7837 = vmatpush3.bf16.msra.mxu1 %v8967_v63  ;;  %v10918_v32 = vld [vmem:[%s12441_s0 + $0x3c] ss:$100 sps:$4 sm:$0xff]   ;;  %v8991_v63 = vld [vmem:[%s12440_s1 + $0xb58] ss:$12 sps:$4 sm:$0xff]  }
 0x14d   :  { %5297 = vmatprep.subr.bf16.mxu0 %v8962_v62  ;;  %7838 = vmatprep.subr.bf16.mxu1 %v8971_v0  ;;  %v9445_v62 = vld [vmem:[%s12441_s0 + $0x278] ss:$100 sps:$4 sm:$0xff]   ;;  %v9000_v0 = vld [vmem:[%s12440_s1 + $0xb74] ss:$12 sps:$4 sm:$0xff]  }
 0x14e   :  { %5262 = vmatprep.mubr.bf16.mxu0 %v10779_v1 }
 0x150   :  { %5298 = vmatpush1.bf16.msra.mxu0 %v8960_v11  ;;  %7839 = vmatpush3.bf16.msra.mxu1 %v8972_v6 }
 0x151   :  { %5299 = vmatprep.subr.bf16.mxu0 %v8965_v5  ;;  %7840 = vmatprep.subr.bf16.mxu1 %v8976_v36  ;;  %v8998_v5 = vld [vmem:[%s12440_s1 + $0xb70] ss:$12 sps:$4 sm:$0xff]  }
 0x152   :  { %6106 = vmatmul.mubr.bf16.gmra.mrb[104].mxu1 %v9441_v42 }
 0x153   :  { %5263 = vmatmul.mubr.bf16.gmra.mrb[8].mxu0 %v10804_v28  ;;  %6113 = vmatprep.mubr.bf16.mxu1 %v9442_v16  ;;  %v9017_v16 = vld [vmem:[%s12440_s1 + $0xbbc] ss:$12 sps:$4 sm:$0xff]  }
 0x154   :  { %5300 = vmatpush1.bf16.msra.mxu0 %v8963_v7  ;;  %7841 = vmatpush3.bf16.msra.mxu1 %v8977_v9  ;;  %v9006_v7 = vld [vmem:[%s12440_s1 + $0xb8c] ss:$12 sps:$4 sm:$0xff]  }
 0x155   :  { %5301 = vmatprep.subr.bf16.mxu0 %v8970_v8  ;;  %v10842_v21 = vpop.f32.mrb[0].mxu1  ;;  %7842 = vmatprep.subr.bf16.mxu1 %v8981_v10  ;;  %v9004_v8 = vld [vmem:[%s12440_s1 + $0xb88] ss:$12 sps:$4 sm:$0xff]   ;;  %v9446_v9 = vld [vmem:[%s12441_s0 + $0x2c] ss:$100 sps:$4 sm:$0xff]  }
 0x156   :  { %5272 = vmatprep.mubr.bf16.mxu0 %v10824_v15  ;;  %v10853_v26 = vpop.f32.mrb[1].mxu1  ;;  %v9013_v10 = vld [vmem:[%s12440_s1 + $0xba4] ss:$12 sps:$4 sm:$0xff]  }
 0x157   :  { %v10858_v27 = vpop.f32.mrb[2].mxu1 }
 0x158   :  { %5302 = vmatpush1.bf16.msra.mxu0 %v8968_v13  ;;  %v10866_v34 = vpop.f32.mrb[3].mxu1  ;;  %7843 = vmatpush3.bf16.msra.mxu1 %v8982_v17 }
 0x159   :  { %5303 = vmatprep.subr.bf16.mxu0 %v8975_v48  ;;  %7844 = vmatprep.subr.bf16.mxu1 %v8988_v20  ;;  %v9024_v20 = vld [vmem:[%s12440_s1 + $0x908] ss:$12 sps:$4 sm:$0xff]  }
 0x15a   :  { %6114 = vmatmul.mubr.bf16.gmra.mrb[108].mxu1 %v9443_v39 }
 0x15b   :  { %5273 = vmatmul.mubr.bf16.gmra.mrb[12].mxu0 %v10851_v54  ;;  %6121 = vmatprep.mubr.bf16.mxu1 %v9444_v41 }
 0x15c   :  { %5304 = vmatpush1.bf16.msra.mxu0 %v8973_v25  ;;  %7845 = vmatpush3.bf16.msra.mxu1 %v8990_v33  ;;  %v9028_v25 = vld [vmem:[%s12440_s1 + $0x9e0] ss:$12 sps:$4 sm:$0xff]  }
 0x15d   :  { %5305 = vmatprep.subr.bf16.mxu0 %v8980_v31  ;;  %v10889_v47 = vpop.f32.mrb[4].mxu1  ;;  %7846 = vmatprep.subr.bf16.mxu1 %v8994_v29  ;;  %v9021_v31 = vld [vmem:[%s12440_s1 + $0xbd4] ss:$12 sps:$4 sm:$0xff]  }
 0x15e   :  { %5282 = vmatprep.mubr.bf16.mxu0 %v10871_v35  ;;  %v10895_v50 = vpop.f32.mrb[5].mxu1  ;;  %v9029_v33 = vld [vmem:[%s12440_s1 + $0x920] ss:$12 sps:$4 sm:$0xff]  }
 0x15f   :  { %v10902_v22 = vpop.f32.mrb[6].mxu1 }
 0x160   :  { %5306 = vmatpush1.bf16.msra.mxu0 %v8978_v40  ;;  %v10910_v58 = vpop.f32.mrb[7].mxu1  ;;  %7847 = vmatpush3.bf16.msra.mxu1 %v8995_v46  ;;  %v9019_v40 = vld [vmem:[%s12440_s1 + $0xbd0] ss:$12 sps:$4 sm:$0xff]   ;;  %v9037_v46 = vld [vmem:[%s12440_s1 + $0x938] ss:$12 sps:$4 sm:$0xff]  }
 0x161   :  { %5307 = vmatprep.subr.bf16.mxu0 %v8987_v44  ;;  %7848 = vmatprep.subr.bf16.mxu1 %v9001_v49  ;;  %v9027_v44 = vld [vmem:[%s12440_s1 + $0xbec] ss:$12 sps:$4 sm:$0xff]   ;;  %v9041_v49 = vld [vmem:[%s12440_s1 + $0xa10] ss:$12 sps:$4 sm:$0xff]  }
 0x162   :  { %6122 = vmatmul.mubr.bf16.gmra.mrb[112].mxu1 %v9445_v62  ;;  %v9033_v62 = vld [vmem:[%s12440_s1 + $0xc00] ss:$12 sps:$4 sm:$0xff]  }
 0x163   :  { %5283 = vmatmul.mubr.bf16.gmra.mrb[16].mxu0 %v10900_v12  ;;  %6129 = vmatprep.mubr.bf16.mxu1 %v10331_v45 }
 0x164   :  { %5308 = vmatpush1.bf16.msra.mxu0 %v8985_v51  ;;  %7849 = vmatpush3.bf16.msra.mxu1 %v9003_v61  ;;  %v9025_v51 = vld [vmem:[%s12440_s1 + $0xbe8] ss:$12 sps:$4 sm:$0xff]   ;;  %v11023_v61 = vld [vmem:[%s12441_s0 + $0x38] ss:$100 sps:$4 sm:$0xff]  }
 0x165   :  { %5309 = vmatprep.subr.bf16.mxu0 %v8993_v57  ;;  %v10934_v11 = vpop.f32.mrb[8].mxu1  ;;  %7850 = vmatprep.subr.bf16.mxu1 %v9007_v53  ;;  %v9035_v57 = vld [vmem:[%s12440_s1 + $0xc04] ss:$12 sps:$4 sm:$0xff]  }
 0x166   :  { %5323 = vmatprep.mubr.bf16.mxu0 %v10918_v32  ;;  %v10940_v45 = vpop.f32.mrb[9].mxu1 }
 0x167   :  { %v10945_v6 = vpop.f32.mrb[10].mxu1 }
 0x168   :  { %5310 = vmatpush1.bf16.msra.mxu0 %v8991_v63  ;;  %v10947_v36 = vpop.f32.mrb[11].mxu1  ;;  %7851 = vmatpush3.bf16.msra.mxu1 %v9008_v55  ;;  %v9040_v63 = vld [vmem:[%s12440_s1 + $0xc1c] ss:$12 sps:$4 sm:$0xff]  }
 0x169   :  { %5311 = vmatprep.subr.bf16.mxu0 %v9000_v0  ;;  %7882 = vmatprep.subr.bf16.mxu1 %v9022_v3 }
 0x16a   :  { %6130 = vmatmul.mubr.bf16.gmra.mrb[116].mxu1 %v10351_v4  ;;  %v9011_v4 = vld [vmem:[%s12440_s1 + $0xba0] ss:$12 sps:$4 sm:$0xff]  }
 0x16b   :  { %6169 = vmatprep.mubr.bf16.mxu1 %v9446_v9 }
 0x16c   :  { %5312 = vmatpush1.bf16.msra.mxu0 %v8998_v5  ;;  %v9047_v5 = vld [vmem:[%s12440_s1 + $0x968] ss:$12 sps:$4 sm:$0xff]  }
 0x16d   :  { %5313 = vmatprep.subr.bf16.mxu0 %v9006_v7  ;;  %v10962_v13 = vpop.f32.mrb[12].mxu1 }
 0x16e   :  { %v10964_v42 = vpop.f32.mrb[13].mxu1 }
 0x16f   :  { %v10969_v48 = vpop.f32.mrb[14].mxu1 }
 0x170   :  { %5314 = vmatpush1.bf16.msra.mxu0 %v9004_v8  ;;  %v10974_v17 = vpop.f32.mrb[15].mxu1  ;;  %v9051_v8 = vld [vmem:[%s12440_s1 + $0xa40] ss:$12 sps:$4 sm:$0xff]  }
 0x171   :  { %5315 = vmatprep.subr.bf16.mxu0 %v9013_v10  ;;  %v11050_v10 = vld [vmem:[%s12441_s0 + $0x104] ss:$100 sps:$4 sm:$0xff]  }
 0x172   :  { %6170 = vmatmul.mubr.bf16.vlgmr.msra.gmra.mrb[120].mxu1 %v10446_v14  ;;  %v9036_v14 = vld [vmem:[%s12440_s1 + $0x9f8] ss:$12 sps:$4 sm:$0xff]  }
 0x173   :  { %6177 = vmatprep.mubr.bf16.mxu1 %v10472_v23  ;;  %7883 = vmatpush3.bf16.msra.mxu1 %v9024_v20  ;;  %v9052_v20 = vld [vmem:[%s12440_s1 + $0x980] ss:$12 sps:$4 sm:$0xff]  }
 0x174   :  { %5316 = vmatpush1.bf16.msra.mxu0 %v9011_v4  ;;  %7884 = vmatprep.subr.bf16.mxu1 %v9028_v25  ;;  %v9038_v4 = vld [vmem:[%s12440_s1 + $0xc18] ss:$12 sps:$4 sm:$0xff]  }
 0x175   :  { %5317 = vmatprep.subr.bf16.mxu0 %v9017_v16  ;;  %v10996_v29 = vpop.f32.mrb[16].mxu1  ;;  %v9045_v16 = vld [vmem:[%s12440_s1 + $0xc34] ss:$12 sps:$4 sm:$0xff]   ;;  %v9056_v25 = vld [vmem:[%s12440_s1 + $0xa58] ss:$12 sps:$4 sm:$0xff]  }
 0x176   :  { %v10998_v39 = vpop.f32.mrb[17].mxu1 }
 0x177   :  { %v4883_v23 = vpop.f32.mrb[18].mxu1  ;;  %7885 = vmatpush3.bf16.msra.mxu1 %v9029_v33  ;;  %v11077_v33 = vld [vmem:[%s12441_s0 + $0x100] ss:$100 sps:$4 sm:$0xff]  }
 0x178   :  { %5318 = vmatpush1.bf16.msra.mxu0 %v9015_v60  ;;  %v4884_v41 = vpop.f32.mrb[19].mxu1  ;;  %7886 = vmatprep.subr.bf16.mxu1 %v9036_v14  ;;  %v9050_v60 = vld [vmem:[%s12440_s1 + $0xc4c] ss:$12 sps:$4 sm:$0xff]  }
 0x179   :  { %5319 = vmatprep.subr.bf16.mxu0 %v9021_v31  ;;  %v9061_v41 = vld [vmem:[%s12440_s1 + $0xa70] ss:$12 sps:$4 sm:$0xff]  }
 0x17a   :  { %6178 = vmatmul.mubr.bf16.gmra.mrb[124].mxu1 %v10503_v37  ;;  %v9042_v37 = vld [vmem:[%s12440_s1 + $0x950] ss:$12 sps:$4 sm:$0xff]  }
 0x17b   :  { %6185 = vmatprep.mubr.bf16.mxu1 %v10514_v38  ;;  %7887 = vmatpush3.bf16.msra.mxu1 %v9037_v46  ;;  %v9046_v38 = vld [vmem:[%s12440_s1 + $0xa28] ss:$12 sps:$4 sm:$0xff]  }
 0x17c   :  { %5320 = vmatpush1.bf16.msra.mxu0 %v9019_v40  ;;  %7888 = vmatprep.subr.bf16.mxu1 %v9041_v49  ;;  %v9057_v40 = vld [vmem:[%s12440_s1 + $0x998] ss:$12 sps:$4 sm:$0xff]   ;;  %v11092_v49 = vld [vmem:[%s12441_s0 + $0x1cc] ss:$100 sps:$4 sm:$0xff]  }
 0x17d   :  { %5321 = vmatprep.subr.bf16.mxu0 %v9027_v44  ;;  %v7622_v53 = vpop.f32.mrb[20].mxu1 }
 0x17e   :  { %v7623_v0 = vpop.f32.mrb[21].mxu1 }
 0x17f   :  { %v11037_v55 = vadd.f32 %v7623_v0, %v7622_v53  ;;  %v7625_v3 = vpop.f32.mrb[22].mxu1  ;;  %7889 = vmatpush3.bf16.msra.mxu1 %v9042_v37  ;;  %v9062_v37 = vld [vmem:[%s12440_s1 + $0x9b0] ss:$12 sps:$4 sm:$0xff]  }
 0x180   :  { %5322 = vmatpush1.bf16.msra.mxu0 %v9025_v51  ;;  %v7626_v7 = vpop.f32.mrb[23].mxu1  ;;  %7890 = vmatprep.subr.bf16.mxu1 %v9046_v38  ;;  %v9048_v51 = vld [vmem:[%s12440_s1 + $0xc48] ss:$12 sps:$4 sm:$0xff]  }
 0x181   :  { %5372 = vmatprep.subr.bf16.mxu0 %v9035_v57  ;;  %v11045_v9 = vadd.f32 %v7626_v7, %v7625_v3  ;;  %v9055_v57 = vld [vmem:[%s12440_s1 + $0xc64] ss:$12 sps:$4 sm:$0xff]   ;;  %v9074_v38 = vld [vmem:[%s12440_s1 + $0xb48] ss:$12 sps:$4 sm:$0xff]  }
 0x182   :  { %6186 = vmatmul.mubr.bf16.gmra.mrb[128].mxu1 %v10542_v43  ;;  %v9043_v43 = vld [vmem:[%s12440_s1 + $0xc30] ss:$12 sps:$4 sm:$0xff]   ;;  %v11126_v7 = vld [vmem:[%s12441_s0 + $0x294] ss:$100 sps:$4 sm:$0xff]  }
 0x183   :  { %5324 = vmatmul.mubr.bf16.vlgmr.msra.gmra.mrb[0].mxu0 %v11023_v61  ;;  %6193 = vmatprep.mubr.bf16.mxu1 %v10556_v52 }
 0x184   :  { %5373 = vmatpush1.bf16.msra.mxu0 %v9033_v62  ;;  %7891 = vmatpush3.bf16.msra.mxu1 %v9047_v5  ;;  %v9053_v62 = vld [vmem:[%s12440_s1 + $0xc60] ss:$12 sps:$4 sm:$0xff]  }
 0x185   :  { %5374 = vmatprep.subr.bf16.mxu0 %v9040_v63  ;;  %7892 = vmatprep.subr.bf16.mxu1 %v9051_v8  ;;  %v7628_v52 = vpop.f32.mrb[24].mxu1  ;;  %v9060_v63 = vld [vmem:[%s12440_s1 + $0xc7c] ss:$12 sps:$4 sm:$0xff]  }
 0x186   :  { %5333 = vmatprep.mubr.bf16.mxu0 %v11050_v10  ;;  %v7629_v31 = vpop.f32.mrb[25].mxu1 }
 0x187   :  { %v11079_v14 = vadd.f32 %v7629_v31, %v7628_v52  ;;  %v7631_v23 = vpop.f32.mrb[26].mxu1  ;;  %v126_v52 = vld [vmem:[%s12441_s0 + $0x358] sm:$0xff] }
 0x188   :  { %5375 = vmatpush1.bf16.msra.mxu0 %v9038_v4  ;;  %7893 = vmatpush3.bf16.msra.mxu1 %v9052_v20  ;;  %v7632_v44 = vpop.f32.mrb[27].mxu1  ;;  %v9058_v4 = vld [vmem:[%s12440_s1 + $0xc78] ss:$12 sps:$4 sm:$0xff]  }
 0x189   :  { %5376 = vmatprep.subr.bf16.mxu0 %v9045_v16  ;;  %7894 = vmatprep.subr.bf16.mxu1 %v9056_v25  ;;  %v11087_v46 = vadd.f32 %v7632_v44, %v7631_v23  ;;  %v9065_v16 = vld [vmem:[%s12440_s1 + $0xc94] ss:$12 sps:$4 sm:$0xff]  }
 0x18a   :  { %6194 = vmatmul.mubr.bf16.gmra.mrb[132].mxu1 %v10582_v2  ;;  %v9076_v23 = vld [vmem:[%s12440_s1 + $0xa88] ss:$12 sps:$4 sm:$0xff]   ;;  %v9080_v44 = vld [vmem:[%s12440_s1 + $0xb60] ss:$12 sps:$4 sm:$0xff]  }
 0x18b   :  { %5334 = vmatmul.mubr.bf16.gmra.mrb[4].mxu0 %v11077_v33  ;;  %6201 = vmatprep.mubr.bf16.mxu1 %v10590_v24  ;;  %v11113_v24 = vld [vmem:[%s12441_s0 + $0x1c8] ss:$100 sps:$4 sm:$0xff]  }
 0x18c   :  { %5377 = vmatpush1.bf16.msra.mxu0 %v9043_v43  ;;  %7895 = vmatpush3.bf16.msra.mxu1 %v9057_v40  ;;  %v9068_v43 = vld [vmem:[%s12440_s1 + $0xcac] ss:$12 sps:$4 sm:$0xff]  }
 0x18d   :  { %5378 = vmatprep.subr.bf16.mxu0 %v9050_v60  ;;  %7896 = vmatprep.subr.bf16.mxu1 %v9061_v41  ;;  %v7634_v2 = vpop.f32.mrb[28].mxu1 }
 0x18e   :  { %5343 = vmatprep.mubr.bf16.mxu0 %v11092_v49  ;;  %v7635_v53 = vpop.f32.mrb[29].mxu1 }
 0x18f   :  { %v11121_v0 = vadd.f32 %v7635_v53, %v7634_v2  ;;  %v7637_v3 = vpop.f32.mrb[30].mxu1  ;;  %v9081_v2 = vld [vmem:[%s12440_s1 + $0xaa0] ss:$12 sps:$4 sm:$0xff]  }
 0x190   :  { %5379 = vmatpush1.bf16.msra.mxu0 %v9048_v51  ;;  %7897 = vmatpush3.bf16.msra.mxu1 %v9062_v37  ;;  %v7638_v5 = vpop.f32.mrb[31].mxu1  ;;  %v11164_v51 = vcombine.high %v126_v52, %v126_v52  ;;  %v9073_v37 = vld [vmem:[%s12440_s1 + $0xcc4] ss:$12 sps:$4 sm:$0xff]  }
 0x191   :  { %5380 = vmatprep.subr.bf16.mxu0 %v9055_v57  ;;  %v11128_v8 = vadd.f32 %v7638_v5, %v7637_v3  ;;  %7928 = vmatprep.subr.bf16.mxu1 %v9074_v38  ;;  %v9066_v57 = vld [vmem:[%s12440_s1 + $0xca8] ss:$12 sps:$4 sm:$0xff]   ;;  %v9087_v38 = vld [vmem:[%s12440_s1 + $0xb78] ss:$12 sps:$4 sm:$0xff]  }
 0x192   :  { %6202 = vmatmul.mubr.bf16.gmra.mrb[136].mxu1 %v10610_v19  ;;  %v9063_v19 = vld [vmem:[%s12440_s1 + $0xc90] ss:$12 sps:$4 sm:$0xff]  }
 0x193   :  { %5344 = vmatmul.mubr.bf16.gmra.mrb[8].mxu0 %v11113_v24  ;;  %6241 = vmatprep.mubr.bf16.mxu1 %v10621_v30  ;;  %v11149_v30 = vld [vmem:[%s12441_s0 + $0x290] ss:$100 sps:$4 sm:$0xff]  }
 0x194   :  { %5381 = vmatpush1.bf16.msra.mxu0 %v9053_v62  ;;  %5353 = vmatprep.mubr.bf16.mxu0 %v11126_v7  ;;  %v11185_v62 = vcombine.low %v126_v52, %v126_v52  ;;  %v9094_v52 = vld [vmem:[%s12440_s1 + $0xad0] ss:$12 sps:$4 sm:$0xff]  }
 0x195   :  { %5382 = vmatprep.subr.bf16.mxu0 %v9060_v63  ;;  %v7640_v20 = vpop.f32.mrb[32].mxu1 }
 0x196   :  { %v7641_v25 = vpop.f32.mrb[33].mxu1 }
 0x197   :  { %v11154_v60 = vadd.f32 %v7641_v25, %v7640_v20  ;;  %v7643_v31 = vpop.f32.mrb[34].mxu1  ;;  %v11201_v20 = vld [vmem:[%s12441_s0 + $0x44] ss:$100 sps:$4 sm:$0xff]   ;;  %v9086_v25 = vld [vmem:[%s12440_s1 + $0xcf4] ss:$12 sps:$4 sm:$0xff]  }
 0x198   :  { %5383 = vmatpush1.bf16.msra.mxu0 %v9058_v4  ;;  %v7644_v40 = vpop.f32.mrb[35].mxu1  ;;  %v9079_v4 = vld [vmem:[%s12440_s1 + $0xcdc] ss:$12 sps:$4 sm:$0xff]  }
 0x199   :  { %5384 = vmatprep.subr.bf16.mxu0 %v9065_v16  ;;  %v11159_v41 = vadd.f32 %v7644_v40, %v7643_v31  ;;  %v9089_v16 = vld [vmem:[%s12440_s1 + $0xab8] ss:$12 sps:$4 sm:$0xff]   ;;  %v9100_v31 = vld [vmem:[%s12440_s1 + $0xba8] ss:$12 sps:$4 sm:$0xff]  }
 0x19a   :  { %6242 = vmatmul.mubr.bf16.vlgmr.msra.gmra.mrb[140].mxu1 %v10734_v56 }
 0x19b   :  { %5354 = vmatmul.mubr.bf16.gmra.mrb[12].mxu0 %v11149_v30  ;;  %6249 = vmatprep.mubr.bf16.mxu1 %v10745_v59  ;;  %v9071_v59 = vld [vmem:[%s12440_s1 + $0xcc0] ss:$12 sps:$4 sm:$0xff]  }
 0x19c   :  { %5385 = vmatpush1.bf16.msra.mxu0 %v9063_v19  ;;  %7929 = vmatpush3.bf16.msra.mxu1 %v9076_v23  ;;  %v9093_v19 = vld [vmem:[%s12440_s1 + $0xb90] ss:$12 sps:$4 sm:$0xff]  }
 0x19d   :  { %5386 = vmatprep.subr.bf16.mxu0 %v9068_v43  ;;  %v7646_v56 = vpop.f32.mrb[36].mxu1  ;;  %7930 = vmatprep.subr.bf16.mxu1 %v9080_v44  ;;  %v9077_v43 = vld [vmem:[%s12440_s1 + $0xcd8] ss:$12 sps:$4 sm:$0xff]  }
 0x19e   :  { %5363 = vmatprep.mubr.bf16.mxu0 %v11164_v51  ;;  %v7647_v53 = vpop.f32.mrb[37].mxu1 }
 0x19f   :  { %v11187_v63 = vadd.f32 %v7647_v53, %v7646_v56  ;;  %v7649_v3 = vpop.f32.mrb[38].mxu1 }
 0x1a0   :  { %5387 = vmatpush1.bf16.msra.mxu0 %v9066_v57  ;;  %v7650_v5 = vpop.f32.mrb[39].mxu1  ;;  %7931 = vmatpush3.bf16.msra.mxu1 %v9081_v2  ;;  %v9102_v2 = vld [vmem:[%s12440_s1 + $0xae8] ss:$12 sps:$4 sm:$0xff]  }
 0x1a1   :  { %5388 = vmatprep.subr.bf16.mxu0 %v9073_v37  ;;  %7932 = vmatprep.subr.bf16.mxu1 %v9087_v38  ;;  %v9092_v37 = vld [vmem:[%s12440_s1 + $0xd0c] ss:$12 sps:$4 sm:$0xff]   ;;  %v9090_v3 = vld [vmem:[%s12440_s1 + $0xd08] ss:$12 sps:$4 sm:$0xff]  }
 0x1a2   :  { %6250 = vmatmul.mubr.bf16.gmra.mrb[144].mxu1 %v10765_v18  ;;  %v9107_v5 = vld [vmem:[%s12440_s1 + $0xb00] ss:$12 sps:$4 sm:$0xff]  }
 0x1a3   :  { %5364 = vmatmul.mubr.bf16.gmra.mrb[16].mxu0 %v11185_v62  ;;  %6257 = vmatprep.mubr.bf16.mxu1 %v10779_v1  ;;  %v9084_v1 = vld [vmem:[%s12440_s1 + $0xcf0] ss:$12 sps:$4 sm:$0xff]  }
 0x1a4   :  { %5389 = vmatpush1.bf16.msra.mxu0 %v9071_v59  ;;  %7933 = vmatpush3.bf16.msra.mxu1 %v9089_v16  ;;  %v9106_v59 = vld [vmem:[%s12440_s1 + $0xbc0] ss:$12 sps:$4 sm:$0xff]  }
 0x1a5   :  { %5390 = vmatprep.subr.bf16.mxu0 %v9079_v4  ;;  %v7668_v18 = vpop.f32.mrb[40].mxu1  ;;  %7934 = vmatprep.subr.bf16.mxu1 %v9093_v19  ;;  %v9097_v19 = vld [vmem:[%s12440_s1 + $0xd20] ss:$12 sps:$4 sm:$0xff]  }
 0x1a6   :  { %5404 = vmatprep.mubr.bf16.mxu0 %v11201_v20  ;;  %v7669_v23 = vpop.f32.mrb[41].mxu1 }
 0x1a7   :  { %v7670_v40 = vadd.f32 %v7669_v23, %v7668_v18  ;;  %v7671_v44 = vpop.f32.mrb[42].mxu1  ;;  %v9118_v23 = vld [vmem:[%s12440_s1 + $0xbf0] ss:$12 sps:$4 sm:$0xff]  }
 0x1a8   :  { %5391 = vmatpush1.bf16.msra.mxu0 %v9077_v43  ;;  %v7672_v57 = vpop.f32.mrb[43].mxu1  ;;  %7935 = vmatpush3.bf16.msra.mxu1 %v9094_v52  ;;  %v9114_v52 = vld [vmem:[%s12440_s1 + $0xb18] ss:$12 sps:$4 sm:$0xff]  }
 0x1a9   :  { %5392 = vmatprep.subr.bf16.mxu0 %v9086_v25  ;;  %v11229_v56 = vadd.f32 %v7670_v40, %v11037_v55  ;;  %v7673_v38 = vadd.f32 %v7672_v57, %v7671_v44  ;;  %7936 = vmatprep.subr.bf16.mxu1 %v9100_v31  ;;  %v9099_v55 = vld [vmem:[%s12440_s1 + $0xd24] ss:$12 sps:$4 sm:$0xff]   ;;  %v9105_v25 = vld [vmem:[%s12440_s1 + $0xd3c] ss:$12 sps:$4 sm:$0xff]  }
 0x1aa   :  { %6258 = vmatmul.mubr.bf16.gmra.mrb[148].mxu1 %v10804_v28  ;;  %v9112_v28 = vld [vmem:[%s12440_s1 + $0xbd8] ss:$12 sps:$4 sm:$0xff]  }
 0x1ab   :  { %v11236_v53 = vadd.f32 %v7673_v38, %v11045_v9  ;;  %6265 = vmatprep.mubr.bf16.mxu1 %v10824_v15 }
 0x1ac   :  { %5393 = vmatpush1.bf16.msra.mxu0 %v9084_v1  ;;  %7937 = vmatpush3.bf16.msra.mxu1 %v9102_v2  ;;  %v9103_v1 = vld [vmem:[%s12440_s1 + $0xd38] ss:$12 sps:$4 sm:$0xff]  }
 0x1ad   :  { %5394 = vmatprep.subr.bf16.mxu0 %v9092_v37  ;;  %v7674_v9 = vpop.f32.mrb[44].mxu1  ;;  %7938 = vmatprep.subr.bf16.mxu1 %v9106_v59  ;;  %v9117_v59 = vld [vmem:[%s12440_s1 + $0xd6c] ss:$12 sps:$4 sm:$0xff]  }
 0x1ae   :  { %v7675_v4 = vpop.f32.mrb[45].mxu1 }
 0x1af   :  { %v7676_v16 = vadd.f32 %v7675_v4, %v7674_v9  ;;  %v7677_v15 = vpop.f32.mrb[46].mxu1  ;;  %v9123_v4 = vld [vmem:[%s12440_s1 + $0xd80] ss:$12 sps:$4 sm:$0xff]  }
 0x1b0   :  { %5395 = vmatpush1.bf16.msra.mxu0 %v9090_v3  ;;  %v7678_v43 = vpop.f32.mrb[47].mxu1  ;;  %7939 = vmatpush3.bf16.msra.mxu1 %v9107_v5 }
 0x1b1   :  { %5396 = vmatprep.subr.bf16.mxu0 %v9099_v55  ;;  %v11261_v18 = vadd.f32 %v7676_v16, %v11079_v14  ;;  %v7679_v31 = vadd.f32 %v7678_v43, %v7677_v15  ;;  %7940 = vmatprep.subr.bf16.mxu1 %v9112_v28  ;;  %v9111_v14 = vld [vmem:[%s12440_s1 + $0xd54] ss:$12 sps:$4 sm:$0xff]  }
 0x1b2   :  { %6266 = vmatmul.mubr.bf16.gmra.mrb[152].mxu1 %v10851_v54  ;;  %v9119_v54 = vld [vmem:[%s12440_s1 + $0xb30] ss:$12 sps:$4 sm:$0xff]   ;;  %v9115_v28 = vld [vmem:[%s12440_s1 + $0xd68] ss:$12 sps:$4 sm:$0xff]  }
 0x1b3   :  { %v11271_v40 = vadd.f32 %v7679_v31, %v11087_v46  ;;  %6273 = vmatprep.mubr.bf16.mxu1 %v10871_v35  ;;  %v9132_v46 = vld [vmem:[%s12440_s1 + $0xcc8] ss:$12 sps:$4 sm:$0xff]   ;;  %v9109_v35 = vld [vmem:[%s12440_s1 + $0xd50] ss:$12 sps:$4 sm:$0xff]   ;;  %v9137_v31 = vld [vmem:[%s12440_s1 + $0xce0] ss:$12 sps:$4 sm:$0xff]  }
 0x1b4   :  { %5397 = vmatpush1.bf16.msra.mxu0 %v9097_v19  ;;  %7941 = vmatpush3.bf16.msra.mxu1 %v9114_v52  ;;  %v9133_v43 = vld [vmem:[%s12440_s1 + $0xc08] ss:$12 sps:$4 sm:$0xff]  }
 0x1b5   :  { %5398 = vmatprep.subr.bf16.mxu0 %v9105_v25  ;;  %v7680_v44 = vpop.f32.mrb[48].mxu1  ;;  %7942 = vmatprep.subr.bf16.mxu1 %v9118_v23  ;;  %v11326_v23 = vld [vmem:[%s12441_s0 + $0x10c] ss:$100 sps:$4 sm:$0xff]  }
 0x1b6   :  { %v7681_v57 = vpop.f32.mrb[49].mxu1 }
 0x1b7   :  { %v7682_v37 = vadd.f32 %v7681_v57, %v7680_v44  ;;  %v7683_v2 = vpop.f32.mrb[50].mxu1  ;;  %v9129_v44 = vld [vmem:[%s12440_s1 + $0xdb0] ss:$12 sps:$4 sm:$0xff]   ;;  %v11356_v57 = vld [vmem:[%s12441_s0 + $0x108] ss:$100 sps:$4 sm:$0xff]  }
 0x1b8   :  { %5399 = vmatpush1.bf16.msra.mxu0 %v9103_v1  ;;  %v7684_v38 = vpop.f32.mrb[51].mxu1  ;;  %7943 = vmatpush3.bf16.msra.mxu1 %v9119_v54  ;;  %v9126_v1 = vld [vmem:[%s12440_s1 + $0xd98] ss:$12 sps:$4 sm:$0xff]  }
 0x1b9   :  { %5400 = vmatprep.subr.bf16.mxu0 %v9111_v14  ;;  %v11290_v3 = vadd.f32 %v7682_v37, %v11121_v0  ;;  %v7685_v55 = vadd.f32 %v7684_v38, %v7683_v2  ;;  %7974 = vmatprep.subr.bf16.mxu1 %v9132_v46  ;;  %v9125_v0 = vld [vmem:[%s12440_s1 + $0xd84] ss:$12 sps:$4 sm:$0xff]   ;;  %v9131_v14 = vld [vmem:[%s12440_s1 + $0xdb4] ss:$12 sps:$4 sm:$0xff]   ;;  %v9136_v46 = vld [vmem:[%s12440_s1 + $0xdcc] ss:$12 sps:$4 sm:$0xff]  }
 0x1ba   :  { %6274 = vmatmul.mubr.bf16.gmra.mrb[156].mxu1 %v10900_v12  ;;  %v11306_v12 = vld [vmem:[%s12441_s0 + $0x40] ss:$100 sps:$4 sm:$0xff]  }
 0x1bb   :  { %v11294_v5 = vadd.f32 %v7685_v55, %v11128_v8  ;;  %6313 = vmatprep.mubr.bf16.mxu1 %v10918_v32  ;;  %v9128_v32 = vld [vmem:[%s12440_s1 + $0xd9c] ss:$12 sps:$4 sm:$0xff]   ;;  %v9143_v38 = vld [vmem:[%s12440_s1 + $0xc38] ss:$12 sps:$4 sm:$0xff]  }
 0x1bc   :  { %5401 = vmatpush1.bf16.msra.mxu0 %v9109_v35  ;;  %v9147_v55 = vld [vmem:[%s12440_s1 + $0xd10] ss:$12 sps:$4 sm:$0xff]  }
 0x1bd   :  { %5402 = vmatprep.subr.bf16.mxu0 %v9117_v59  ;;  %v7686_v9 = vpop.f32.mrb[52].mxu1 }
 0x1be   :  { %v7687_v8 = vpop.f32.mrb[53].mxu1 }
 0x1bf   :  { %v7688_v16 = vadd.f32 %v7687_v8, %v7686_v9  ;;  %v7689_v15 = vpop.f32.mrb[54].mxu1  ;;  %v9148_v9 = vld [vmem:[%s12440_s1 + $0xc50] ss:$12 sps:$4 sm:$0xff]   ;;  %v9139_v8 = vld [vmem:[%s12440_s1 + $0xde0] ss:$12 sps:$4 sm:$0xff]  }
 0x1c0   :  { %5403 = vmatpush1.bf16.msra.mxu0 %v9115_v28  ;;  %v7690_v19 = vpop.f32.mrb[55].mxu1  ;;  %v11370_v28 = vld [vmem:[%s12441_s0 + $0x1d4] ss:$100 sps:$4 sm:$0xff]  }
 0x1c1   :  { %5453 = vmatprep.subr.bf16.mxu0 %v9125_v0  ;;  %v11318_v25 = vadd.f32 %v7688_v16, %v11154_v60  ;;  %v7691_v52 = vadd.f32 %v7690_v19, %v7689_v15  ;;  %v9134_v0 = vld [vmem:[%s12440_s1 + $0xdc8] ss:$12 sps:$4 sm:$0xff]  }
 0x1c2   :  { %6314 = vmatmul.mubr.bf16.vlgmr.msra.gmra.mrb[160].mxu1 %v11023_v61  ;;  %v9138_v61 = vld [vmem:[%s12440_s1 + $0xc20] ss:$12 sps:$4 sm:$0xff]   ;;  %v9146_v19 = vld [vmem:[%s12440_s1 + $0xdfc] ss:$12 sps:$4 sm:$0xff]  }
 0x1c3   :  { %5405 = vmatmul.mubr.bf16.vlgmr.msra.gmra.mrb[0].mxu0 %v11306_v12  ;;  %v11334_v60 = vadd.f32 %v7691_v52, %v11159_v41  ;;  %6321 = vmatprep.mubr.bf16.mxu1 %v11050_v10  ;;  %v9142_v10 = vld [vmem:[%s12440_s1 + $0xcf8] ss:$12 sps:$4 sm:$0xff]   ;;  %v9153_v52 = vld [vmem:[%s12440_s1 + $0xc68] ss:$12 sps:$4 sm:$0xff]  }
 0x1c4   :  { %5454 = vmatpush1.bf16.msra.mxu0 %v9123_v4  ;;  %7975 = vmatpush3.bf16.msra.mxu1 %v9133_v43  ;;  %v11394_v4 = vld [vmem:[%s12441_s0 + $0x1d0] ss:$100 sps:$4 sm:$0xff]  }
 0x1c5   :  { %5455 = vmatprep.subr.bf16.mxu0 %v9128_v32  ;;  %v7692_v54 = vpop.f32.mrb[56].mxu1  ;;  %7976 = vmatprep.subr.bf16.mxu1 %v9137_v31 }
 0x1c6   :  { %5414 = vmatprep.mubr.bf16.mxu0 %v11326_v23  ;;  %v7693_v41 = vpop.f32.mrb[57].mxu1 }
 0x1c7   :  { %v7694_v35 = vadd.f32 %v7693_v41, %v7692_v54  ;;  %v7695_v37 = vpop.f32.mrb[58].mxu1  ;;  %v11438_v41 = vld [vmem:[%s12441_s0 + $0x298] ss:$100 sps:$4 sm:$0xff]  }
 0x1c8   :  { %5456 = vmatpush1.bf16.msra.mxu0 %v9126_v1  ;;  %v7696_v2 = vpop.f32.mrb[59].mxu1  ;;  %7977 = vmatpush3.bf16.msra.mxu1 %v9138_v61  ;;  %v11411_v61 = vld [vmem:[%s12441_s0 + $0x29c] ss:$100 sps:$4 sm:$0xff]  }
 0x1c9   :  { %5457 = vmatprep.subr.bf16.mxu0 %v9131_v14  ;;  %v11362_v59 = vadd.f32 %v7694_v35, %v11187_v63  ;;  %7978 = vmatprep.subr.bf16.mxu1 %v9142_v10  ;;  %v9141_v63 = vld [vmem:[%s12440_s1 + $0xde4] ss:$12 sps:$4 sm:$0xff]   ;;  %v9157_v14 = vld [vmem:[%s12440_s1 + $0xd40] ss:$12 sps:$4 sm:$0xff]  }
 0x1ca   :  { %6322 = vmatmul.mubr.bf16.gmra.mrb[164].mxu1 %v11077_v33  ;;  %v9156_v35 = vld [vmem:[%s12440_s1 + $0xe2c] ss:$12 sps:$4 sm:$0xff]   ;;  %v127_v37 = vld [vmem:[%s12441_s0 + $0x360] sm:$0xff] }
 0x1cb   :  { %5415 = vmatmul.mubr.bf16.gmra.mrb[4].mxu0 %v11356_v57  ;;  %6329 = vmatprep.mubr.bf16.mxu1 %v11092_v49  ;;  %v9152_v49 = vld [vmem:[%s12440_s1 + $0xd28] ss:$12 sps:$4 sm:$0xff]  }
 0x1cc   :  { %5458 = vmatpush1.bf16.msra.mxu0 %v9129_v44  ;;  %7979 = vmatpush3.bf16.msra.mxu1 %v9143_v38  ;;  %v9151_v44 = vld [vmem:[%s12440_s1 + $0xe14] ss:$12 sps:$4 sm:$0xff]  }
 0x1cd   :  { %5459 = vmatprep.subr.bf16.mxu0 %v9136_v46  ;;  %v7714_v33 = vpop.f32.mrb[60].mxu1  ;;  %7980 = vmatprep.subr.bf16.mxu1 %v9147_v55  ;;  %v9166_v55 = vld [vmem:[%s12440_s1 + $0xc98] ss:$12 sps:$4 sm:$0xff]  }
 0x1ce   :  { %5424 = vmatprep.mubr.bf16.mxu0 %v11370_v28  ;;  %v7715_v32 = vpop.f32.mrb[61].mxu1 }
 0x1cf   :  { %v7716_v16 = vadd.f32 %v7715_v32, %v7714_v33  ;;  %v7717_v15 = vpop.f32.mrb[62].mxu1  ;;  %v9170_v33 = vld [vmem:[%s12440_s1 + $0xd70] ss:$12 sps:$4 sm:$0xff]  }
 0x1d0   :  { %5460 = vmatpush1.bf16.msra.mxu0 %v9134_v0  ;;  %v7718_v43 = vpop.f32.mrb[63].mxu1  ;;  %7981 = vmatpush3.bf16.msra.mxu1 %v9148_v9 }
 0x1d1   :  { %5461 = vmatprep.subr.bf16.mxu0 %v9141_v63  ;;  %v11403_v31 = vadd.f32 %v7716_v16, %v11229_v56  ;;  %v7719_v1 = vadd.f32 %v7718_v43, %v7717_v15  ;;  %7982 = vmatprep.subr.bf16.mxu1 %v9152_v49  ;;  %v9144_v56 = vld [vmem:[%s12440_s1 + $0xdf8] ss:$12 sps:$4 sm:$0xff]   ;;  %v9154_v49 = vld [vmem:[%s12440_s1 + $0xe28] ss:$12 sps:$4 sm:$0xff]   ;;  %v9161_v15 = vld [vmem:[%s12440_s1 + $0xe40] ss:$12 sps:$4 sm:$0xff]   ;;  %v11482_v43 = vcombine.low %v127_v37, %v127_v37 }
 0x1d2   :  { %6330 = vmatmul.mubr.bf16.gmra.mrb[168].mxu1 %v11113_v24  ;;  %v9158_v24 = vld [vmem:[%s12440_s1 + $0xc80] ss:$12 sps:$4 sm:$0xff]  }
 0x1d3   :  { %5425 = vmatmul.mubr.bf16.gmra.mrb[8].mxu0 %v11394_v4  ;;  %v11416_v54 = vadd.f32 %v7719_v1, %v11236_v53  ;;  %6337 = vmatprep.mubr.bf16.mxu1 %v11126_v7  ;;  %v9149_v53 = vld [vmem:[%s12440_s1 + $0xe10] ss:$12 sps:$4 sm:$0xff]   ;;  %v9164_v7 = vld [vmem:[%s12440_s1 + $0xd58] ss:$12 sps:$4 sm:$0xff]  }
 0x1d4   :  { %5462 = vmatpush1.bf16.msra.mxu0 %v9139_v8  ;;  %7983 = vmatpush3.bf16.msra.mxu1 %v9153_v52  ;;  %v11455_v8 = vcombine.high %v127_v37, %v127_v37  ;;  %v9188_v37 = vld [vmem:[%s12440_s1 + $0xd88] ss:$12 sps:$4 sm:$0xff]  }
 0x1d5   :  { %5463 = vmatprep.subr.bf16.mxu0 %v9146_v19  ;;  %v7720_v10 = vpop.f32.mrb[64].mxu1  ;;  %7984 = vmatprep.subr.bf16.mxu1 %v9157_v14  ;;  %v9169_v19 = vld [vmem:[%s12440_s1 + $0xe5c] ss:$12 sps:$4 sm:$0xff]   ;;  %v11487_v14 = vld [vmem:[%s12441_s0 + $0x4c] ss:$100 sps:$4 sm:$0xff]  }
 0x1d6   :  { %5434 = vmatprep.mubr.bf16.mxu0 %v11411_v61  ;;  %v7721_v46 = vpop.f32.mrb[65].mxu1 }
 0x1d7   :  { %v7722_v2 = vadd.f32 %v7721_v46, %v7720_v10  ;;  %v7723_v38 = vpop.f32.mrb[66].mxu1  ;;  %v9180_v46 = vld [vmem:[%s12440_s1 + $0xe8c] ss:$12 sps:$4 sm:$0xff]  }
 0x1d8   :  { %5464 = vmatpush1.bf16.msra.mxu0 %v9144_v56  ;;  %v7724_v0 = vpop.f32.mrb[67].mxu1  ;;  %7985 = vmatpush3.bf16.msra.mxu1 %v9158_v24 }
 0x1d9   :  { %5465 = vmatprep.subr.bf16.mxu0 %v9151_v44  ;;  %v11450_v63 = vadd.f32 %v7722_v2, %v11261_v18  ;;  %v7725_v9 = vadd.f32 %v7724_v0, %v7723_v38  ;;  %7986 = vmatprep.subr.bf16.mxu1 %v9164_v7  ;;  %v9163_v18 = vld [vmem:[%s12440_s1 + $0xe44] ss:$12 sps:$4 sm:$0xff]   ;;  %v9192_v0 = vld [vmem:[%s12440_s1 + $0xe60] ss:$12 sps:$4 sm:$0xff]  }
 0x1da   :  { %6338 = vmatmul.mubr.bf16.gmra.mrb[172].mxu1 %v11149_v30  ;;  %v9171_v30 = vld [vmem:[%s12440_s1 + $0xcb0] ss:$12 sps:$4 sm:$0xff]  }
 0x1db   :  { %5435 = vmatmul.mubr.bf16.gmra.mrb[12].mxu0 %v11438_v41  ;;  %v11463_v32 = vadd.f32 %v7725_v9, %v11271_v40  ;;  %6345 = vmatprep.mubr.bf16.mxu1 %v11164_v51  ;;  %v9186_v51 = vld [vmem:[%s12440_s1 + $0xe48] ss:$12 sps:$4 sm:$0xff]  }
 0x1dc   :  { %5466 = vmatpush1.bf16.msra.mxu0 %v9149_v53  ;;  %7987 = vmatpush3.bf16.msra.mxu1 %v9166_v55  ;;  %v9167_v53 = vld [vmem:[%s12440_s1 + $0xe58] ss:$12 sps:$4 sm:$0xff]   ;;  %v9178_v9 = vld [vmem:[%s12440_s1 + $0xe88] ss:$12 sps:$4 sm:$0xff]  }
 0x1dd   :  { %5467 = vmatprep.subr.bf16.mxu0 %v9156_v35  ;;  %v7726_v16 = vpop.f32.mrb[68].mxu1  ;;  %7988 = vmatprep.subr.bf16.mxu1 %v9170_v33 }
 0x1de   :  { %5444 = vmatprep.mubr.bf16.mxu0 %v11455_v8  ;;  %v7727_v40 = vpop.f32.mrb[69].mxu1 }
 0x1df   :  { %v7728_v52 = vadd.f32 %v7727_v40, %v7726_v16  ;;  %v7729_v1 = vpop.f32.mrb[70].mxu1  ;;  %v9200_v40 = vld [vmem:[%s12440_s1 + $0xdb8] ss:$12 sps:$4 sm:$0xff]  }
 0x1e0   :  { %5468 = vmatpush1.bf16.msra.mxu0 %v9154_v49  ;;  %v7730_v56 = vpop.f32.mrb[71].mxu1  ;;  %7989 = vmatpush3.bf16.msra.mxu1 %v9171_v30 }
 0x1e1   :  { %5469 = vmatprep.subr.bf16.mxu0 %v9163_v18  ;;  %v11490_v44 = vadd.f32 %v7728_v52, %v11290_v3  ;;  %v7731_v24 = vadd.f32 %v7730_v56, %v7729_v1  ;;  %8020 = vmatprep.subr.bf16.mxu1 %v9186_v51  ;;  %v9176_v3 = vld [vmem:[%s12440_s1 + $0xe74] ss:$12 sps:$4 sm:$0xff]   ;;  %v9191_v51 = vld [vmem:[%s12440_s1 + $0xebc] ss:$12 sps:$4 sm:$0xff]   ;;  %v9189_v1 = vld [vmem:[%s12440_s1 + $0xeb8] ss:$12 sps:$4 sm:$0xff]  }
 0x1e2   :  { %6346 = vmatmul.mubr.bf16.gmra.mrb[176].mxu1 %v11185_v62  ;;  %v9204_v52 = vld [vmem:[%s12440_s1 + $0xe90] ss:$12 sps:$4 sm:$0xff]   ;;  %v9197_v56 = vld [vmem:[%s12440_s1 + $0xed4] ss:$12 sps:$4 sm:$0xff]  }
 0x1e3   :  { %5445 = vmatmul.mubr.bf16.gmra.mrb[16].mxu0 %v11482_v43  ;;  %v11495_v10 = vadd.f32 %v7731_v24, %v11294_v5  ;;  %6385 = vmatprep.mubr.bf16.mxu1 %v11201_v20  ;;  %v9174_v5 = vld [vmem:[%s12440_s1 + $0xe70] ss:$12 sps:$4 sm:$0xff]  }
 0x1e4   :  { %5470 = vmatpush1.bf16.msra.mxu0 %v9161_v15  ;;  %5485 = vmatprep.mubr.bf16.mxu0 %v11487_v14 }
 0x1e5   :  { %5471 = vmatprep.subr.bf16.mxu0 %v9169_v19  ;;  %v7732_v62 = vpop.f32.mrb[72].mxu1 }
 0x1e6   :  { %v7733_v7 = vpop.f32.mrb[73].mxu1 }
 0x1e7   :  { %v7734_v35 = vadd.f32 %v7733_v7, %v7732_v62  ;;  %v7735_v20 = vpop.f32.mrb[74].mxu1  ;;  %v9195_v62 = vld [vmem:[%s12440_s1 + $0xed0] ss:$12 sps:$4 sm:$0xff]   ;;  %v9203_v7 = vld [vmem:[%s12440_s1 + $0xeec] ss:$12 sps:$4 sm:$0xff]  }
 0x1e8   :  { %5472 = vmatpush1.bf16.msra.mxu0 %v9167_v53  ;;  %v7736_v2 = vpop.f32.mrb[75].mxu1 }
 0x1e9   :  { %5473 = vmatprep.subr.bf16.mxu0 %v9176_v3  ;;  %v11515_v38 = vadd.f32 %v7734_v35, %v11318_v25  ;;  %v7737_v55 = vadd.f32 %v7736_v2, %v7735_v20  ;;  %v9185_v25 = vld [vmem:[%s12440_s1 + $0xea4] ss:$12 sps:$4 sm:$0xff]  }
 0x1ea   :  { %6386 = vmatmul.mubr.bf16.vlgmr.msra.gmra.mrb[180].mxu1 %v11306_v12  ;;  %v9193_v12 = vld [vmem:[%s12440_s1 + $0xda0] ss:$12 sps:$4 sm:$0xff]  }
 0x1eb   :  { %v11525_v33 = vadd.f32 %v7737_v55, %v11334_v60  ;;  %6393 = vmatprep.mubr.bf16.mxu1 %v11326_v23  ;;  %8021 = vmatpush3.bf16.msra.mxu1 %v9188_v37  ;;  %v9198_v60 = vld [vmem:[%s12440_s1 + $0xe78] ss:$12 sps:$4 sm:$0xff]   ;;  %v9183_v23 = vld [vmem:[%s12440_s1 + $0xea0] ss:$12 sps:$4 sm:$0xff]   ;;  %v9201_v55 = vld [vmem:[%s12440_s1 + $0xee8] ss:$12 sps:$4 sm:$0xff]  }
 0x1ec   :  { %5474 = vmatpush1.bf16.msra.mxu0 %v9174_v5  ;;  %8022 = vmatprep.subr.bf16.mxu1 %v9192_v0  ;;  %v9217_v37 = vld [vmem:[%s12440_s1 + $0xec0] ss:$12 sps:$4 sm:$0xff]  }
 0x1ed   :  { %5475 = vmatprep.subr.bf16.mxu0 %v9180_v46  ;;  %v7738_v49 = vpop.f32.mrb[76].mxu1  ;;  %v9213_v46 = vld [vmem:[%s12440_s1 + $0xde8] ss:$12 sps:$4 sm:$0xff]  }
 0x1ee   :  { %v7739_v18 = vpop.f32.mrb[77].mxu1 }
 0x1ef   :  { %v7740_v30 = vadd.f32 %v7739_v18, %v7738_v49  ;;  %v7741_v16 = vpop.f32.mrb[78].mxu1  ;;  %8023 = vmatpush3.bf16.msra.mxu1 %v9193_v12 }
 0x1f0   :  { %5476 = vmatpush1.bf16.msra.mxu0 %v9178_v9  ;;  %v7742_v15 = vpop.f32.mrb[79].mxu1  ;;  %8024 = vmatprep.subr.bf16.mxu1 %v9198_v60  ;;  %v9216_v60 = vld [vmem:[%s12440_s1 + $0xf1c] ss:$12 sps:$4 sm:$0xff]  }
 0x1f1   :  { %5477 = vmatprep.subr.bf16.mxu0 %v9185_v25  ;;  %v11547_v19 = vadd.f32 %v7740_v30, %v11362_v59  ;;  %v9205_v59 = vld [vmem:[%s12440_s1 + $0xdd0] ss:$12 sps:$4 sm:$0xff]   ;;  %v9209_v25 = vld [vmem:[%s12440_s1 + $0xf00] ss:$12 sps:$4 sm:$0xff]  }
 0x1f2   :  { %6394 = vmatmul.mubr.bf16.gmra.mrb[184].mxu1 %v11356_v57  ;;  %v9212_v57 = vld [vmem:[%s12440_s1 + $0xea8] ss:$12 sps:$4 sm:$0xff]   ;;  %v9227_v15 = vld [vmem:[%s12440_s1 + $0xef0] ss:$12 sps:$4 sm:$0xff]  }
 0x1f3   :  { %6401 = vmatprep.mubr.bf16.mxu1 %v11370_v28  ;;  %8025 = vmatpush3.bf16.msra.mxu1 %v9200_v40 }
 0x1f4   :  { %5478 = vmatpush1.bf16.msra.mxu0 %v9183_v23  ;;  %8026 = vmatprep.subr.bf16.mxu1 %v9204_v52  ;;  %v9223_v23 = vld [vmem:[%s12440_s1 + $0xe18] ss:$12 sps:$4 sm:$0xff]   ;;  %v9228_v52 = vld [vmem:[%s12440_s1 + $0xe30] ss:$12 sps:$4 sm:$0xff]  }
 0x1f5   :  { %5479 = vmatprep.subr.bf16.mxu0 %v9191_v51  ;;  %v7760_v24 = vpop.f32.mrb[80].mxu1  ;;  %v9214_v51 = vld [vmem:[%s12440_s1 + $0xf18] ss:$12 sps:$4 sm:$0xff]  }
 0x1f6   :  { %v7761_v53 = vpop.f32.mrb[81].mxu1 }
 0x1f7   :  { %v7762_v3 = vadd.f32 %v7761_v53, %v7760_v24  ;;  %v7763_v28 = vpop.f32.mrb[82].mxu1  ;;  %8027 = vmatpush3.bf16.msra.mxu1 %v9205_v59  ;;  %v9240_v53 = vld [vmem:[%s12441_s0 + $0x110] ss:$100 sps:$4 sm:$0xff]  }
 0x1f8   :  { %5480 = vmatpush1.bf16.msra.mxu0 %v9189_v1  ;;  %v7764_v5 = vpop.f32.mrb[83].mxu1  ;;  %8028 = vmatprep.subr.bf16.mxu1 %v9212_v57  ;;  %v9226_v57 = vld [vmem:[%s12440_s1 + $0xf4c] ss:$12 sps:$4 sm:$0xff]  }
 0x1f9   :  { %5481 = vmatprep.subr.bf16.mxu0 %v9197_v56  ;;  %v11576_v35 = vadd.f32 %v7762_v3, %v11403_v31  ;;  %v7765_v20 = vadd.f32 %v7764_v5, %v7763_v28  ;;  %v9211_v31 = vld [vmem:[%s12440_s1 + $0xf04] ss:$12 sps:$4 sm:$0xff]   ;;  %v9248_v5 = vld [vmem:[%s12441_s0 + $0x1dc] ss:$100 sps:$4 sm:$0xff]  }
 0x1fa   :  { %6402 = vmatmul.mubr.bf16.gmra.mrb[188].mxu1 %v11394_v4  ;;  %v9218_v4 = vld [vmem:[%s12440_s1 + $0xe00] ss:$12 sps:$4 sm:$0xff]   ;;  %v9219_v56 = vld [vmem:[%s12440_s1 + $0xf30] ss:$12 sps:$4 sm:$0xff]  }
 0x1fb   :  { %v11583_v2 = vadd.f32 %v7765_v20, %v11416_v54  ;;  %6409 = vmatprep.mubr.bf16.mxu1 %v11411_v61  ;;  %8029 = vmatpush3.bf16.msra.mxu1 %v9213_v46  ;;  %v9222_v54 = vld [vmem:[%s12440_s1 + $0xed8] ss:$12 sps:$4 sm:$0xff]   ;;  %v11601_v61 = vld [vmem:[%s12441_s0 + $0x48] ss:$100 sps:$4 sm:$0xff]  }
 0x1fc   :  { %5482 = vmatpush1.bf16.msra.mxu0 %v9195_v62  ;;  %8030 = vmatprep.subr.bf16.mxu1 %v9217_v37  ;;  %v9224_v46 = vld [vmem:[%s12440_s1 + $0xf48] ss:$12 sps:$4 sm:$0xff]   ;;  %v9229_v20 = vld [vmem:[%s12440_s1 + $0xf60] ss:$12 sps:$4 sm:$0xff]  }
 0x1fd   :  { %5483 = vmatprep.subr.bf16.mxu0 %v9203_v7  ;;  %v7766_v0 = vpop.f32.mrb[84].mxu1 }
 0x1fe   :  { %v7767_v9 = vpop.f32.mrb[85].mxu1 }
 0x1ff   :  { %v7768_v12 = vadd.f32 %v7767_v9, %v7766_v0  ;;  %v7769_v49 = vpop.f32.mrb[86].mxu1  ;;  %8031 = vmatpush3.bf16.msra.mxu1 %v9218_v4  ;;  %v9253_v0 = vld [vmem:[%s12441_s0 + $0x1d8] ss:$100 sps:$4 sm:$0xff]  }
 0x200   :  { %5484 = vmatpush1.bf16.msra.mxu0 %v9201_v55  ;;  %v7770_v18 = vpop.f32.mrb[87].mxu1  ;;  %8032 = vmatprep.subr.bf16.mxu1 %v9222_v54 }
 0x201   :  { %5534 = vmatprep.subr.bf16.mxu0 %v9211_v31  ;;  %v11613_v30 = vadd.f32 %v7768_v12, %v11450_v63  ;;  %v7771_v16 = vadd.f32 %v7770_v18, %v7769_v49  ;;  %v9235_v63 = vld [vmem:[%s12441_s0 + $0x114] ss:$100 sps:$4 sm:$0xff]   ;;  %v9234_v31 = vld [vmem:[%s12440_s1 + $0xf7c] ss:$12 sps:$4 sm:$0xff]   ;;  %v9246_v12 = vld [vmem:[%s12440_s1 + $0xfe0] ss:$12 sps:$4 sm:$0xff]  }
 0x202   :  { %6410 = vmatmul.mubr.bf16.gmra.mrb[192].mxu1 %v11438_v41  ;;  %v9221_v41 = vld [vmem:[%s12440_s1 + $0xf34] ss:$12 sps:$4 sm:$0xff]  }
 0x203   :  { %5486 = vmatmul.mubr.bf16.vlgmr.msra.gmra.mrb[0].mxu0 %v11601_v61  ;;  %v11624_v40 = vadd.f32 %v7771_v16, %v11463_v32  ;;  %6417 = vmatprep.mubr.bf16.mxu1 %v11455_v8  ;;  %v9241_v8 = vld [vmem:[%s12440_s1 + $0xfc8] ss:$12 sps:$4 sm:$0xff]   ;;  %v9254_v16 = vld [vmem:[%s12440_s1 + $0xff8] ss:$12 sps:$4 sm:$0xff]  }
 0x204   :  { %5535 = vmatpush1.bf16.msra.mxu0 %v9209_v25  ;;  %8033 = vmatpush3.bf16.msra.mxu1 %v9223_v23  ;;  %v9232_v25 = vld [vmem:[%s12440_s1 + $0xf78] ss:$12 sps:$4 sm:$0xff]   ;;  %v9239_v49 = vld [vmem:[%s12440_s1 + $0xf94] ss:$12 sps:$4 sm:$0xff]   ;;  %v9237_v23 = vld [vmem:[%s12440_s1 + $0xf90] ss:$12 sps:$4 sm:$0xff]  }
 0x205   :  { %5536 = vmatprep.subr.bf16.mxu0 %v9216_v60  ;;  %v7772_v1 = vpop.f32.mrb[88].mxu1  ;;  %8034 = vmatprep.subr.bf16.mxu1 %v9227_v15  ;;  %v9261_v60 = vld [vmem:[%s12441_s0 + $0x2a4] ss:$100 sps:$4 sm:$0xff]  }
 0x206   :  { %5495 = vmatprep.mubr.bf16.mxu0 %v9235_v63  ;;  %v7773_v32 = vpop.f32.mrb[89].mxu1 }
 0x207   :  { %v7774_v59 = vadd.f32 %v7773_v32, %v7772_v1  ;;  %v7775_v24 = vpop.f32.mrb[90].mxu1  ;;  %v9266_v1 = vld [vmem:[%s12441_s0 + $0x2a0] ss:$100 sps:$4 sm:$0xff]  }
 0x208   :  { %5537 = vmatpush1.bf16.msra.mxu0 %v9214_v51  ;;  %v7776_v3 = vpop.f32.mrb[91].mxu1  ;;  %8035 = vmatpush3.bf16.msra.mxu1 %v9228_v52  ;;  %v9255_v52 = vld [vmem:[%s12440_s1 + $0xf38] ss:$12 sps:$4 sm:$0xff]  }
 0x209   :  { %5538 = vmatprep.subr.bf16.mxu0 %v9221_v41  ;;  %v11649_v28 = vadd.f32 %v7774_v59, %v11490_v44  ;;  %v7777_v62 = vadd.f32 %v7776_v3, %v7775_v24  ;;  %8066 = vmatprep.subr.bf16.mxu1 %v9241_v8  ;;  %v128_v8 = vld [vmem:[%s12441_s0 + $0x368] sm:$0xff] }
 0x20a   :  { %6418 = vmatmul.mubr.bf16.gmra.mrb[196].mxu1 %v11482_v43  ;;  %v9231_v43 = vld [vmem:[%s12440_s1 + $0xf64] ss:$12 sps:$4 sm:$0xff]   ;;  %v9243_v59 = vld [vmem:[%s12440_s1 + $0xfa8] ss:$12 sps:$4 sm:$0xff]   ;;  %v7000_v24 = vcombine.high %v128_v8, %v128_v8 }
 0x20b   :  { %5496 = vmatmul.mubr.bf16.gmra.mrb[4].mxu0 %v9240_v53  ;;  %v11656_v7 = vadd.f32 %v7777_v62, %v11495_v10  ;;  %6457 = vmatprep.mubr.bf16.mxu1 %v11487_v14  ;;  %v9242_v14 = vld [vmem:[%s12440_s1 + $0xf08] ss:$12 sps:$4 sm:$0xff]  }
 0x20c   :  { %5539 = vmatpush1.bf16.msra.mxu0 %v9219_v56  ;;  %5505 = vmatprep.mubr.bf16.mxu0 %v9248_v5  ;;  %v9259_v56 = vld [vmem:[%s12440_s1 + $0x1010] ss:$12 sps:$4 sm:$0xff]  }
 0x20d   :  { %5540 = vmatprep.subr.bf16.mxu0 %v9226_v57  ;;  %v7778_v44 = vpop.f32.mrb[92].mxu1  ;;  %v9260_v57 = vld [vmem:[%s12440_s1 + $0xf50] ss:$12 sps:$4 sm:$0xff]  }
 0x20e   :  { %v7779_v10 = vpop.f32.mrb[93].mxu1 }
 0x20f   :  { %v7780_v37 = vadd.f32 %v7779_v10, %v7778_v44  ;;  %v7781_v55 = vpop.f32.mrb[94].mxu1  ;;  %v9268_v10 = vld [vmem:[%s12440_s1 + $0xf68] ss:$12 sps:$4 sm:$0xff]  }
 0x210   :  { %5541 = vmatpush1.bf16.msra.mxu0 %v9224_v46  ;;  %v7782_v4 = vpop.f32.mrb[95].mxu1 }
 0x211   :  { %5542 = vmatprep.subr.bf16.mxu0 %v9231_v43  ;;  %v11678_v54 = vadd.f32 %v7780_v37, %v11515_v38  ;;  %v7783_v9 = vadd.f32 %v7782_v4, %v7781_v55  ;;  %v9247_v38 = vld [vmem:[%s12440_s1 + $0xf20] ss:$12 sps:$4 sm:$0xff]   ;;  %v6999_v37 = vcombine.low %v128_v8, %v128_v8  ;;  %v9285_v8 = vld [vmem:[%s12440_s1 + $0xfb0] ss:$12 sps:$4 sm:$0xff]  }
 0x212   :  { %6458 = vmatmul.mubr.bf16.vlgmr.msra.gmra.mrb[200].mxu1 %v11601_v61  ;;  %v9250_v43 = vld [vmem:[%s12440_s1 + $0xfc0] ss:$12 sps:$4 sm:$0xff]  }
 0x213   :  { %5506 = vmatmul.mubr.bf16.gmra.mrb[8].mxu0 %v9253_v0  ;;  %v11697_v18 = vadd.f32 %v7783_v9, %v11525_v33  ;;  %6465 = vmatprep.mubr.bf16.mxu1 %v9235_v63  ;;  %v9245_v63 = vld [vmem:[%s12440_s1 + $0xfac] ss:$12 sps:$4 sm:$0xff]  }
 0x214   :  { %5543 = vmatpush1.bf16.msra.mxu0 %v9229_v20  ;;  %8067 = vmatpush3.bf16.msra.mxu1 %v9242_v14  ;;  %v9258_v20 = vld [vmem:[%s12440_s1 + $0xfdc] ss:$12 sps:$4 sm:$0xff]   ;;  %v9272_v14 = vld [vmem:[%s12440_s1 + $0x1040] ss:$12 sps:$4 sm:$0xff]   ;;  %v9256_v9 = vld [vmem:[%s12440_s1 + $0xfd8] ss:$12 sps:$4 sm:$0xff]  }
 0x215   :  { %5544 = vmatprep.subr.bf16.mxu0 %v9234_v31  ;;  %v7784_v61 = vpop.f32.mrb[96].mxu1  ;;  %8068 = vmatprep.subr.bf16.mxu1 %v9246_v12  ;;  %v9279_v12 = vld [vmem:[%s12440_s1 + $0x1058] ss:$12 sps:$4 sm:$0xff]  }
 0x216   :  { %5515 = vmatprep.mubr.bf16.mxu0 %v9261_v60  ;;  %v7785_v15 = vpop.f32.mrb[97].mxu1 }
 0x217   :  { %v7786_v51 = vadd.f32 %v7785_v15, %v7784_v61  ;;  %v7787_v33 = vpop.f32.mrb[98].mxu1  ;;  %v9263_v61 = vld [vmem:[%s12440_s1 + $0xff0] ss:$12 sps:$4 sm:$0xff]   ;;  %v9280_v15 = vld [vmem:[%s12440_s1 + $0xf98] ss:$12 sps:$4 sm:$0xff]  }
 0x218   :  { %5545 = vmatpush1.bf16.msra.mxu0 %v9232_v25  ;;  %v7788_v41 = vpop.f32.mrb[99].mxu1  ;;  %8069 = vmatpush3.bf16.msra.mxu1 %v9247_v38  ;;  %v9265_v25 = vld [vmem:[%s12440_s1 + $0xff4] ss:$12 sps:$4 sm:$0xff]  }
 0x219   :  { %5546 = vmatprep.subr.bf16.mxu0 %v9239_v49  ;;  %v11718_v32 = vadd.f32 %v7786_v51, %v11547_v19  ;;  %8070 = vmatprep.subr.bf16.mxu1 %v9254_v16  ;;  %v9252_v19 = vld [vmem:[%s12440_s1 + $0xfc4] ss:$12 sps:$4 sm:$0xff]   ;;  %v9271_v16 = vld [vmem:[%s12440_s1 + $0x100c] ss:$12 sps:$4 sm:$0xff]  }
 0x21a   :  { %6466 = vmatmul.mubr.bf16.gmra.mrb[204].mxu1 %v9240_v53  ;;  %v9267_v53 = vld [vmem:[%s12440_s1 + $0x1028] ss:$12 sps:$4 sm:$0xff]  }
 0x21b   :  { %5516 = vmatmul.mubr.bf16.gmra.mrb[12].mxu0 %v9266_v1  ;;  %6473 = vmatprep.mubr.bf16.mxu1 %v9248_v5 }
 0x21c   :  { %5547 = vmatpush1.bf16.msra.mxu0 %v9237_v23  ;;  %8071 = vmatpush3.bf16.msra.mxu1 %v9255_v52  ;;  %v9269_v52 = vld [vmem:[%s12440_s1 + $0x1008] ss:$12 sps:$4 sm:$0xff]  }
 0x21d   :  { %5548 = vmatprep.subr.bf16.mxu0 %v9245_v63  ;;  %v7806_v3 = vpop.f32.mrb[100].mxu1  ;;  %8072 = vmatprep.subr.bf16.mxu1 %v9259_v56  ;;  %v9284_v63 = vld [vmem:[%s12440_s1 + $0x1070] ss:$12 sps:$4 sm:$0xff]  }
 0x21e   :  { %5525 = vmatprep.mubr.bf16.mxu0 %v7000_v24  ;;  %v7807_v62 = vpop.f32.mrb[101].mxu1 }
 0x21f   :  { %v7808_v5 = vadd.f32 %v7807_v62, %v7806_v3  ;;  %v7809_v46 = vpop.f32.mrb[102].mxu1  ;;  %v9283_v3 = vld [vmem:[%s12440_s1 + $0x103c] ss:$12 sps:$4 sm:$0xff]  }
 0x220   :  { %5549 = vmatpush1.bf16.msra.mxu0 %v9243_v59  ;;  %v7810_v44 = vpop.f32.mrb[103].mxu1  ;;  %8073 = vmatpush3.bf16.msra.mxu1 %v9260_v57 }
 0x221   :  { %5550 = vmatprep.subr.bf16.mxu0 %v9252_v19  ;;  %v11745_v55 = vadd.f32 %v7808_v5, %v11576_v35  ;;  %v7811_v31 = vadd.f32 %v7810_v44, %v7809_v46  ;;  %8074 = vmatprep.subr.bf16.mxu1 %v9267_v53  ;;  %v9288_v35 = vld [vmem:[%s12441_s0 + $0x54] ss:$100 sps:$4 sm:$0xff]   ;;  %v9275_v19 = vld [vmem:[%s12440_s1 + $0x1020] ss:$12 sps:$4 sm:$0xff]  }
 0x222   :  { %6474 = vmatmul.mubr.bf16.gmra.mrb[208].mxu1 %v9253_v0  ;;  %v9281_v46 = vld [vmem:[%s12440_s1 + $0x1038] ss:$12 sps:$4 sm:$0xff]  }
 0x223   :  { %5526 = vmatmul.mubr.bf16.gmra.mrb[16].mxu0 %v6999_v37  ;;  %v11751_v4 = vadd.f32 %v7811_v31, %v11583_v2  ;;  %6481 = vmatprep.mubr.bf16.mxu1 %v9261_v60  ;;  %v9273_v2 = vld [vmem:[%s12440_s1 + $0xf80] ss:$12 sps:$4 sm:$0xff]  }
 0x224   :  { %5551 = vmatpush1.bf16.msra.mxu0 %v9250_v43  ;;  %8075 = vmatpush3.bf16.msra.mxu1 %v9268_v10  ;;  %v9291_v43 = vld [vmem:[%s12440_s1 + $0x1054] ss:$12 sps:$4 sm:$0xff]  }
 0x225   :  { %5552 = vmatprep.subr.bf16.mxu0 %v9258_v20  ;;  %v7812_v0 = vpop.f32.mrb[104].mxu1  ;;  %8076 = vmatprep.subr.bf16.mxu1 %v9272_v14  ;;  %v9286_v20 = vld [vmem:[%s12441_s0 + $0x50] ss:$100 sps:$4 sm:$0xff]   ;;  %v9295_v31 = vld [vmem:[%s12441_s0 + $0x11c] ss:$100 sps:$4 sm:$0xff]  }
 0x226   :  { %5566 = vmatprep.mubr.bf16.mxu0 %v9288_v35  ;;  %v7813_v49 = vpop.f32.mrb[105].mxu1 }
 0x227   :  { %v7814_v38 = vadd.f32 %v7813_v49, %v7812_v0  ;;  %v7815_v60 = vpop.f32.mrb[106].mxu1  ;;  %v9306_v0 = vld [vmem:[%s12440_s1 + $0x1160] ss:$12 sps:$4 sm:$0xff]   ;;  %v9292_v49 = vld [vmem:[%s12440_s1 + $0x1068] ss:$12 sps:$4 sm:$0xff]  }
 0x228   :  { %5553 = vmatpush1.bf16.msra.mxu0 %v9256_v9  ;;  %v7816_v23 = vpop.f32.mrb[107].mxu1  ;;  %8077 = vmatpush3.bf16.msra.mxu1 %v9273_v2  ;;  %v9294_v9 = vld [vmem:[%s12440_s1 + $0x106c] ss:$12 sps:$4 sm:$0xff]  }
 0x229   :  { %5554 = vmatprep.subr.bf16.mxu0 %v9265_v25  ;;  %v11778_v51 = vadd.f32 %v7814_v38, %v11613_v30  ;;  %v7817_v33 = vadd.f32 %v7816_v23, %v7815_v60  ;;  %8078 = vmatprep.subr.bf16.mxu1 %v9279_v12  ;;  %v9277_v30 = vld [vmem:[%s12440_s1 + $0x1024] ss:$12 sps:$4 sm:$0xff]   ;;  %v9307_v38 = vld [vmem:[%s12440_s1 + $0x10a0] ss:$12 sps:$4 sm:$0xff]   ;;  %v9300_v23 = vld [vmem:[%s12441_s0 + $0x118] ss:$100 sps:$4 sm:$0xff]  }
 0x22a   :  { %6482 = vmatmul.mubr.bf16.gmra.mrb[212].mxu1 %v9266_v1 }
 0x22b   :  { %v11784_v41 = vadd.f32 %v7817_v33, %v11624_v40  ;;  %6489 = vmatprep.mubr.bf16.mxu1 %v7000_v24  ;;  %v9301_v40 = vld [vmem:[%s12440_s1 + $0x1148] ss:$12 sps:$4 sm:$0xff]  }
 0x22c   :  { %5555 = vmatpush1.bf16.msra.mxu0 %v9263_v61  ;;  %8079 = vmatpush3.bf16.msra.mxu1 %v9280_v15  ;;  %v9297_v15 = vld [vmem:[%s12440_s1 + $0x1080] ss:$12 sps:$4 sm:$0xff]  }
 0x22d   :  { %5556 = vmatprep.subr.bf16.mxu0 %v9271_v16  ;;  %v7818_v1 = vpop.f32.mrb[108].mxu1  ;;  %8080 = vmatprep.subr.bf16.mxu1 %v9284_v63  ;;  %v9308_v63 = vld [vmem:[%s12441_s0 + $0x1e4] ss:$100 sps:$4 sm:$0xff]  }
 0x22e   :  { %v7819_v56 = vpop.f32.mrb[109].mxu1 }
 0x22f   :  { %v7820_v59 = vadd.f32 %v7819_v56, %v7818_v1  ;;  %v7821_v24 = vpop.f32.mrb[110].mxu1  ;;  %v9303_v56 = vld [vmem:[%s12440_s1 + $0x1098] ss:$12 sps:$4 sm:$0xff]  }
 0x230   :  { %5557 = vmatpush1.bf16.msra.mxu0 %v9269_v52  ;;  %v7822_v57 = vpop.f32.mrb[111].mxu1  ;;  %8081 = vmatpush3.bf16.msra.mxu1 %v9285_v8  ;;  %v9315_v8 = vld [vmem:[%s12440_s1 + $0x10b8] ss:$12 sps:$4 sm:$0xff]  }
 0x231   :  { %5558 = vmatprep.subr.bf16.mxu0 %v9277_v30  ;;  %v11805_v53 = vadd.f32 %v7820_v59, %v11649_v28  ;;  %v7823_v62 = vadd.f32 %v7822_v57, %v7821_v24  ;;  %8112 = vmatprep.subr.bf16.mxu1 %v9301_v40  ;;  %v9305_v30 = vld [vmem:[%s12440_s1 + $0x109c] ss:$12 sps:$4 sm:$0xff]   ;;  %v9312_v59 = vld [vmem:[%s12440_s1 + $0x10b4] ss:$12 sps:$4 sm:$0xff]  }
 0x232   :  { %6490 = vmatmul.mubr.bf16.gmra.mrb[216].mxu1 %v6999_v37  ;;  %v9289_v37 = vld [vmem:[%s12440_s1 + $0x1050] ss:$12 sps:$4 sm:$0xff]  }
 0x233   :  { %v11808_v5 = vadd.f32 %v7823_v62, %v11656_v7  ;;  %6529 = vmatprep.mubr.bf16.mxu1 %v9288_v35  ;;  %v9302_v35 = vld [vmem:[%s12440_s1 + $0x1088] ss:$12 sps:$4 sm:$0xff]   ;;  %v9319_v40 = vld [vmem:[%s12440_s1 + $0x1190] ss:$12 sps:$4 sm:$0xff]  }
 0x234   :  { %5559 = vmatpush1.bf16.msra.mxu0 %v9275_v19  ;;  %v9327_v19 = vld [vmem:[%s12440_s1 + $0x11a8] ss:$12 sps:$4 sm:$0xff]  }
 0x235   :  { %5560 = vmatprep.subr.bf16.mxu0 %v9283_v3  ;;  %v7824_v44 = vpop.f32.mrb[112].mxu1  ;;  %v9313_v3 = vld [vmem:[%s12441_s0 + $0x1e0] ss:$100 sps:$4 sm:$0xff]  }
 0x236   :  { %v7825_v28 = vpop.f32.mrb[113].mxu1 }
 0x237   :  { %v7826_v10 = vadd.f32 %v7825_v28, %v7824_v44  ;;  %v7827_v7 = vpop.f32.mrb[114].mxu1  ;;  %v9321_v44 = vld [vmem:[%s12441_s0 + $0x2ac] ss:$100 sps:$4 sm:$0xff]  }
 0x238   :  { %5561 = vmatpush1.bf16.msra.mxu0 %v9281_v46  ;;  %v7828_v14 = vpop.f32.mrb[115].mxu1 }
 0x239   :  { %5562 = vmatprep.subr.bf16.mxu0 %v9291_v43  ;;  %v11832_v25 = vadd.f32 %v7826_v10, %v11678_v54  ;;  %v7829_v2 = vadd.f32 %v7828_v14, %v7827_v7  ;;  %v9299_v54 = vld [vmem:[%s12440_s1 + $0x1084] ss:$12 sps:$4 sm:$0xff]   ;;  %v9328_v10 = vld [vmem:[%s12440_s1 + $0x10e8] ss:$12 sps:$4 sm:$0xff]  }
 0x23a   :  { %6530 = vmatmul.mubr.bf16.vlgmr.msra.gmra.mrb[220].mxu1 %v9286_v20  ;;  %v9310_v43 = vld [vmem:[%s12440_s1 + $0x10b0] ss:$12 sps:$4 sm:$0xff]  }
 0x23b   :  { %v11838_v12 = vadd.f32 %v7829_v2, %v11697_v18  ;;  %6537 = vmatprep.mubr.bf16.mxu1 %v9295_v31  ;;  %8113 = vmatpush3.bf16.msra.mxu1 %v9302_v35  ;;  %v9314_v18 = vld [vmem:[%s12440_s1 + $0x1178] ss:$12 sps:$4 sm:$0xff]   ;;  %v9333_v35 = vld [vmem:[%s12440_s1 + $0x1100] ss:$12 sps:$4 sm:$0xff]  }
 0x23c   :  { %5563 = vmatpush1.bf16.msra.mxu0 %v9289_v37  ;;  %8114 = vmatprep.subr.bf16.mxu1 %v9306_v0  ;;  %v9339_v0 = vld [vmem:[%s12440_s1 + $0x11d8] ss:$12 sps:$4 sm:$0xff]  }
 0x23d   :  { %5564 = vmatprep.subr.bf16.mxu0 %v9294_v9  ;;  %v7830_v60 = vpop.f32.mrb[116].mxu1  ;;  %v9316_v9 = vld [vmem:[%s12440_s1 + $0x10c8] ss:$12 sps:$4 sm:$0xff]  }
 0x23e   :  { %v7831_v61 = vpop.f32.mrb[117].mxu1 }
 0x23f   :  { %v7832_v16 = vadd.f32 %v7831_v61, %v7830_v60  ;;  %v7833_v33 = vpop.f32.mrb[118].mxu1  ;;  %8115 = vmatpush3.bf16.msra.mxu1 %v9307_v38 }
 0x240   :  { %5565 = vmatpush1.bf16.msra.mxu0 %v9292_v49  ;;  %v7834_v52 = vpop.f32.mrb[119].mxu1  ;;  %8116 = vmatprep.subr.bf16.mxu1 %v9314_v18  ;;  %v9323_v18 = vld [vmem:[%s12440_s1 + $0x10e0] ss:$12 sps:$4 sm:$0xff]  }
 0x241   :  { %5615 = vmatprep.subr.bf16.mxu0 %v9299_v54  ;;  %v11868_v1 = vadd.f32 %v7832_v16, %v11718_v32  ;;  %v9320_v32 = vld [vmem:[%s12440_s1 + $0x10d0] ss:$12 sps:$4 sm:$0xff]   ;;  %v9326_v54 = vld [vmem:[%s12441_s0 + $0x2a8] ss:$100 sps:$4 sm:$0xff]  }
 0x242   :  { %6538 = vmatmul.mubr.bf16.gmra.mrb[224].mxu1 %v9300_v23  ;;  %v9331_v16 = vld [vmem:[%s12440_s1 + $0x10fc] ss:$12 sps:$4 sm:$0xff]  }
 0x243   :  { %5567 = vmatmul.mubr.bf16.vlgmr.msra.gmra.mrb[0].mxu0 %v9286_v20  ;;  %6545 = vmatprep.mubr.bf16.mxu1 %v9308_v63  ;;  %v9318_v20 = vld [vmem:[%s12440_s1 + $0x10cc] ss:$12 sps:$4 sm:$0xff]   ;;  %v9344_v52 = vld [vmem:[%s12440_s1 + $0x11f0] ss:$12 sps:$4 sm:$0xff]  }
 0x244   :  { %5616 = vmatpush1.bf16.msra.mxu0 %v9297_v15  ;;  %8117 = vmatpush3.bf16.msra.mxu1 %v9315_v8  ;;  %v9340_v15 = vld [vmem:[%s12440_s1 + $0x1118] ss:$12 sps:$4 sm:$0xff]  }
 0x245   :  { %5617 = vmatprep.subr.bf16.mxu0 %v9305_v30  ;;  %v7852_v24 = vpop.f32.mrb[120].mxu1  ;;  %8118 = vmatprep.subr.bf16.mxu1 %v9319_v40  ;;  %v9329_v8 = vld [vmem:[%s12440_s1 + $0x10f8] ss:$12 sps:$4 sm:$0xff]   ;;  %v9345_v40 = vld [vmem:[%s12440_s1 + $0x1130] ss:$12 sps:$4 sm:$0xff]  }
 0x246   :  { %5576 = vmatprep.mubr.bf16.mxu0 %v9295_v31  ;;  %v7853_v57 = vpop.f32.mrb[121].mxu1  ;;  %v9332_v31 = vld [vmem:[%s12440_s1 + $0x11c0] ss:$12 sps:$4 sm:$0xff]  }
 0x247   :  { %v7854_v62 = vadd.f32 %v7853_v57, %v7852_v24  ;;  %v7855_v46 = vpop.f32.mrb[122].mxu1  ;;  %v9348_v57 = vld [vmem:[%s12441_s0 + $0x5c] ss:$100 sps:$4 sm:$0xff]  }
 0x248   :  { %5618 = vmatpush1.bf16.msra.mxu0 %v9303_v56  ;;  %v7856_v28 = vpop.f32.mrb[123].mxu1  ;;  %8119 = vmatpush3.bf16.msra.mxu1 %v9320_v32 }
 0x249   :  { %5619 = vmatprep.subr.bf16.mxu0 %v9312_v59  ;;  %v11901_v7 = vadd.f32 %v7854_v62, %v11745_v55  ;;  %v7857_v37 = vadd.f32 %v7856_v28, %v7855_v46  ;;  %8120 = vmatprep.subr.bf16.mxu1 %v9327_v19  ;;  %v9325_v55 = vld [vmem:[%s12440_s1 + $0x10e4] ss:$12 sps:$4 sm:$0xff]   ;;  %v9343_v62 = vld [vmem:[%s12440_s1 + $0x112c] ss:$12 sps:$4 sm:$0xff]  }
 0x24a   :  { %6546 = vmatmul.mubr.bf16.gmra.mrb[228].mxu1 %v9313_v3  ;;  %v9335_v19 = vld [vmem:[%s12440_s1 + $0x1110] ss:$12 sps:$4 sm:$0xff]  }
 0x24b   :  { %5577 = vmatmul.mubr.bf16.gmra.mrb[4].mxu0 %v9300_v23  ;;  %v11907_v14 = vadd.f32 %v7857_v37, %v11751_v4  ;;  %6553 = vmatprep.mubr.bf16.mxu1 %v9321_v44  ;;  %v129_v4 = vld [vmem:[%s12441_s0 + $0x370] sm:$0xff] }
 0x24c   :  { %5620 = vmatpush1.bf16.msra.mxu0 %v9310_v43  ;;  %8121 = vmatpush3.bf16.msra.mxu1 %v9328_v10  ;;  %v7002_v61 = vcombine.high %v129_v4, %v129_v4  ;;  %v7001_v59 = vcombine.low %v129_v4, %v129_v4 }
 0x24d   :  { %5621 = vmatprep.subr.bf16.mxu0 %v9318_v20  ;;  %v7858_v2 = vpop.f32.mrb[124].mxu1  ;;  %8122 = vmatprep.subr.bf16.mxu1 %v9332_v31  ;;  %v9341_v20 = vld [vmem:[%s12440_s1 + $0x1128] ss:$12 sps:$4 sm:$0xff]   ;;  %v11979_v31 = vld [vmem:[%s12441_s0 + $0x58] ss:$100 sps:$4 sm:$0xff]  }
 0x24e   :  { %5586 = vmatprep.mubr.bf16.mxu0 %v9308_v63  ;;  %v7859_v49 = vpop.f32.mrb[125].mxu1 }
 0x24f   :  { %v7860_v38 = vadd.f32 %v7859_v49, %v7858_v2  ;;  %v7861_v60 = vpop.f32.mrb[126].mxu1  ;;  %v9354_v2 = vld [vmem:[%s12440_s1 + $0x115c] ss:$12 sps:$4 sm:$0xff]  }
 0x250   :  { %5622 = vmatpush1.bf16.msra.mxu0 %v9316_v9  ;;  %v7862_v23 = vpop.f32.mrb[127].mxu1  ;;  %8123 = vmatpush3.bf16.msra.mxu1 %v9333_v35  ;;  %v11987_v35 = vld [vmem:[%s12441_s0 + $0x124] ss:$100 sps:$4 sm:$0xff]  }
 0x251   :  { %5623 = vmatprep.subr.bf16.mxu0 %v9325_v55  ;;  %v11937_v33 = vadd.f32 %v7860_v38, %v11778_v51  ;;  %v7863_v63 = vadd.f32 %v7862_v23, %v7861_v60  ;;  %8124 = vmatprep.subr.bf16.mxu1 %v9339_v0  ;;  %v9337_v51 = vld [vmem:[%s12440_s1 + $0x1114] ss:$12 sps:$4 sm:$0xff]   ;;  %v9352_v60 = vld [vmem:[%s12440_s1 + $0x1158] ss:$12 sps:$4 sm:$0xff]  }
 0x252   :  { %6554 = vmatmul.mubr.bf16.gmra.mrb[232].mxu1 %v9326_v54  ;;  %v9349_v55 = vld [vmem:[%s12440_s1 + $0x1140] ss:$12 sps:$4 sm:$0xff]   ;;  %v9361_v0 = vld [vmem:[%s12440_s1 + $0x1208] ss:$12 sps:$4 sm:$0xff]  }
 0x253   :  { %5587 = vmatmul.mubr.bf16.gmra.mrb[8].mxu0 %v9313_v3  ;;  %v11943_v30 = vadd.f32 %v7863_v63, %v11784_v41  ;;  %6561 = vmatprep.mubr.bf16.mxu1 %v7002_v61  ;;  %v12016_v23 = vld [vmem:[%s12441_s0 + $0x120] ss:$100 sps:$4 sm:$0xff]  }
 0x254   :  { %5624 = vmatpush1.bf16.msra.mxu0 %v9323_v18  ;;  %8125 = vmatpush3.bf16.msra.mxu1 %v9340_v15  ;;  %v9365_v18 = vld [vmem:[%s12440_s1 + $0x1220] ss:$12 sps:$4 sm:$0xff]   ;;  %v9357_v15 = vld [vmem:[%s12440_s1 + $0x1170] ss:$12 sps:$4 sm:$0xff]  }
 0x255   :  { %5625 = vmatprep.subr.bf16.mxu0 %v9331_v16  ;;  %v7864_v56 = vpop.f32.mrb[128].mxu1  ;;  %8126 = vmatprep.subr.bf16.mxu1 %v9344_v52  ;;  %v12024_v52 = vld [vmem:[%s12441_s0 + $0x1ec] ss:$100 sps:$4 sm:$0xff]  }
 0x256   :  { %5596 = vmatprep.mubr.bf16.mxu0 %v9321_v44  ;;  %v7865_v41 = vpop.f32.mrb[129].mxu1  ;;  %v9447_v44 = vmov 0.0  }
 0x257   :  { %v7866_v32 = vadd.f32 %v7865_v41, %v7864_v56  ;;  %v7867_v24 = vpop.f32.mrb[130].mxu1  ;;  %v9362_v41 = vld [vmem:[%s12440_s1 + $0x1188] ss:$12 sps:$4 sm:$0xff]  }
 0x258   :  { %5626 = vmatpush1.bf16.msra.mxu0 %v9329_v8  ;;  %v7868_v3 = vpop.f32.mrb[131].mxu1  ;;  %8127 = vmatpush3.bf16.msra.mxu1 %v9345_v40  ;;  %v9372_v40 = vld [vmem:[%s12440_s1 + $0x1238] ss:$12 sps:$4 sm:$0xff]  }
 0x259   :  { %5627 = vmatprep.subr.bf16.mxu0 %v9337_v51  ;;  %v11964_v46 = vadd.f32 %v7866_v32, %v11805_v53  ;;  %v7869_v43 = vadd.f32 %v7868_v3, %v7867_v24  ;;  %8171 = vmatprep.subr.bf16.mxu1 %v9447_v44  ;;  %v9351_v53 = vld [vmem:[%s12440_s1 + $0x1144] ss:$12 sps:$4 sm:$0xff]   ;;  %v9364_v51 = vld [vmem:[%s12440_s1 + $0x118c] ss:$12 sps:$4 sm:$0xff]  }
 0x25a   :  { %6562 = vmatmul.mubr.bf16.gmra.mrb[236].mxu1 %v7001_v59 }
 0x25b   :  { %5597 = vmatmul.mubr.bf16.gmra.mrb[12].mxu0 %v9326_v54  ;;  %v11968_v28 = vadd.f32 %v7869_v43, %v11808_v5  ;;  %6601 = vmatprep.mubr.bf16.mxu1 %v9348_v57  ;;  %v12059_v43 = vld [vmem:[%s12441_s0 + $0x2b4] ss:$100 sps:$4 sm:$0xff]  }
 0x25c   :  { %5628 = vmatpush1.bf16.msra.mxu0 %v9335_v19  ;;  %5606 = vmatprep.mubr.bf16.mxu0 %v7002_v61  ;;  %v12051_v19 = vld [vmem:[%s12441_s0 + $0x1e8] ss:$100 sps:$4 sm:$0xff]  }
 0x25d   :  { %5629 = vmatprep.subr.bf16.mxu0 %v9343_v62  ;;  %v7870_v10 = vpop.f32.mrb[132].mxu1  ;;  %v9368_v62 = vld [vmem:[%s12440_s1 + $0x11a0] ss:$12 sps:$4 sm:$0xff]  }
 0x25e   :  { %v7871_v37 = vpop.f32.mrb[133].mxu1 }
 0x25f   :  { %v7872_v5 = vadd.f32 %v7871_v37, %v7870_v10  ;;  %v7873_v9 = vpop.f32.mrb[134].mxu1  ;;  %v9383_v10 = vld [vmem:[%s12440_s1 + $0x1268] ss:$12 sps:$4 sm:$0xff]  }
 0x260   :  { %5630 = vmatpush1.bf16.msra.mxu0 %v9341_v20  ;;  %v7874_v4 = vpop.f32.mrb[135].mxu1 }
 0x261   :  { %5631 = vmatprep.subr.bf16.mxu0 %v9351_v53  ;;  %v11996_v49 = vadd.f32 %v7872_v5, %v11832_v25  ;;  %v7875_v54 = vadd.f32 %v7874_v4, %v7873_v9  ;;  %v9359_v25 = vld [vmem:[%s12440_s1 + $0x1174] ss:$12 sps:$4 sm:$0xff]   ;;  %v9375_v53 = vld [vmem:[%s12440_s1 + $0x11bc] ss:$12 sps:$4 sm:$0xff]  }
 0x262   :  { %6602 = vmatmul.mubr.bf16.vlgmr.msra.gmra.mrb[240].mxu1 %v11979_v31  ;;  %v9387_v4 = vld [vmem:[%s12440_s1 + $0x1280] ss:$12 sps:$4 sm:$0xff]  }
 0x263   :  { %5607 = vmatmul.mubr.bf16.gmra.mrb[16].mxu0 %v7001_v59  ;;  %v12000_v38 = vadd.f32 %v7875_v54, %v11838_v12  ;;  %6609 = vmatprep.mubr.bf16.mxu1 %v11987_v35  ;;  %v9370_v59 = vld [vmem:[%s12440_s1 + $0x11a4] ss:$12 sps:$4 sm:$0xff]  }
 0x264   :  { %5632 = vmatpush1.bf16.msra.mxu0 %v9349_v55  ;;  %8172 = vmatpush3.bf16.msra.mxu1 %v9361_v0  ;;  %v9373_v55 = vld [vmem:[%s12440_s1 + $0x11b8] ss:$12 sps:$4 sm:$0xff]   ;;  %v12092_v54 = vld [vmem:[%s12441_s0 + $0x2b0] ss:$100 sps:$4 sm:$0xff]  }
 0x265   :  { %5633 = vmatprep.subr.bf16.mxu0 %v9354_v2  ;;  %v7876_v61 = vpop.f32.mrb[136].mxu1  ;;  %8173 = vmatprep.subr.bf16.mxu1 %v9447_v44 }
 0x266   :  { %5647 = vmatprep.mubr.bf16.mxu0 %v9348_v57  ;;  %v7877_v12 = vpop.f32.mrb[137].mxu1 }
 0x267   :  { %v7878_v16 = vadd.f32 %v7877_v12, %v7876_v61  ;;  %v7879_v63 = vpop.f32.mrb[138].mxu1 }
 0x268   :  { %5634 = vmatpush1.bf16.msra.mxu0 %v9352_v60  ;;  %v7880_v8 = vpop.f32.mrb[139].mxu1  ;;  %8174 = vmatpush3.bf16.msra.mxu1 %v9365_v18  ;;  %v9379_v18 = vld [vmem:[%s12440_s1 + $0x11d0] ss:$12 sps:$4 sm:$0xff]  }
 0x269   :  { %5635 = vmatprep.subr.bf16.mxu0 %v9359_v25  ;;  %v12033_v56 = vadd.f32 %v7878_v16, %v11868_v1  ;;  %8175 = vmatprep.subr.bf16.mxu1 %v9447_v44  ;;  %v9376_v1 = vld [vmem:[%s12440_s1 + $0x1250] ss:$12 sps:$4 sm:$0xff]   ;;  %v9386_v16 = vld [vmem:[%s12440_s1 + $0x11ec] ss:$12 sps:$4 sm:$0xff]  }
 0x26a   :  { %6610 = vmatmul.mubr.bf16.gmra.mrb[244].mxu1 %v12016_v23 }
 0x26b   :  { %6617 = vmatprep.mubr.bf16.mxu1 %v12024_v52 }
 0x26c   :  { %5636 = vmatpush1.bf16.msra.mxu0 %v9357_v15  ;;  %8176 = vmatpush3.bf16.msra.mxu1 %v9372_v40  ;;  %v9393_v15 = vld [vmem:[%s12440_s1 + $0x1298] ss:$12 sps:$4 sm:$0xff]   ;;  %v9384_v40 = vld [vmem:[%s12440_s1 + $0x11e8] ss:$12 sps:$4 sm:$0xff]  }
 0x26d   :  { %5637 = vmatprep.subr.bf16.mxu0 %v9364_v51  ;;  %v7898_v32 = vpop.f32.mrb[140].mxu1  ;;  %8177 = vmatprep.subr.bf16.mxu1 %v9447_v44 }
 0x26e   :  { %v7899_v24 = vpop.f32.mrb[141].mxu1 }
 0x26f   :  { %v7900_v57 = vadd.f32 %v7899_v24, %v7898_v32  ;;  %v7901_v3 = vpop.f32.mrb[142].mxu1 }
 0x270   :  { %5638 = vmatpush1.bf16.msra.mxu0 %v9362_v41  ;;  %v7902_v20 = vpop.f32.mrb[143].mxu1  ;;  %8178 = vmatpush3.bf16.msra.mxu1 %v9376_v1  ;;  %v9397_v41 = vld [vmem:[%s12440_s1 + $0x12b0] ss:$12 sps:$4 sm:$0xff]  }
 0x271   :  { %5639 = vmatprep.subr.bf16.mxu0 %v9370_v59  ;;  %v12068_v37 = vadd.f32 %v7900_v57, %v11901_v7  ;;  %v7903_v5 = vadd.f32 %v7902_v20, %v7901_v3  ;;  %8179 = vmatprep.subr.bf16.mxu1 %v9447_v44  ;;  %v9381_v7 = vld [vmem:[%s12440_s1 + $0x11d4] ss:$12 sps:$4 sm:$0xff]  }
 0x272   :  { %6618 = vmatmul.mubr.bf16.gmra.mrb[248].mxu1 %v12051_v19  ;;  %v9390_v57 = vld [vmem:[%s12440_s1 + $0x1200] ss:$12 sps:$4 sm:$0xff]  }
 0x273   :  { %v12073_v9 = vadd.f32 %v7903_v5, %v11907_v14  ;;  %6625 = vmatprep.mubr.bf16.mxu1 %v12059_v43  ;;  %v130_v14 = vld [vmem:[%s12441_s0 + $0x378] sm:$0xff] }
 0x274   :  { %5640 = vmatpush1.bf16.msra.mxu0 %v9368_v62  ;;  %8180 = vmatpush3.bf16.msra.mxu1 %v9383_v10  ;;  %v12097_v61 = vcombine.high %v130_v14, %v130_v14  ;;  %v12124_v1 = vcombine.low %v130_v14, %v130_v14  ;;  %v9396_v62 = vld [vmem:[%s12440_s1 + $0x121c] ss:$12 sps:$4 sm:$0xff]   ;;  %v9394_v5 = vld [vmem:[%s12440_s1 + $0x1218] ss:$12 sps:$4 sm:$0xff]  }
 0x275   :  { %5641 = vmatprep.subr.bf16.mxu0 %v9375_v53  ;;  %v7904_v2 = vpop.f32.mrb[144].mxu1  ;;  %8181 = vmatprep.subr.bf16.mxu1 %v9447_v44 }
 0x276   :  { %v7905_v0 = vpop.f32.mrb[145].mxu1 }
 0x277   :  { %v7906_v60 = vadd.f32 %v7905_v0, %v7904_v2  ;;  %v7907_v25 = vpop.f32.mrb[146].mxu1  ;;  %v9404_v2 = vld [vmem:[%s12440_s1 + $0x124c] ss:$12 sps:$4 sm:$0xff]  }
 0x278   :  { %5642 = vmatpush1.bf16.msra.mxu0 %v9373_v55  ;;  %v7908_v12 = vpop.f32.mrb[147].mxu1  ;;  %8182 = vmatpush3.bf16.msra.mxu1 %v9387_v4 }
 0x279   :  { %5643 = vmatprep.subr.bf16.mxu0 %v9381_v7  ;;  %v12106_v63 = vadd.f32 %v7906_v60, %v11937_v33  ;;  %v7909_v8 = vadd.f32 %v7908_v12, %v7907_v25  ;;  %8183 = vmatprep.subr.bf16.mxu1 %v9447_v44  ;;  %v9392_v33 = vld [vmem:[%s12440_s1 + $0x1204] ss:$12 sps:$4 sm:$0xff]  }
 0x27a   :  { %6626 = vmatmul.mubr.bf16.gmra.mrb[252].mxu1 %v12092_v54 }
 0x27b   :  { %v12111_v51 = vadd.f32 %v7909_v8, %v11943_v30  ;;  %6633 = vmatprep.mubr.bf16.mxu1 %v12097_v61 }
 0x27c   :  { %5644 = vmatpush1.bf16.msra.mxu0 %v9379_v18  ;;  %8184 = vmatpush3.bf16.msra.mxu1 %v9393_v15  ;;  %v9402_v18 = vld [vmem:[%s12440_s1 + $0x1248] ss:$12 sps:$4 sm:$0xff]   ;;  %v9406_v15 = vld [vmem:[%s12440_s1 + $0x1260] ss:$12 sps:$4 sm:$0xff]  }
 0x27d   :  { %5645 = vmatprep.subr.bf16.mxu0 %v9386_v16  ;;  %v7910_v59 = vpop.f32.mrb[148].mxu1  ;;  %8185 = vmatprep.subr.bf16.mxu1 %v9447_v44 }
 0x27e   :  { %v7911_v30 = vpop.f32.mrb[149].mxu1 }
 0x27f   :  { %v7912_v32 = vadd.f32 %v7911_v30, %v7910_v59  ;;  %v7913_v24 = vpop.f32.mrb[150].mxu1 }
 0x280   :  { %5646 = vmatpush1.bf16.msra.mxu0 %v9384_v40  ;;  %v7914_v3 = vpop.f32.mrb[151].mxu1  ;;  %8186 = vmatpush3.bf16.msra.mxu1 %v9397_v41  ;;  %v9412_v40 = vld [vmem:[%s12440_s1 + $0x127c] ss:$12 sps:$4 sm:$0xff]   ;;  %v9410_v41 = vld [vmem:[%s12440_s1 + $0x1278] ss:$12 sps:$4 sm:$0xff]  }
 0x281   :  { %5696 = vmatprep.subr.bf16.mxu0 %v9392_v33  ;;  %v12133_v20 = vadd.f32 %v7912_v32, %v11964_v46  ;;  %v7915_v53 = vadd.f32 %v7914_v3, %v7913_v24  ;;  %v9401_v46 = vld [vmem:[%s12440_s1 + $0x1234] ss:$12 sps:$4 sm:$0xff]   ;;  %v9413_v24 = vld [vmem:[%s12440_s1 + $0x1290] ss:$12 sps:$4 sm:$0xff]   ;;  %v9419_v3 = vld [vmem:[%s12440_s1 + $0x12ac] ss:$12 sps:$4 sm:$0xff]  }
 0x282   :  { %6634 = vmatmul.mubr.bf16.gmra.mrb[0].mxu1 %v12124_v1 }
 0x283   :  { %5648 = vmatmul.mubr.bf16.vlgmr.msra.gmra.mrb[0].mxu0 %v11979_v31  ;;  %v12138_v10 = vadd.f32 %v7915_v53, %v11968_v28  ;;  %8187 = vmatprep.mubr.msk.bf16.mxu1 %vm9448_vm0, %v9447_v44  ;;  %v12152_v28 = vld [vmem:[%s12441_s0 + $0x60] ss:$100 sps:$4 sm:$0xff]  }
 0x284   :  { %5697 = vmatpush1.bf16.msra.mxu0 %v9390_v57  ;;  %5657 = vmatprep.mubr.bf16.mxu0 %v11987_v35  ;;  %v9399_v35 = vld [vmem:[%s12440_s1 + $0x1230] ss:$12 sps:$4 sm:$0xff]  }
 0x285   :  { %5698 = vmatprep.subr.bf16.mxu0 %v9396_v62  ;;  %v7916_v31 = vpop.f32.mrb[152].mxu1 }
 0x286   :  { %v7917_v55 = vpop.f32.mrb[153].mxu1 }
 0x287   :  { %v7918_v7 = vadd.f32 %v7917_v55, %v7916_v31  ;;  %v7919_v4 = vpop.f32.mrb[154].mxu1 }
 0x288   :  { %5699 = vmatpush1.bf16.msra.mxu0 %v9394_v5  ;;  %v7920_v14 = vpop.f32.mrb[155].mxu1 }
 0x289   :  { %5700 = vmatprep.subr.bf16.mxu0 %v9401_v46  ;;  %v12161_v0 = vadd.f32 %v7918_v7, %v11996_v49  ;;  %v7921_v60 = vadd.f32 %v7920_v14, %v7919_v4  ;;  %v9408_v49 = vld [vmem:[%s12440_s1 + $0x1264] ss:$12 sps:$4 sm:$0xff]   ;;  %v9417_v46 = vld [vmem:[%s12440_s1 + $0x12a8] ss:$12 sps:$4 sm:$0xff]   ;;  %v9449_v14 = vmov 0  }
 0x28a   :  { %8188 = vmatmul.mubr.bf16.vlgmr.msra.gmra.mrb[4].mxu1 %v12152_v28 }
 0x28b   :  { %5658 = vmatmul.mubr.bf16.gmra.mrb[4].mxu0 %v12016_v23  ;;  %v12166_v25 = vadd.f32 %v7921_v60, %v12000_v38  ;;  %8191 = vmatprep.mubr.msk.bf16.mxu1 %vm9448_vm0, %v9447_v44  ;;  %v12180_v38 = vld [vmem:[%s12441_s0 + $0x128] ss:$100 sps:$4 sm:$0xff]  }
 0x28c   :  { %5701 = vmatpush1.bf16.msra.mxu0 %v9399_v35  ;;  %5667 = vmatprep.mubr.bf16.mxu0 %v12024_v52 }
 0x28d   :  { %5702 = vmatprep.subr.bf16.mxu0 %v9404_v2  ;;  %v7922_v23 = vpop.f32.mrb[156].mxu1 }
 0x28e   :  { %v7923_v12 = vpop.f32.mrb[157].mxu1 }
 0x28f   :  { %v7924_v52 = vadd.f32 %v7923_v12, %v7922_v23  ;;  %v7925_v16 = vpop.f32.mrb[158].mxu1 }
 0x290   :  { %5703 = vmatpush1.bf16.msra.mxu0 %v9402_v18  ;;  %v7926_v8 = vpop.f32.mrb[159].mxu1  ;;  %v9420_v18 = vld [vmem:[%s12441_s0 + $0x380] ss:$0 sps:$4 sm:$0xff]  }
 0x291   :  { %5704 = vmatprep.subr.bf16.mxu0 %v9408_v49  ;;  %v12189_v33 = vadd.f32 %v7924_v52, %v12033_v56  ;;  %v9415_v56 = vld [vmem:[%s12440_s1 + $0x1294] ss:$12 sps:$4 sm:$0xff]  }
 0x292   :  { %8192 = vmatmul.mubr.bf16.gmra.mrb[8].mxu1 %v12180_v38 }
 0x293   :  { %5668 = vmatmul.mubr.bf16.gmra.mrb[8].mxu0 %v12051_v19  ;;  %8195 = vmatprep.mubr.msk.bf16.mxu1 %vm9448_vm0, %v9447_v44  ;;  %v9409_v19 = vld [vmem:[%s12441_s0 + $0x1f0] ss:$100 sps:$4 sm:$0xff]  }
 0x294   :  { %5705 = vmatpush1.bf16.msra.mxu0 %v9406_v15  ;;  %5677 = vmatprep.mubr.bf16.mxu0 %v12059_v43 }
 0x295   :  { %5706 = vmatprep.subr.bf16.mxu0 %v9412_v40  ;;  %v7944_v59 = vpop.f32.mrb[160].mxu1 }
 0x296   :  { %v7945_v30 = vpop.f32.mrb[161].mxu1 }
 0x297   :  { %v7946_v32 = vadd.f32 %v7945_v30, %v7944_v59  ;;  %v7947_v43 = vpop.f32.mrb[162].mxu1 }
 0x298   :  { %5707 = vmatpush1.bf16.msra.mxu0 %v9410_v41  ;;  %v7948_v57 = vpop.f32.mrb[163].mxu1 }
 0x299   :  { %5708 = vmatprep.subr.bf16.mxu0 %v9415_v56  ;;  %v6316_v62 = vadd.f32 %v7946_v32, %v12068_v37  ;;  %v7949_v53 = vadd.f32 %v7948_v57, %v7947_v43  ;;  %v9416_v37 = vld [vmem:[%s12441_s0 + $0x2b8] ss:$100 sps:$4 sm:$0xff]  }
 0x29a   :  { %8196 = vmatmul.mubr.bf16.gmra.mrb[12].mxu1 %v9409_v19 }
 0x29b   :  { %5678 = vmatmul.mubr.bf16.gmra.mrb[12].mxu0 %v12092_v54  ;;  %v6319_v5 = vadd.f32 %v7949_v53, %v12073_v9  ;;  %8199 = vmatprep.mubr.msk.bf16.mxu1 %vm9448_vm0, %v9447_v44 }
 0x29c   :  { %5687 = vmatprep.mubr.bf16.mxu0 %v12097_v61  ;;  %5709 = vmatpush1.bf16.msra.mxu0 %v9413_v24 }
 0x29d   :  { %5710 = vmatprep.subr.bf16.mxu0 %v9419_v3  ;;  %v7950_v31 = vpop.f32.mrb[164].mxu1 }
 0x29e   :  { %v7951_v55 = vpop.f32.mrb[165].mxu1 }
 0x29f   :  { %v7952_v54 = vadd.f32 %v7951_v55, %v7950_v31  ;;  %v7953_v7 = vpop.f32.mrb[166].mxu1 }
 0x2a0   :  { %5711 = vmatpush1.bf16.msra.mxu0 %v9417_v46  ;;  %v7954_v9 = vpop.f32.mrb[167].mxu1 }
 0x2a1   :  { %v6324_v61 = vadd.f32 %v7952_v54, %v12106_v63  ;;  %v7955_v4 = vadd.f32 %v7954_v9, %v7953_v7 }
 0x2a2   :  { %8200 = vmatmul.mubr.bf16.gmra.mrb[16].mxu1 %v9416_v37 }
 0x2a3   :  { %5688 = vmatmul.mubr.bf16.gmra.mrb[16].mxu0 %v12124_v1  ;;  %v6327_v35 = vadd.f32 %v7955_v4, %v12111_v51  ;;  %8203 = vmatprep.mubr.msk.bf16.mxu1 %vm9448_vm0, %v9447_v44 }
 0x2a4   :  { %5728 = vmatprep.mubr.bf16.mxu0 %v9449_v14 }
 0x2a5   :  { %v7956_v2 = vpop.f32.mrb[168].mxu1 }
 0x2a6   :  { %v7957_v60 = vpop.f32.mrb[169].mxu1 }
 0x2a7   :  { %v7958_v49 = vadd.f32 %v7957_v60, %v7956_v2  ;;  %v7959_v23 = vpop.f32.mrb[170].mxu1 }
 0x2a8   :  { %v7960_v63 = vpop.f32.mrb[171].mxu1 }
 0x2a9   :  { %v6332_v12 = vadd.f32 %v7958_v49, %v12133_v20  ;;  %v7961_v1 = vadd.f32 %v7960_v63, %v7959_v23 }
 0x2aa   :  { %8204 = vmatmul.mubr.bf16.gmra.mrb[20].mxu1 %v9420_v18 }
 0x2ab   :  { %5729 = vmatmul.mubr.bf16.vlgmr.msra.gmra.mrb[0].mxu0 %v12152_v28  ;;  %v6335_v51 = vadd.f32 %v7961_v1, %v12138_v10 }
 0x2ac   :  { %5738 = vmatprep.mubr.bf16.mxu0 %v9449_v14 }
 0x2ad   :  { %v7962_v52 = vpop.f32.mrb[172].mxu1 }
 0x2ae   :  { %v7963_v44 = vpop.f32.mrb[173].mxu1 }
 0x2af   :  { %v7964_v16 = vadd.f32 %v7963_v44, %v7962_v52  ;;  %v7965_v15 = vpop.f32.mrb[174].mxu1 }
 0x2b0   :  { %v7966_v8 = vpop.f32.mrb[175].mxu1 }
 0x2b1   :  { %v6340_v40 = vadd.f32 %v7964_v16, %v12161_v0  ;;  %v7967_v41 = vadd.f32 %v7966_v8, %v7965_v15 }
 0x2b3   :  { %5739 = vmatmul.mubr.bf16.gmra.mrb[4].mxu0 %v12180_v38  ;;  %v6343_v56 = vadd.f32 %v7967_v41, %v12166_v25 }
 0x2b4   :  { %5748 = vmatprep.mubr.bf16.mxu0 %v9449_v14 }
 0x2b5   :  { %v7968_v20 = vpop.f32.mrb[176].mxu1 }
 0x2b6   :  { %v7969_v59 = vpop.f32.mrb[177].mxu1 }
 0x2b7   :  { %v7970_v28 = vadd.f32 %v7969_v59, %v7968_v20  ;;  %v7971_v30 = vpop.f32.mrb[178].mxu1 }
 0x2b8   :  { %v7972_v32 = vpop.f32.mrb[179].mxu1 }
 0x2b9   :  { %v6348_v10 = vadd.f32 %v7970_v28, %v12189_v33 }
 0x2bb   :  { %5749 = vmatmul.mubr.bf16.gmra.mrb[8].mxu0 %v9409_v19 }
 0x2bc   :  { %5758 = vmatprep.mubr.bf16.mxu0 %v9449_v14 }
 0x2bd   :  { %v7990_v43 = vpop.f32.mrb[180].mxu1 }
 0x2be   :  { %v7991_v24 = vpop.f32.mrb[181].mxu1 }
 0x2bf   :  { %v7992_v57 = vadd.f32 %v7991_v24, %v7990_v43  ;;  %v7993_v3 = vpop.f32.mrb[182].mxu1 }
 0x2c0   :  { %v7994_v0 = vpop.f32.mrb[183].mxu1 }
 0x2c1   :  { %v6388_v53 = vadd.f32 %v7992_v57, %v6316_v62  ;;  %v7995_v46 = vadd.f32 %v7994_v0, %v7993_v3 }
 0x2c3   :  { %5759 = vmatmul.mubr.bf16.gmra.mrb[12].mxu0 %v9416_v37  ;;  %v6391_v38 = vadd.f32 %v7995_v46, %v6319_v5 }
 0x2c4   :  { %5768 = vmatprep.mubr.bf16.mxu0 %v9449_v14 }
 0x2c5   :  { %v7996_v25 = vpop.f32.mrb[184].mxu1 }
 0x2c6   :  { %v7997_v31 = vpop.f32.mrb[185].mxu1 }
 0x2c7   :  { %v7998_v55 = vadd.f32 %v7997_v31, %v7996_v25  ;;  %v7999_v54 = vpop.f32.mrb[186].mxu1 }
 0x2c8   :  { %v8000_v7 = vpop.f32.mrb[187].mxu1 }
 0x2c9   :  { %v6396_v9 = vadd.f32 %v7998_v55, %v6324_v61  ;;  %v8001_v4 = vadd.f32 %v8000_v7, %v7999_v54 }
 0x2cb   :  { %5769 = vmatmul.mubr.bf16.gmra.mrb[16].mxu0 %v9420_v18  ;;  %v6399_v33 = vadd.f32 %v8001_v4, %v6327_v35 }
 0x2cd   :  { %v8002_v19 = vpop.f32.mrb[188].mxu1 }
 0x2ce   :  { %v8003_v2 = vpop.f32.mrb[189].mxu1 }
 0x2cf   :  { %v8004_v60 = vadd.f32 %v8003_v2, %v8002_v19  ;;  %v8005_v49 = vpop.f32.mrb[190].mxu1 }
 0x2d0   :  { %v8006_v23 = vpop.f32.mrb[191].mxu1 }
 0x2d1   :  { %v6404_v63 = vadd.f32 %v8004_v60, %v6332_v12  ;;  %v8007_v62 = vadd.f32 %v8006_v23, %v8005_v49 }
 0x2d3   :  { %v6407_v1 = vadd.f32 %v8007_v62, %v6335_v51 }
 0x2d5   :  { %v8008_v37 = vpop.f32.mrb[192].mxu1 }
 0x2d6   :  { %v8009_v5 = vpop.f32.mrb[193].mxu1 }
 0x2d7   :  { %v8010_v14 = vadd.f32 %v8009_v5, %v8008_v37  ;;  %v8011_v52 = vpop.f32.mrb[194].mxu1 }
 0x2d8   :  { %v8012_v44 = vpop.f32.mrb[195].mxu1 }
 0x2d9   :  { %v6412_v16 = vadd.f32 %v8010_v14, %v6340_v40  ;;  %v8013_v15 = vadd.f32 %v8012_v44, %v8011_v52 }
 0x2db   :  { %v6415_v8 = vadd.f32 %v8013_v15, %v6343_v56 }
 0x2dd   :  { %v8014_v61 = vpop.f32.mrb[196].mxu1 }
 0x2de   :  { %v8015_v41 = vpop.f32.mrb[197].mxu1 }
 0x2df   :  { %v8016_v18 = vadd.f32 %v8015_v41, %v8014_v61  ;;  %v8017_v35 = vpop.f32.mrb[198].mxu1 }
 0x2e0   :  { %v8018_v20 = vpop.f32.mrb[199].mxu1 }
 0x2e1   :  { %v6420_v59 = vadd.f32 %v8016_v18, %v6348_v10 }
 0x2e5   :  { %v8036_v28 = vpop.f32.mrb[200].mxu1 }
 0x2e6   :  { %v8037_v30 = vpop.f32.mrb[201].mxu1 }
 0x2e7   :  { %v8038_v32 = vadd.f32 %v8037_v30, %v8036_v28  ;;  %v8039_v12 = vpop.f32.mrb[202].mxu1 }
 0x2e8   :  { %v8040_v43 = vpop.f32.mrb[203].mxu1 }
 0x2e9   :  { %v6460_v51 = vadd.f32 %v8038_v32, %v6388_v53  ;;  %v8041_v24 = vadd.f32 %v8040_v43, %v8039_v12 }
 0x2eb   :  { %v6463_v57 = vadd.f32 %v8041_v24, %v6391_v38 }
 0x2ed   :  { %v8042_v3 = vpop.f32.mrb[204].mxu1 }
 0x2ee   :  { %v8043_v0 = vpop.f32.mrb[205].mxu1 }
 0x2ef   :  { %v8044_v46 = vadd.f32 %v8043_v0, %v8042_v3  ;;  %v8045_v40 = vpop.f32.mrb[206].mxu1 }
 0x2f0   :  { %v8046_v25 = vpop.f32.mrb[207].mxu1 }
 0x2f1   :  { %v6468_v56 = vadd.f32 %v8044_v46, %v6396_v9  ;;  %v8047_v31 = vadd.f32 %v8046_v25, %v8045_v40 }
 0x2f3   :  { %v6471_v55 = vadd.f32 %v8047_v31, %v6399_v33 }
 0x2f5   :  { %v8048_v54 = vpop.f32.mrb[208].mxu1 }
 0x2f6   :  { %v8049_v7 = vpop.f32.mrb[209].mxu1 }
 0x2f7   :  { %v8050_v4 = vadd.f32 %v8049_v7, %v8048_v54  ;;  %v8051_v10 = vpop.f32.mrb[210].mxu1 }
 0x2f8   :  { %v8052_v19 = vpop.f32.mrb[211].mxu1 }
 0x2f9   :  { %v6476_v2 = vadd.f32 %v8050_v4, %v6404_v63  ;;  %v8053_v60 = vadd.f32 %v8052_v19, %v8051_v10 }
 0x2fb   :  { %v6479_v49 = vadd.f32 %v8053_v60, %v6407_v1 }
 0x2fd   :  { %v8054_v23 = vpop.f32.mrb[212].mxu1 }
 0x2fe   :  { %v8055_v53 = vpop.f32.mrb[213].mxu1 }
 0x2ff   :  { %v8056_v62 = vadd.f32 %v8055_v53, %v8054_v23  ;;  %v8057_v38 = vpop.f32.mrb[214].mxu1 }
 0x300   :  { %v8058_v37 = vpop.f32.mrb[215].mxu1 }
 0x301   :  { %v6484_v5 = vadd.f32 %v8056_v62, %v6412_v16  ;;  %v8059_v14 = vadd.f32 %v8058_v37, %v8057_v38 }
 0x303   :  { %v6487_v52 = vadd.f32 %v8059_v14, %v6415_v8 }
 0x305   :  { %v8060_v44 = vpop.f32.mrb[216].mxu1 }
 0x306   :  { %v8061_v9 = vpop.f32.mrb[217].mxu1 }
 0x307   :  { %v8062_v15 = vadd.f32 %v8061_v9, %v8060_v44  ;;  %v8063_v33 = vpop.f32.mrb[218].mxu1 }
 0x308   :  { %v8064_v61 = vpop.f32.mrb[219].mxu1 }
 0x309   :  { %v6492_v41 = vadd.f32 %v8062_v15, %v6420_v59 }
 0x30d   :  { %v8082_v18 = vpop.f32.mrb[220].mxu1 }
 0x30e   :  { %v8083_v35 = vpop.f32.mrb[221].mxu1 }
 0x30f   :  { %v8084_v20 = vadd.f32 %v8083_v35, %v8082_v18  ;;  %v8085_v63 = vpop.f32.mrb[222].mxu1 }
 0x310   :  { %v8086_v28 = vpop.f32.mrb[223].mxu1 }
 0x311   :  { %v6532_v1 = vadd.f32 %v8084_v20, %v6460_v51  ;;  %v8087_v30 = vadd.f32 %v8086_v28, %v8085_v63 }
 0x313   :  { %v6535_v32 = vadd.f32 %v8087_v30, %v6463_v57 }
 0x315   :  { %v8088_v12 = vpop.f32.mrb[224].mxu1 }
 0x316   :  { %v8089_v43 = vpop.f32.mrb[225].mxu1 }
 0x317   :  { %v8090_v24 = vadd.f32 %v8089_v43, %v8088_v12  ;;  %v8091_v16 = vpop.f32.mrb[226].mxu1 }
 0x318   :  { %v8092_v3 = vpop.f32.mrb[227].mxu1 }
 0x319   :  { %v6540_v8 = vadd.f32 %v8090_v24, %v6468_v56  ;;  %v8093_v0 = vadd.f32 %v8092_v3, %v8091_v16 }
 0x31b   :  { %v6543_v46 = vadd.f32 %v8093_v0, %v6471_v55 }
 0x31d   :  { %v8094_v40 = vpop.f32.mrb[228].mxu1 }
 0x31e   :  { %v8095_v25 = vpop.f32.mrb[229].mxu1 }
 0x31f   :  { %v8096_v31 = vadd.f32 %v8095_v25, %v8094_v40  ;;  %v8097_v59 = vpop.f32.mrb[230].mxu1 }
 0x320   :  { %v8098_v54 = vpop.f32.mrb[231].mxu1 }
 0x321   :  { %v6548_v7 = vadd.f32 %v8096_v31, %v6476_v2  ;;  %v8099_v4 = vadd.f32 %v8098_v54, %v8097_v59  ;;  %v6715_v54 = vlaneseq }
 0x323   :  { %v6551_v10 = vadd.f32 %v8099_v4, %v6479_v49 }
 0x325   :  { %v8100_v19 = vpop.f32.mrb[232].mxu1 }
 0x326   :  { %v8101_v51 = vpop.f32.mrb[233].mxu1 }
 0x327   :  { %v8102_v60 = vadd.f32 %v8101_v51, %v8100_v19  ;;  %v8103_v57 = vpop.f32.mrb[234].mxu1 }
 0x328   :  { %v8104_v23 = vpop.f32.mrb[235].mxu1 }
 0x329   :  { %v6556_v53 = vadd.f32 %v8102_v60, %v6484_v5  ;;  %v8105_v62 = vadd.f32 %v8104_v23, %v8103_v57  ;;  %v12238_v60 = vshrl.u32 %v6715_v54, 7 }
 0x32b   :  { %v6559_v38 = vadd.f32 %v8105_v62, %v6487_v52 }
 0x32d   :  { %v8106_v37 = vpop.f32.mrb[236].mxu1 }
 0x32e   :  { %v8107_v56 = vpop.f32.mrb[237].mxu1 }
 0x32f   :  { %v8108_v14 = vadd.f32 %v8107_v56, %v8106_v37  ;;  %v8109_v55 = vpop.f32.mrb[238].mxu1  ;;  %v6779_v37 = vsub.s32 5, %v12238_v60 }
 0x330   :  { %v8110_v44 = vpop.f32.mrb[239].mxu1 }
 0x331   :  { %v6564_v9 = vadd.f32 %v8108_v14, %v6492_v41  ;;  %v12250_v44 = vsub.s32 0, %v12238_v60 }
 0x335   :  { %v8128_v15 = vpop.f32.mrb[240].mxu1 }
 0x336   :  { %v8129_v33 = vpop.f32.mrb[241].mxu1 }
 0x337   :  { %v8130_v61 = vadd.f32 %v8129_v33, %v8128_v15  ;;  %v8131_v2 = vpop.f32.mrb[242].mxu1  ;;  %v12256_v15 = vsub.s32 1, %v12238_v60 }
 0x338   :  { %v8132_v18 = vpop.f32.mrb[243].mxu1 }
 0x339   :  { %v8133_v49 = vadd.f32 %v8132_v18, %v8131_v2  ;;  %v6604_v35 = vadd.f32 %v8130_v61, %v6532_v1 }
 0x33b   :  { %v6607_v20 = vadd.f32 %v8133_v49, %v6535_v32 }
 0x33d   :  { %v8134_v63 = vpop.f32.mrb[244].mxu1 }
 0x33e   :  { %v8135_v28 = vpop.f32.mrb[245].mxu1 }
 0x33f   :  { %v8136_v30 = vadd.f32 %v8135_v28, %v8134_v63  ;;  %v8137_v5 = vpop.f32.mrb[246].mxu1 }
 0x340   :  { %v8138_v12 = vpop.f32.mrb[247].mxu1 }
 0x341   :  { %v8139_v52 = vadd.f32 %v8138_v12, %v8137_v5  ;;  %v6612_v43 = vadd.f32 %v8136_v30, %v6540_v8 }
 0x343   :  { %v6615_v24 = vadd.f32 %v8139_v52, %v6543_v46  ;;  %v6725_v46 = vsub.s32 4, %v12238_v60 }
 0x345   :  { %v8140_v16 = vpop.f32.mrb[248].mxu1 }
 0x346   :  { %v8141_v3 = vpop.f32.mrb[249].mxu1 }
 0x347   :  { %v8142_v0 = vadd.f32 %v8141_v3, %v8140_v16  ;;  %v8143_v41 = vpop.f32.mrb[250].mxu1 }
 0x348   :  { %v8144_v40 = vpop.f32.mrb[251].mxu1 }
 0x349   :  { %v8145_v25 = vadd.f32 %v8144_v40, %v8143_v41  ;;  %v6620_v31 = vadd.f32 %v8142_v0, %v6548_v7  ;;  %v12246_v7 = vld [vmem:[%s12442_s2] sm:$0x3f] }
 0x34a   :  { %v6780_v33 = vrot.slane %v12246_v7, %v6779_v37 }
 0x34b   :  { %v6623_v59 = vadd.f32 %v8145_v25, %v6551_v10 }
 0x34c   :  { %v12263_v49 = vrot.slane %v6780_v33, %v12256_v15 }
 0x34d   :  { %v8146_v4 = vpop.f32.mrb[252].mxu1 }
 0x34e   :  { %v8147_v1 = vpop.f32.mrb[253].mxu1 }
 0x34f   :  { %v8148_v32 = vadd.f32 %v8147_v1, %v8146_v4  ;;  %v8149_v19 = vpop.f32.mrb[254].mxu1 }
 0x350   :  { %v8150_v51 = vpop.f32.mrb[255].mxu1 }
 0x351   :  { %v8151_v57 = vadd.f32 %v8150_v51, %v8149_v19  ;;  %v6628_v23 = vadd.f32 %v8148_v32, %v6556_v53  ;;  %v6726_v53 = vrot.slane %v12246_v7, %v6725_v46 }
 0x353   :  { %v12240_v8 = vadd.f32 %v8151_v57, %v6559_v38  ;;  %v12260_v61 = vrot.slane %v6726_v53, %v12250_v44 }
 0x355   :  { %v8152_v62 = vpop.f32.mrb[0].mxu1 }
 0x356   :  { %v8153_v10 = vpop.f32.mrb[1].mxu1 }
 0x357   :  { %v8154_v56 = vadd.f32 %v8153_v10, %v8152_v62  ;;  %v8155_v14 = vpop.f32.mrb[2].mxu1 }
 0x358   :  { %v8156_v55 = vpop.f32.mrb[3].mxu1 }
 0x359   :  { %v12253_v38 = vadd.f32 %v8154_v56, %v6564_v9 }
 0x35d   :  { %v6675_v2 = vpop.f32.mrb[4].mxu1 }
 0x35e   :  { %v6676_v18 = vadd.f32 %v6675_v2, %v6604_v35  ;;  %v8189_v63 = vpop.f32.mrb[5].mxu1 }
 0x35f   :  { %v6678_v28 = vpop.f32.mrb[6].mxu1 }
 0x360   :  { %v6744_v30 = vmul.f32 %v12260_v61, %v6676_v18  ;;  %v6679_v5 = vadd.f32 %v6678_v28, %v6607_v20  ;;  %v8190_v9 = vpop.f32.mrb[7].mxu1 }
 0x362   :  { %v6798_v12 = vadd.f32 %v12263_v49, %v6744_v30  ;;  %v6747_v52 = vmul.f32 %v12260_v61, %v6679_v5 }
 0x364   :  { %v6825_v16 = vmax.f32 %v6798_v12, 0.0  ;;  %v6801_v3 = vadd.f32 %v12263_v49, %v6747_v52  ;;  %v6718_v52 = vrot.slane %v12246_v7, %v12250_v44 }
 0x365   :  { %v6683_v0 = vpop.f32.mrb[8].mxu1 }
 0x366   :  { %6852 = vst [vmem:[%s12443_s3 + $0x10] sm:$0xff] %v6825_v16  ;;  %v6828_v35 = vmax.f32 %v6801_v3, 0.0  ;;  %v6684_v41 = vadd.f32 %v6683_v0, %v6612_v43  ;;  %v8193_v40 = vpop.f32.mrb[9].mxu1 }
 0x367   :  { %v6686_v25 = vpop.f32.mrb[10].mxu1 }
 0x368   :  { %6855 = vst [vmem:[%s12443_s3 + $0x28] sm:$0xff] %v6828_v35  ;;  %v6750_v20 = vmul.f32 %v12260_v61, %v6684_v41  ;;  %v6687_v54 = vadd.f32 %v6686_v25, %v6615_v24  ;;  %v8194_v4 = vpop.f32.mrb[11].mxu1 }
 0x36a   :  { %v6804_v1 = vadd.f32 %v12263_v49, %v6750_v20  ;;  %v6753_v32 = vmul.f32 %v12260_v61, %v6687_v54 }
 0x36c   :  { %v6831_v19 = vmax.f32 %v6804_v1, 0.0  ;;  %v6807_v51 = vadd.f32 %v12263_v49, %v6753_v32 }
 0x36d   :  { %v6691_v57 = vpop.f32.mrb[12].mxu1 }
 0x36e   :  { %6858 = vst [vmem:[%s12443_s3 + $0x40] sm:$0xff] %v6831_v19  ;;  %v6834_v43 = vmax.f32 %v6807_v51, 0.0  ;;  %v6692_v46 = vadd.f32 %v6691_v57, %v6620_v31  ;;  %v8197_v62 = vpop.f32.mrb[13].mxu1  ;;  %v6721_v31 = vsub.s32 2, %v12238_v60 }
 0x36f   :  { %v6694_v10 = vpop.f32.mrb[14].mxu1 }
 0x370   :  { %6861 = vst [vmem:[%s12443_s3 + $0x58] sm:$0xff] %v6834_v43  ;;  %v6756_v24 = vmul.f32 %v12260_v61, %v6692_v46  ;;  %v6695_v37 = vadd.f32 %v6694_v10, %v6623_v59  ;;  %v8198_v56 = vpop.f32.mrb[15].mxu1  ;;  %v6775_v59 = vsub.s32 3, %v12238_v60  ;;  %v6722_v16 = vrot.slane %v12246_v7, %v6721_v31 }
 0x371   :  { %v6772_v60 = vrot.slane %v12246_v7, %v12256_v15 }
 0x372   :  { %v6810_v14 = vadd.f32 %v12263_v49, %v6756_v24  ;;  %v6759_v55 = vmul.f32 %v12260_v61, %v6695_v37  ;;  %v6776_v0 = vrot.slane %v12246_v7, %v6775_v59  ;;  %v12312_v20 = vrot.slane %v6722_v16, %v12250_v44 }
 0x373   :  { %v12319_v7 = vrot.slane %v6772_v60, %v12256_v15 }
 0x374   :  { %v6837_v53 = vmax.f32 %v6810_v14, 0.0  ;;  %v6813_v33 = vadd.f32 %v12263_v49, %v6759_v55  ;;  %v12324_v57 = vrot.slane %v6776_v0, %v12256_v15 }
 0x375   :  { %v6699_v2 = vpop.f32.mrb[16].mxu1 }
 0x376   :  { %6864 = vst [vmem:[%s12443_s3 + $0x70] sm:$0xff] %v6837_v53  ;;  %v6840_v18 = vmax.f32 %v6813_v33, 0.0  ;;  %v6700_v63 = vadd.f32 %v6699_v2, %v6628_v23  ;;  %v8201_v28 = vpop.f32.mrb[17].mxu1 }
 0x377   :  { %v6702_v30 = vpop.f32.mrb[18].mxu1 }
 0x378   :  { %6867 = vst [vmem:[%s12443_s3 + $0x88] sm:$0xff] %v6840_v18  ;;  %v6762_v5 = vmul.f32 %v12260_v61, %v6700_v63  ;;  %v6703_v9 = vadd.f32 %v6702_v30, %v12240_v8  ;;  %v8202_v12 = vpop.f32.mrb[19].mxu1  ;;  %v12309_v8 = vrot.slane %v6718_v52, %v12250_v44 }
 0x37a   :  { %v6816_v23 = vadd.f32 %v12263_v49, %v6762_v5  ;;  %v6765_v3 = vmul.f32 %v12260_v61, %v6703_v9 }
 0x37c   :  { %v6843_v35 = vmax.f32 %v6816_v23, 0.0  ;;  %v6819_v41 = vadd.f32 %v12263_v49, %v6765_v3 }
 0x37d   :  { %v6707_v25 = vpop.f32.mrb[20].mxu1 }
 0x37e   :  { %v5730_v40 = vpop.f32.mrb[0].mxu0  ;;  %6870 = vst [vmem:[%s12443_s3 + $0xa0] sm:$0xff] %v6843_v35  ;;  %v6846_v54 = vmax.f32 %v6819_v41, 0.0  ;;  %v6708_v1 = vadd.f32 %v6707_v25, %v12253_v38  ;;  %v8205_v19 = vpop.f32.mrb[21].mxu1 }
 0x37f   :  { %v8207_v4 = vadd.f32 %v5730_v40, %v10842_v21  ;;  %v5732_v32 = vpop.f32.mrb[1].mxu0  ;;  %v6710_v43 = vpop.f32.mrb[22].mxu1 }
 0x380   :  { %v8208_v51 = vadd.f32 %v5732_v32, %v10853_v26  ;;  %v5734_v44 = vpop.f32.mrb[2].mxu0  ;;  %6873 = vst [vmem:[%s12443_s3 + $0xb8] sm:$0xff] %v6846_v54  ;;  %v6768_v46 = vmul.f32 %v12260_v61, %v6708_v1  ;;  %v8206_v10 = vpop.f32.mrb[23].mxu1 }
 0x381   :  { %v6742_v21 = vmul.f32 %v8207_v4, %v12309_v8  ;;  %v8209_v62 = vadd.f32 %v5734_v44, %v10858_v27  ;;  %v5736_v38 = vpop.f32.mrb[3].mxu0 }
 0x382   :  { %v6743_v24 = vmul.f32 %v8208_v51, %v12312_v20  ;;  %v8210_v26 = vadd.f32 %v5736_v38, %v10866_v34  ;;  %v6822_v37 = vadd.f32 %v12263_v49, %v6768_v46 }
 0x383   :  { %v6796_v15 = vadd.f32 %v12319_v7, %v6742_v21  ;;  %v6745_v56 = vmul.f32 %v8209_v62, %v12309_v8 }
 0x384   :  { %v6797_v14 = vadd.f32 %v12324_v57, %v6743_v24  ;;  %v6746_v55 = vmul.f32 %v8210_v26, %v12312_v20  ;;  %v6849_v61 = vmax.f32 %v6822_v37, 0.0 }
 0x385   :  { %v6823_v53 = vmax.f32 %v6796_v15, 0.0  ;;  %v6799_v27 = vadd.f32 %v12319_v7, %v6745_v56 }
 0x386   :  { %v6824_v33 = vmax.f32 %v6797_v14, 0.0  ;;  %v6800_v2 = vadd.f32 %v12324_v57, %v6746_v55  ;;  %v5740_v31 = vpop.f32.mrb[4].mxu0  ;;  %6876 = vst [vmem:[%s12443_s3 + $0xd0] sm:$0xff] %v6849_v61 }
 0x387   :  { %6850 = vst [vmem:[%s12443_s3] sm:$0xff] %v6823_v53  ;;  %v6826_v34 = vmax.f32 %v6799_v27, 0.0  ;;  %v8211_v49 = vadd.f32 %v5740_v31, %v10889_v47  ;;  %v5742_v18 = vpop.f32.mrb[5].mxu0 }
 0x388   :  { %6851 = vst [vmem:[%s12443_s3 + $0x8] sm:$0xff] %v6824_v33  ;;  %v6827_v63 = vmax.f32 %v6800_v2, 0.0  ;;  %v8212_v28 = vadd.f32 %v5742_v18, %v10895_v50  ;;  %v5744_v30 = vpop.f32.mrb[6].mxu0 }
 0x389   :  { %6853 = vst [vmem:[%s12443_s3 + $0x18] sm:$0xff] %v6826_v34  ;;  %v6748_v59 = vmul.f32 %v8211_v49, %v12309_v8  ;;  %v8213_v5 = vadd.f32 %v5744_v30, %v10902_v22  ;;  %v5746_v9 = vpop.f32.mrb[7].mxu0 }
 0x38a   :  { %6854 = vst [vmem:[%s12443_s3 + $0x20] sm:$0xff] %v6827_v63  ;;  %v6749_v47 = vmul.f32 %v8212_v28, %v12312_v20  ;;  %v8214_v12 = vadd.f32 %v5746_v9, %v10910_v58 }
 0x38b   :  { %v6802_v50 = vadd.f32 %v12319_v7, %v6748_v59  ;;  %v6751_v52 = vmul.f32 %v8213_v5, %v12309_v8 }
 0x38c   :  { %v6803_v16 = vadd.f32 %v12324_v57, %v6749_v47  ;;  %v6752_v23 = vmul.f32 %v8214_v12, %v12312_v20 }
 0x38d   :  { %v6829_v3 = vmax.f32 %v6802_v50, 0.0  ;;  %v6805_v22 = vadd.f32 %v12319_v7, %v6751_v52 }
 0x38e   :  { %v6830_v60 = vmax.f32 %v6803_v16, 0.0  ;;  %v6806_v0 = vadd.f32 %v12324_v57, %v6752_v23  ;;  %v5750_v35 = vpop.f32.mrb[8].mxu0 }
 0x38f   :  { %6856 = vst [vmem:[%s12443_s3 + $0x30] sm:$0xff] %v6829_v3  ;;  %v6832_v58 = vmax.f32 %v6805_v22, 0.0  ;;  %v8215_v41 = vadd.f32 %v5750_v35, %v10934_v11  ;;  %v5752_v40 = vpop.f32.mrb[9].mxu0 }
 0x390   :  { %6857 = vst [vmem:[%s12443_s3 + $0x38] sm:$0xff] %v6830_v60  ;;  %v6833_v25 = vmax.f32 %v6806_v0, 0.0  ;;  %v8216_v54 = vadd.f32 %v5752_v40, %v10940_v45  ;;  %v5754_v4 = vpop.f32.mrb[10].mxu0 }
 0x391   :  { %6859 = vst [vmem:[%s12443_s3 + $0x48] sm:$0xff] %v6832_v58  ;;  %v6754_v1 = vmul.f32 %v8215_v41, %v12309_v8  ;;  %v8217_v32 = vadd.f32 %v5754_v4, %v10945_v6  ;;  %v5756_v19 = vpop.f32.mrb[11].mxu0 }
 0x392   :  { %6860 = vst [vmem:[%s12443_s3 + $0x50] sm:$0xff] %v6833_v25  ;;  %v6755_v11 = vmul.f32 %v8216_v54, %v12312_v20  ;;  %v8218_v51 = vadd.f32 %v5756_v19, %v10947_v36 }
 0x393   :  { %v6808_v45 = vadd.f32 %v12319_v7, %v6754_v1  ;;  %v6757_v44 = vmul.f32 %v8217_v32, %v12309_v8 }
 0x394   :  { %v6809_v43 = vadd.f32 %v12324_v57, %v6755_v11  ;;  %v6758_v21 = vmul.f32 %v8218_v51, %v12312_v20 }
 0x395   :  { %v6835_v46 = vmax.f32 %v6808_v45, 0.0  ;;  %v6811_v6 = vadd.f32 %v12319_v7, %v6757_v44 }
 0x396   :  { %v6836_v62 = vmax.f32 %v6809_v43, 0.0  ;;  %v6812_v38 = vadd.f32 %v12324_v57, %v6758_v21  ;;  %v5760_v10 = vpop.f32.mrb[12].mxu0 }
 0x397   :  { %6862 = vst [vmem:[%s12443_s3 + $0x60] sm:$0xff] %v6835_v46  ;;  %v6838_v36 = vmax.f32 %v6811_v6, 0.0  ;;  %v8219_v24 = vadd.f32 %v5760_v10, %v10962_v13  ;;  %v5762_v26 = vpop.f32.mrb[13].mxu0 }
 0x398   :  { %6863 = vst [vmem:[%s12443_s3 + $0x68] sm:$0xff] %v6836_v62  ;;  %v6839_v15 = vmax.f32 %v6812_v38, 0.0  ;;  %v8220_v37 = vadd.f32 %v5762_v26, %v10964_v42  ;;  %v5764_v56 = vpop.f32.mrb[14].mxu0 }
 0x399   :  { %6865 = vst [vmem:[%s12443_s3 + $0x78] sm:$0xff] %v6838_v36  ;;  %v6760_v14 = vmul.f32 %v8219_v24, %v12309_v8  ;;  %v8221_v55 = vadd.f32 %v5764_v56, %v10969_v48  ;;  %v5766_v53 = vpop.f32.mrb[15].mxu0 }
 0x39a   :  { %6866 = vst [vmem:[%s12443_s3 + $0x80] sm:$0xff] %v6839_v15  ;;  %v6761_v13 = vmul.f32 %v8220_v37, %v12312_v20  ;;  %v8222_v61 = vadd.f32 %v5766_v53, %v10974_v17 }
 0x39b   :  { %v6814_v42 = vadd.f32 %v12319_v7, %v6760_v14  ;;  %v6763_v27 = vmul.f32 %v8221_v55, %v12309_v8 }
 0x39c   :  { %v6815_v33 = vadd.f32 %v12324_v57, %v6761_v13  ;;  %v6764_v2 = vmul.f32 %v8222_v61, %v12312_v20 }
 0x39d   :  { %v6841_v31 = vmax.f32 %v6814_v42, 0.0  ;;  %v6817_v48 = vadd.f32 %v12319_v7, %v6763_v27 }
 0x39e   :  { %v6842_v34 = vmax.f32 %v6815_v33, 0.0  ;;  %v6818_v49 = vadd.f32 %v12324_v57, %v6764_v2  ;;  %v5770_v18 = vpop.f32.mrb[16].mxu0 }
 0x39f   :  { %6868 = vst [vmem:[%s12443_s3 + $0x90] sm:$0xff] %v6841_v31  ;;  %v6844_v17 = vmax.f32 %v6817_v48, 0.0  ;;  %v8223_v63 = vadd.f32 %v5770_v18, %v10996_v29  ;;  %v5772_v28 = vpop.f32.mrb[17].mxu0 }
 0x3a0   :  { %6869 = vst [vmem:[%s12443_s3 + $0x98] sm:$0xff] %v6842_v34  ;;  %v6845_v30 = vmax.f32 %v6818_v49, 0.0  ;;  %v8224_v59 = vadd.f32 %v5772_v28, %v10998_v39  ;;  %v5774_v5 = vpop.f32.mrb[18].mxu0 }
 0x3a1   :  { %6871 = vst [vmem:[%s12443_s3 + $0xa8] sm:$0xff] %v6844_v17  ;;  %v6766_v9 = vmul.f32 %v8223_v63, %v12309_v8  ;;  %v5775_v47 = vpop.f32.mrb[19].mxu0 }
 0x3a2   :  { %6872 = vst [vmem:[%s12443_s3 + $0xb0] sm:$0xff] %v6845_v30  ;;  %v6767_v29 = vmul.f32 %v8224_v59, %v12312_v20 }
 0x3a3   :  { %v6820_v12 = vadd.f32 %v12319_v7, %v6766_v9 }
 0x3a4   :  { %v6821_v50 = vadd.f32 %v12324_v57, %v6767_v29 }
 0x3a5   :  { %v6847_v52 = vmax.f32 %v6820_v12, 0.0 }
 0x3a6   :  { %v6848_v39 = vmax.f32 %v6821_v50, 0.0 }
 0x3a7   :  { %6874 = vst [vmem:[%s12443_s3 + $0xc0] sm:$0xff] %v6847_v52 }
 0x3a8   :  { %6875 = vst [vmem:[%s12443_s3 + $0xc8] sm:$0xff] %v6848_v39 }

// kernel: _lambda_.9
= control target key start
LH: loop header
LB: loop body
LE: loop exit
PB: predicated region body
PF: predicated region fallthrough
CT: control target
= control target key end

     0   :  { %v423_v1 = vmov 0.0   ;;  %vm424_vm0 = vmmov 0   ;;  %v301_v29 = vlaneseq  ;;  %s529_s1 = inlined_call_operand.vmem [shape: bf16[384,128], index: 1, kind: input, shape index: {}]   ;;  %s530_s0 = inlined_call_operand.vmem [shape: bf16[8,384], index: 0, kind: input, shape index: {}]   ;;  %s531_s2 = inlined_call_operand.vmem [shape: f32[2,128], index: 2, kind: input, shape index: {}]   ;;  %s532_s3 = inlined_call_operand.vmem [shape: f32[8,128], index: 3, kind: output, shape index: {}]  }
   0x1   :  { %v396_v0 = vld [vmem:[%s529_s1 + $0x40] sm:$0xff]   ;;  %374 = vmatprep.subr.bf16.mxu1 %v423_v1  ;;  %390 = vmatprep.mubr.msk.bf16.mxu1 %vm424_vm0, %v423_v1  ;;  %v399_v4 = vld [vmem:[%s529_s1 + $0x48] sm:$0xff]   ;;  %v402_v7 = vld [vmem:[%s529_s1 + $0x50] sm:$0xff]  }
   0x2   :  { %v397_v2 = vld [vmem:[%s529_s1] sm:$0xff]   ;;  %343 = vmatprep.subr.bf16.mxu0 %v396_v0  ;;  %v400_v5 = vld [vmem:[%s529_s1 + $0x8] sm:$0xff]   ;;  %v403_v8 = vld [vmem:[%s529_s1 + $0x10] sm:$0xff]   ;;  %v302_v30 = vshrl.u32 %v301_v29, 7 }
   0x3   :  { %v398_v3 = vld [vmem:[%s529_s1 + $0x80] sm:$0xff]   ;;  %344 = vmatpush3.bf16.msra.mxu0 %v397_v2  ;;  %v401_v6 = vld [vmem:[%s529_s1 + $0x88] sm:$0xff]   ;;  %v404_v9 = vld [vmem:[%s529_s1 + $0x90] sm:$0xff]  }
   0x4   :  { %375 = vmatpush3.bf16.msra.mxu1 %v398_v3  ;;  %345 = vmatprep.subr.bf16.mxu0 %v399_v4  ;;  %v405_v10 = vld [vmem:[%s529_s1 + $0x58] sm:$0xff]   ;;  %v408_v13 = vld [vmem:[%s529_s1 + $0x60] sm:$0xff]   ;;  %v411_v16 = vld [vmem:[%s529_s1 + $0x68] sm:$0xff]   ;;  %v303_v31 = vsub.s32 0, %v302_v30  ;;  %v308_v34 = vsub.s32 1, %v302_v30 }
   0x5   :  { %376 = vmatprep.subr.bf16.mxu1 %v423_v1  ;;  %v406_v11 = vld [vmem:[%s529_s1 + $0x18] sm:$0xff]   ;;  %v409_v14 = vld [vmem:[%s529_s1 + $0x20] sm:$0xff]   ;;  %v412_v17 = vld [vmem:[%s529_s1 + $0x28] sm:$0xff]  }
   0x6   :  { %v407_v12 = vld [vmem:[%s529_s1 + $0x98] sm:$0xff]   ;;  %v410_v15 = vld [vmem:[%s529_s1 + $0xa0] sm:$0xff]   ;;  %v413_v18 = vld [vmem:[%s529_s1 + $0xa8] sm:$0xff]  }
   0x7   :  { %346 = vmatpush3.bf16.msra.mxu0 %v400_v5  ;;  %v414_v19 = vld [vmem:[%s529_s1 + $0x70] sm:$0xff]   ;;  %v417_v22 = vld [vmem:[%s529_s1 + $0x78] sm:$0xff]   ;;  %v15_v23 = vld [vmem:[%s530_s0] sm:$0xff] }
   0x8   :  { %377 = vmatpush3.bf16.msra.mxu1 %v401_v6  ;;  %347 = vmatprep.subr.bf16.mxu0 %v402_v7  ;;  %v415_v20 = vld [vmem:[%s529_s1 + $0x30] sm:$0xff]   ;;  %v317_v24 = vcombine.high %v15_v23, %v15_v23  ;;  %v418_v25 = vld [vmem:[%s529_s1 + $0x38] sm:$0xff]   ;;  %v316_v27 = vcombine.low %v15_v23, %v15_v23  ;;  %v422_v28 = vld [vmem:[%s530_s0 + $0x8] ss:$0 sps:$4 sm:$0xff]  }
   0x9   :  { %378 = vmatprep.subr.bf16.mxu1 %v423_v1  ;;  %v416_v21 = vld [vmem:[%s529_s1 + $0xb0] sm:$0xff]   ;;  %v419_v26 = vld [vmem:[%s529_s1 + $0xb8] sm:$0xff]   ;;  %v300_v32 = vld [vmem:[%s531_s2] sm:$0x3] }
   0xa   :  { %252 = vmatprep.mubr.bf16.mxu0 %v317_v24  ;;  %v304_v38 = vrot.slane %v300_v32, %v303_v31  ;;  %v309_v44 = vrot.slane %v300_v32, %v308_v34 }
   0xb   :  { %348 = vmatpush3.bf16.msra.mxu0 %v403_v8 }
   0xc   :  { %379 = vmatpush3.bf16.msra.mxu1 %v404_v9  ;;  %349 = vmatprep.subr.bf16.mxu0 %v405_v10 }
   0xd   :  { %380 = vmatprep.subr.bf16.mxu1 %v423_v1 }
   0xf   :  { %350 = vmatpush3.bf16.msra.mxu0 %v406_v11 }
  0x10   :  { %381 = vmatpush3.bf16.msra.mxu1 %v407_v12  ;;  %351 = vmatprep.subr.bf16.mxu0 %v408_v13 }
  0x11   :  { %382 = vmatprep.subr.bf16.mxu1 %v423_v1 }
  0x13   :  { %352 = vmatpush3.bf16.msra.mxu0 %v409_v14 }
  0x14   :  { %383 = vmatpush3.bf16.msra.mxu1 %v410_v15  ;;  %353 = vmatprep.subr.bf16.mxu0 %v411_v16 }
  0x15   :  { %384 = vmatprep.subr.bf16.mxu1 %v423_v1 }
  0x17   :  { %354 = vmatpush3.bf16.msra.mxu0 %v412_v17 }
  0x18   :  { %385 = vmatpush3.bf16.msra.mxu1 %v413_v18  ;;  %355 = vmatprep.subr.bf16.mxu0 %v414_v19 }
  0x19   :  { %386 = vmatprep.subr.bf16.mxu1 %v423_v1 }
  0x1b   :  { %356 = vmatpush3.bf16.msra.mxu0 %v415_v20 }
  0x1c   :  { %387 = vmatpush3.bf16.msra.mxu1 %v416_v21  ;;  %357 = vmatprep.subr.bf16.mxu0 %v417_v22 }
  0x1d   :  { %388 = vmatprep.subr.bf16.mxu1 %v423_v1 }
  0x1f   :  { %358 = vmatpush3.bf16.msra.mxu0 %v418_v25 }
  0x20   :  { %389 = vmatpush3.bf16.msra.mxu1 %v419_v26 }
  0x22   :  { %253 = vmatmul.mubr.bf16.vlgmr.msra.gmra.mrb[0].mxu0 %v316_v27 }
  0x23   :  { %391 = vmatmul.mubr.bf16.vlgmr.msra.gmra.mrb[0].mxu1 %v422_v28 }
  0xf5   :  { %v359_v33 = vpop.f32.mrb[0].mxu0 }
  0xf6   :  { %v294_v35 = vpop.f32.mrb[0].mxu1  ;;  %v360_v36 = vpop.f32.mrb[1].mxu0 }
  0xf7   :  { %v361_v37 = vadd.f32 %v360_v36, %v359_v33  ;;  %v392_v39 = vpop.f32.mrb[1].mxu1  ;;  %v362_v40 = vpop.f32.mrb[2].mxu0 }
  0xf8   :  { %v297_v41 = vpop.f32.mrb[2].mxu1  ;;  %v363_v42 = vpop.f32.mrb[3].mxu0 }
  0xf9   :  { %v295_v43 = vadd.f32 %v361_v37, %v294_v35  ;;  %v393_v45 = vpop.f32.mrb[3].mxu1 }
  0xfb   :  { %v305_v46 = vmul.f32 %v304_v38, %v295_v43 }
  0xfd   :  { %v310_v47 = vadd.f32 %v309_v44, %v305_v46 }
  0xff   :  { %311 = vst [vmem:[%s532_s3] sm:$0xff] %v310_v47 }

// kernel: _lambda_.8
= control target key start
LH: loop header
LB: loop body
LE: loop exit
PB: predicated region body
PF: predicated region fallthrough
CT: control target
= control target key end

     0   :  { %s7941_s1 = inlined_call_operand.vmem [shape: bf16[2816,384], index: 1, kind: input, shape index: {}]   ;;  %s7942_s0 = inlined_call_operand.vmem [shape: bf16[8,2816], index: 0, kind: input, shape index: {}]   ;;  %s7943_s2 = inlined_call_operand.vmem [shape: f32[2,384], index: 2, kind: input, shape index: {}]   ;;  %s7944_s3 = inlined_call_operand.vmem [shape: f32[8,384], index: 3, kind: output, shape index: {}]  }
   0x1   :  { %v5416_v0 = vld [vmem:[%s7941_s1 + $0x4] ss:$12 sps:$4 sm:$0xff]   ;;  %v5420_v2 = vld [vmem:[%s7941_s1] ss:$12 sps:$4 sm:$0xff]   ;;  %v5422_v4 = vld [vmem:[%s7941_s1 + $0x1c] ss:$12 sps:$4 sm:$0xff]  }
   0x2   :  { %v5418_v1 = vld [vmem:[%s7941_s1 + $0x484] ss:$12 sps:$4 sm:$0xff]   ;;  %3623 = vmatprep.subr.bf16.mxu1 %v5416_v0  ;;  %v5421_v3 = vld [vmem:[%s7941_s1 + $0x480] ss:$12 sps:$4 sm:$0xff]   ;;  %v5424_v5 = vld [vmem:[%s7941_s1 + $0x49c] ss:$12 sps:$4 sm:$0xff]  }
   0x3   :  { %3746 = vmatprep.subr.bf16.mxu0 %v5418_v1  ;;  %3624 = vmatpush1.bf16.msra.mxu1 %v5420_v2  ;;  %v5426_v6 = vld [vmem:[%s7941_s1 + $0x18] ss:$12 sps:$4 sm:$0xff]   ;;  %v5428_v8 = vld [vmem:[%s7941_s1 + $0x34] ss:$12 sps:$4 sm:$0xff]   ;;  %v5432_v10 = vld [vmem:[%s7941_s1 + $0x30] ss:$12 sps:$4 sm:$0xff]  }
   0x4   :  { %3747 = vmatpush1.bf16.msra.mxu0 %v5421_v3  ;;  %3625 = vmatprep.subr.bf16.mxu1 %v5422_v4  ;;  %v5427_v7 = vld [vmem:[%s7941_s1 + $0x498] ss:$12 sps:$4 sm:$0xff]   ;;  %v5430_v9 = vld [vmem:[%s7941_s1 + $0x4b4] ss:$12 sps:$4 sm:$0xff]   ;;  %v5433_v11 = vld [vmem:[%s7941_s1 + $0x4b0] ss:$12 sps:$4 sm:$0xff]  }
   0x5   :  { %3748 = vmatprep.subr.bf16.mxu0 %v5424_v5  ;;  %v5434_v12 = vld [vmem:[%s7941_s1 + $0x4c] ss:$12 sps:$4 sm:$0xff]   ;;  %v5438_v14 = vld [vmem:[%s7941_s1 + $0x48] ss:$12 sps:$4 sm:$0xff]   ;;  %v5440_v16 = vld [vmem:[%s7941_s1 + $0x64] ss:$12 sps:$4 sm:$0xff]  }
   0x6   :  { %v5436_v13 = vld [vmem:[%s7941_s1 + $0x4cc] ss:$12 sps:$4 sm:$0xff]   ;;  %v5439_v15 = vld [vmem:[%s7941_s1 + $0x4c8] ss:$12 sps:$4 sm:$0xff]   ;;  %v5442_v17 = vld [vmem:[%s7941_s1 + $0x4e4] ss:$12 sps:$4 sm:$0xff]  }
   0x7   :  { %3626 = vmatpush1.bf16.msra.mxu1 %v5426_v6  ;;  %v5444_v18 = vld [vmem:[%s7941_s1 + $0x60] ss:$12 sps:$4 sm:$0xff]   ;;  %v5446_v20 = vld [vmem:[%s7941_s1 + $0x7c] ss:$12 sps:$4 sm:$0xff]   ;;  %v5450_v22 = vld [vmem:[%s7941_s1 + $0x78] ss:$12 sps:$4 sm:$0xff]  }
   0x8   :  { %3749 = vmatpush1.bf16.msra.mxu0 %v5427_v7  ;;  %3627 = vmatprep.subr.bf16.mxu1 %v5428_v8  ;;  %v5445_v19 = vld [vmem:[%s7941_s1 + $0x4e0] ss:$12 sps:$4 sm:$0xff]   ;;  %v5448_v21 = vld [vmem:[%s7941_s1 + $0x4fc] ss:$12 sps:$4 sm:$0xff]   ;;  %v5451_v23 = vld [vmem:[%s7941_s1 + $0x4f8] ss:$12 sps:$4 sm:$0xff]  }
   0x9   :  { %3750 = vmatprep.subr.bf16.mxu0 %v5430_v9  ;;  %v5452_v24 = vld [vmem:[%s7941_s1 + $0x94] ss:$12 sps:$4 sm:$0xff]   ;;  %v5456_v26 = vld [vmem:[%s7941_s1 + $0x90] ss:$12 sps:$4 sm:$0xff]   ;;  %v5458_v28 = vld [vmem:[%s7941_s1 + $0xac] ss:$12 sps:$4 sm:$0xff]  }
   0xa   :  { %v5454_v25 = vld [vmem:[%s7941_s1 + $0x514] ss:$12 sps:$4 sm:$0xff]   ;;  %v5457_v27 = vld [vmem:[%s7941_s1 + $0x510] ss:$12 sps:$4 sm:$0xff]   ;;  %v5460_v29 = vld [vmem:[%s7941_s1 + $0x52c] ss:$12 sps:$4 sm:$0xff]  }
   0xb   :  { %3628 = vmatpush1.bf16.msra.mxu1 %v5432_v10  ;;  %v5462_v30 = vld [vmem:[%s7941_s1 + $0xa8] ss:$12 sps:$4 sm:$0xff]   ;;  %v5464_v32 = vld [vmem:[%s7941_s1 + $0xc4] ss:$12 sps:$4 sm:$0xff]   ;;  %v5468_v34 = vld [vmem:[%s7941_s1 + $0xc0] ss:$12 sps:$4 sm:$0xff]  }
   0xc   :  { %3751 = vmatpush1.bf16.msra.mxu0 %v5433_v11  ;;  %3629 = vmatprep.subr.bf16.mxu1 %v5434_v12  ;;  %v5463_v31 = vld [vmem:[%s7941_s1 + $0x528] ss:$12 sps:$4 sm:$0xff]   ;;  %v5466_v33 = vld [vmem:[%s7941_s1 + $0x544] ss:$12 sps:$4 sm:$0xff]   ;;  %v5469_v35 = vld [vmem:[%s7941_s1 + $0x540] ss:$12 sps:$4 sm:$0xff]  }
   0xd   :  { %3752 = vmatprep.subr.bf16.mxu0 %v5436_v13  ;;  %v5470_v36 = vld [vmem:[%s7941_s1 + $0xdc] ss:$12 sps:$4 sm:$0xff]   ;;  %v5474_v38 = vld [vmem:[%s7941_s1 + $0xd8] ss:$12 sps:$4 sm:$0xff]   ;;  %v5476_v40 = vld [vmem:[%s7941_s1 + $0xf4] ss:$12 sps:$4 sm:$0xff]  }
   0xe   :  { %v5472_v37 = vld [vmem:[%s7941_s1 + $0x55c] ss:$12 sps:$4 sm:$0xff]   ;;  %v5475_v39 = vld [vmem:[%s7941_s1 + $0x558] ss:$12 sps:$4 sm:$0xff]   ;;  %v5478_v41 = vld [vmem:[%s7941_s1 + $0x574] ss:$12 sps:$4 sm:$0xff]  }
   0xf   :  { %3630 = vmatpush1.bf16.msra.mxu1 %v5438_v14  ;;  %v5480_v42 = vld [vmem:[%s7941_s1 + $0xf0] ss:$12 sps:$4 sm:$0xff]   ;;  %v5482_v44 = vld [vmem:[%s7941_s1 + $0x10c] ss:$12 sps:$4 sm:$0xff]   ;;  %v15_v46 = vld [vmem:[%s7942_s0] sm:$0xff] }
  0x10   :  { %3753 = vmatpush1.bf16.msra.mxu0 %v5439_v15  ;;  %3631 = vmatprep.subr.bf16.mxu1 %v5440_v16  ;;  %v5481_v43 = vld [vmem:[%s7941_s1 + $0x570] ss:$12 sps:$4 sm:$0xff]   ;;  %v5484_v45 = vld [vmem:[%s7941_s1 + $0x58c] ss:$12 sps:$4 sm:$0xff]   ;;  %v5486_v47 = vld [vmem:[%s7941_s1 + $0x108] ss:$12 sps:$4 sm:$0xff]   ;;  %v6306_v48 = vcombine.high %v15_v46, %v15_v46  ;;  %v6372_v6 = vcombine.low %v15_v46, %v15_v46 }
  0x11   :  { %3754 = vmatprep.subr.bf16.mxu0 %v5442_v17  ;;  %v5487_v49 = vld [vmem:[%s7941_s1 + $0x588] ss:$12 sps:$4 sm:$0xff]   ;;  %v18_v50 = vld [vmem:[%s7942_s0 + $0x18] sm:$0xff]  ;;  %v5488_v51 = vld [vmem:[%s7941_s1 + $0x124] ss:$12 sps:$4 sm:$0xff]  }
  0x12   :  { %v5490_v52 = vld [vmem:[%s7941_s1 + $0x5a4] ss:$12 sps:$4 sm:$0xff]   ;;  %v6320_v53 = vcombine.high %v18_v50, %v18_v50  ;;  %3655 = vmatprep.mubr.bf16.mxu1 %v6306_v48  ;;  %v5492_v54 = vld [vmem:[%s7941_s1 + $0x120] ss:$12 sps:$4 sm:$0xff]   ;;  %v5494_v56 = vld [vmem:[%s7941_s1 + $0x13c] ss:$12 sps:$4 sm:$0xff]   ;;  %v6374_v7 = vcombine.low %v18_v50, %v18_v50 }
  0x13   :  { %3632 = vmatpush1.bf16.msra.mxu1 %v5444_v18  ;;  %v5493_v55 = vld [vmem:[%s7941_s1 + $0x5a0] ss:$12 sps:$4 sm:$0xff]   ;;  %v5496_v57 = vld [vmem:[%s7941_s1 + $0x5bc] ss:$12 sps:$4 sm:$0xff]   ;;  %v5498_v58 = vld [vmem:[%s7941_s1 + $0x138] ss:$12 sps:$4 sm:$0xff]  }
  0x14   :  { %3755 = vmatpush1.bf16.msra.mxu0 %v5445_v19  ;;  %3633 = vmatprep.subr.bf16.mxu1 %v5446_v20  ;;  %v5499_v59 = vld [vmem:[%s7941_s1 + $0x5b8] ss:$12 sps:$4 sm:$0xff]   ;;  %v5500_v60 = vld [vmem:[%s7941_s1 + $0x154] ss:$12 sps:$4 sm:$0xff]   ;;  %v5504_v62 = vld [vmem:[%s7941_s1 + $0x150] ss:$12 sps:$4 sm:$0xff]  }
  0x15   :  { %3756 = vmatprep.subr.bf16.mxu0 %v5448_v21  ;;  %3778 = vmatprep.mubr.bf16.mxu0 %v6320_v53  ;;  %v5502_v61 = vld [vmem:[%s7941_s1 + $0x5d4] ss:$12 sps:$4 sm:$0xff]   ;;  %v5505_v63 = vld [vmem:[%s7941_s1 + $0x5d0] ss:$12 sps:$4 sm:$0xff]   ;;  %v5506_v0 = vld [vmem:[%s7941_s1 + $0x16c] ss:$12 sps:$4 sm:$0xff]  }
  0x16   :  { %v5508_v1 = vld [vmem:[%s7941_s1 + $0x5ec] ss:$12 sps:$4 sm:$0xff]   ;;  %v5510_v2 = vld [vmem:[%s7941_s1 + $0x168] ss:$12 sps:$4 sm:$0xff]   ;;  %v5516_v4 = vld [vmem:[%s7941_s1 + $0x184] ss:$12 sps:$4 sm:$0xff]  }
  0x17   :  { %3634 = vmatpush1.bf16.msra.mxu1 %v5450_v22  ;;  %v5511_v3 = vld [vmem:[%s7941_s1 + $0x5e8] ss:$12 sps:$4 sm:$0xff]   ;;  %v5521_v5 = vld [vmem:[%s7941_s1 + $0x604] ss:$12 sps:$4 sm:$0xff]   ;;  %v5514_v8 = vld [vmem:[%s7941_s1 + $0x180] ss:$12 sps:$4 sm:$0xff]  }
  0x18   :  { %3757 = vmatpush1.bf16.msra.mxu0 %v5451_v23  ;;  %3635 = vmatprep.subr.bf16.mxu1 %v5452_v24  ;;  %v5519_v9 = vld [vmem:[%s7941_s1 + $0x600] ss:$12 sps:$4 sm:$0xff]   ;;  %v5524_v10 = vld [vmem:[%s7941_s1 + $0x19c] ss:$12 sps:$4 sm:$0xff]   ;;  %v5522_v12 = vld [vmem:[%s7941_s1 + $0x198] ss:$12 sps:$4 sm:$0xff]  }
  0x19   :  { %3758 = vmatprep.subr.bf16.mxu0 %v5454_v25  ;;  %v5527_v11 = vld [vmem:[%s7941_s1 + $0x61c] ss:$12 sps:$4 sm:$0xff]   ;;  %v5525_v13 = vld [vmem:[%s7941_s1 + $0x618] ss:$12 sps:$4 sm:$0xff]   ;;  %v5530_v14 = vld [vmem:[%s7941_s1 + $0x1b4] ss:$12 sps:$4 sm:$0xff]  }
  0x1a   :  { %v5533_v15 = vld [vmem:[%s7941_s1 + $0x634] ss:$12 sps:$4 sm:$0xff]   ;;  %v5528_v16 = vld [vmem:[%s7941_s1 + $0x1b0] ss:$12 sps:$4 sm:$0xff]   ;;  %v5536_v18 = vld [vmem:[%s7941_s1 + $0x1cc] ss:$12 sps:$4 sm:$0xff]  }
  0x1b   :  { %3636 = vmatpush1.bf16.msra.mxu1 %v5456_v26  ;;  %v5531_v17 = vld [vmem:[%s7941_s1 + $0x630] ss:$12 sps:$4 sm:$0xff]   ;;  %v5539_v19 = vld [vmem:[%s7941_s1 + $0x64c] ss:$12 sps:$4 sm:$0xff]   ;;  %v5534_v20 = vld [vmem:[%s7941_s1 + $0x1c8] ss:$12 sps:$4 sm:$0xff]  }
  0x1c   :  { %3759 = vmatpush1.bf16.msra.mxu0 %v5457_v27  ;;  %3637 = vmatprep.subr.bf16.mxu1 %v5458_v28  ;;  %v5537_v21 = vld [vmem:[%s7941_s1 + $0x648] ss:$12 sps:$4 sm:$0xff]   ;;  %v5542_v22 = vld [vmem:[%s7941_s1 + $0x1e4] ss:$12 sps:$4 sm:$0xff]   ;;  %v5540_v24 = vld [vmem:[%s7941_s1 + $0x1e0] ss:$12 sps:$4 sm:$0xff]  }
  0x1d   :  { %3760 = vmatprep.subr.bf16.mxu0 %v5460_v29  ;;  %v5545_v23 = vld [vmem:[%s7941_s1 + $0x664] ss:$12 sps:$4 sm:$0xff]   ;;  %v5543_v25 = vld [vmem:[%s7941_s1 + $0x660] ss:$12 sps:$4 sm:$0xff]   ;;  %v5548_v26 = vld [vmem:[%s7941_s1 + $0x1fc] ss:$12 sps:$4 sm:$0xff]  }
  0x1e   :  { %v5551_v27 = vld [vmem:[%s7941_s1 + $0x67c] ss:$12 sps:$4 sm:$0xff]   ;;  %v5546_v28 = vld [vmem:[%s7941_s1 + $0x1f8] ss:$12 sps:$4 sm:$0xff]  }
  0x1f   :  { %3638 = vmatpush1.bf16.msra.mxu1 %v5462_v30  ;;  %v5549_v29 = vld [vmem:[%s7941_s1 + $0x678] ss:$12 sps:$4 sm:$0xff]   ;;  %v5554_v30 = vld [vmem:[%s7941_s1 + $0x214] ss:$12 sps:$4 sm:$0xff]   ;;  %v5572_v46 = vld [vmem:[%s7941_s1 + $0x25c] ss:$12 sps:$4 sm:$0xff]  }
  0x20   :  { %3761 = vmatpush1.bf16.msra.mxu0 %v5463_v31  ;;  %3639 = vmatprep.subr.bf16.mxu1 %v5464_v32  ;;  %v5557_v31 = vld [vmem:[%s7941_s1 + $0x694] ss:$12 sps:$4 sm:$0xff]   ;;  %v6453_v32 = vld [vmem:[%s7942_s0 + $0x8] sm:$0xff]  ;;  %v5573_v50 = vld [vmem:[%s7941_s1 + $0x6d8] ss:$12 sps:$4 sm:$0xff]  }
  0x21   :  { %3762 = vmatprep.subr.bf16.mxu0 %v5466_v33  ;;  %v5552_v33 = vld [vmem:[%s7941_s1 + $0x210] ss:$12 sps:$4 sm:$0xff]  }
  0x23   :  { %3640 = vmatpush1.bf16.msra.mxu1 %v5468_v34  ;;  %v5555_v34 = vld [vmem:[%s7941_s1 + $0x690] ss:$12 sps:$4 sm:$0xff]  }
  0x24   :  { %3763 = vmatpush1.bf16.msra.mxu0 %v5469_v35  ;;  %3641 = vmatprep.subr.bf16.mxu1 %v5470_v36  ;;  %v6463_v35 = vcombine.high %v6453_v32, %v6453_v32  ;;  %v6468_v36 = vld [vmem:[%s7942_s0 + $0x20] sm:$0xff] }
  0x25   :  { %3764 = vmatprep.subr.bf16.mxu0 %v5472_v37  ;;  %v5560_v37 = vld [vmem:[%s7941_s1 + $0x22c] ss:$12 sps:$4 sm:$0xff]  }
  0x27   :  { %3642 = vmatpush1.bf16.msra.mxu1 %v5474_v38  ;;  %v6475_v38 = vcombine.high %v6468_v36, %v6468_v36 }
  0x28   :  { %3765 = vmatpush1.bf16.msra.mxu0 %v5475_v39  ;;  %3643 = vmatprep.subr.bf16.mxu1 %v5476_v40  ;;  %v5563_v39 = vld [vmem:[%s7941_s1 + $0x6ac] ss:$12 sps:$4 sm:$0xff]   ;;  %v5558_v40 = vld [vmem:[%s7941_s1 + $0x228] ss:$12 sps:$4 sm:$0xff]  }
  0x29   :  { %3766 = vmatprep.subr.bf16.mxu0 %v5478_v41  ;;  %v5561_v41 = vld [vmem:[%s7941_s1 + $0x6a8] ss:$12 sps:$4 sm:$0xff]  }
  0x2b   :  { %3644 = vmatpush1.bf16.msra.mxu1 %v5480_v42  ;;  %v5566_v42 = vld [vmem:[%s7941_s1 + $0x244] ss:$12 sps:$4 sm:$0xff]  }
  0x2c   :  { %3767 = vmatpush1.bf16.msra.mxu0 %v5481_v43  ;;  %3645 = vmatprep.subr.bf16.mxu1 %v5482_v44  ;;  %v5569_v43 = vld [vmem:[%s7941_s1 + $0x6c4] ss:$12 sps:$4 sm:$0xff]   ;;  %v5564_v44 = vld [vmem:[%s7941_s1 + $0x240] ss:$12 sps:$4 sm:$0xff]  }
  0x2d   :  { %3768 = vmatprep.subr.bf16.mxu0 %v5484_v45  ;;  %v5567_v45 = vld [vmem:[%s7941_s1 + $0x6c0] ss:$12 sps:$4 sm:$0xff]  }
  0x2f   :  { %3646 = vmatpush1.bf16.msra.mxu1 %v5486_v47  ;;  %v5575_v47 = vld [vmem:[%s7941_s1 + $0x6dc] ss:$12 sps:$4 sm:$0xff]  }
  0x30   :  { %3769 = vmatpush1.bf16.msra.mxu0 %v5487_v49  ;;  %3647 = vmatprep.subr.bf16.mxu1 %v5488_v51  ;;  %v5570_v49 = vld [vmem:[%s7941_s1 + $0x258] ss:$12 sps:$4 sm:$0xff]   ;;  %v5578_v51 = vld [vmem:[%s7941_s1 + $0x274] ss:$12 sps:$4 sm:$0xff]  }
  0x31   :  { %3770 = vmatprep.subr.bf16.mxu0 %v5490_v52  ;;  %v5581_v52 = vld [vmem:[%s7941_s1 + $0x6f4] ss:$12 sps:$4 sm:$0xff]  }
  0x33   :  { %3648 = vmatpush1.bf16.msra.mxu1 %v5492_v54  ;;  %v5576_v54 = vld [vmem:[%s7941_s1 + $0x270] ss:$12 sps:$4 sm:$0xff]  }
  0x34   :  { %3771 = vmatpush1.bf16.msra.mxu0 %v5493_v55  ;;  %3649 = vmatprep.subr.bf16.mxu1 %v5494_v56  ;;  %v5579_v55 = vld [vmem:[%s7941_s1 + $0x6f0] ss:$12 sps:$4 sm:$0xff]   ;;  %v5584_v56 = vld [vmem:[%s7941_s1 + $0x28c] ss:$12 sps:$4 sm:$0xff]  }
  0x35   :  { %3772 = vmatprep.subr.bf16.mxu0 %v5496_v57  ;;  %v5587_v57 = vld [vmem:[%s7941_s1 + $0x70c] ss:$12 sps:$4 sm:$0xff]  }
  0x37   :  { %3650 = vmatpush1.bf16.msra.mxu1 %v5498_v58  ;;  %v5582_v58 = vld [vmem:[%s7941_s1 + $0x288] ss:$12 sps:$4 sm:$0xff]  }
  0x38   :  { %3773 = vmatpush1.bf16.msra.mxu0 %v5499_v59  ;;  %3651 = vmatprep.subr.bf16.mxu1 %v5500_v60  ;;  %v5585_v59 = vld [vmem:[%s7941_s1 + $0x708] ss:$12 sps:$4 sm:$0xff]   ;;  %v5590_v60 = vld [vmem:[%s7941_s1 + $0x2a4] ss:$12 sps:$4 sm:$0xff]  }
  0x39   :  { %3774 = vmatprep.subr.bf16.mxu0 %v5502_v61  ;;  %v5593_v61 = vld [vmem:[%s7941_s1 + $0x724] ss:$12 sps:$4 sm:$0xff]  }
  0x3b   :  { %3652 = vmatpush1.bf16.msra.mxu1 %v5504_v62  ;;  %v5588_v62 = vld [vmem:[%s7941_s1 + $0x2a0] ss:$12 sps:$4 sm:$0xff]  }
  0x3c   :  { %3775 = vmatpush1.bf16.msra.mxu0 %v5505_v63  ;;  %3653 = vmatprep.subr.bf16.mxu1 %v5506_v0  ;;  %v5591_v63 = vld [vmem:[%s7941_s1 + $0x720] ss:$12 sps:$4 sm:$0xff]   ;;  %v5596_v0 = vld [vmem:[%s7941_s1 + $0x2bc] ss:$12 sps:$4 sm:$0xff]  }
  0x3d   :  { %3776 = vmatprep.subr.bf16.mxu0 %v5508_v1  ;;  %v5599_v1 = vld [vmem:[%s7941_s1 + $0x73c] ss:$12 sps:$4 sm:$0xff]  }
  0x3f   :  { %3654 = vmatpush1.bf16.msra.mxu1 %v5510_v2  ;;  %v5594_v2 = vld [vmem:[%s7941_s1 + $0x2b8] ss:$12 sps:$4 sm:$0xff]  }
  0x40   :  { %3777 = vmatpush1.bf16.msra.mxu0 %v5511_v3  ;;  %3664 = vmatprep.subr.bf16.mxu1 %v5516_v4  ;;  %v5597_v3 = vld [vmem:[%s7941_s1 + $0x738] ss:$12 sps:$4 sm:$0xff]   ;;  %v5602_v4 = vld [vmem:[%s7941_s1 + $0x2d4] ss:$12 sps:$4 sm:$0xff]  }
  0x41   :  { %3787 = vmatprep.subr.bf16.mxu0 %v5521_v5  ;;  %v5605_v5 = vld [vmem:[%s7941_s1 + $0x754] ss:$12 sps:$4 sm:$0xff]  }
  0x42   :  { %3656 = vmatmul.mubr.bf16.vlgmr.msra.gmra.mrb[0].mxu1 %v6372_v6 }
  0x43   :  { %3779 = vmatmul.mubr.bf16.vlgmr.msra.gmra.mrb[0].mxu0 %v6374_v7  ;;  %3665 = vmatpush1.bf16.msra.mxu1 %v5514_v8  ;;  %v5600_v8 = vld [vmem:[%s7941_s1 + $0x2d0] ss:$12 sps:$4 sm:$0xff]  }
  0x44   :  { %3788 = vmatpush1.bf16.msra.mxu0 %v5519_v9  ;;  %3666 = vmatprep.subr.bf16.mxu1 %v5524_v10  ;;  %v5603_v9 = vld [vmem:[%s7941_s1 + $0x750] ss:$12 sps:$4 sm:$0xff]   ;;  %v5608_v10 = vld [vmem:[%s7941_s1 + $0x2ec] ss:$12 sps:$4 sm:$0xff]  }
  0x45   :  { %3789 = vmatprep.subr.bf16.mxu0 %v5527_v11  ;;  %3696 = vmatprep.mubr.bf16.mxu1 %v6463_v35  ;;  %v5611_v11 = vld [vmem:[%s7941_s1 + $0x76c] ss:$12 sps:$4 sm:$0xff]  }
  0x46   :  { %3819 = vmatprep.mubr.bf16.mxu0 %v6475_v38 }
  0x47   :  { %3667 = vmatpush1.bf16.msra.mxu1 %v5522_v12  ;;  %v5606_v12 = vld [vmem:[%s7941_s1 + $0x2e8] ss:$12 sps:$4 sm:$0xff]  }
  0x48   :  { %3790 = vmatpush1.bf16.msra.mxu0 %v5525_v13  ;;  %3668 = vmatprep.subr.bf16.mxu1 %v5530_v14  ;;  %v5609_v13 = vld [vmem:[%s7941_s1 + $0x768] ss:$12 sps:$4 sm:$0xff]   ;;  %v5616_v14 = vld [vmem:[%s7941_s1 + $0x304] ss:$12 sps:$4 sm:$0xff]  }
  0x49   :  { %3791 = vmatprep.subr.bf16.mxu0 %v5533_v15  ;;  %v5621_v15 = vld [vmem:[%s7941_s1 + $0x784] ss:$12 sps:$4 sm:$0xff]  }
  0x4b   :  { %3669 = vmatpush1.bf16.msra.mxu1 %v5528_v16  ;;  %v6592_v16 = vcombine.low %v6453_v32, %v6453_v32  ;;  %v5636_v32 = vld [vmem:[%s7941_s1 + $0x34c] ss:$12 sps:$4 sm:$0xff]  }
  0x4c   :  { %3792 = vmatpush1.bf16.msra.mxu0 %v5531_v17  ;;  %3670 = vmatprep.subr.bf16.mxu1 %v5536_v18  ;;  %v5614_v17 = vld [vmem:[%s7941_s1 + $0x300] ss:$12 sps:$4 sm:$0xff]   ;;  %v6599_v18 = vcombine.low %v6468_v36, %v6468_v36  ;;  %v5637_v36 = vld [vmem:[%s7941_s1 + $0x7c8] ss:$12 sps:$4 sm:$0xff]  }
  0x4d   :  { %3793 = vmatprep.subr.bf16.mxu0 %v5539_v19  ;;  %v5619_v19 = vld [vmem:[%s7941_s1 + $0x780] ss:$12 sps:$4 sm:$0xff]  }
  0x4f   :  { %3671 = vmatpush1.bf16.msra.mxu1 %v5534_v20  ;;  %v5624_v20 = vld [vmem:[%s7941_s1 + $0x31c] ss:$12 sps:$4 sm:$0xff]  }
  0x50   :  { %3794 = vmatpush1.bf16.msra.mxu0 %v5537_v21  ;;  %3672 = vmatprep.subr.bf16.mxu1 %v5542_v22  ;;  %v5627_v21 = vld [vmem:[%s7941_s1 + $0x79c] ss:$12 sps:$4 sm:$0xff]   ;;  %v6613_v22 = vld [vmem:[%s7942_s0 + $0x10] sm:$0xff] }
  0x51   :  { %3795 = vmatprep.subr.bf16.mxu0 %v5545_v23  ;;  %v6618_v23 = vld [vmem:[%s7942_s0 + $0x28] sm:$0xff] }
  0x53   :  { %3673 = vmatpush1.bf16.msra.mxu1 %v5540_v24  ;;  %v5622_v24 = vld [vmem:[%s7941_s1 + $0x318] ss:$12 sps:$4 sm:$0xff]  }
  0x54   :  { %3796 = vmatpush1.bf16.msra.mxu0 %v5543_v25  ;;  %3674 = vmatprep.subr.bf16.mxu1 %v5548_v26  ;;  %v6625_v25 = vcombine.high %v6613_v22, %v6613_v22  ;;  %v6629_v26 = vcombine.high %v6618_v23, %v6618_v23 }
  0x55   :  { %3797 = vmatprep.subr.bf16.mxu0 %v5551_v27  ;;  %v5625_v27 = vld [vmem:[%s7941_s1 + $0x798] ss:$12 sps:$4 sm:$0xff]  }
  0x57   :  { %3675 = vmatpush1.bf16.msra.mxu1 %v5546_v28  ;;  %v5630_v28 = vld [vmem:[%s7941_s1 + $0x334] ss:$12 sps:$4 sm:$0xff]  }
  0x58   :  { %3798 = vmatpush1.bf16.msra.mxu0 %v5549_v29  ;;  %3676 = vmatprep.subr.bf16.mxu1 %v5554_v30  ;;  %v5633_v29 = vld [vmem:[%s7941_s1 + $0x7b4] ss:$12 sps:$4 sm:$0xff]   ;;  %v5628_v30 = vld [vmem:[%s7941_s1 + $0x330] ss:$12 sps:$4 sm:$0xff]  }
  0x59   :  { %3799 = vmatprep.subr.bf16.mxu0 %v5557_v31  ;;  %v5631_v31 = vld [vmem:[%s7941_s1 + $0x7b0] ss:$12 sps:$4 sm:$0xff]  }
  0x5b   :  { %3677 = vmatpush1.bf16.msra.mxu1 %v5552_v33  ;;  %v5639_v33 = vld [vmem:[%s7941_s1 + $0x7cc] ss:$12 sps:$4 sm:$0xff]  }
  0x5c   :  { %3800 = vmatpush1.bf16.msra.mxu0 %v5555_v34  ;;  %3678 = vmatprep.subr.bf16.mxu1 %v5560_v37  ;;  %v5634_v34 = vld [vmem:[%s7941_s1 + $0x348] ss:$12 sps:$4 sm:$0xff]   ;;  %v5642_v37 = vld [vmem:[%s7941_s1 + $0x364] ss:$12 sps:$4 sm:$0xff]  }
  0x5d   :  { %3801 = vmatprep.subr.bf16.mxu0 %v5563_v39  ;;  %v5645_v39 = vld [vmem:[%s7941_s1 + $0x7e4] ss:$12 sps:$4 sm:$0xff]  }
  0x5f   :  { %3679 = vmatpush1.bf16.msra.mxu1 %v5558_v40  ;;  %v5640_v40 = vld [vmem:[%s7941_s1 + $0x360] ss:$12 sps:$4 sm:$0xff]  }
  0x60   :  { %3802 = vmatpush1.bf16.msra.mxu0 %v5561_v41  ;;  %3680 = vmatprep.subr.bf16.mxu1 %v5566_v42  ;;  %v5643_v41 = vld [vmem:[%s7941_s1 + $0x7e0] ss:$12 sps:$4 sm:$0xff]   ;;  %v5648_v42 = vld [vmem:[%s7941_s1 + $0x37c] ss:$12 sps:$4 sm:$0xff]  }
  0x61   :  { %3803 = vmatprep.subr.bf16.mxu0 %v5569_v43  ;;  %v5651_v43 = vld [vmem:[%s7941_s1 + $0x7fc] ss:$12 sps:$4 sm:$0xff]  }
  0x63   :  { %3681 = vmatpush1.bf16.msra.mxu1 %v5564_v44  ;;  %v5646_v44 = vld [vmem:[%s7941_s1 + $0x378] ss:$12 sps:$4 sm:$0xff]  }
  0x64   :  { %3804 = vmatpush1.bf16.msra.mxu0 %v5567_v45  ;;  %3682 = vmatprep.subr.bf16.mxu1 %v5572_v46  ;;  %v5649_v45 = vld [vmem:[%s7941_s1 + $0x7f8] ss:$12 sps:$4 sm:$0xff]   ;;  %v5654_v46 = vld [vmem:[%s7941_s1 + $0x394] ss:$12 sps:$4 sm:$0xff]  }
  0x65   :  { %3805 = vmatprep.subr.bf16.mxu0 %v5575_v47  ;;  %v5657_v47 = vld [vmem:[%s7941_s1 + $0x814] ss:$12 sps:$4 sm:$0xff]  }
  0x67   :  { %3683 = vmatpush1.bf16.msra.mxu1 %v5570_v49  ;;  %v5652_v49 = vld [vmem:[%s7941_s1 + $0x390] ss:$12 sps:$4 sm:$0xff]  }
  0x68   :  { %3806 = vmatpush1.bf16.msra.mxu0 %v5573_v50  ;;  %3684 = vmatprep.subr.bf16.mxu1 %v5578_v51  ;;  %v5655_v50 = vld [vmem:[%s7941_s1 + $0x810] ss:$12 sps:$4 sm:$0xff]   ;;  %v5660_v51 = vld [vmem:[%s7941_s1 + $0x3ac] ss:$12 sps:$4 sm:$0xff]  }
  0x69   :  { %3807 = vmatprep.subr.bf16.mxu0 %v5581_v52  ;;  %v5663_v52 = vld [vmem:[%s7941_s1 + $0x82c] ss:$12 sps:$4 sm:$0xff]  }
  0x6b   :  { %3685 = vmatpush1.bf16.msra.mxu1 %v5576_v54  ;;  %v5658_v54 = vld [vmem:[%s7941_s1 + $0x3a8] ss:$12 sps:$4 sm:$0xff]  }
  0x6c   :  { %3808 = vmatpush1.bf16.msra.mxu0 %v5579_v55  ;;  %3686 = vmatprep.subr.bf16.mxu1 %v5584_v56  ;;  %v5661_v55 = vld [vmem:[%s7941_s1 + $0x828] ss:$12 sps:$4 sm:$0xff]   ;;  %v5666_v56 = vld [vmem:[%s7941_s1 + $0x3c4] ss:$12 sps:$4 sm:$0xff]  }
  0x6d   :  { %3809 = vmatprep.subr.bf16.mxu0 %v5587_v57  ;;  %v5669_v57 = vld [vmem:[%s7941_s1 + $0x844] ss:$12 sps:$4 sm:$0xff]  }
  0x6f   :  { %3687 = vmatpush1.bf16.msra.mxu1 %v5582_v58  ;;  %v5664_v58 = vld [vmem:[%s7941_s1 + $0x3c0] ss:$12 sps:$4 sm:$0xff]  }
  0x70   :  { %3810 = vmatpush1.bf16.msra.mxu0 %v5585_v59  ;;  %3688 = vmatprep.subr.bf16.mxu1 %v5590_v60  ;;  %v5667_v59 = vld [vmem:[%s7941_s1 + $0x840] ss:$12 sps:$4 sm:$0xff]   ;;  %v5672_v60 = vld [vmem:[%s7941_s1 + $0x3dc] ss:$12 sps:$4 sm:$0xff]  }
  0x71   :  { %3811 = vmatprep.subr.bf16.mxu0 %v5593_v61  ;;  %v5675_v61 = vld [vmem:[%s7941_s1 + $0x85c] ss:$12 sps:$4 sm:$0xff]  }
  0x73   :  { %3689 = vmatpush1.bf16.msra.mxu1 %v5588_v62  ;;  %v5670_v62 = vld [vmem:[%s7941_s1 + $0x3d8] ss:$12 sps:$4 sm:$0xff]  }
  0x74   :  { %3812 = vmatpush1.bf16.msra.mxu0 %v5591_v63  ;;  %3690 = vmatprep.subr.bf16.mxu1 %v5596_v0  ;;  %v5673_v63 = vld [vmem:[%s7941_s1 + $0x858] ss:$12 sps:$4 sm:$0xff]   ;;  %v5678_v0 = vld [vmem:[%s7941_s1 + $0x3f4] ss:$12 sps:$4 sm:$0xff]  }
  0x75   :  { %3813 = vmatprep.subr.bf16.mxu0 %v5599_v1  ;;  %v5681_v1 = vld [vmem:[%s7941_s1 + $0x874] ss:$12 sps:$4 sm:$0xff]  }
  0x77   :  { %3691 = vmatpush1.bf16.msra.mxu1 %v5594_v2  ;;  %v5676_v2 = vld [vmem:[%s7941_s1 + $0x3f0] ss:$12 sps:$4 sm:$0xff]  }
  0x78   :  { %3814 = vmatpush1.bf16.msra.mxu0 %v5597_v3  ;;  %3692 = vmatprep.subr.bf16.mxu1 %v5602_v4  ;;  %v5679_v3 = vld [vmem:[%s7941_s1 + $0x870] ss:$12 sps:$4 sm:$0xff]   ;;  %v5684_v4 = vld [vmem:[%s7941_s1 + $0x40c] ss:$12 sps:$4 sm:$0xff]  }
  0x79   :  { %3815 = vmatprep.subr.bf16.mxu0 %v5605_v5  ;;  %v5687_v5 = vld [vmem:[%s7941_s1 + $0x88c] ss:$12 sps:$4 sm:$0xff]  }
  0x7b   :  { %3693 = vmatpush1.bf16.msra.mxu1 %v5600_v8  ;;  %v5682_v8 = vld [vmem:[%s7941_s1 + $0x408] ss:$12 sps:$4 sm:$0xff]  }
  0x7c   :  { %3816 = vmatpush1.bf16.msra.mxu0 %v5603_v9  ;;  %3694 = vmatprep.subr.bf16.mxu1 %v5608_v10  ;;  %v5685_v9 = vld [vmem:[%s7941_s1 + $0x888] ss:$12 sps:$4 sm:$0xff]   ;;  %v5690_v10 = vld [vmem:[%s7941_s1 + $0x424] ss:$12 sps:$4 sm:$0xff]  }
  0x7d   :  { %3817 = vmatprep.subr.bf16.mxu0 %v5611_v11  ;;  %v5693_v11 = vld [vmem:[%s7941_s1 + $0x8a4] ss:$12 sps:$4 sm:$0xff]  }
  0x7f   :  { %3695 = vmatpush1.bf16.msra.mxu1 %v5606_v12  ;;  %v5688_v12 = vld [vmem:[%s7941_s1 + $0x420] ss:$12 sps:$4 sm:$0xff]  }
  0x80   :  { %3818 = vmatpush1.bf16.msra.mxu0 %v5609_v13  ;;  %3705 = vmatprep.subr.bf16.mxu1 %v5616_v14  ;;  %v5691_v13 = vld [vmem:[%s7941_s1 + $0x8a0] ss:$12 sps:$4 sm:$0xff]   ;;  %v5696_v14 = vld [vmem:[%s7941_s1 + $0x43c] ss:$12 sps:$4 sm:$0xff]  }
  0x81   :  { %3828 = vmatprep.subr.bf16.mxu0 %v5621_v15  ;;  %v5699_v15 = vld [vmem:[%s7941_s1 + $0x8bc] ss:$12 sps:$4 sm:$0xff]  }
  0x82   :  { %3697 = vmatmul.mubr.bf16.vlgmr.msra.gmra.mrb[0].mxu1 %v6592_v16 }
  0x83   :  { %3820 = vmatmul.mubr.bf16.vlgmr.msra.gmra.mrb[0].mxu0 %v6599_v18  ;;  %3706 = vmatpush1.bf16.msra.mxu1 %v5614_v17  ;;  %v5694_v17 = vld [vmem:[%s7941_s1 + $0x438] ss:$12 sps:$4 sm:$0xff]  }
  0x84   :  { %3829 = vmatpush1.bf16.msra.mxu0 %v5619_v19  ;;  %3707 = vmatprep.subr.bf16.mxu1 %v5624_v20  ;;  %v5697_v19 = vld [vmem:[%s7941_s1 + $0x8b8] ss:$12 sps:$4 sm:$0xff]   ;;  %v5702_v20 = vld [vmem:[%s7941_s1 + $0x454] ss:$12 sps:$4 sm:$0xff]  }
  0x85   :  { %3830 = vmatprep.subr.bf16.mxu0 %v5627_v21  ;;  %3737 = vmatprep.mubr.bf16.mxu1 %v6625_v25  ;;  %v5705_v21 = vld [vmem:[%s7941_s1 + $0x8d4] ss:$12 sps:$4 sm:$0xff]  }
  0x86   :  { %3860 = vmatprep.mubr.bf16.mxu0 %v6629_v26 }
  0x87   :  { %3708 = vmatpush1.bf16.msra.mxu1 %v5622_v24  ;;  %v5700_v24 = vld [vmem:[%s7941_s1 + $0x450] ss:$12 sps:$4 sm:$0xff]  }
  0x88   :  { %3831 = vmatpush1.bf16.msra.mxu0 %v5625_v27  ;;  %3709 = vmatprep.subr.bf16.mxu1 %v5630_v28  ;;  %v5703_v27 = vld [vmem:[%s7941_s1 + $0x8d0] ss:$12 sps:$4 sm:$0xff]   ;;  %v5708_v28 = vld [vmem:[%s7941_s1 + $0x46c] ss:$12 sps:$4 sm:$0xff]  }
  0x89   :  { %3832 = vmatprep.subr.bf16.mxu0 %v5633_v29  ;;  %v5711_v29 = vld [vmem:[%s7941_s1 + $0x8ec] ss:$12 sps:$4 sm:$0xff]  }
  0x8b   :  { %3710 = vmatpush1.bf16.msra.mxu1 %v5628_v30  ;;  %v5706_v30 = vld [vmem:[%s7941_s1 + $0x468] ss:$12 sps:$4 sm:$0xff]  }
  0x8c   :  { %3833 = vmatpush1.bf16.msra.mxu0 %v5631_v31  ;;  %3711 = vmatprep.subr.bf16.mxu1 %v5636_v32  ;;  %v5709_v31 = vld [vmem:[%s7941_s1 + $0x8e8] ss:$12 sps:$4 sm:$0xff]   ;;  %v5718_v32 = vld [vmem:[%s7941_s1 + $0x904] ss:$12 sps:$4 sm:$0xff]  }
  0x8d   :  { %3834 = vmatprep.subr.bf16.mxu0 %v5639_v33  ;;  %v5719_v33 = vld [vmem:[%s7941_s1 + $0xc8] ss:$12 sps:$4 sm:$0xff]  }
  0x8f   :  { %3712 = vmatpush1.bf16.msra.mxu1 %v5634_v34  ;;  %v5716_v34 = vld [vmem:[%s7941_s1 + $0x900] ss:$12 sps:$4 sm:$0xff]  }
  0x90   :  { %3835 = vmatpush1.bf16.msra.mxu0 %v5637_v36  ;;  %3713 = vmatprep.subr.bf16.mxu1 %v5642_v37  ;;  %v6817_v36 = vcombine.low %v6613_v22, %v6613_v22  ;;  %v6821_v37 = vcombine.low %v6618_v23, %v6618_v23  ;;  %v5723_v22 = vld [vmem:[%s7941_s1 + $0x91c] ss:$12 sps:$4 sm:$0xff]   ;;  %v5724_v23 = vld [vmem:[%s7941_s1 + $0xe0] ss:$12 sps:$4 sm:$0xff]  }
  0x91   :  { %3836 = vmatprep.subr.bf16.mxu0 %v5645_v39  ;;  %v5720_v39 = vld [vmem:[%s7941_s1 + $0x8] ss:$12 sps:$4 sm:$0xff]  }
  0x93   :  { %3714 = vmatpush1.bf16.msra.mxu1 %v5640_v40  ;;  %v6829_v40 = vld [vmem:[%s7942_s0 + $0x30] sm:$0xff] }
  0x94   :  { %3837 = vmatpush1.bf16.msra.mxu0 %v5643_v41  ;;  %3715 = vmatprep.subr.bf16.mxu1 %v5648_v42  ;;  %v5721_v41 = vld [vmem:[%s7941_s1 + $0x918] ss:$12 sps:$4 sm:$0xff]   ;;  %v6842_v42 = vcombine.high %v6829_v40, %v6829_v40 }
  0x95   :  { %3838 = vmatprep.subr.bf16.mxu0 %v5651_v43  ;;  %v5725_v43 = vld [vmem:[%s7941_s1 + $0x20] ss:$12 sps:$4 sm:$0xff]  }
  0x97   :  { %3716 = vmatpush1.bf16.msra.mxu1 %v5646_v44  ;;  %v5728_v44 = vld [vmem:[%s7941_s1 + $0x934] ss:$12 sps:$4 sm:$0xff]  }
  0x98   :  { %3839 = vmatpush1.bf16.msra.mxu0 %v5649_v45  ;;  %3717 = vmatprep.subr.bf16.mxu1 %v5654_v46  ;;  %v5729_v45 = vld [vmem:[%s7941_s1 + $0xf8] ss:$12 sps:$4 sm:$0xff]   ;;  %v5726_v46 = vld [vmem:[%s7941_s1 + $0x930] ss:$12 sps:$4 sm:$0xff]  }
  0x99   :  { %3840 = vmatprep.subr.bf16.mxu0 %v5657_v47  ;;  %v5730_v47 = vld [vmem:[%s7941_s1 + $0x38] ss:$12 sps:$4 sm:$0xff]  }
  0x9b   :  { %3718 = vmatpush1.bf16.msra.mxu1 %v5652_v49  ;;  %v5733_v49 = vld [vmem:[%s7941_s1 + $0x94c] ss:$12 sps:$4 sm:$0xff]  }
  0x9c   :  { %3841 = vmatpush1.bf16.msra.mxu0 %v5655_v50  ;;  %3719 = vmatprep.subr.bf16.mxu1 %v5660_v51  ;;  %v5731_v50 = vld [vmem:[%s7941_s1 + $0x948] ss:$12 sps:$4 sm:$0xff]   ;;  %v5735_v51 = vld [vmem:[%s7941_s1 + $0x50] ss:$12 sps:$4 sm:$0xff]  }
  0x9d   :  { %3842 = vmatprep.subr.bf16.mxu0 %v5663_v52  ;;  %v5738_v52 = vld [vmem:[%s7941_s1 + $0x964] ss:$12 sps:$4 sm:$0xff]  }
  0x9f   :  { %3720 = vmatpush1.bf16.msra.mxu1 %v5658_v54  ;;  %v5739_v54 = vld [vmem:[%s7941_s1 + $0x128] ss:$12 sps:$4 sm:$0xff]  }
  0xa0   :  { %3843 = vmatpush1.bf16.msra.mxu0 %v5661_v55  ;;  %3721 = vmatprep.subr.bf16.mxu1 %v5666_v56  ;;  %v5736_v55 = vld [vmem:[%s7941_s1 + $0x960] ss:$12 sps:$4 sm:$0xff]   ;;  %v5740_v56 = vld [vmem:[%s7941_s1 + $0x68] ss:$12 sps:$4 sm:$0xff]  }
  0xa1   :  { %3844 = vmatprep.subr.bf16.mxu0 %v5669_v57  ;;  %v5743_v57 = vld [vmem:[%s7941_s1 + $0x97c] ss:$12 sps:$4 sm:$0xff]  }
  0xa3   :  { %3722 = vmatpush1.bf16.msra.mxu1 %v5664_v58  ;;  %v5744_v58 = vld [vmem:[%s7941_s1 + $0x140] ss:$12 sps:$4 sm:$0xff]  }
  0xa4   :  { %3845 = vmatpush1.bf16.msra.mxu0 %v5667_v59  ;;  %3723 = vmatprep.subr.bf16.mxu1 %v5672_v60  ;;  %v5741_v59 = vld [vmem:[%s7941_s1 + $0x978] ss:$12 sps:$4 sm:$0xff]   ;;  %v5745_v60 = vld [vmem:[%s7941_s1 + $0x80] ss:$12 sps:$4 sm:$0xff]  }
  0xa5   :  { %3846 = vmatprep.subr.bf16.mxu0 %v5675_v61  ;;  %v5748_v61 = vld [vmem:[%s7941_s1 + $0x994] ss:$12 sps:$4 sm:$0xff]  }
  0xa7   :  { %3724 = vmatpush1.bf16.msra.mxu1 %v5670_v62  ;;  %v5749_v62 = vld [vmem:[%s7941_s1 + $0x158] ss:$12 sps:$4 sm:$0xff]  }
  0xa8   :  { %3847 = vmatpush1.bf16.msra.mxu0 %v5673_v63  ;;  %3725 = vmatprep.subr.bf16.mxu1 %v5678_v0  ;;  %v5746_v63 = vld [vmem:[%s7941_s1 + $0x990] ss:$12 sps:$4 sm:$0xff]   ;;  %v5750_v0 = vld [vmem:[%s7941_s1 + $0x98] ss:$12 sps:$4 sm:$0xff]  }
  0xa9   :  { %3848 = vmatprep.subr.bf16.mxu0 %v5681_v1  ;;  %v5753_v1 = vld [vmem:[%s7941_s1 + $0x9ac] ss:$12 sps:$4 sm:$0xff]  }
  0xab   :  { %3726 = vmatpush1.bf16.msra.mxu1 %v5676_v2  ;;  %v5754_v2 = vld [vmem:[%s7941_s1 + $0x170] ss:$12 sps:$4 sm:$0xff]  }
  0xac   :  { %3849 = vmatpush1.bf16.msra.mxu0 %v5679_v3  ;;  %3727 = vmatprep.subr.bf16.mxu1 %v5684_v4  ;;  %v5751_v3 = vld [vmem:[%s7941_s1 + $0x9a8] ss:$12 sps:$4 sm:$0xff]   ;;  %v5755_v4 = vld [vmem:[%s7941_s1 + $0xb0] ss:$12 sps:$4 sm:$0xff]  }
  0xad   :  { %3850 = vmatprep.subr.bf16.mxu0 %v5687_v5  ;;  %v5758_v5 = vld [vmem:[%s7941_s1 + $0x9c4] ss:$12 sps:$4 sm:$0xff]  }
  0xaf   :  { %3728 = vmatpush1.bf16.msra.mxu1 %v5682_v8  ;;  %v5759_v8 = vld [vmem:[%s7941_s1 + $0x248] ss:$12 sps:$4 sm:$0xff]  }
  0xb0   :  { %3851 = vmatpush1.bf16.msra.mxu0 %v5685_v9  ;;  %3729 = vmatprep.subr.bf16.mxu1 %v5690_v10  ;;  %v5756_v9 = vld [vmem:[%s7941_s1 + $0x9c0] ss:$12 sps:$4 sm:$0xff]   ;;  %v5760_v10 = vld [vmem:[%s7941_s1 + $0x188] ss:$12 sps:$4 sm:$0xff]  }
  0xb1   :  { %3852 = vmatprep.subr.bf16.mxu0 %v5693_v11  ;;  %v5763_v11 = vld [vmem:[%s7941_s1 + $0x9dc] ss:$12 sps:$4 sm:$0xff]  }
  0xb3   :  { %3730 = vmatpush1.bf16.msra.mxu1 %v5688_v12  ;;  %v5764_v12 = vld [vmem:[%s7941_s1 + $0x260] ss:$12 sps:$4 sm:$0xff]  }
  0xb4   :  { %3853 = vmatpush1.bf16.msra.mxu0 %v5691_v13  ;;  %3731 = vmatprep.subr.bf16.mxu1 %v5696_v14  ;;  %v5761_v13 = vld [vmem:[%s7941_s1 + $0x9d8] ss:$12 sps:$4 sm:$0xff]   ;;  %v5765_v14 = vld [vmem:[%s7941_s1 + $0x1a0] ss:$12 sps:$4 sm:$0xff]  }
  0xb5   :  { %3854 = vmatprep.subr.bf16.mxu0 %v5699_v15  ;;  %v5768_v15 = vld [vmem:[%s7941_s1 + $0x9f4] ss:$12 sps:$4 sm:$0xff]  }
  0xb7   :  { %3732 = vmatpush1.bf16.msra.mxu1 %v5694_v17  ;;  %v5769_v17 = vld [vmem:[%s7941_s1 + $0x278] ss:$12 sps:$4 sm:$0xff]  }
  0xb8   :  { %3855 = vmatpush1.bf16.msra.mxu0 %v5697_v19  ;;  %3733 = vmatprep.subr.bf16.mxu1 %v5702_v20  ;;  %v5770_v19 = vld [vmem:[%s7941_s1 + $0x1b8] ss:$12 sps:$4 sm:$0xff]  }
  0xb9   :  { %3856 = vmatprep.subr.bf16.mxu0 %v5705_v21  ;;  %v5773_v20 = vld [vmem:[%s7941_s1 + $0xa0c] ss:$12 sps:$4 sm:$0xff]   ;;  %v5771_v21 = vld [vmem:[%s7941_s1 + $0xa08] ss:$12 sps:$4 sm:$0xff]  }
  0xbb   :  { %3734 = vmatpush1.bf16.msra.mxu1 %v5700_v24  ;;  %v5775_v24 = vld [vmem:[%s7941_s1 + $0x1d0] ss:$12 sps:$4 sm:$0xff]  }
  0xbc   :  { %3857 = vmatpush1.bf16.msra.mxu0 %v5703_v27  ;;  %3735 = vmatprep.subr.bf16.mxu1 %v5708_v28  ;;  %v5778_v27 = vld [vmem:[%s7941_s1 + $0xa24] ss:$12 sps:$4 sm:$0xff]   ;;  %v5779_v28 = vld [vmem:[%s7941_s1 + $0x2a8] ss:$12 sps:$4 sm:$0xff]  }
  0xbd   :  { %3858 = vmatprep.subr.bf16.mxu0 %v5711_v29  ;;  %v5776_v29 = vld [vmem:[%s7941_s1 + $0xa20] ss:$12 sps:$4 sm:$0xff]  }
  0xbf   :  { %3736 = vmatpush1.bf16.msra.mxu1 %v5706_v30  ;;  %v5780_v30 = vld [vmem:[%s7941_s1 + $0x1e8] ss:$12 sps:$4 sm:$0xff]  }
  0xc0   :  { %3859 = vmatpush1.bf16.msra.mxu0 %v5709_v31  ;;  %5136 = vmatprep.subr.bf16.mxu1 %v5719_v33  ;;  %v5783_v31 = vld [vmem:[%s7941_s1 + $0xa3c] ss:$12 sps:$4 sm:$0xff]   ;;  %v5781_v33 = vld [vmem:[%s7941_s1 + $0xa38] ss:$12 sps:$4 sm:$0xff]  }
  0xc1   :  { %3869 = vmatprep.subr.bf16.mxu0 %v5718_v32  ;;  %v5784_v32 = vld [vmem:[%s7941_s1 + $0x2c0] ss:$12 sps:$4 sm:$0xff]  }
  0xc2   :  { %3738 = vmatmul.mubr.bf16.vlgmr.msra.gmra.mrb[0].mxu1 %v6817_v36 }
  0xc3   :  { %3861 = vmatmul.mubr.bf16.vlgmr.msra.gmra.mrb[0].mxu0 %v6821_v37  ;;  %5137 = vmatpush3.bf16.msra.mxu1 %v5720_v39  ;;  %v5788_v39 = vld [vmem:[%s7941_s1 + $0xa54] ss:$12 sps:$4 sm:$0xff]  }
  0xc4   :  { %3870 = vmatpush1.bf16.msra.mxu0 %v5716_v34  ;;  %5138 = vmatprep.subr.bf16.mxu1 %v5724_v23  ;;  %v5785_v34 = vld [vmem:[%s7941_s1 + $0x200] ss:$12 sps:$4 sm:$0xff]   ;;  %v5786_v23 = vld [vmem:[%s7941_s1 + $0xa50] ss:$12 sps:$4 sm:$0xff]  }
  0xc5   :  { %3871 = vmatprep.subr.bf16.mxu0 %v5723_v22  ;;  %4106 = vmatprep.mubr.bf16.mxu1 %v6306_v48  ;;  %v5734_v48 = vld [vmem:[%s7941_s1 + $0x110] ss:$12 sps:$4 sm:$0xff]   ;;  %v5789_v22 = vld [vmem:[%s7941_s1 + $0x2d8] ss:$12 sps:$4 sm:$0xff]  }
  0xc6   :  { %3901 = vmatprep.mubr.bf16.mxu0 %v6842_v42 }
  0xc7   :  { %5139 = vmatpush3.bf16.msra.mxu1 %v5725_v43  ;;  %v5793_v43 = vld [vmem:[%s7941_s1 + $0xa6c] ss:$12 sps:$4 sm:$0xff]  }
  0xc8   :  { %3872 = vmatpush1.bf16.msra.mxu0 %v5721_v41  ;;  %5140 = vmatprep.subr.bf16.mxu1 %v5729_v45  ;;  %v5790_v41 = vld [vmem:[%s7941_s1 + $0x218] ss:$12 sps:$4 sm:$0xff]   ;;  %v5791_v45 = vld [vmem:[%s7941_s1 + $0xa68] ss:$12 sps:$4 sm:$0xff]  }
  0xc9   :  { %3873 = vmatprep.subr.bf16.mxu0 %v5728_v44  ;;  %v5794_v44 = vld [vmem:[%s7941_s1 + $0x2f0] ss:$12 sps:$4 sm:$0xff]  }
  0xcb   :  { %5141 = vmatpush3.bf16.msra.mxu1 %v5730_v47  ;;  %v5800_v47 = vld [vmem:[%s7941_s1 + $0xa84] ss:$12 sps:$4 sm:$0xff]  }
  0xcc   :  { %3874 = vmatpush1.bf16.msra.mxu0 %v5726_v46  ;;  %5142 = vmatprep.subr.bf16.mxu1 %v5734_v48  ;;  %v5795_v46 = vld [vmem:[%s7941_s1 + $0x230] ss:$12 sps:$4 sm:$0xff]   ;;  %v5798_v48 = vld [vmem:[%s7941_s1 + $0xa80] ss:$12 sps:$4 sm:$0xff]  }
  0xcd   :  { %3875 = vmatprep.subr.bf16.mxu0 %v5733_v49  ;;  %v5801_v49 = vld [vmem:[%s7941_s1 + $0x3c8] ss:$12 sps:$4 sm:$0xff]  }
  0xcf   :  { %5143 = vmatpush3.bf16.msra.mxu1 %v5735_v51  ;;  %v7035_v51 = vcombine.low %v6829_v40, %v6829_v40 }
  0xd0   :  { %3876 = vmatpush1.bf16.msra.mxu0 %v5731_v50  ;;  %5144 = vmatprep.subr.bf16.mxu1 %v5739_v54  ;;  %v5802_v50 = vld [vmem:[%s7941_s1 + $0x308] ss:$12 sps:$4 sm:$0xff]  }
  0xd1   :  { %3877 = vmatprep.subr.bf16.mxu0 %v5738_v52  ;;  %v7040_v52 = vld [vmem:[%s7942_s0 + $0x38] sm:$0xff] }
  0xd2   :  { %v5805_v54 = vld [vmem:[%s7941_s1 + $0xa9c] ss:$12 sps:$4 sm:$0xff]   ;;  %v7050_v40 = vcombine.high %v7040_v52, %v7040_v52 }
  0xd3   :  { %5145 = vmatpush3.bf16.msra.mxu1 %v5740_v56  ;;  %v5803_v56 = vld [vmem:[%s7941_s1 + $0xa98] ss:$12 sps:$4 sm:$0xff]  }
  0xd4   :  { %3878 = vmatpush1.bf16.msra.mxu0 %v5736_v55  ;;  %5146 = vmatprep.subr.bf16.mxu1 %v5744_v58  ;;  %v5806_v55 = vld [vmem:[%s7941_s1 + $0x3e0] ss:$12 sps:$4 sm:$0xff]  }
  0xd5   :  { %3879 = vmatprep.subr.bf16.mxu0 %v5743_v57  ;;  %v5807_v57 = vld [vmem:[%s7941_s1 + $0x320] ss:$12 sps:$4 sm:$0xff]  }
  0xd6   :  { %v5810_v58 = vld [vmem:[%s7941_s1 + $0xab4] ss:$12 sps:$4 sm:$0xff]  }
  0xd7   :  { %5147 = vmatpush3.bf16.msra.mxu1 %v5745_v60  ;;  %v5812_v60 = vld [vmem:[%s7941_s1 + $0x338] ss:$12 sps:$4 sm:$0xff]  }
  0xd8   :  { %3880 = vmatpush1.bf16.msra.mxu0 %v5741_v59  ;;  %5148 = vmatprep.subr.bf16.mxu1 %v5749_v62  ;;  %v5808_v59 = vld [vmem:[%s7941_s1 + $0xab0] ss:$12 sps:$4 sm:$0xff]  }
  0xd9   :  { %3881 = vmatprep.subr.bf16.mxu0 %v5748_v61  ;;  %v5815_v61 = vld [vmem:[%s7941_s1 + $0xacc] ss:$12 sps:$4 sm:$0xff]   ;;  %v5816_v62 = vld [vmem:[%s7941_s1 + $0x410] ss:$12 sps:$4 sm:$0xff]  }
  0xdb   :  { %5149 = vmatpush3.bf16.msra.mxu1 %v5750_v0  ;;  %v5820_v0 = vld [vmem:[%s7941_s1 + $0xae4] ss:$12 sps:$4 sm:$0xff]  }
  0xdc   :  { %3882 = vmatpush1.bf16.msra.mxu0 %v5746_v63  ;;  %5150 = vmatprep.subr.bf16.mxu1 %v5754_v2  ;;  %v5817_v63 = vld [vmem:[%s7941_s1 + $0x350] ss:$12 sps:$4 sm:$0xff]   ;;  %v5818_v2 = vld [vmem:[%s7941_s1 + $0xae0] ss:$12 sps:$4 sm:$0xff]  }
  0xdd   :  { %3883 = vmatprep.subr.bf16.mxu0 %v5753_v1  ;;  %v5821_v1 = vld [vmem:[%s7941_s1 + $0x428] ss:$12 sps:$4 sm:$0xff]  }
  0xdf   :  { %5151 = vmatpush3.bf16.msra.mxu1 %v5755_v4  ;;  %v5825_v4 = vld [vmem:[%s7941_s1 + $0xafc] ss:$12 sps:$4 sm:$0xff]  }
  0xe0   :  { %3884 = vmatpush1.bf16.msra.mxu0 %v5751_v3  ;;  %5158 = vmatprep.subr.bf16.mxu1 %v5759_v8  ;;  %v5822_v3 = vld [vmem:[%s7941_s1 + $0x368] ss:$12 sps:$4 sm:$0xff]   ;;  %v5823_v8 = vld [vmem:[%s7941_s1 + $0xaf8] ss:$12 sps:$4 sm:$0xff]  }
  0xe1   :  { %3885 = vmatprep.subr.bf16.mxu0 %v5758_v5  ;;  %v5826_v5 = vld [vmem:[%s7941_s1 + $0x440] ss:$12 sps:$4 sm:$0xff]  }
  0xe2   :  { %4107 = vmatmul.mubr.bf16.vlgmr.msra.gmra.mrb[4].mxu1 %v6372_v6  ;;  %v5766_v6 = vld [vmem:[%s7941_s1 + $0x9f0] ss:$12 sps:$4 sm:$0xff]  }
  0xe3   :  { %5159 = vmatpush3.bf16.msra.mxu1 %v5760_v10  ;;  %4146 = vmatprep.mubr.bf16.mxu1 %v6463_v35  ;;  %v5774_v35 = vld [vmem:[%s7941_s1 + $0x290] ss:$12 sps:$4 sm:$0xff]   ;;  %v5830_v10 = vld [vmem:[%s7941_s1 + $0xb14] ss:$12 sps:$4 sm:$0xff]  }
  0xe4   :  { %3886 = vmatpush1.bf16.msra.mxu0 %v5756_v9  ;;  %5160 = vmatprep.subr.bf16.mxu1 %v5764_v12  ;;  %v5827_v9 = vld [vmem:[%s7941_s1 + $0x380] ss:$12 sps:$4 sm:$0xff]   ;;  %v5828_v12 = vld [vmem:[%s7941_s1 + $0xb10] ss:$12 sps:$4 sm:$0xff]  }
  0xe5   :  { %3887 = vmatprep.subr.bf16.mxu0 %v5763_v11  ;;  %v5831_v11 = vld [vmem:[%s7941_s1 + $0x458] ss:$12 sps:$4 sm:$0xff]  }
  0xe7   :  { %5161 = vmatpush3.bf16.msra.mxu1 %v5765_v14  ;;  %v5835_v14 = vld [vmem:[%s7941_s1 + $0xb2c] ss:$12 sps:$4 sm:$0xff]  }
  0xe8   :  { %3888 = vmatpush1.bf16.msra.mxu0 %v5761_v13  ;;  %5162 = vmatprep.subr.bf16.mxu1 %v5769_v17  ;;  %v5832_v13 = vld [vmem:[%s7941_s1 + $0x398] ss:$12 sps:$4 sm:$0xff]   ;;  %v5833_v17 = vld [vmem:[%s7941_s1 + $0xb28] ss:$12 sps:$4 sm:$0xff]  }
  0xe9   :  { %3889 = vmatprep.subr.bf16.mxu0 %v5768_v15  ;;  %v5836_v15 = vld [vmem:[%s7941_s1 + $0x470] ss:$12 sps:$4 sm:$0xff]  }
  0xeb   :  { %5163 = vmatpush3.bf16.msra.mxu1 %v5770_v19  ;;  %v5840_v19 = vld [vmem:[%s7941_s1 + $0xb44] ss:$12 sps:$4 sm:$0xff]  }
  0xec   :  { %3890 = vmatpush1.bf16.msra.mxu0 %v5766_v6  ;;  %5164 = vmatprep.subr.bf16.mxu1 %v5774_v35  ;;  %v5837_v6 = vld [vmem:[%s7941_s1 + $0x3b0] ss:$12 sps:$4 sm:$0xff]   ;;  %v5838_v35 = vld [vmem:[%s7941_s1 + $0xb40] ss:$12 sps:$4 sm:$0xff]  }
  0xed   :  { %3891 = vmatprep.subr.bf16.mxu0 %v5773_v20  ;;  %v5841_v20 = vld [vmem:[%s7941_s1 + $0x548] ss:$12 sps:$4 sm:$0xff]  }
  0xef   :  { %5165 = vmatpush3.bf16.msra.mxu1 %v5775_v24  ;;  %v5845_v24 = vld [vmem:[%s7941_s1 + $0xb5c] ss:$12 sps:$4 sm:$0xff]  }
  0xf0   :  { %3892 = vmatpush1.bf16.msra.mxu0 %v5771_v21  ;;  %5166 = vmatprep.subr.bf16.mxu1 %v5779_v28  ;;  %v5842_v21 = vld [vmem:[%s7941_s1 + $0x488] ss:$12 sps:$4 sm:$0xff]   ;;  %v5843_v28 = vld [vmem:[%s7941_s1 + $0xb58] ss:$12 sps:$4 sm:$0xff]  }
  0xf1   :  { %3893 = vmatprep.subr.bf16.mxu0 %v5778_v27  ;;  %v5846_v27 = vld [vmem:[%s7941_s1 + $0x560] ss:$12 sps:$4 sm:$0xff]  }
  0xf3   :  { %5167 = vmatpush3.bf16.msra.mxu1 %v5780_v30  ;;  %v5850_v30 = vld [vmem:[%s7941_s1 + $0xb74] ss:$12 sps:$4 sm:$0xff]  }
  0xf4   :  { %3894 = vmatpush1.bf16.msra.mxu0 %v5776_v29  ;;  %5168 = vmatprep.subr.bf16.mxu1 %v5784_v32  ;;  %v5847_v29 = vld [vmem:[%s7941_s1 + $0x4a0] ss:$12 sps:$4 sm:$0xff]   ;;  %v5852_v32 = vld [vmem:[%s7941_s1 + $0x4b8] ss:$12 sps:$4 sm:$0xff]  }
  0xf5   :  { %3895 = vmatprep.subr.bf16.mxu0 %v5783_v31  ;;  %v5851_v31 = vld [vmem:[%s7941_s1 + $0x578] ss:$12 sps:$4 sm:$0xff]  }
  0xf7   :  { %5169 = vmatpush3.bf16.msra.mxu1 %v5785_v34  ;;  %v5853_v34 = vld [vmem:[%s7941_s1 + $0xb88] ss:$12 sps:$4 sm:$0xff]  }
  0xf8   :  { %3896 = vmatpush1.bf16.msra.mxu0 %v5781_v33  ;;  %5170 = vmatprep.subr.bf16.mxu1 %v5789_v22  ;;  %v5855_v33 = vld [vmem:[%s7941_s1 + $0xb8c] ss:$12 sps:$4 sm:$0xff]   ;;  %v5860_v22 = vld [vmem:[%s7941_s1 + $0xba4] ss:$12 sps:$4 sm:$0xff]  }
  0xf9   :  { %3897 = vmatprep.subr.bf16.mxu0 %v5788_v39  ;;  %v5857_v39 = vld [vmem:[%s7941_s1 + $0x4d0] ss:$12 sps:$4 sm:$0xff]  }
  0xfb   :  { %5171 = vmatpush3.bf16.msra.mxu1 %v5790_v41  ;;  %v5858_v41 = vld [vmem:[%s7941_s1 + $0xba0] ss:$12 sps:$4 sm:$0xff]  }
  0xfc   :  { %3898 = vmatpush1.bf16.msra.mxu0 %v5786_v23  ;;  %5172 = vmatprep.subr.bf16.mxu1 %v5794_v44  ;;  %v5861_v23 = vld [vmem:[%s7941_s1 + $0x5a8] ss:$12 sps:$4 sm:$0xff]  }
  0xfd   :  { %3899 = vmatprep.subr.bf16.mxu0 %v5793_v43  ;;  %v5862_v43 = vld [vmem:[%s7941_s1 + $0x4e8] ss:$12 sps:$4 sm:$0xff]  }
  0xfe   :  { %v5865_v44 = vld [vmem:[%s7941_s1 + $0xbbc] ss:$12 sps:$4 sm:$0xff]  }
  0xff   :  { %5173 = vmatpush3.bf16.msra.mxu1 %v5795_v46  ;;  %v5863_v46 = vld [vmem:[%s7941_s1 + $0xbb8] ss:$12 sps:$4 sm:$0xff]  }
 0x100   :  { %3900 = vmatpush1.bf16.msra.mxu0 %v5791_v45  ;;  %5180 = vmatprep.subr.bf16.mxu1 %v5801_v49  ;;  %v5866_v45 = vld [vmem:[%s7941_s1 + $0x5c0] ss:$12 sps:$4 sm:$0xff]  }
 0x101   :  { %3910 = vmatprep.subr.bf16.mxu0 %v5800_v47  ;;  %v5867_v47 = vld [vmem:[%s7941_s1 + $0x500] ss:$12 sps:$4 sm:$0xff]  }
 0x102   :  { %4147 = vmatmul.mubr.bf16.vlgmr.msra.gmra.mrb[8].mxu1 %v6592_v16  ;;  %v5811_v16 = vld [vmem:[%s7941_s1 + $0x3f8] ss:$12 sps:$4 sm:$0xff]   ;;  %v5870_v49 = vld [vmem:[%s7941_s1 + $0xbd4] ss:$12 sps:$4 sm:$0xff]  }
 0x103   :  { %3902 = vmatmul.mubr.bf16.vlgmr.msra.gmra.mrb[0].mxu0 %v7035_v51  ;;  %5181 = vmatpush3.bf16.msra.mxu1 %v5802_v50  ;;  %v5868_v50 = vld [vmem:[%s7941_s1 + $0xbd0] ss:$12 sps:$4 sm:$0xff]  }
 0x104   :  { %3911 = vmatpush1.bf16.msra.mxu0 %v5798_v48  ;;  %5182 = vmatprep.subr.bf16.mxu1 %v5806_v55  ;;  %v5871_v48 = vld [vmem:[%s7941_s1 + $0x5d8] ss:$12 sps:$4 sm:$0xff]  }
 0x105   :  { %3912 = vmatprep.subr.bf16.mxu0 %v5805_v54  ;;  %4186 = vmatprep.mubr.bf16.mxu1 %v6625_v25  ;;  %v5813_v25 = vld [vmem:[%s7941_s1 + $0xac8] ss:$12 sps:$4 sm:$0xff]   ;;  %v5872_v54 = vld [vmem:[%s7941_s1 + $0x518] ss:$12 sps:$4 sm:$0xff]  }
 0x106   :  { %3942 = vmatprep.mubr.bf16.mxu0 %v7050_v40  ;;  %v5875_v55 = vld [vmem:[%s7941_s1 + $0xbec] ss:$12 sps:$4 sm:$0xff]  }
 0x107   :  { %5183 = vmatpush3.bf16.msra.mxu1 %v5807_v57  ;;  %v5873_v57 = vld [vmem:[%s7941_s1 + $0xbe8] ss:$12 sps:$4 sm:$0xff]  }
 0x108   :  { %3913 = vmatpush1.bf16.msra.mxu0 %v5803_v56  ;;  %5184 = vmatprep.subr.bf16.mxu1 %v5811_v16  ;;  %v5876_v56 = vld [vmem:[%s7941_s1 + $0x5f0] ss:$12 sps:$4 sm:$0xff]  }
 0x109   :  { %3914 = vmatprep.subr.bf16.mxu0 %v5810_v58  ;;  %v5877_v58 = vld [vmem:[%s7941_s1 + $0x530] ss:$12 sps:$4 sm:$0xff]  }
 0x10a   :  { %v5882_v16 = vld [vmem:[%s7941_s1 + $0xc04] ss:$12 sps:$4 sm:$0xff]  }
 0x10b   :  { %5185 = vmatpush3.bf16.msra.mxu1 %v5812_v60  ;;  %v5880_v60 = vld [vmem:[%s7941_s1 + $0xc00] ss:$12 sps:$4 sm:$0xff]  }
 0x10c   :  { %3915 = vmatpush1.bf16.msra.mxu0 %v5808_v59  ;;  %5186 = vmatprep.subr.bf16.mxu1 %v5816_v62  ;;  %v5883_v59 = vld [vmem:[%s7941_s1 + $0x6c8] ss:$12 sps:$4 sm:$0xff]   ;;  %v7246_v62 = vcombine.low %v7040_v52, %v7040_v52 }
 0x10d   :  { %3916 = vmatprep.subr.bf16.mxu0 %v5815_v61  ;;  %v5884_v61 = vld [vmem:[%s7941_s1 + $0x608] ss:$12 sps:$4 sm:$0xff]  }
 0x10f   :  { %5187 = vmatpush3.bf16.msra.mxu1 %v5817_v63  ;;  %v5887_v63 = vld [vmem:[%s7941_s1 + $0xc1c] ss:$12 sps:$4 sm:$0xff]  }
 0x110   :  { %3917 = vmatpush1.bf16.msra.mxu0 %v5813_v25  ;;  %5188 = vmatprep.subr.bf16.mxu1 %v5821_v1  ;;  %v7251_v25 = vld [vmem:[%s7942_s0 + $0x40] sm:$0xff] }
 0x111   :  { %3918 = vmatprep.subr.bf16.mxu0 %v5820_v0  ;;  %v5888_v0 = vld [vmem:[%s7941_s1 + $0x6e0] ss:$12 sps:$4 sm:$0xff]   ;;  %v7261_v52 = vcombine.high %v7251_v25, %v7251_v25  ;;  %v5885_v1 = vld [vmem:[%s7941_s1 + $0xc18] ss:$12 sps:$4 sm:$0xff]  }
 0x113   :  { %5189 = vmatpush3.bf16.msra.mxu1 %v5822_v3  ;;  %v5892_v3 = vld [vmem:[%s7941_s1 + $0xc34] ss:$12 sps:$4 sm:$0xff]  }
 0x114   :  { %3919 = vmatpush1.bf16.msra.mxu0 %v5818_v2  ;;  %5190 = vmatprep.subr.bf16.mxu1 %v5826_v5  ;;  %v5889_v2 = vld [vmem:[%s7941_s1 + $0x620] ss:$12 sps:$4 sm:$0xff]   ;;  %v5894_v5 = vld [vmem:[%s7941_s1 + $0x638] ss:$12 sps:$4 sm:$0xff]  }
 0x115   :  { %3920 = vmatprep.subr.bf16.mxu0 %v5825_v4  ;;  %v5890_v4 = vld [vmem:[%s7941_s1 + $0xc30] ss:$12 sps:$4 sm:$0xff]  }
 0x117   :  { %5191 = vmatpush3.bf16.msra.mxu1 %v5827_v9  ;;  %v5895_v9 = vld [vmem:[%s7941_s1 + $0xc48] ss:$12 sps:$4 sm:$0xff]  }
 0x118   :  { %3921 = vmatpush1.bf16.msra.mxu0 %v5823_v8  ;;  %5192 = vmatprep.subr.bf16.mxu1 %v5831_v11  ;;  %v5897_v8 = vld [vmem:[%s7941_s1 + $0xc4c] ss:$12 sps:$4 sm:$0xff]   ;;  %v5902_v11 = vld [vmem:[%s7941_s1 + $0xc64] ss:$12 sps:$4 sm:$0xff]  }
 0x119   :  { %3922 = vmatprep.subr.bf16.mxu0 %v5830_v10  ;;  %v5899_v10 = vld [vmem:[%s7941_s1 + $0x650] ss:$12 sps:$4 sm:$0xff]  }
 0x11b   :  { %5193 = vmatpush3.bf16.msra.mxu1 %v5832_v13  ;;  %v5900_v13 = vld [vmem:[%s7941_s1 + $0xc60] ss:$12 sps:$4 sm:$0xff]  }
 0x11c   :  { %3923 = vmatpush1.bf16.msra.mxu0 %v5828_v12  ;;  %5194 = vmatprep.subr.bf16.mxu1 %v5836_v15  ;;  %v5903_v12 = vld [vmem:[%s7941_s1 + $0x728] ss:$12 sps:$4 sm:$0xff]  }
 0x11d   :  { %3924 = vmatprep.subr.bf16.mxu0 %v5835_v14  ;;  %v5904_v14 = vld [vmem:[%s7941_s1 + $0x668] ss:$12 sps:$4 sm:$0xff]  }
 0x11e   :  { %v5907_v15 = vld [vmem:[%s7941_s1 + $0xc7c] ss:$12 sps:$4 sm:$0xff]  }
 0x11f   :  { %5195 = vmatpush3.bf16.msra.mxu1 %v5837_v6  ;;  %v5905_v6 = vld [vmem:[%s7941_s1 + $0xc78] ss:$12 sps:$4 sm:$0xff]  }
 0x120   :  { %3925 = vmatpush1.bf16.msra.mxu0 %v5833_v17  ;;  %5202 = vmatprep.subr.bf16.mxu1 %v5841_v20  ;;  %v5908_v17 = vld [vmem:[%s7941_s1 + $0x740] ss:$12 sps:$4 sm:$0xff]  }
 0x121   :  { %3926 = vmatprep.subr.bf16.mxu0 %v5840_v19  ;;  %v5909_v19 = vld [vmem:[%s7941_s1 + $0x680] ss:$12 sps:$4 sm:$0xff]  }
 0x122   :  { %4187 = vmatmul.mubr.bf16.vlgmr.msra.gmra.mrb[12].mxu1 %v6817_v36  ;;  %v5848_v36 = vld [vmem:[%s7941_s1 + $0xb70] ss:$12 sps:$4 sm:$0xff]   ;;  %v5912_v20 = vld [vmem:[%s7941_s1 + $0xc94] ss:$12 sps:$4 sm:$0xff]  }
 0x123   :  { %5203 = vmatpush3.bf16.msra.mxu1 %v5842_v21  ;;  %4226 = vmatprep.mubr.bf16.mxu1 %v6320_v53  ;;  %v5856_v53 = vld [vmem:[%s7941_s1 + $0x590] ss:$12 sps:$4 sm:$0xff]  }
 0x124   :  { %3927 = vmatpush1.bf16.msra.mxu0 %v5838_v35  ;;  %5204 = vmatprep.subr.bf16.mxu1 %v5846_v27  ;;  %v5913_v35 = vld [vmem:[%s7941_s1 + $0x758] ss:$12 sps:$4 sm:$0xff]   ;;  %v5910_v21 = vld [vmem:[%s7941_s1 + $0xc90] ss:$12 sps:$4 sm:$0xff]  }
 0x125   :  { %3928 = vmatprep.subr.bf16.mxu0 %v5845_v24  ;;  %v5914_v24 = vld [vmem:[%s7941_s1 + $0x698] ss:$12 sps:$4 sm:$0xff]  }
 0x126   :  { %v5917_v27 = vld [vmem:[%s7941_s1 + $0xcac] ss:$12 sps:$4 sm:$0xff]  }
 0x127   :  { %5205 = vmatpush3.bf16.msra.mxu1 %v5847_v29  ;;  %v5915_v29 = vld [vmem:[%s7941_s1 + $0xca8] ss:$12 sps:$4 sm:$0xff]  }
 0x128   :  { %3929 = vmatpush1.bf16.msra.mxu0 %v5843_v28  ;;  %5206 = vmatprep.subr.bf16.mxu1 %v5851_v31  ;;  %v5918_v28 = vld [vmem:[%s7941_s1 + $0x770] ss:$12 sps:$4 sm:$0xff]  }
 0x129   :  { %3930 = vmatprep.subr.bf16.mxu0 %v5850_v30  ;;  %v5919_v30 = vld [vmem:[%s7941_s1 + $0x6b0] ss:$12 sps:$4 sm:$0xff]  }
 0x12a   :  { %v5922_v31 = vld [vmem:[%s7941_s1 + $0xcc4] ss:$12 sps:$4 sm:$0xff]  }
 0x12b   :  { %5207 = vmatpush3.bf16.msra.mxu1 %v5852_v32  ;;  %v5920_v32 = vld [vmem:[%s7941_s1 + $0xcc0] ss:$12 sps:$4 sm:$0xff]  }
 0x12c   :  { %3931 = vmatpush1.bf16.msra.mxu0 %v5848_v36  ;;  %5208 = vmatprep.subr.bf16.mxu1 %v5856_v53  ;;  %v5923_v36 = vld [vmem:[%s7941_s1 + $0x848] ss:$12 sps:$4 sm:$0xff]  }
 0x12d   :  { %3932 = vmatprep.subr.bf16.mxu0 %v5855_v33  ;;  %v5924_v33 = vld [vmem:[%s7941_s1 + $0x788] ss:$12 sps:$4 sm:$0xff]  }
 0x12e   :  { %v5927_v53 = vld [vmem:[%s7941_s1 + $0xcdc] ss:$12 sps:$4 sm:$0xff]  }
 0x12f   :  { %5209 = vmatpush3.bf16.msra.mxu1 %v5857_v39  ;;  %v5925_v39 = vld [vmem:[%s7941_s1 + $0xcd8] ss:$12 sps:$4 sm:$0xff]  }
 0x130   :  { %3933 = vmatpush1.bf16.msra.mxu0 %v5853_v34  ;;  %5210 = vmatprep.subr.bf16.mxu1 %v5861_v23  ;;  %v5928_v34 = vld [vmem:[%s7941_s1 + $0x860] ss:$12 sps:$4 sm:$0xff]  }
 0x131   :  { %3934 = vmatprep.subr.bf16.mxu0 %v5860_v22  ;;  %v5929_v22 = vld [vmem:[%s7941_s1 + $0x7a0] ss:$12 sps:$4 sm:$0xff]  }
 0x132   :  { %v5932_v23 = vld [vmem:[%s7941_s1 + $0xcf4] ss:$12 sps:$4 sm:$0xff]  }
 0x133   :  { %5211 = vmatpush3.bf16.msra.mxu1 %v5862_v43  ;;  %v5934_v43 = vld [vmem:[%s7941_s1 + $0x7b8] ss:$12 sps:$4 sm:$0xff]  }
 0x134   :  { %3935 = vmatpush1.bf16.msra.mxu0 %v5858_v41  ;;  %5212 = vmatprep.subr.bf16.mxu1 %v5866_v45  ;;  %v5930_v41 = vld [vmem:[%s7941_s1 + $0xcf0] ss:$12 sps:$4 sm:$0xff]  }
 0x135   :  { %3936 = vmatprep.subr.bf16.mxu0 %v5865_v44  ;;  %v5937_v44 = vld [vmem:[%s7941_s1 + $0xd0c] ss:$12 sps:$4 sm:$0xff]   ;;  %v5938_v45 = vld [vmem:[%s7941_s1 + $0x890] ss:$12 sps:$4 sm:$0xff]  }
 0x137   :  { %5213 = vmatpush3.bf16.msra.mxu1 %v5867_v47  ;;  %v5942_v47 = vld [vmem:[%s7941_s1 + $0xd24] ss:$12 sps:$4 sm:$0xff]  }
 0x138   :  { %3937 = vmatpush1.bf16.msra.mxu0 %v5863_v46  ;;  %5214 = vmatprep.subr.bf16.mxu1 %v5871_v48  ;;  %v5939_v46 = vld [vmem:[%s7941_s1 + $0x7d0] ss:$12 sps:$4 sm:$0xff]   ;;  %v5940_v48 = vld [vmem:[%s7941_s1 + $0xd20] ss:$12 sps:$4 sm:$0xff]  }
 0x139   :  { %3938 = vmatprep.subr.bf16.mxu0 %v5870_v49  ;;  %v5943_v49 = vld [vmem:[%s7941_s1 + $0x8a8] ss:$12 sps:$4 sm:$0xff]  }
 0x13b   :  { %5215 = vmatpush3.bf16.msra.mxu1 %v5872_v54  ;;  %v5947_v54 = vld [vmem:[%s7941_s1 + $0xd3c] ss:$12 sps:$4 sm:$0xff]  }
 0x13c   :  { %3939 = vmatpush1.bf16.msra.mxu0 %v5868_v50  ;;  %5216 = vmatprep.subr.bf16.mxu1 %v5876_v56  ;;  %v5944_v50 = vld [vmem:[%s7941_s1 + $0x7e8] ss:$12 sps:$4 sm:$0xff]   ;;  %v5945_v56 = vld [vmem:[%s7941_s1 + $0xd38] ss:$12 sps:$4 sm:$0xff]  }
 0x13d   :  { %3940 = vmatprep.subr.bf16.mxu0 %v5875_v55  ;;  %v5948_v55 = vld [vmem:[%s7941_s1 + $0x8c0] ss:$12 sps:$4 sm:$0xff]  }
 0x13f   :  { %5217 = vmatpush3.bf16.msra.mxu1 %v5877_v58  ;;  %v5952_v58 = vld [vmem:[%s7941_s1 + $0xd54] ss:$12 sps:$4 sm:$0xff]  }
 0x140   :  { %3941 = vmatpush1.bf16.msra.mxu0 %v5873_v57  ;;  %5224 = vmatprep.subr.bf16.mxu1 %v5883_v59  ;;  %v5949_v57 = vld [vmem:[%s7941_s1 + $0x800] ss:$12 sps:$4 sm:$0xff]   ;;  %v5950_v59 = vld [vmem:[%s7941_s1 + $0xd50] ss:$12 sps:$4 sm:$0xff]  }
 0x141   :  { %3951 = vmatprep.subr.bf16.mxu0 %v5882_v16  ;;  %v5953_v16 = vld [vmem:[%s7941_s1 + $0x8d8] ss:$12 sps:$4 sm:$0xff]  }
 0x142   :  { %4227 = vmatmul.mubr.bf16.vlgmr.msra.gmra.mrb[16].mxu1 %v6374_v7  ;;  %v5893_v7 = vld [vmem:[%s7941_s1 + $0x6f8] ss:$12 sps:$4 sm:$0xff]  }
 0x143   :  { %3943 = vmatmul.mubr.bf16.vlgmr.msra.gmra.mrb[0].mxu0 %v7246_v62  ;;  %5225 = vmatpush3.bf16.msra.mxu1 %v5884_v61  ;;  %v5957_v61 = vld [vmem:[%s7941_s1 + $0xd6c] ss:$12 sps:$4 sm:$0xff]  }
 0x144   :  { %3952 = vmatpush1.bf16.msra.mxu0 %v5880_v60  ;;  %5226 = vmatprep.subr.bf16.mxu1 %v5888_v0  ;;  %v5954_v60 = vld [vmem:[%s7941_s1 + $0x818] ss:$12 sps:$4 sm:$0xff]   ;;  %v5955_v0 = vld [vmem:[%s7941_s1 + $0xd68] ss:$12 sps:$4 sm:$0xff]  }
 0x145   :  { %3953 = vmatprep.subr.bf16.mxu0 %v5887_v63  ;;  %4266 = vmatprep.mubr.bf16.mxu1 %v6475_v38  ;;  %v5898_v38 = vld [vmem:[%s7941_s1 + $0x710] ss:$12 sps:$4 sm:$0xff]  }
 0x146   :  { %3983 = vmatprep.mubr.bf16.mxu0 %v7261_v52  ;;  %v5958_v63 = vld [vmem:[%s7941_s1 + $0x8f0] ss:$12 sps:$4 sm:$0xff]  }
 0x147   :  { %5227 = vmatpush3.bf16.msra.mxu1 %v5889_v2  ;;  %v5964_v2 = vld [vmem:[%s7941_s1 + $0xd84] ss:$12 sps:$4 sm:$0xff]  }
 0x148   :  { %3954 = vmatpush1.bf16.msra.mxu0 %v5885_v1  ;;  %5228 = vmatprep.subr.bf16.mxu1 %v5893_v7  ;;  %v5959_v1 = vld [vmem:[%s7941_s1 + $0x830] ss:$12 sps:$4 sm:$0xff]   ;;  %v5962_v7 = vld [vmem:[%s7941_s1 + $0xd80] ss:$12 sps:$4 sm:$0xff]  }
 0x149   :  { %3955 = vmatprep.subr.bf16.mxu0 %v5892_v3  ;;  %v5965_v3 = vld [vmem:[%s7941_s1 + $0x9c8] ss:$12 sps:$4 sm:$0xff]  }
 0x14b   :  { %5229 = vmatpush3.bf16.msra.mxu1 %v5894_v5  ;;  %v7459_v5 = vld [vmem:[%s7942_s0 + $0x48] sm:$0xff] }
 0x14c   :  { %3956 = vmatpush1.bf16.msra.mxu0 %v5890_v4  ;;  %5230 = vmatprep.subr.bf16.mxu1 %v5898_v38  ;;  %v7454_v4 = vcombine.low %v7251_v25, %v7251_v25  ;;  %v5969_v38 = vld [vmem:[%s7941_s1 + $0xd9c] ss:$12 sps:$4 sm:$0xff]   ;;  %v5970_v25 = vld [vmem:[%s7941_s1 + $0x9e0] ss:$12 sps:$4 sm:$0xff]  }
 0x14d   :  { %3957 = vmatprep.subr.bf16.mxu0 %v5897_v8  ;;  %v5966_v8 = vld [vmem:[%s7941_s1 + $0x908] ss:$12 sps:$4 sm:$0xff]  }
 0x14f   :  { %5231 = vmatpush3.bf16.msra.mxu1 %v5899_v10  ;;  %v7475_v10 = vcombine.high %v7459_v5, %v7459_v5 }
 0x150   :  { %3958 = vmatpush1.bf16.msra.mxu0 %v5895_v9  ;;  %5232 = vmatprep.subr.bf16.mxu1 %v5903_v12  ;;  %v5967_v9 = vld [vmem:[%s7941_s1 + $0xd98] ss:$12 sps:$4 sm:$0xff]   ;;  %v5974_v12 = vld [vmem:[%s7941_s1 + $0xdb4] ss:$12 sps:$4 sm:$0xff]  }
 0x151   :  { %3959 = vmatprep.subr.bf16.mxu0 %v5902_v11  ;;  %v5971_v11 = vld [vmem:[%s7941_s1 + $0x920] ss:$12 sps:$4 sm:$0xff]  }
 0x153   :  { %5233 = vmatpush3.bf16.msra.mxu1 %v5904_v14  ;;  %v5976_v14 = vld [vmem:[%s7941_s1 + $0x938] ss:$12 sps:$4 sm:$0xff]  }
 0x154   :  { %3960 = vmatpush1.bf16.msra.mxu0 %v5900_v13  ;;  %5234 = vmatprep.subr.bf16.mxu1 %v5908_v17  ;;  %v5975_v13 = vld [vmem:[%s7941_s1 + $0x9f8] ss:$12 sps:$4 sm:$0xff]   ;;  %v5977_v17 = vld [vmem:[%s7941_s1 + $0xdc8] ss:$12 sps:$4 sm:$0xff]  }
 0x155   :  { %3961 = vmatprep.subr.bf16.mxu0 %v5907_v15  ;;  %v5979_v15 = vld [vmem:[%s7941_s1 + $0xdcc] ss:$12 sps:$4 sm:$0xff]  }
 0x157   :  { %5235 = vmatpush3.bf16.msra.mxu1 %v5909_v19  ;;  %v5984_v19 = vld [vmem:[%s7941_s1 + $0xde4] ss:$12 sps:$4 sm:$0xff]  }
 0x158   :  { %3962 = vmatpush1.bf16.msra.mxu0 %v5905_v6  ;;  %5236 = vmatprep.subr.bf16.mxu1 %v5913_v35  ;;  %v5981_v6 = vld [vmem:[%s7941_s1 + $0x950] ss:$12 sps:$4 sm:$0xff]   ;;  %v5982_v35 = vld [vmem:[%s7941_s1 + $0xde0] ss:$12 sps:$4 sm:$0xff]  }
 0x159   :  { %3963 = vmatprep.subr.bf16.mxu0 %v5912_v20  ;;  %v5985_v20 = vld [vmem:[%s7941_s1 + $0xa28] ss:$12 sps:$4 sm:$0xff]  }
 0x15b   :  { %5237 = vmatpush3.bf16.msra.mxu1 %v5914_v24  ;;  %v5989_v24 = vld [vmem:[%s7941_s1 + $0xdfc] ss:$12 sps:$4 sm:$0xff]  }
 0x15c   :  { %3964 = vmatpush1.bf16.msra.mxu0 %v5910_v21  ;;  %5238 = vmatprep.subr.bf16.mxu1 %v5918_v28  ;;  %v5986_v21 = vld [vmem:[%s7941_s1 + $0x968] ss:$12 sps:$4 sm:$0xff]   ;;  %v5987_v28 = vld [vmem:[%s7941_s1 + $0xdf8] ss:$12 sps:$4 sm:$0xff]  }
 0x15d   :  { %3965 = vmatprep.subr.bf16.mxu0 %v5917_v27  ;;  %v5990_v27 = vld [vmem:[%s7941_s1 + $0xa40] ss:$12 sps:$4 sm:$0xff]  }
 0x15f   :  { %5239 = vmatpush3.bf16.msra.mxu1 %v5919_v30  ;;  %v5994_v30 = vld [vmem:[%s7941_s1 + $0xe14] ss:$12 sps:$4 sm:$0xff]  }
 0x160   :  { %3966 = vmatpush1.bf16.msra.mxu0 %v5915_v29  ;;  %5246 = vmatprep.subr.bf16.mxu1 %v5923_v36  ;;  %v5991_v29 = vld [vmem:[%s7941_s1 + $0x980] ss:$12 sps:$4 sm:$0xff]  }
 0x161   :  { %3967 = vmatprep.subr.bf16.mxu0 %v5922_v31  ;;  %v5995_v31 = vld [vmem:[%s7941_s1 + $0xa58] ss:$12 sps:$4 sm:$0xff]  }
 0x162   :  { %4267 = vmatmul.mubr.bf16.vlgmr.msra.gmra.mrb[20].mxu1 %v6599_v18  ;;  %v5933_v18 = vld [vmem:[%s7941_s1 + $0x878] ss:$12 sps:$4 sm:$0xff]  }
 0x163   :  { %5247 = vmatpush3.bf16.msra.mxu1 %v5924_v33  ;;  %4306 = vmatprep.mubr.bf16.mxu1 %v6629_v26  ;;  %v5935_v26 = vld [vmem:[%s7941_s1 + $0xd08] ss:$12 sps:$4 sm:$0xff]   ;;  %v5996_v33 = vld [vmem:[%s7941_s1 + $0x998] ss:$12 sps:$4 sm:$0xff]  }
 0x164   :  { %3968 = vmatpush1.bf16.msra.mxu0 %v5920_v32  ;;  %5248 = vmatprep.subr.bf16.mxu1 %v5928_v34  ;;  %v5992_v32 = vld [vmem:[%s7941_s1 + $0xe10] ss:$12 sps:$4 sm:$0xff]   ;;  %v5999_v34 = vld [vmem:[%s7941_s1 + $0xe2c] ss:$12 sps:$4 sm:$0xff]  }
 0x165   :  { %3969 = vmatprep.subr.bf16.mxu0 %v5927_v53 }
 0x167   :  { %5249 = vmatpush3.bf16.msra.mxu1 %v5929_v22 }
 0x168   :  { %3970 = vmatpush1.bf16.msra.mxu0 %v5925_v39  ;;  %5250 = vmatprep.subr.bf16.mxu1 %v5933_v18  ;;  %v5997_v18 = vld [vmem:[%s7941_s1 + $0xe28] ss:$12 sps:$4 sm:$0xff]  }
 0x169   :  { %3971 = vmatprep.subr.bf16.mxu0 %v5932_v23  ;;  %v6000_v23 = vld [vmem:[%s7941_s1 + $0xa70] ss:$12 sps:$4 sm:$0xff]  }
 0x16b   :  { %5251 = vmatpush3.bf16.msra.mxu1 %v5934_v43  ;;  %v6004_v43 = vld [vmem:[%s7941_s1 + $0xe44] ss:$12 sps:$4 sm:$0xff]  }
 0x16c   :  { %3972 = vmatpush1.bf16.msra.mxu0 %v5930_v41  ;;  %5252 = vmatprep.subr.bf16.mxu1 %v5938_v45  ;;  %v6001_v41 = vld [vmem:[%s7941_s1 + $0x9b0] ss:$12 sps:$4 sm:$0xff]   ;;  %v6002_v45 = vld [vmem:[%s7941_s1 + $0xe40] ss:$12 sps:$4 sm:$0xff]  }
 0x16d   :  { %3973 = vmatprep.subr.bf16.mxu0 %v5937_v44  ;;  %v6005_v44 = vld [vmem:[%s7941_s1 + $0xb48] ss:$12 sps:$4 sm:$0xff]  }
 0x16f   :  { %5253 = vmatpush3.bf16.msra.mxu1 %v5939_v46  ;;  %v6009_v46 = vld [vmem:[%s7941_s1 + $0xe5c] ss:$12 sps:$4 sm:$0xff]  }
 0x170   :  { %3974 = vmatpush1.bf16.msra.mxu0 %v5935_v26  ;;  %5254 = vmatprep.subr.bf16.mxu1 %v5943_v49  ;;  %v6006_v26 = vld [vmem:[%s7941_s1 + $0xa88] ss:$12 sps:$4 sm:$0xff]   ;;  %v6007_v49 = vld [vmem:[%s7941_s1 + $0xe58] ss:$12 sps:$4 sm:$0xff]  }
 0x171   :  { %3975 = vmatprep.subr.bf16.mxu0 %v5942_v47  ;;  %v6010_v47 = vld [vmem:[%s7941_s1 + $0xb60] ss:$12 sps:$4 sm:$0xff]  }
 0x173   :  { %5255 = vmatpush3.bf16.msra.mxu1 %v5944_v50  ;;  %v6014_v50 = vld [vmem:[%s7941_s1 + $0xe74] ss:$12 sps:$4 sm:$0xff]  }
 0x174   :  { %3976 = vmatpush1.bf16.msra.mxu0 %v5940_v48  ;;  %5256 = vmatprep.subr.bf16.mxu1 %v5948_v55  ;;  %v6011_v48 = vld [vmem:[%s7941_s1 + $0xaa0] ss:$12 sps:$4 sm:$0xff]   ;;  %v6016_v55 = vld [vmem:[%s7941_s1 + $0xab8] ss:$12 sps:$4 sm:$0xff]  }
 0x175   :  { %3977 = vmatprep.subr.bf16.mxu0 %v5947_v54  ;;  %v6012_v54 = vld [vmem:[%s7941_s1 + $0xe70] ss:$12 sps:$4 sm:$0xff]  }
 0x177   :  { %5257 = vmatpush3.bf16.msra.mxu1 %v5949_v57  ;;  %v6017_v57 = vld [vmem:[%s7941_s1 + $0xe88] ss:$12 sps:$4 sm:$0xff]  }
 0x178   :  { %3978 = vmatpush1.bf16.msra.mxu0 %v5945_v56  ;;  %5258 = vmatprep.subr.bf16.mxu1 %v5953_v16  ;;  %v6019_v56 = vld [vmem:[%s7941_s1 + $0xe8c] ss:$12 sps:$4 sm:$0xff]   ;;  %v6024_v16 = vld [vmem:[%s7941_s1 + $0xea4] ss:$12 sps:$4 sm:$0xff]  }
 0x179   :  { %3979 = vmatprep.subr.bf16.mxu0 %v5952_v58  ;;  %v6021_v58 = vld [vmem:[%s7941_s1 + $0xad0] ss:$12 sps:$4 sm:$0xff]  }
 0x17b   :  { %5259 = vmatpush3.bf16.msra.mxu1 %v5954_v60  ;;  %v6022_v60 = vld [vmem:[%s7941_s1 + $0xea0] ss:$12 sps:$4 sm:$0xff]  }
 0x17c   :  { %3980 = vmatpush1.bf16.msra.mxu0 %v5950_v59  ;;  %5260 = vmatprep.subr.bf16.mxu1 %v5958_v63  ;;  %v6025_v59 = vld [vmem:[%s7941_s1 + $0xba8] ss:$12 sps:$4 sm:$0xff]  }
 0x17d   :  { %3981 = vmatprep.subr.bf16.mxu0 %v5957_v61  ;;  %v6026_v61 = vld [vmem:[%s7941_s1 + $0xae8] ss:$12 sps:$4 sm:$0xff]  }
 0x17e   :  { %v6029_v63 = vld [vmem:[%s7941_s1 + $0xebc] ss:$12 sps:$4 sm:$0xff]  }
 0x17f   :  { %5261 = vmatpush3.bf16.msra.mxu1 %v5959_v1  ;;  %v6027_v1 = vld [vmem:[%s7941_s1 + $0xeb8] ss:$12 sps:$4 sm:$0xff]  }
 0x180   :  { %3982 = vmatpush1.bf16.msra.mxu0 %v5955_v0  ;;  %5268 = vmatprep.subr.bf16.mxu1 %v5965_v3  ;;  %v6030_v0 = vld [vmem:[%s7941_s1 + $0xbc0] ss:$12 sps:$4 sm:$0xff]  }
 0x181   :  { %3992 = vmatprep.subr.bf16.mxu0 %v5964_v2  ;;  %v6031_v2 = vld [vmem:[%s7941_s1 + $0xb00] ss:$12 sps:$4 sm:$0xff]  }
 0x182   :  { %4307 = vmatmul.mubr.bf16.vlgmr.msra.gmra.mrb[24].mxu1 %v6821_v37  ;;  %v5972_v37 = vld [vmem:[%s7941_s1 + $0xdb0] ss:$12 sps:$4 sm:$0xff]   ;;  %v6034_v3 = vld [vmem:[%s7941_s1 + $0xed4] ss:$12 sps:$4 sm:$0xff]  }
 0x183   :  { %3984 = vmatmul.mubr.bf16.vlgmr.msra.gmra.mrb[0].mxu0 %v7454_v4  ;;  %5269 = vmatpush3.bf16.msra.mxu1 %v5966_v8 }
 0x184   :  { %3993 = vmatpush1.bf16.msra.mxu0 %v5962_v7  ;;  %5270 = vmatprep.subr.bf16.mxu1 %v5970_v25  ;;  %v6035_v7 = vld [vmem:[%s7941_s1 + $0xbd8] ss:$12 sps:$4 sm:$0xff]  }
 0x185   :  { %3994 = vmatprep.subr.bf16.mxu0 %v5969_v38  ;;  %4346 = vmatprep.mubr.bf16.mxu1 %v6842_v42  ;;  %v5980_v42 = vld [vmem:[%s7941_s1 + $0xa10] ss:$12 sps:$4 sm:$0xff]  }
 0x186   :  { %4024 = vmatprep.mubr.bf16.mxu0 %v7475_v10 }
 0x187   :  { %5271 = vmatpush3.bf16.msra.mxu1 %v5971_v11  ;;  %v6032_v11 = vld [vmem:[%s7941_s1 + $0xed0] ss:$12 sps:$4 sm:$0xff]  }
 0x188   :  { %3995 = vmatpush1.bf16.msra.mxu0 %v5967_v9  ;;  %5272 = vmatprep.subr.bf16.mxu1 %v5975_v13 }
 0x189   :  { %3996 = vmatprep.subr.bf16.mxu0 %v5974_v12  ;;  %v6036_v12 = vld [vmem:[%s7941_s1 + $0xb18] ss:$12 sps:$4 sm:$0xff]  }
 0x18b   :  { %5273 = vmatpush3.bf16.msra.mxu1 %v5976_v14  ;;  %v6040_v14 = vld [vmem:[%s7941_s1 + $0xbf0] ss:$12 sps:$4 sm:$0xff]  }
 0x18c   :  { %3997 = vmatpush1.bf16.msra.mxu0 %v5972_v37  ;;  %5274 = vmatprep.subr.bf16.mxu1 %v5980_v42  ;;  %v6039_v37 = vld [vmem:[%s7941_s1 + $0xeec] ss:$12 sps:$4 sm:$0xff]   ;;  %v6041_v42 = vld [vmem:[%s7941_s1 + $0xb30] ss:$12 sps:$4 sm:$0xff]  }
 0x18d   :  { %3998 = vmatprep.subr.bf16.mxu0 %v5979_v15  ;;  %v6037_v15 = vld [vmem:[%s7941_s1 + $0xee8] ss:$12 sps:$4 sm:$0xff]  }
 0x18f   :  { %5275 = vmatpush3.bf16.msra.mxu1 %v5981_v6  ;;  %v6047_v6 = vld [vmem:[%s7941_s1 + $0xcc8] ss:$12 sps:$4 sm:$0xff]  }
 0x190   :  { %3999 = vmatpush1.bf16.msra.mxu0 %v5977_v17  ;;  %5276 = vmatprep.subr.bf16.mxu1 %v5985_v20  ;;  %v6046_v17 = vld [vmem:[%s7941_s1 + $0xf04] ss:$12 sps:$4 sm:$0xff]  }
 0x191   :  { %4000 = vmatprep.subr.bf16.mxu0 %v5984_v19  ;;  %v7668_v19 = vcombine.low %v7459_v5, %v7459_v5  ;;  %v7673_v20 = vld [vmem:[%s7942_s0 + $0x50] sm:$0xff]  ;;  %v6051_v5 = vld [vmem:[%s7941_s1 + $0xf1c] ss:$12 sps:$4 sm:$0xff]  }
 0x193   :  { %5277 = vmatpush3.bf16.msra.mxu1 %v5986_v21  ;;  %v6048_v21 = vld [vmem:[%s7941_s1 + $0xc08] ss:$12 sps:$4 sm:$0xff]  }
 0x194   :  { %4001 = vmatpush1.bf16.msra.mxu0 %v5982_v35  ;;  %5278 = vmatprep.subr.bf16.mxu1 %v5990_v27  ;;  %v6044_v35 = vld [vmem:[%s7941_s1 + $0xf00] ss:$12 sps:$4 sm:$0xff]   ;;  %v7689_v27 = vcombine.high %v7673_v20, %v7673_v20 }
 0x195   :  { %4002 = vmatprep.subr.bf16.mxu0 %v5989_v24  ;;  %v7538_v36 = vpop.f32.mrb[0].mxu1  ;;  %v6052_v24 = vld [vmem:[%s7941_s1 + $0xce0] ss:$12 sps:$4 sm:$0xff]  }
 0x196   :  { %v7546_v53 = vpop.f32.mrb[1].mxu1 }
 0x197   :  { %v3743_v39 = vpop.f32.mrb[2].mxu1  ;;  %5279 = vmatpush3.bf16.msra.mxu1 %v5991_v29  ;;  %v6053_v29 = vld [vmem:[%s7941_s1 + $0xc20] ss:$12 sps:$4 sm:$0xff]  }
 0x198   :  { %4003 = vmatpush1.bf16.msra.mxu0 %v5987_v28  ;;  %v3744_v22 = vpop.f32.mrb[3].mxu1  ;;  %5280 = vmatprep.subr.bf16.mxu1 %v5995_v31  ;;  %v6049_v28 = vld [vmem:[%s7941_s1 + $0xf18] ss:$12 sps:$4 sm:$0xff]   ;;  %v6054_v31 = vld [vmem:[%s7941_s1 + $0xf30] ss:$12 sps:$4 sm:$0xff]  }
 0x199   :  { %4004 = vmatprep.subr.bf16.mxu0 %v5994_v30  ;;  %v6056_v30 = vld [vmem:[%s7941_s1 + $0xf34] ss:$12 sps:$4 sm:$0xff]   ;;  %v6063_v39 = vld [vmem:[%s7941_s1 + $0xc50] ss:$12 sps:$4 sm:$0xff]  }
 0x19a   :  { %v6066_v22 = vld [vmem:[%s7941_s1 + $0xf64] ss:$12 sps:$4 sm:$0xff]  }
 0x19b   :  { %5281 = vmatpush3.bf16.msra.mxu1 %v5996_v33  ;;  %v6061_v33 = vld [vmem:[%s7941_s1 + $0xf4c] ss:$12 sps:$4 sm:$0xff]  }
 0x19c   :  { %4005 = vmatpush1.bf16.msra.mxu0 %v5992_v32  ;;  %5282 = vmatprep.subr.bf16.mxu1 %v6000_v23  ;;  %v6058_v32 = vld [vmem:[%s7941_s1 + $0xc38] ss:$12 sps:$4 sm:$0xff]   ;;  %v6067_v23 = vld [vmem:[%s7941_s1 + $0xd28] ss:$12 sps:$4 sm:$0xff]  }
 0x19d   :  { %4006 = vmatprep.subr.bf16.mxu0 %v5999_v34  ;;  %v6059_v34 = vld [vmem:[%s7941_s1 + $0xf48] ss:$12 sps:$4 sm:$0xff]  }
 0x19f   :  { %5283 = vmatpush3.bf16.msra.mxu1 %v6001_v41  ;;  %v6068_v41 = vld [vmem:[%s7941_s1 + $0xc68] ss:$12 sps:$4 sm:$0xff]  }
 0x1a0   :  { %4007 = vmatpush1.bf16.msra.mxu0 %v5997_v18  ;;  %5290 = vmatprep.subr.bf16.mxu1 %v6005_v44  ;;  %v6064_v18 = vld [vmem:[%s7941_s1 + $0xf60] ss:$12 sps:$4 sm:$0xff]  }
 0x1a1   :  { %4008 = vmatprep.subr.bf16.mxu0 %v6004_v43  ;;  %v6071_v43 = vld [vmem:[%s7941_s1 + $0xf7c] ss:$12 sps:$4 sm:$0xff]   ;;  %v6072_v44 = vld [vmem:[%s7941_s1 + $0xd40] ss:$12 sps:$4 sm:$0xff]  }
 0x1a2   :  { %4347 = vmatmul.mubr.bf16.vlgmr.msra.gmra.mrb[28].mxu1 %v7035_v51  ;;  %v6015_v51 = vld [vmem:[%s7941_s1 + $0xb78] ss:$12 sps:$4 sm:$0xff]  }
 0x1a3   :  { %5291 = vmatpush3.bf16.msra.mxu1 %v6006_v26  ;;  %4386 = vmatprep.mubr.bf16.mxu1 %v7050_v40  ;;  %v6020_v40 = vld [vmem:[%s7941_s1 + $0xb90] ss:$12 sps:$4 sm:$0xff]   ;;  %v6073_v26 = vld [vmem:[%s7941_s1 + $0xc80] ss:$12 sps:$4 sm:$0xff]  }
 0x1a4   :  { %4009 = vmatpush1.bf16.msra.mxu0 %v6002_v45  ;;  %5292 = vmatprep.subr.bf16.mxu1 %v6010_v47  ;;  %v6069_v45 = vld [vmem:[%s7941_s1 + $0xf78] ss:$12 sps:$4 sm:$0xff]  }
 0x1a5   :  { %4010 = vmatprep.subr.bf16.mxu0 %v6009_v46  ;;  %v6076_v46 = vld [vmem:[%s7941_s1 + $0xf94] ss:$12 sps:$4 sm:$0xff]   ;;  %v6077_v47 = vld [vmem:[%s7941_s1 + $0xd58] ss:$12 sps:$4 sm:$0xff]  }
 0x1a7   :  { %5293 = vmatpush3.bf16.msra.mxu1 %v6011_v48 }
 0x1a8   :  { %4011 = vmatpush1.bf16.msra.mxu0 %v6007_v49  ;;  %5294 = vmatprep.subr.bf16.mxu1 %v6015_v51 }
 0x1a9   :  { %4012 = vmatprep.subr.bf16.mxu0 %v6014_v50 }
 0x1ab   :  { %5295 = vmatpush3.bf16.msra.mxu1 %v6016_v55  ;;  %v6078_v55 = vld [vmem:[%s7941_s1 + $0xc98] ss:$12 sps:$4 sm:$0xff]  }
 0x1ac   :  { %4013 = vmatpush1.bf16.msra.mxu0 %v6012_v54  ;;  %5296 = vmatprep.subr.bf16.mxu1 %v6020_v40  ;;  %v6074_v54 = vld [vmem:[%s7941_s1 + $0xf90] ss:$12 sps:$4 sm:$0xff]   ;;  %v6081_v40 = vld [vmem:[%s7941_s1 + $0xfac] ss:$12 sps:$4 sm:$0xff]  }
 0x1ad   :  { %4014 = vmatprep.subr.bf16.mxu0 %v6019_v56 }
 0x1af   :  { %5297 = vmatpush3.bf16.msra.mxu1 %v6021_v58 }
 0x1b0   :  { %4015 = vmatpush1.bf16.msra.mxu0 %v6017_v57  ;;  %5298 = vmatprep.subr.bf16.mxu1 %v6025_v59  ;;  %v6082_v57 = vld [vmem:[%s7941_s1 + $0xd70] ss:$12 sps:$4 sm:$0xff]  }
 0x1b1   :  { %4016 = vmatprep.subr.bf16.mxu0 %v6024_v16  ;;  %v6079_v16 = vld [vmem:[%s7941_s1 + $0xfa8] ss:$12 sps:$4 sm:$0xff]   ;;  %v6083_v59 = vld [vmem:[%s7941_s1 + $0xcb0] ss:$12 sps:$4 sm:$0xff]  }
 0x1b3   :  { %5299 = vmatpush3.bf16.msra.mxu1 %v6026_v61  ;;  %v6087_v61 = vld [vmem:[%s7941_s1 + $0xe48] ss:$12 sps:$4 sm:$0xff]  }
 0x1b4   :  { %4017 = vmatpush1.bf16.msra.mxu0 %v6022_v60  ;;  %5300 = vmatprep.subr.bf16.mxu1 %v6030_v0  ;;  %v6086_v60 = vld [vmem:[%s7941_s1 + $0xfc4] ss:$12 sps:$4 sm:$0xff]   ;;  %v6088_v0 = vld [vmem:[%s7941_s1 + $0xd88] ss:$12 sps:$4 sm:$0xff]  }
 0x1b5   :  { %4018 = vmatprep.subr.bf16.mxu0 %v6029_v63  ;;  %v5152_v8 = vpop.f32.mrb[4].mxu1  ;;  %v6084_v63 = vld [vmem:[%s7941_s1 + $0xfc0] ss:$12 sps:$4 sm:$0xff]  }
 0x1b6   :  { %v5153_v38 = vpop.f32.mrb[5].mxu1 }
 0x1b7   :  { %v7640_v25 = vadd.f32 %v5153_v38, %v5152_v8  ;;  %v5155_v9 = vpop.f32.mrb[6].mxu1  ;;  %5301 = vmatpush3.bf16.msra.mxu1 %v6031_v2  ;;  %v6092_v2 = vld [vmem:[%s7941_s1 + $0xe60] ss:$12 sps:$4 sm:$0xff]   ;;  %v6094_v38 = vld [vmem:[%s7941_s1 + $0xff0] ss:$12 sps:$4 sm:$0xff]  }
 0x1b8   :  { %4019 = vmatpush1.bf16.msra.mxu0 %v6027_v1  ;;  %v5156_v13 = vpop.f32.mrb[7].mxu1  ;;  %5302 = vmatprep.subr.bf16.mxu1 %v6035_v7  ;;  %v6091_v1 = vld [vmem:[%s7941_s1 + $0xfdc] ss:$12 sps:$4 sm:$0xff]   ;;  %v6093_v7 = vld [vmem:[%s7941_s1 + $0xda0] ss:$12 sps:$4 sm:$0xff]  }
 0x1b9   :  { %4020 = vmatprep.subr.bf16.mxu0 %v6034_v3  ;;  %v6089_v3 = vld [vmem:[%s7941_s1 + $0xfd8] ss:$12 sps:$4 sm:$0xff]   ;;  %v6096_v8 = vld [vmem:[%s7941_s1 + $0xff4] ss:$12 sps:$4 sm:$0xff]  }
 0x1ba   :  { %v6101_v9 = vld [vmem:[%s7941_s1 + $0x100c] ss:$12 sps:$4 sm:$0xff]   ;;  %v6106_v13 = vld [vmem:[%s7941_s1 + $0x1024] ss:$12 sps:$4 sm:$0xff]  }
 0x1bb   :  { %5303 = vmatpush3.bf16.msra.mxu1 %v6036_v12  ;;  %v6103_v12 = vld [vmem:[%s7941_s1 + $0xdd0] ss:$12 sps:$4 sm:$0xff]  }
 0x1bc   :  { %4021 = vmatpush1.bf16.msra.mxu0 %v6032_v11  ;;  %5304 = vmatprep.subr.bf16.mxu1 %v6040_v14  ;;  %v6099_v11 = vld [vmem:[%s7941_s1 + $0x1008] ss:$12 sps:$4 sm:$0xff]   ;;  %v6104_v14 = vld [vmem:[%s7941_s1 + $0x1020] ss:$12 sps:$4 sm:$0xff]  }
 0x1bd   :  { %4022 = vmatprep.subr.bf16.mxu0 %v6039_v37  ;;  %v6107_v37 = vld [vmem:[%s7941_s1 + $0xea8] ss:$12 sps:$4 sm:$0xff]  }
 0x1bf   :  { %5305 = vmatpush3.bf16.msra.mxu1 %v6041_v42  ;;  %v6111_v42 = vld [vmem:[%s7941_s1 + $0x103c] ss:$12 sps:$4 sm:$0xff]  }
 0x1c0   :  { %4023 = vmatpush1.bf16.msra.mxu0 %v6037_v15  ;;  %5312 = vmatprep.subr.bf16.mxu1 %v6047_v6  ;;  %v6108_v15 = vld [vmem:[%s7941_s1 + $0xde8] ss:$12 sps:$4 sm:$0xff]   ;;  %v6109_v6 = vld [vmem:[%s7941_s1 + $0x1038] ss:$12 sps:$4 sm:$0xff]  }
 0x1c1   :  { %4033 = vmatprep.subr.bf16.mxu0 %v6046_v17  ;;  %v6112_v17 = vld [vmem:[%s7941_s1 + $0xec0] ss:$12 sps:$4 sm:$0xff]  }
 0x1c2   :  { %4387 = vmatmul.mubr.bf16.vlgmr.msra.gmra.mrb[32].mxu1 %v7246_v62  ;;  %v6057_v62 = vld [vmem:[%s7941_s1 + $0xcf8] ss:$12 sps:$4 sm:$0xff]  }
 0x1c3   :  { %4025 = vmatmul.mubr.bf16.vlgmr.msra.gmra.mrb[0].mxu0 %v7668_v19  ;;  %5313 = vmatpush3.bf16.msra.mxu1 %v6048_v21  ;;  %v6116_v21 = vld [vmem:[%s7941_s1 + $0x1054] ss:$12 sps:$4 sm:$0xff]  }
 0x1c4   :  { %4034 = vmatpush1.bf16.msra.mxu0 %v6044_v35  ;;  %5314 = vmatprep.subr.bf16.mxu1 %v6052_v24  ;;  %v6113_v35 = vld [vmem:[%s7941_s1 + $0xe00] ss:$12 sps:$4 sm:$0xff]  }
 0x1c5   :  { %4035 = vmatprep.subr.bf16.mxu0 %v6051_v5  ;;  %4426 = vmatprep.mubr.bf16.mxu1 %v7261_v52  ;;  %v6062_v52 = vld [vmem:[%s7941_s1 + $0xd10] ss:$12 sps:$4 sm:$0xff]   ;;  %v6117_v5 = vld [vmem:[%s7941_s1 + $0xed8] ss:$12 sps:$4 sm:$0xff]  }
 0x1c6   :  { %4065 = vmatprep.mubr.bf16.mxu0 %v7689_v27 }
 0x1c7   :  { %5315 = vmatpush3.bf16.msra.mxu1 %v6053_v29 }
 0x1c8   :  { %4036 = vmatpush1.bf16.msra.mxu0 %v6049_v28  ;;  %5316 = vmatprep.subr.bf16.mxu1 %v6057_v62  ;;  %v6114_v62 = vld [vmem:[%s7941_s1 + $0x1050] ss:$12 sps:$4 sm:$0xff]  }
 0x1c9   :  { %4037 = vmatprep.subr.bf16.mxu0 %v6056_v30 }
 0x1cb   :  { %5317 = vmatpush3.bf16.msra.mxu1 %v6058_v32 }
 0x1cc   :  { %4038 = vmatpush1.bf16.msra.mxu0 %v6054_v31  ;;  %5318 = vmatprep.subr.bf16.mxu1 %v6062_v52  ;;  %v6118_v31 = vld [vmem:[%s7941_s1 + $0xe18] ss:$12 sps:$4 sm:$0xff]   ;;  %v6122_v52 = vld [vmem:[%s7941_s1 + $0xef0] ss:$12 sps:$4 sm:$0xff]  }
 0x1cd   :  { %4039 = vmatprep.subr.bf16.mxu0 %v6061_v33  ;;  %v6121_v33 = vld [vmem:[%s7941_s1 + $0x106c] ss:$12 sps:$4 sm:$0xff]  }
 0x1cf   :  { %5319 = vmatpush3.bf16.msra.mxu1 %v6063_v39  ;;  %v6119_v39 = vld [vmem:[%s7941_s1 + $0x1068] ss:$12 sps:$4 sm:$0xff]  }
 0x1d0   :  { %4040 = vmatpush1.bf16.msra.mxu0 %v6059_v34  ;;  %5320 = vmatprep.subr.bf16.mxu1 %v6067_v23  ;;  %v6126_v23 = vld [vmem:[%s7941_s1 + $0xfc8] ss:$12 sps:$4 sm:$0xff]  }
 0x1d1   :  { %4041 = vmatprep.subr.bf16.mxu0 %v6066_v22  ;;  %v6123_v22 = vld [vmem:[%s7941_s1 + $0xe30] ss:$12 sps:$4 sm:$0xff]  }
 0x1d3   :  { %5321 = vmatpush3.bf16.msra.mxu1 %v6068_v41  ;;  %v6127_v41 = vld [vmem:[%s7941_s1 + $0xf08] ss:$12 sps:$4 sm:$0xff]  }
 0x1d4   :  { %4042 = vmatpush1.bf16.msra.mxu0 %v6064_v18  ;;  %5322 = vmatprep.subr.bf16.mxu1 %v6072_v44  ;;  %v4606_v18 = vcombine.low %v7673_v20, %v7673_v20  ;;  %v6129_v44 = vld [vmem:[%s7941_s1 + $0xf20] ss:$12 sps:$4 sm:$0xff]   ;;  %v6130_v20 = vld [vmem:[%s7941_s1 + $0xff8] ss:$12 sps:$4 sm:$0xff]  }
 0x1d5   :  { %4043 = vmatprep.subr.bf16.mxu0 %v6071_v43  ;;  %v5174_v49 = vpop.f32.mrb[8].mxu1  ;;  %v6128_v43 = vld [vmem:[%s7941_s1 + $0xfe0] ss:$12 sps:$4 sm:$0xff]  }
 0x1d6   :  { %v5175_v48 = vpop.f32.mrb[9].mxu1 }
 0x1d7   :  { %v5176_v50 = vadd.f32 %v5175_v48, %v5174_v49  ;;  %v5177_v51 = vpop.f32.mrb[10].mxu1  ;;  %5323 = vmatpush3.bf16.msra.mxu1 %v6073_v26  ;;  %v6134_v26 = vld [vmem:[%s7941_s1 + $0x1028] ss:$12 sps:$4 sm:$0xff]   ;;  %v6137_v49 = vld [vmem:[%s7941_s1 + $0xf80] ss:$12 sps:$4 sm:$0xff]  }
 0x1d8   :  { %4044 = vmatpush1.bf16.msra.mxu0 %v6069_v45  ;;  %v5178_v56 = vpop.f32.mrb[11].mxu1  ;;  %5324 = vmatprep.subr.bf16.mxu1 %v6077_v47  ;;  %v6131_v45 = vld [vmem:[%s7941_s1 + $0xf38] ss:$12 sps:$4 sm:$0xff]   ;;  %v6136_v47 = vld [vmem:[%s7941_s1 + $0x1040] ss:$12 sps:$4 sm:$0xff]  }
 0x1d9   :  { %4045 = vmatprep.subr.bf16.mxu0 %v6076_v46  ;;  %v7768_v58 = vadd.f32 %v5176_v50, %v7640_v25  ;;  %v6098_v25 = vld [vmem:[%s7941_s1 + $0xdb8] ss:$12 sps:$4 sm:$0xff]   ;;  %v6135_v46 = vld [vmem:[%s7941_s1 + $0xf68] ss:$12 sps:$4 sm:$0xff]  }
 0x1da   :  { %v6138_v48 = vld [vmem:[%s7941_s1 + $0x1058] ss:$12 sps:$4 sm:$0xff]  }
 0x1db   :  { %5325 = vmatpush3.bf16.msra.mxu1 %v6078_v55  ;;  %v6139_v56 = vld [vmem:[%s7941_s1 + $0xf98] ss:$12 sps:$4 sm:$0xff]  }
 0x1dc   :  { %4046 = vmatpush1.bf16.msra.mxu0 %v6074_v54  ;;  %5326 = vmatprep.subr.bf16.mxu1 %v6082_v57  ;;  %v6140_v57 = vld [vmem:[%s7941_s1 + $0x1070] ss:$12 sps:$4 sm:$0xff]  }
 0x1dd   :  { %4047 = vmatprep.subr.bf16.mxu0 %v6081_v40 }
 0x1df   :  { %5327 = vmatpush3.bf16.msra.mxu1 %v6083_v59 }
 0x1e0   :  { %4048 = vmatpush1.bf16.msra.mxu0 %v6079_v16  ;;  %5334 = vmatprep.subr.bf16.mxu1 %v6087_v61  ;;  %v6141_v16 = vld [vmem:[%s7941_s1 + $0xfb0] ss:$12 sps:$4 sm:$0xff]  }
 0x1e1   :  { %4049 = vmatprep.subr.bf16.mxu0 %v6086_v60 }
 0x1e2   :  { %4427 = vmatmul.mubr.bf16.vlgmr.msra.gmra.mrb[36].mxu1 %v7454_v4  ;;  %v6097_v4 = vld [vmem:[%s7941_s1 + $0xe78] ss:$12 sps:$4 sm:$0xff]  }
 0x1e3   :  { %5335 = vmatpush3.bf16.msra.mxu1 %v6088_v0  ;;  %4466 = vmatprep.mubr.bf16.mxu1 %v7475_v10  ;;  %v6102_v10 = vld [vmem:[%s7941_s1 + $0xe90] ss:$12 sps:$4 sm:$0xff]  }
 0x1e4   :  { %4050 = vmatpush1.bf16.msra.mxu0 %v6084_v63  ;;  %5336 = vmatprep.subr.bf16.mxu1 %v6092_v2 }
 0x1e5   :  { %4051 = vmatprep.subr.bf16.mxu0 %v6091_v1 }
 0x1e7   :  { %5337 = vmatpush3.bf16.msra.mxu1 %v6093_v7 }
 0x1e8   :  { %4052 = vmatpush1.bf16.msra.mxu0 %v6089_v3  ;;  %5338 = vmatprep.subr.bf16.mxu1 %v6097_v4 }
 0x1e9   :  { %4053 = vmatprep.subr.bf16.mxu0 %v6096_v8 }
 0x1eb   :  { %5339 = vmatpush3.bf16.msra.mxu1 %v6098_v25 }
 0x1ec   :  { %4054 = vmatpush1.bf16.msra.mxu0 %v6094_v38  ;;  %5340 = vmatprep.subr.bf16.mxu1 %v6102_v10 }
 0x1ed   :  { %4055 = vmatprep.subr.bf16.mxu0 %v6101_v9 }
 0x1ef   :  { %5341 = vmatpush3.bf16.msra.mxu1 %v6103_v12 }
 0x1f0   :  { %4056 = vmatpush1.bf16.msra.mxu0 %v6099_v11  ;;  %5342 = vmatprep.subr.bf16.mxu1 %v6107_v37 }
 0x1f1   :  { %4057 = vmatprep.subr.bf16.mxu0 %v6106_v13 }
 0x1f3   :  { %5343 = vmatpush3.bf16.msra.mxu1 %v6108_v15 }
 0x1f4   :  { %4058 = vmatpush1.bf16.msra.mxu0 %v6104_v14  ;;  %5344 = vmatprep.subr.bf16.mxu1 %v6112_v17 }
 0x1f5   :  { %4059 = vmatprep.subr.bf16.mxu0 %v6111_v42  ;;  %v5196_v24 = vpop.f32.mrb[12].mxu1 }
 0x1f6   :  { %v5197_v28 = vpop.f32.mrb[13].mxu1 }
 0x1f7   :  { %v5198_v29 = vadd.f32 %v5197_v28, %v5196_v24  ;;  %v5199_v30 = vpop.f32.mrb[14].mxu1  ;;  %5345 = vmatpush3.bf16.msra.mxu1 %v6113_v35 }
 0x1f8   :  { %4060 = vmatpush1.bf16.msra.mxu0 %v6109_v6  ;;  %v5200_v32 = vpop.f32.mrb[15].mxu1  ;;  %5346 = vmatprep.subr.bf16.mxu1 %v6117_v5  ;;  %v4516_v30 = vlaneseq }
 0x1f9   :  { %4061 = vmatprep.subr.bf16.mxu0 %v6116_v21  ;;  %v4189_v34 = vadd.f32 %v5198_v29, %v7768_v58  ;;  %v4514_v32 = vld [vmem:[%s7943_s2] sm:$0x3f] }
 0x1fb   :  { %5347 = vmatpush3.bf16.msra.mxu1 %v6118_v31 }
 0x1fc   :  { %4062 = vmatpush1.bf16.msra.mxu0 %v6114_v62  ;;  %5348 = vmatprep.subr.bf16.mxu1 %v6122_v52  ;;  %v4517_v62 = vshrl.u32 %v4516_v30, 7 }
 0x1fd   :  { %4063 = vmatprep.subr.bf16.mxu0 %v6121_v33 }
 0x1fe   :  { %v4518_v31 = vsub.s32 0, %v4517_v62  ;;  %v4522_v33 = vsub.s32 2, %v4517_v62  ;;  %v4548_v52 = vsub.s32 1, %v4517_v62 }
 0x1ff   :  { %5349 = vmatpush3.bf16.msra.mxu1 %v6123_v22 }
 0x200   :  { %4064 = vmatpush1.bf16.msra.mxu0 %v6119_v39  ;;  %5356 = vmatprep.subr.bf16.mxu1 %v6126_v23  ;;  %v4519_v39 = vrot.slane %v4514_v32, %v4518_v31  ;;  %v4523_v22 = vrot.slane %v4514_v32, %v4522_v33  ;;  %v4549_v23 = vrot.slane %v4514_v32, %v4548_v52 }
 0x202   :  { %4467 = vmatmul.mubr.bf16.vlgmr.msra.gmra.mrb[40].mxu1 %v7668_v19  ;;  %v6132_v19 = vld [vmem:[%s7941_s1 + $0x1010] ss:$12 sps:$4 sm:$0xff]  }
 0x203   :  { %4066 = vmatmul.mubr.bf16.vlgmr.msra.gmra.mrb[0].mxu0 %v4606_v18  ;;  %5357 = vmatpush3.bf16.msra.mxu1 %v6127_v41  ;;  %v4534_v41 = vrot.slane %v4519_v39, %v4518_v31 }
 0x204   :  { %4506 = vmatprep.mubr.bf16.mxu1 %v7689_v27  ;;  %5358 = vmatprep.subr.bf16.mxu1 %v6128_v43  ;;  %v6133_v27 = vld [vmem:[%s7941_s1 + $0xf50] ss:$12 sps:$4 sm:$0xff]  }
 0x207   :  { %5359 = vmatpush3.bf16.msra.mxu1 %v6129_v44 }
 0x208   :  { %5360 = vmatprep.subr.bf16.mxu1 %v6130_v20  ;;  %v4538_v20 = vrot.slane %v4523_v22, %v4518_v31 }
 0x20b   :  { %5361 = vmatpush3.bf16.msra.mxu1 %v6131_v45 }
 0x20c   :  { %5362 = vmatprep.subr.bf16.mxu1 %v6132_v19  ;;  %v4564_v19 = vrot.slane %v4549_v23, %v4548_v52 }
 0x20f   :  { %5363 = vmatpush3.bf16.msra.mxu1 %v6133_v27 }
 0x210   :  { %5364 = vmatprep.subr.bf16.mxu1 %v6134_v26 }
 0x213   :  { %5365 = vmatpush3.bf16.msra.mxu1 %v6135_v46 }
 0x214   :  { %5366 = vmatprep.subr.bf16.mxu1 %v6136_v47 }
 0x215   :  { %v5218_v50 = vpop.f32.mrb[16].mxu1 }
 0x216   :  { %v5219_v51 = vpop.f32.mrb[17].mxu1 }
 0x217   :  { %v5220_v54 = vadd.f32 %v5219_v51, %v5218_v50  ;;  %v5221_v55 = vpop.f32.mrb[18].mxu1  ;;  %5367 = vmatpush3.bf16.msra.mxu1 %v6137_v49 }
 0x218   :  { %v5222_v40 = vpop.f32.mrb[19].mxu1  ;;  %5368 = vmatprep.subr.bf16.mxu1 %v6138_v48 }
 0x219   :  { %v4229_v58 = vadd.f32 %v5220_v54, %v4189_v34  ;;  %v4552_v34 = vsub.s32 3, %v4517_v62 }
 0x21b   :  { %5369 = vmatpush3.bf16.msra.mxu1 %v6139_v56 }
 0x21c   :  { %5370 = vmatprep.subr.bf16.mxu1 %v6140_v57 }
 0x21f   :  { %5371 = vmatpush3.bf16.msra.mxu1 %v6141_v16 }
 0x222   :  { %4507 = vmatmul.mubr.bf16.vlgmr.msra.gmra.mrb[44].mxu1 %v4606_v18  ;;  %v4553_v18 = vrot.slane %v4514_v32, %v4552_v34 }
 0x224   :  { %v4568_v47 = vrot.slane %v4553_v18, %v4548_v52 }
 0x235   :  { %v5240_v59 = vpop.f32.mrb[20].mxu1 }
 0x236   :  { %v5241_v60 = vpop.f32.mrb[21].mxu1 }
 0x237   :  { %v5242_v61 = vadd.f32 %v5241_v60, %v5240_v59  ;;  %v5243_v63 = vpop.f32.mrb[22].mxu1 }
 0x238   :  { %v5244_v0 = vpop.f32.mrb[23].mxu1 }
 0x239   :  { %v4269_v1 = vadd.f32 %v5242_v61, %v4229_v58 }
 0x255   :  { %v5262_v2 = vpop.f32.mrb[24].mxu1 }
 0x256   :  { %v5263_v3 = vpop.f32.mrb[25].mxu1 }
 0x257   :  { %v5264_v7 = vadd.f32 %v5263_v3, %v5262_v2  ;;  %v5265_v8 = vpop.f32.mrb[26].mxu1 }
 0x258   :  { %v5266_v4 = vpop.f32.mrb[27].mxu1 }
 0x259   :  { %v4309_v38 = vadd.f32 %v5264_v7, %v4269_v1 }
 0x275   :  { %v5284_v25 = vpop.f32.mrb[28].mxu1 }
 0x276   :  { %v5285_v9 = vpop.f32.mrb[29].mxu1 }
 0x277   :  { %v5286_v10 = vadd.f32 %v5285_v9, %v5284_v25  ;;  %v5287_v11 = vpop.f32.mrb[30].mxu1 }
 0x278   :  { %v5288_v12 = vpop.f32.mrb[31].mxu1 }
 0x279   :  { %v4349_v13 = vadd.f32 %v5286_v10, %v4309_v38 }
 0x295   :  { %v5306_v37 = vpop.f32.mrb[32].mxu1 }
 0x296   :  { %v5307_v14 = vpop.f32.mrb[33].mxu1 }
 0x297   :  { %v5308_v15 = vadd.f32 %v5307_v14, %v5306_v37  ;;  %v5309_v42 = vpop.f32.mrb[34].mxu1 }
 0x298   :  { %v5310_v17 = vpop.f32.mrb[35].mxu1 }
 0x299   :  { %v4389_v6 = vadd.f32 %v5308_v15, %v4349_v13 }
 0x2b5   :  { %v5328_v35 = vpop.f32.mrb[36].mxu1 }
 0x2b6   :  { %v5329_v21 = vpop.f32.mrb[37].mxu1 }
 0x2b7   :  { %v5330_v5 = vadd.f32 %v5329_v21, %v5328_v35  ;;  %v5331_v24 = vpop.f32.mrb[38].mxu1 }
 0x2b8   :  { %v5332_v28 = vpop.f32.mrb[39].mxu1 }
 0x2b9   :  { %v4429_v29 = vadd.f32 %v5330_v5, %v4389_v6 }
 0x2d5   :  { %v5350_v44 = vpop.f32.mrb[40].mxu1 }
 0x2d6   :  { %v4067_v43 = vpop.f32.mrb[0].mxu0  ;;  %v5351_v26 = vpop.f32.mrb[41].mxu1 }
 0x2d7   :  { %v5378_v45 = vadd.f32 %v4067_v43, %v7538_v36  ;;  %v4069_v27 = vpop.f32.mrb[1].mxu0  ;;  %v5352_v49 = vadd.f32 %v5351_v26, %v5350_v44  ;;  %v5353_v50 = vpop.f32.mrb[42].mxu1  ;;  %v4526_v36 = vsub.s32 4, %v4517_v62 }
 0x2d8   :  { %v5379_v46 = vadd.f32 %v4069_v27, %v7546_v53  ;;  %v4071_v48 = vpop.f32.mrb[2].mxu0  ;;  %v5354_v55 = vpop.f32.mrb[43].mxu1  ;;  %v4556_v53 = vsub.s32 5, %v4517_v62 }
 0x2d9   :  { %v4543_v51 = vmul.f32 %v5378_v45, %v4534_v41  ;;  %v4072_v54 = vpop.f32.mrb[3].mxu0  ;;  %v4469_v40 = vadd.f32 %v5352_v49, %v4429_v29  ;;  %v4527_v60 = vrot.slane %v4514_v32, %v4526_v36 }
 0x2da   :  { %v4544_v56 = vmul.f32 %v5379_v46, %v4538_v20  ;;  %v4557_v63 = vrot.slane %v4514_v32, %v4556_v53 }
 0x2db   :  { %v4573_v57 = vadd.f32 %v4564_v19, %v4543_v51  ;;  %v4542_v2 = vrot.slane %v4527_v60, %v4518_v31 }
 0x2dc   :  { %v4574_v58 = vadd.f32 %v4568_v47, %v4544_v56  ;;  %v4572_v4 = vrot.slane %v4557_v63, %v4548_v52 }
 0x2dd   :  { %v4576_v16 = vmax.f32 %v4573_v57, 0.0 }
 0x2de   :  { %v4577_v59 = vmax.f32 %v4574_v58, 0.0 }
 0x2df   :  { %4579 = vst [vmem:[%s7944_s3] sm:$0xff] %v4576_v16 }
 0x2e0   :  { %4580 = vst [vmem:[%s7944_s3 + $0x8] sm:$0xff] %v4577_v59 }
 0x2f5   :  { %v5372_v61 = vpop.f32.mrb[44].mxu1 }
 0x2f6   :  { %v5373_v0 = vpop.f32.mrb[45].mxu1 }
 0x2f7   :  { %v5374_v1 = vadd.f32 %v5373_v0, %v5372_v61  ;;  %v5375_v3 = vpop.f32.mrb[46].mxu1 }
 0x2f8   :  { %v5376_v7 = vpop.f32.mrb[47].mxu1 }
 0x2f9   :  { %v4509_v8 = vadd.f32 %v5374_v1, %v4469_v40 }
 0x2fb   :  { %v4545_v38 = vmul.f32 %v4542_v2, %v4509_v8 }
 0x2fd   :  { %v4575_v25 = vadd.f32 %v4572_v4, %v4545_v38 }
 0x2ff   :  { %v4578_v9 = vmax.f32 %v4575_v25, 0.0 }
 0x301   :  { %4581 = vst [vmem:[%s7944_s3 + $0x10] sm:$0xff] %v4578_v9 }

</bundles_post_ra>
